<compile_context>
chip_gen: v7x
topology: tpu7x:2x2x1
jax: 0.10.0
libtpu: 0.0.40
codegen_flags: <defaults>
</compile_context>

<pallas_src>
import functools
import numpy as np
import jax
import jax.numpy as jnp
from jax.experimental import pallas as pl
from jax.experimental.pallas import tpu as pltpu


# ----------------------------- shared helpers ------------------------------

def _mm(a, b):
    return jnp.dot(a, b, preferred_element_type=jnp.float32)


def _gru_step(xproj_t, h, whh, bhh, H):
    """One GRU step. xproj_t: (B, 3H) = x@Wih + bih (precomputed); whh: (H, 3H)."""
    hp = _mm(h, whh) + bhh
    r = jax.nn.sigmoid(xproj_t[:, :H] + hp[:, :H])
    z = jax.nn.sigmoid(xproj_t[:, H:2 * H] + hp[:, H:2 * H])
    n = jnp.tanh(xproj_t[:, 2 * H:] + r * hp[:, 2 * H:])
    return (1.0 - z) * n + z * h


# ------------------------------ fused kernel --------------------------------

def dmn_fused_kernel(num_hop,
                     src_ref, q_ref,
                     wih_f_ref, whh_f_ref, bih_f_ref, bhh_f_ref,
                     wih_b_ref, whh_b_ref, bih_b_ref, bhh_b_ref,
                     q_wih_ref, q_whh_ref, q_bih_ref, q_bhh_ref,
                     z1_w_ref, z1_b_ref, z2_w_ref, z2_b_ref,
                     agru_fw_ref, agru_fb_ref, agru_hw_ref, agru_hb_ref,
                     nm_w_ref, nm_b_ref, zz_w_ref, zz_b_ref,
                     out_ref,
                     fwd_scr, bwd_scr):
    B, S, H = src_ref.shape
    _, Sq, _ = q_ref.shape

    # ---------------- InputModule: bidirectional GRU, facts = fwd + bwd -----
    src2 = src_ref[...].reshape(B * S, H)
    # Hoisted input-side projections: one fat matmul per direction.
    xf = (_mm(src2, wih_f_ref[...]) + bih_f_ref[...]).reshape(B, S, 3 * H)
    xb = (_mm(src2, wih_b_ref[...]) + bih_b_ref[...]).reshape(B, S, 3 * H)
    whh_f, bhh_f = whh_f_ref[...], bhh_f_ref[...]
    whh_b, bhh_b = whh_b_ref[...], bhh_b_ref[...]

    h_f = jnp.zeros((B, H), jnp.float32)
    h_b = jnp.zeros((B, H), jnp.float32)
    for t in range(S):                       # fwd & bwd interleaved: half the serial depth
        h_f = _gru_step(xf[:, t, :], h_f, whh_f, bhh_f, H)
        h_b = _gru_step(xb[:, S - 1 - t, :], h_b, whh_b, bhh_b, H)
        fwd_scr[:, t, :] = h_f               # write-as-you-go: bounded live ranges
        bwd_scr[:, S - 1 - t, :] = h_b
    facts = fwd_scr[...] + bwd_scr[...]      # (B, S, H), stays in VMEM

    # ---------------- QuestionModule: unidirectional GRU, final hidden ------
    qx = (_mm(q_ref[...].reshape(B * Sq, H), q_wih_ref[...])
          + q_bih_ref[...]).reshape(B, Sq, 3 * H)
    q_whh, q_bhh = q_whh_ref[...], q_bhh_ref[...]
    h_q = jnp.zeros((B, H), jnp.float32)
    for t in range(Sq):
        h_q = _gru_step(qx[:, t, :], h_q, q_whh, q_bhh, H)
    q_vec = h_q                              # (B, H)

    # ---------------- EpisodicMemory hops ------------------------------------
    # Fact-side AttentionGRU projections are hop-invariant -> hoist out of the hop loop.
    fact_proj = (_mm(facts.reshape(B * S, H), agru_fw_ref[...])
                 + agru_fb_ref[...]).reshape(B, S, 2 * H)
    agru_hw, agru_hb = agru_hw_ref[...], agru_hb_ref[...]
    z1_w, z1_b = z1_w_ref[...], z1_b_ref[...]
    z2_w, z2_b = z2_w_ref[...], z2_b_ref[...]
    nm_w, nm_b = nm_w_ref[...], nm_b_ref[...]

    q3 = q_vec[:, None, :]                   # (B, 1, H)
    memory = q_vec
    for _ in range(num_hop):
        m3 = memory[:, None, :]
        # Gates: one (B*S, 4H) @ (4H, H) matmul (K = 4H = 128).
        feat = jnp.concatenate(
            [facts * q3, facts * m3, jnp.abs(facts - q3), jnp.abs(facts - m3)],
            axis=-1).reshape(B * S, 4 * H)
        g_lin = jnp.tanh(_mm(feat, z1_w) + z1_b)                     # (B*S, H)
        scores = jnp.sum(g_lin.reshape(B, S, H) * z2_w, axis=-1) + z2_b   # (B, S)
        G = jax.nn.softmax(scores, axis=-1)

        # AttentionGRU over sentences: one (B,H)@(H,2H) matmul per step.
        C = jnp.zeros((B, H), jnp.float32)
        for sid in range(S):
            hid = _mm(C, agru_hw) + agru_hb                          # (B, 2H)
            r = jax.nn.sigmoid(fact_proj[:, sid, :H] + hid[:, :H])
            h_t = jnp.tanh(fact_proj[:, sid, H:] + r * hid[:, H:])
            g = G[:, sid:sid + 1]                                    # (B, 1)
            C = g * h_t + (1.0 - g) * C

        # next_mem = relu(cat([prevM, C, question]) @ (3H, H) + b)
        memory = jax.nn.relu(
            _mm(jnp.concatenate([memory, C, q_vec], axis=-1), nm_w) + nm_b)

    # ---------------- AnswerModule: cat([memory, question]) @ (2H, O) --------
    out_ref[...] = (_mm(jnp.concatenate([memory, q_vec], axis=-1), zz_w_ref[...])
                    + zz_b_ref[...])


# ------------------------------ host wrapper --------------------------------

def dmn_encoder_forward(src, question, p, num_hop):
    """Full DMNEncoder forward (isEncoder=False path) as a single fused Pallas kernel."""
    B, S, H = src.shape
    O = p['z_w'].shape[-1]
    vmem = pl.BlockSpec(memory_space=pltpu.MemorySpace.VMEM)
    kernel = functools.partial(dmn_fused_kernel, num_hop)
    return pl.pallas_call(
        kernel,
        out_shape=jax.ShapeDtypeStruct((B, O), jnp.float32),
        in_specs=[vmem] * 26,
        out_specs=vmem,
        scratch_shapes=[pltpu.VMEM((B, S, H), jnp.float32),   # fwd hidden states
                        pltpu.VMEM((B, S, H), jnp.float32)],  # bwd hidden states
    )(src, question,
      p['wih_f'], p['whh_f'], p['bih_f'], p['bhh_f'],
      p['wih_b'], p['whh_b'], p['bih_b'], p['bhh_b'],
      p['q_wih'], p['q_whh'], p['q_bih'], p['q_bhh'],
      p['z1_w'], p['z1_b'], p['z2_w'], p['z2_b'],
      p['agru_fw'], p['agru_fb'], p['agru_hw'], p['agru_hb'],
      p['nm_w'], p['nm_b'], p['z_w'], p['z_b'])


# --------------------------- parameters & reference -------------------------

def _xavier(key, shape):
    fan_in, fan_out = shape[-2], shape[-1]
    std = float(np.sqrt(2.0 / (fan_in + fan_out)))
    return std * jax.random.normal(key, shape, dtype=jnp.float32)


def init_params(key, H, out_dim):
    keys = iter(jax.random.split(key, 40))
    small = lambda k, s: 0.01 * jax.random.normal(k, s, dtype=jnp.float32)
    p = {}
    for d in ('f', 'b'):                               # InputModule bidirectional GRU
        p[f'wih_{d}'] = _xavier(next(keys), (H, 3 * H))
        p[f'whh_{d}'] = _xavier(next(keys), (H, 3 * H))
        p[f'bih_{d}'] = small(next(keys), (1, 3 * H))
        p[f'bhh_{d}'] = small(next(keys), (1, 3 * H))
    p['q_wih'] = _xavier(next(keys), (H, 3 * H))       # QuestionModule GRU
    p['q_whh'] = _xavier(next(keys), (H, 3 * H))
    p['q_bih'] = small(next(keys), (1, 3 * H))
    p['q_bhh'] = small(next(keys), (1, 3 * H))
    p['z1_w'] = _xavier(next(keys), (4 * H, H))        # EpisodicMemory gates
    p['z1_b'] = small(next(keys), (1, H))
    p['z2_w'] = _xavier(next(keys), (1, H))
    p['z2_b'] = jnp.zeros((1, 1), jnp.float32)
    p['agru_fw'] = _xavier(next(keys), (H, 2 * H))     # [Wr | W]
    p['agru_fb'] = small(next(keys), (1, 2 * H))       # [bWr | bW]
    p['agru_hw'] = _xavier(next(keys), (H, 2 * H))     # [Ur | U]
    p['agru_hb'] = small(next(keys), (1, 2 * H))       # [bUr | bU]
    p['nm_w'] = _xavier(next(keys), (3 * H, H))        # next_mem on [prevM, C, q]
    p['nm_b'] = small(next(keys), (1, H))
    p['z_w'] = _xavier(next(keys), (2 * H, out_dim))   # AnswerModule on [memory, q]
    p['z_b'] = jnp.zeros((1, out_dim), jnp.float32)
    return p


def reference_forward(src, question, p, num_hop):
    """Pure-JAX reference with identical math (sanity check)."""
    HI = jax.lax.Precision.HIGHEST
    mm = lambda a, b: jnp.dot(a, b, precision=HI, preferred_element_type=jnp.float32)
    B, S, H = src.shape
    Sq = question.shape[1]

    def gru_cell(x, h, wih, whh, bih, bhh):
        xp = mm(x, wih) + bih
        hp = mm(h, whh) + bhh
        r = jax.nn.sigmoid(xp[:, :H] + hp[:, :H])
        z = jax.nn.sigmoid(xp[:, H:2 * H] + hp[:, H:2 * H])
        n = jnp.tanh(xp[:, 2 * H:] + r * hp[:, 2 * H:])
        return (1.0 - z) * n + z * h

    h = jnp.zeros((B, H), jnp.float32); fwd = []
    for t in range(S):
        h = gru_cell(src[:, t], h, p['wih_f'], p['whh_f'], p['bih_f'], p['bhh_f'])
        fwd.append(h)
    h = jnp.zeros((B, H), jnp.float32); bwd = [None] * S
    for t in range(S - 1, -1, -1):
        h = gru_cell(src[:, t], h, p['wih_b'], p['whh_b'], p['bih_b'], p['bhh_b'])
        bwd[t] = h
    facts = jnp.stack([fwd[t] + bwd[t] for t in range(S)], axis=1)

    h = jnp.zeros((B, H), jnp.float32)
    for t in range(Sq):
        h = gru_cell(question[:, t], h, p['q_wih'], p['q_whh'], p['q_bih'], p['q_bhh'])
    q = h

    memory = q
    for _ in range(num_hop):
        q3, m3 = q[:, None, :], memory[:, None, :]
        feat = jnp.concatenate([facts * q3, facts * m3,
                                jnp.abs(facts - q3), jnp.abs(facts - m3)], axis=-1)
        g_lin = jnp.tanh(mm(feat.reshape(B * S, 4 * H), p['z1_w']) + p['z1_b'])
        scores = jnp.sum(g_lin.reshape(B, S, H) * p['z2_w'], axis=-1) + p['z2_b']
        G = jax.nn.softmax(scores, axis=-1)
        C = jnp.zeros((B, H), jnp.float32)
        for sid in range(S):
            fp = mm(facts[:, sid], p['agru_fw']) + p['agru_fb']
            hp = mm(C, p['agru_hw']) + p['agru_hb']
            r = jax.nn.sigmoid(fp[:, :H] + hp[:, :H])
            ht = jnp.tanh(fp[:, H:] + r * hp[:, H:])
            g = G[:, sid:sid + 1]
            C = g * ht + (1.0 - g) * C
        memory = jax.nn.relu(
            mm(jnp.concatenate([memory, C, q], axis=-1), p['nm_w']) + p['nm_b'])
    return mm(jnp.concatenate([memory, q], axis=-1), p['z_w']) + p['z_b']


# ----------------------------------- main ------------------------------------

if __name__ == "__main__":
    B, S, Sq, H = 2, 8, 8, 32
    num_hop = 2
    out_dim = 2

    key = jax.random.PRNGKey(0)
    k_src, k_q, k_p = jax.random.split(key, 3)
    src = jax.random.normal(k_src, (B, S, H), dtype=jnp.float32)
    question = jax.random.normal(k_q, (B, Sq, H), dtype=jnp.float32)
    params = init_params(k_p, H, out_dim)

    out = jax.block_until_ready(dmn_encoder_forward(src, question, params, num_hop))
    assert out.shape == (B, out_dim)

    ref = jax.block_until_ready(reference_forward(src, question, params, num_hop))
    np.testing.assert_allclose(np.asarray(out), np.asarray(ref), rtol=1e-3, atol=1e-3)

    print("KERNEL_OK")
</pallas_src>

<mosaic_0001>
module attributes {stable_mosaic.version = 11 : i64} {
  func.func @dmn_fused_kernel(%arg0: memref<2x8x32xf32, #tpu.memory_space<vmem>>, %arg1: memref<2x8x32xf32, #tpu.memory_space<vmem>>, %arg2: memref<32x96xf32, #tpu.memory_space<vmem>>, %arg3: memref<32x96xf32, #tpu.memory_space<vmem>>, %arg4: memref<1x96xf32, #tpu.memory_space<vmem>>, %arg5: memref<1x96xf32, #tpu.memory_space<vmem>>, %arg6: memref<32x96xf32, #tpu.memory_space<vmem>>, %arg7: memref<32x96xf32, #tpu.memory_space<vmem>>, %arg8: memref<1x96xf32, #tpu.memory_space<vmem>>, %arg9: memref<1x96xf32, #tpu.memory_space<vmem>>, %arg10: memref<32x96xf32, #tpu.memory_space<vmem>>, %arg11: memref<32x96xf32, #tpu.memory_space<vmem>>, %arg12: memref<1x96xf32, #tpu.memory_space<vmem>>, %arg13: memref<1x96xf32, #tpu.memory_space<vmem>>, %arg14: memref<128x32xf32, #tpu.memory_space<vmem>>, %arg15: memref<1x32xf32, #tpu.memory_space<vmem>>, %arg16: memref<1x32xf32, #tpu.memory_space<vmem>>, %arg17: memref<1x1xf32, #tpu.memory_space<vmem>>, %arg18: memref<32x64xf32, #tpu.memory_space<vmem>>, %arg19: memref<1x64xf32, #tpu.memory_space<vmem>>, %arg20: memref<32x64xf32, #tpu.memory_space<vmem>>, %arg21: memref<1x64xf32, #tpu.memory_space<vmem>>, %arg22: memref<96x32xf32, #tpu.memory_space<vmem>>, %arg23: memref<1x32xf32, #tpu.memory_space<vmem>>, %arg24: memref<64x2xf32, #tpu.memory_space<vmem>>, %arg25: memref<1x2xf32, #tpu.memory_space<vmem>>, %arg26: memref<2x2xf32, #tpu.memory_space<vmem>>, %arg27: memref<2x8x32xf32, #tpu.memory_space<vmem>>, %arg28: memref<2x8x32xf32, #tpu.memory_space<vmem>>) attributes {dimension_semantics = [], scalar_prefetch = 0 : i64, scratch_operands = 2 : i64, tpu.core_type = #tpu.core_type<tc>} {
    %c0 = arith.constant 0 : index
    %c0_0 = arith.constant 0 : index
    %c0_1 = arith.constant 0 : index
    %0 = vector.load %arg0[%c0, %c0_0, %c0_1] : memref<2x8x32xf32, #tpu.memory_space<vmem>>, vector<2x8x32xf32>
    %1 = vector.shape_cast %0 : vector<2x8x32xf32> to vector<16x32xf32>
    %c0_2 = arith.constant 0 : index
    %c0_3 = arith.constant 0 : index
    %2 = vector.load %arg2[%c0_2, %c0_3] : memref<32x96xf32, #tpu.memory_space<vmem>>, vector<32x96xf32>
    %cst = arith.constant dense<0.000000e+00> : vector<16x96xf32>
    %3 = tpu.matmul %1, %2, %cst {dimension_numbers = #tpu.dot_dimension_numbers<[1], [0], [0], [1], [0, 0, 1, 1], [], []>} : vector<16x32xf32>, vector<32x96xf32>, vector<16x96xf32> -> vector<16x96xf32>
    %c0_4 = arith.constant 0 : index
    %c0_5 = arith.constant 0 : index
    %4 = vector.load %arg4[%c0_4, %c0_5] : memref<1x96xf32, #tpu.memory_space<vmem>>, vector<1x96xf32>
    %5 = vector.broadcast %4 : vector<1x96xf32> to vector<16x96xf32>
    %6 = arith.addf %3, %5 : vector<16x96xf32>
    %7 = vector.shape_cast %6 : vector<16x96xf32> to vector<2x8x96xf32>
    %c0_6 = arith.constant 0 : index
    %c0_7 = arith.constant 0 : index
    %8 = vector.load %arg6[%c0_6, %c0_7] : memref<32x96xf32, #tpu.memory_space<vmem>>, vector<32x96xf32>
    %cst_8 = arith.constant dense<0.000000e+00> : vector<16x96xf32>
    %9 = tpu.matmul %1, %8, %cst_8 {dimension_numbers = #tpu.dot_dimension_numbers<[1], [0], [0], [1], [0, 0, 1, 1], [], []>} : vector<16x32xf32>, vector<32x96xf32>, vector<16x96xf32> -> vector<16x96xf32>
    %c0_9 = arith.constant 0 : index
    %c0_10 = arith.constant 0 : index
    %10 = vector.load %arg8[%c0_9, %c0_10] : memref<1x96xf32, #tpu.memory_space<vmem>>, vector<1x96xf32>
    %11 = vector.broadcast %10 : vector<1x96xf32> to vector<16x96xf32>
    %12 = arith.addf %9, %11 : vector<16x96xf32>
    %13 = vector.shape_cast %12 : vector<16x96xf32> to vector<2x8x96xf32>
    %c0_11 = arith.constant 0 : index
    %c0_12 = arith.constant 0 : index
    %14 = vector.load %arg3[%c0_11, %c0_12] : memref<32x96xf32, #tpu.memory_space<vmem>>, vector<32x96xf32>
    %c0_13 = arith.constant 0 : index
    %c0_14 = arith.constant 0 : index
    %15 = vector.load %arg5[%c0_13, %c0_14] : memref<1x96xf32, #tpu.memory_space<vmem>>, vector<1x96xf32>
    %c0_15 = arith.constant 0 : index
    %c0_16 = arith.constant 0 : index
    %16 = vector.load %arg7[%c0_15, %c0_16] : memref<32x96xf32, #tpu.memory_space<vmem>>, vector<32x96xf32>
    %c0_17 = arith.constant 0 : index
    %c0_18 = arith.constant 0 : index
    %17 = vector.load %arg9[%c0_17, %c0_18] : memref<1x96xf32, #tpu.memory_space<vmem>>, vector<1x96xf32>
    %cst_19 = arith.constant 0.000000e+00 : f32
    %18 = vector.broadcast %cst_19 : f32 to vector<2x32xf32>
    %cst_20 = arith.constant 0.000000e+00 : f32
    %19 = vector.broadcast %cst_20 : f32 to vector<2x32xf32>
    %20 = vector.extract_strided_slice %7 {offsets = [0, 0, 0], sizes = [2, 1, 96], strides = [1, 1, 1]} : vector<2x8x96xf32> to vector<2x1x96xf32>
    %21 = vector.shape_cast %20 : vector<2x1x96xf32> to vector<2x96xf32>
    %cst_21 = arith.constant dense<0.000000e+00> : vector<2x96xf32>
    %22 = tpu.matmul %18, %14, %cst_21 {dimension_numbers = #tpu.dot_dimension_numbers<[1], [0], [0], [1], [0, 0, 1, 1], [], []>} : vector<2x32xf32>, vector<32x96xf32>, vector<2x96xf32> -> vector<2x96xf32>
    %23 = vector.broadcast %15 : vector<1x96xf32> to vector<2x96xf32>
    %24 = arith.addf %22, %23 : vector<2x96xf32>
    %25 = vector.extract_strided_slice %21 {offsets = [0, 0], sizes = [2, 32], strides = [1, 1]} : vector<2x96xf32> to vector<2x32xf32>
    %26 = vector.extract_strided_slice %24 {offsets = [0, 0], sizes = [2, 32], strides = [1, 1]} : vector<2x96xf32> to vector<2x32xf32>
    %27 = arith.addf %25, %26 : vector<2x32xf32>
    %28 = arith.negf %27 : vector<2x32xf32>
    %29 = math.exp %28 : vector<2x32xf32>
    %cst_22 = arith.constant 1.000000e+00 : f32
    %30 = vector.broadcast %cst_22 : f32 to vector<2x32xf32>
    %31 = arith.addf %30, %29 : vector<2x32xf32>
    %32 = arith.divf %30, %31 : vector<2x32xf32>
    %33 = vector.extract_strided_slice %21 {offsets = [0, 32], sizes = [2, 32], strides = [1, 1]} : vector<2x96xf32> to vector<2x32xf32>
    %34 = vector.extract_strided_slice %24 {offsets = [0, 32], sizes = [2, 32], strides = [1, 1]} : vector<2x96xf32> to vector<2x32xf32>
    %35 = arith.addf %33, %34 : vector<2x32xf32>
    %36 = arith.negf %35 : vector<2x32xf32>
    %37 = math.exp %36 : vector<2x32xf32>
    %cst_23 = arith.constant 1.000000e+00 : f32
    %38 = vector.broadcast %cst_23 : f32 to vector<2x32xf32>
    %39 = arith.addf %38, %37 : vector<2x32xf32>
    %40 = arith.divf %38, %39 : vector<2x32xf32>
    %41 = vector.extract_strided_slice %21 {offsets = [0, 64], sizes = [2, 32], strides = [1, 1]} : vector<2x96xf32> to vector<2x32xf32>
    %42 = vector.extract_strided_slice %24 {offsets = [0, 64], sizes = [2, 32], strides = [1, 1]} : vector<2x96xf32> to vector<2x32xf32>
    %43 = arith.mulf %32, %42 : vector<2x32xf32>
    %44 = arith.addf %41, %43 : vector<2x32xf32>
    %45 = math.tanh %44 : vector<2x32xf32>
    %cst_24 = arith.constant 1.000000e+00 : f32
    %46 = vector.broadcast %cst_24 : f32 to vector<2x32xf32>
    %47 = arith.subf %46, %40 : vector<2x32xf32>
    %48 = arith.mulf %47, %45 : vector<2x32xf32>
    %49 = arith.mulf %40, %18 : vector<2x32xf32>
    %50 = arith.addf %48, %49 : vector<2x32xf32>
    %51 = vector.extract_strided_slice %13 {offsets = [0, 7, 0], sizes = [2, 1, 96], strides = [1, 1, 1]} : vector<2x8x96xf32> to vector<2x1x96xf32>
    %52 = vector.shape_cast %51 : vector<2x1x96xf32> to vector<2x96xf32>
    %cst_25 = arith.constant dense<0.000000e+00> : vector<2x96xf32>
    %53 = tpu.matmul %19, %16, %cst_25 {dimension_numbers = #tpu.dot_dimension_numbers<[1], [0], [0], [1], [0, 0, 1, 1], [], []>} : vector<2x32xf32>, vector<32x96xf32>, vector<2x96xf32> -> vector<2x96xf32>
    %54 = vector.broadcast %17 : vector<1x96xf32> to vector<2x96xf32>
    %55 = arith.addf %53, %54 : vector<2x96xf32>
    %56 = vector.extract_strided_slice %52 {offsets = [0, 0], sizes = [2, 32], strides = [1, 1]} : vector<2x96xf32> to vector<2x32xf32>
    %57 = vector.extract_strided_slice %55 {offsets = [0, 0], sizes = [2, 32], strides = [1, 1]} : vector<2x96xf32> to vector<2x32xf32>
    %58 = arith.addf %56, %57 : vector<2x32xf32>
    %59 = arith.negf %58 : vector<2x32xf32>
    %60 = math.exp %59 : vector<2x32xf32>
    %cst_26 = arith.constant 1.000000e+00 : f32
    %61 = vector.broadcast %cst_26 : f32 to vector<2x32xf32>
    %62 = arith.addf %61, %60 : vector<2x32xf32>
    %63 = arith.divf %61, %62 : vector<2x32xf32>
    %64 = vector.extract_strided_slice %52 {offsets = [0, 32], sizes = [2, 32], strides = [1, 1]} : vector<2x96xf32> to vector<2x32xf32>
    %65 = vector.extract_strided_slice %55 {offsets = [0, 32], sizes = [2, 32], strides = [1, 1]} : vector<2x96xf32> to vector<2x32xf32>
    %66 = arith.addf %64, %65 : vector<2x32xf32>
    %67 = arith.negf %66 : vector<2x32xf32>
    %68 = math.exp %67 : vector<2x32xf32>
    %cst_27 = arith.constant 1.000000e+00 : f32
    %69 = vector.broadcast %cst_27 : f32 to vector<2x32xf32>
    %70 = arith.addf %69, %68 : vector<2x32xf32>
    %71 = arith.divf %69, %70 : vector<2x32xf32>
    %72 = vector.extract_strided_slice %52 {offsets = [0, 64], sizes = [2, 32], strides = [1, 1]} : vector<2x96xf32> to vector<2x32xf32>
    %73 = vector.extract_strided_slice %55 {offsets = [0, 64], sizes = [2, 32], strides = [1, 1]} : vector<2x96xf32> to vector<2x32xf32>
    %74 = arith.mulf %63, %73 : vector<2x32xf32>
    %75 = arith.addf %72, %74 : vector<2x32xf32>
    %76 = math.tanh %75 : vector<2x32xf32>
    %cst_28 = arith.constant 1.000000e+00 : f32
    %77 = vector.broadcast %cst_28 : f32 to vector<2x32xf32>
    %78 = arith.subf %77, %71 : vector<2x32xf32>
    %79 = arith.mulf %78, %76 : vector<2x32xf32>
    %80 = arith.mulf %71, %19 : vector<2x32xf32>
    %81 = arith.addf %79, %80 : vector<2x32xf32>
    %c0_29 = arith.constant 0 : index
    %c0_30 = arith.constant 0 : index
    %c0_31 = arith.constant 0 : index
    %82 = vector.load %arg27[%c0_29, %c0_30, %c0_31] : memref<2x8x32xf32, #tpu.memory_space<vmem>>, vector<2x1x32xf32>
    %83 = vector.shape_cast %82 : vector<2x1x32xf32> to vector<2x32xf32>
    %84 = vector.shape_cast %50 : vector<2x32xf32> to vector<2x1x32xf32>
    tpu.vector_store %arg27[%c0_29, %c0_30, %c0_31], %84 {strides = array<i32>} : memref<2x8x32xf32, #tpu.memory_space<vmem>>, vector<2x1x32xf32>,
    %c0_32 = arith.constant 0 : index
    %c7 = arith.constant 7 : index
    %c0_33 = arith.constant 0 : index
    %85 = vector.load %arg28[%c0_32, %c7, %c0_33] : memref<2x8x32xf32, #tpu.memory_space<vmem>>, vector<2x1x32xf32>
    %86 = vector.shape_cast %85 : vector<2x1x32xf32> to vector<2x32xf32>
    %87 = vector.shape_cast %81 : vector<2x32xf32> to vector<2x1x32xf32>
    tpu.vector_store %arg28[%c0_32, %c7, %c0_33], %87 {strides = array<i32>} : memref<2x8x32xf32, #tpu.memory_space<vmem>>, vector<2x1x32xf32>,
    %88 = vector.extract_strided_slice %7 {offsets = [0, 1, 0], sizes = [2, 1, 96], strides = [1, 1, 1]} : vector<2x8x96xf32> to vector<2x1x96xf32>
    %89 = vector.shape_cast %88 : vector<2x1x96xf32> to vector<2x96xf32>
    %cst_34 = arith.constant dense<0.000000e+00> : vector<2x96xf32>
    %90 = tpu.matmul %50, %14, %cst_34 {dimension_numbers = #tpu.dot_dimension_numbers<[1], [0], [0], [1], [0, 0, 1, 1], [], []>} : vector<2x32xf32>, vector<32x96xf32>, vector<2x96xf32> -> vector<2x96xf32>
    %91 = vector.broadcast %15 : vector<1x96xf32> to vector<2x96xf32>
    %92 = arith.addf %90, %91 : vector<2x96xf32>
    %93 = vector.extract_strided_slice %89 {offsets = [0, 0], sizes = [2, 32], strides = [1, 1]} : vector<2x96xf32> to vector<2x32xf32>
    %94 = vector.extract_strided_slice %92 {offsets = [0, 0], sizes = [2, 32], strides = [1, 1]} : vector<2x96xf32> to vector<2x32xf32>
    %95 = arith.addf %93, %94 : vector<2x32xf32>
    %96 = arith.negf %95 : vector<2x32xf32>
    %97 = math.exp %96 : vector<2x32xf32>
    %cst_35 = arith.constant 1.000000e+00 : f32
    %98 = vector.broadcast %cst_35 : f32 to vector<2x32xf32>
    %99 = arith.addf %98, %97 : vector<2x32xf32>
    %100 = arith.divf %98, %99 : vector<2x32xf32>
    %101 = vector.extract_strided_slice %89 {offsets = [0, 32], sizes = [2, 32], strides = [1, 1]} : vector<2x96xf32> to vector<2x32xf32>
    %102 = vector.extract_strided_slice %92 {offsets = [0, 32], sizes = [2, 32], strides = [1, 1]} : vector<2x96xf32> to vector<2x32xf32>
    %103 = arith.addf %101, %102 : vector<2x32xf32>
    %104 = arith.negf %103 : vector<2x32xf32>
    %105 = math.exp %104 : vector<2x32xf32>
    %cst_36 = arith.constant 1.000000e+00 : f32
    %106 = vector.broadcast %cst_36 : f32 to vector<2x32xf32>
    %107 = arith.addf %106, %105 : vector<2x32xf32>
    %108 = arith.divf %106, %107 : vector<2x32xf32>
    %109 = vector.extract_strided_slice %89 {offsets = [0, 64], sizes = [2, 32], strides = [1, 1]} : vector<2x96xf32> to vector<2x32xf32>
    %110 = vector.extract_strided_slice %92 {offsets = [0, 64], sizes = [2, 32], strides = [1, 1]} : vector<2x96xf32> to vector<2x32xf32>
    %111 = arith.mulf %100, %110 : vector<2x32xf32>
    %112 = arith.addf %109, %111 : vector<2x32xf32>
    %113 = math.tanh %112 : vector<2x32xf32>
    %cst_37 = arith.constant 1.000000e+00 : f32
    %114 = vector.broadcast %cst_37 : f32 to vector<2x32xf32>
    %115 = arith.subf %114, %108 : vector<2x32xf32>
    %116 = arith.mulf %115, %113 : vector<2x32xf32>
    %117 = arith.mulf %108, %50 : vector<2x32xf32>
    %118 = arith.addf %116, %117 : vector<2x32xf32>
    %119 = vector.extract_strided_slice %13 {offsets = [0, 6, 0], sizes = [2, 1, 96], strides = [1, 1, 1]} : vector<2x8x96xf32> to vector<2x1x96xf32>
    %120 = vector.shape_cast %119 : vector<2x1x96xf32> to vector<2x96xf32>
    %cst_38 = arith.constant dense<0.000000e+00> : vector<2x96xf32>
    %121 = tpu.matmul %81, %16, %cst_38 {dimension_numbers = #tpu.dot_dimension_numbers<[1], [0], [0], [1], [0, 0, 1, 1], [], []>} : vector<2x32xf32>, vector<32x96xf32>, vector<2x96xf32> -> vector<2x96xf32>
    %122 = vector.broadcast %17 : vector<1x96xf32> to vector<2x96xf32>
    %123 = arith.addf %121, %122 : vector<2x96xf32>
    %124 = vector.extract_strided_slice %120 {offsets = [0, 0], sizes = [2, 32], strides = [1, 1]} : vector<2x96xf32> to vector<2x32xf32>
    %125 = vector.extract_strided_slice %123 {offsets = [0, 0], sizes = [2, 32], strides = [1, 1]} : vector<2x96xf32> to vector<2x32xf32>
    %126 = arith.addf %124, %125 : vector<2x32xf32>
    %127 = arith.negf %126 : vector<2x32xf32>
    %128 = math.exp %127 : vector<2x32xf32>
    %cst_39 = arith.constant 1.000000e+00 : f32
    %129 = vector.broadcast %cst_39 : f32 to vector<2x32xf32>
    %130 = arith.addf %129, %128 : vector<2x32xf32>
    %131 = arith.divf %129, %130 : vector<2x32xf32>
    %132 = vector.extract_strided_slice %120 {offsets = [0, 32], sizes = [2, 32], strides = [1, 1]} : vector<2x96xf32> to vector<2x32xf32>
    %133 = vector.extract_strided_slice %123 {offsets = [0, 32], sizes = [2, 32], strides = [1, 1]} : vector<2x96xf32> to vector<2x32xf32>
    %134 = arith.addf %132, %133 : vector<2x32xf32>
    %135 = arith.negf %134 : vector<2x32xf32>
    %136 = math.exp %135 : vector<2x32xf32>
    %cst_40 = arith.constant 1.000000e+00 : f32
    %137 = vector.broadcast %cst_40 : f32 to vector<2x32xf32>
    %138 = arith.addf %137, %136 : vector<2x32xf32>
    %139 = arith.divf %137, %138 : vector<2x32xf32>
    %140 = vector.extract_strided_slice %120 {offsets = [0, 64], sizes = [2, 32], strides = [1, 1]} : vector<2x96xf32> to vector<2x32xf32>
    %141 = vector.extract_strided_slice %123 {offsets = [0, 64], sizes = [2, 32], strides = [1, 1]} : vector<2x96xf32> to vector<2x32xf32>
    %142 = arith.mulf %131, %141 : vector<2x32xf32>
    %143 = arith.addf %140, %142 : vector<2x32xf32>
    %144 = math.tanh %143 : vector<2x32xf32>
    %cst_41 = arith.constant 1.000000e+00 : f32
    %145 = vector.broadcast %cst_41 : f32 to vector<2x32xf32>
    %146 = arith.subf %145, %139 : vector<2x32xf32>
    %147 = arith.mulf %146, %144 : vector<2x32xf32>
    %148 = arith.mulf %139, %81 : vector<2x32xf32>
    %149 = arith.addf %147, %148 : vector<2x32xf32>
    %c0_42 = arith.constant 0 : index
    %c1 = arith.constant 1 : index
    %c0_43 = arith.constant 0 : index
    %150 = vector.load %arg27[%c0_42, %c1, %c0_43] : memref<2x8x32xf32, #tpu.memory_space<vmem>>, vector<2x1x32xf32>
    %151 = vector.shape_cast %150 : vector<2x1x32xf32> to vector<2x32xf32>
    %152 = vector.shape_cast %118 : vector<2x32xf32> to vector<2x1x32xf32>
    tpu.vector_store %arg27[%c0_42, %c1, %c0_43], %152 {strides = array<i32>} : memref<2x8x32xf32, #tpu.memory_space<vmem>>, vector<2x1x32xf32>,
    %c0_44 = arith.constant 0 : index
    %c6 = arith.constant 6 : index
    %c0_45 = arith.constant 0 : index
    %153 = vector.load %arg28[%c0_44, %c6, %c0_45] : memref<2x8x32xf32, #tpu.memory_space<vmem>>, vector<2x1x32xf32>
    %154 = vector.shape_cast %153 : vector<2x1x32xf32> to vector<2x32xf32>
    %155 = vector.shape_cast %149 : vector<2x32xf32> to vector<2x1x32xf32>
    tpu.vector_store %arg28[%c0_44, %c6, %c0_45], %155 {strides = array<i32>} : memref<2x8x32xf32, #tpu.memory_space<vmem>>, vector<2x1x32xf32>,
    %156 = vector.extract_strided_slice %7 {offsets = [0, 2, 0], sizes = [2, 1, 96], strides = [1, 1, 1]} : vector<2x8x96xf32> to vector<2x1x96xf32>
    %157 = vector.shape_cast %156 : vector<2x1x96xf32> to vector<2x96xf32>
    %cst_46 = arith.constant dense<0.000000e+00> : vector<2x96xf32>
    %158 = tpu.matmul %118, %14, %cst_46 {dimension_numbers = #tpu.dot_dimension_numbers<[1], [0], [0], [1], [0, 0, 1, 1], [], []>} : vector<2x32xf32>, vector<32x96xf32>, vector<2x96xf32> -> vector<2x96xf32>
    %159 = vector.broadcast %15 : vector<1x96xf32> to vector<2x96xf32>
    %160 = arith.addf %158, %159 : vector<2x96xf32>
    %161 = vector.extract_strided_slice %157 {offsets = [0, 0], sizes = [2, 32], strides = [1, 1]} : vector<2x96xf32> to vector<2x32xf32>
    %162 = vector.extract_strided_slice %160 {offsets = [0, 0], sizes = [2, 32], strides = [1, 1]} : vector<2x96xf32> to vector<2x32xf32>
    %163 = arith.addf %161, %162 : vector<2x32xf32>
    %164 = arith.negf %163 : vector<2x32xf32>
    %165 = math.exp %164 : vector<2x32xf32>
    %cst_47 = arith.constant 1.000000e+00 : f32
    %166 = vector.broadcast %cst_47 : f32 to vector<2x32xf32>
    %167 = arith.addf %166, %165 : vector<2x32xf32>
    %168 = arith.divf %166, %167 : vector<2x32xf32>
    %169 = vector.extract_strided_slice %157 {offsets = [0, 32], sizes = [2, 32], strides = [1, 1]} : vector<2x96xf32> to vector<2x32xf32>
    %170 = vector.extract_strided_slice %160 {offsets = [0, 32], sizes = [2, 32], strides = [1, 1]} : vector<2x96xf32> to vector<2x32xf32>
    %171 = arith.addf %169, %170 : vector<2x32xf32>
    %172 = arith.negf %171 : vector<2x32xf32>
    %173 = math.exp %172 : vector<2x32xf32>
    %cst_48 = arith.constant 1.000000e+00 : f32
    %174 = vector.broadcast %cst_48 : f32 to vector<2x32xf32>
    %175 = arith.addf %174, %173 : vector<2x32xf32>
    %176 = arith.divf %174, %175 : vector<2x32xf32>
    %177 = vector.extract_strided_slice %157 {offsets = [0, 64], sizes = [2, 32], strides = [1, 1]} : vector<2x96xf32> to vector<2x32xf32>
    %178 = vector.extract_strided_slice %160 {offsets = [0, 64], sizes = [2, 32], strides = [1, 1]} : vector<2x96xf32> to vector<2x32xf32>
    %179 = arith.mulf %168, %178 : vector<2x32xf32>
    %180 = arith.addf %177, %179 : vector<2x32xf32>
    %181 = math.tanh %180 : vector<2x32xf32>
    %cst_49 = arith.constant 1.000000e+00 : f32
    %182 = vector.broadcast %cst_49 : f32 to vector<2x32xf32>
    %183 = arith.subf %182, %176 : vector<2x32xf32>
    %184 = arith.mulf %183, %181 : vector<2x32xf32>
    %185 = arith.mulf %176, %118 : vector<2x32xf32>
    %186 = arith.addf %184, %185 : vector<2x32xf32>
    %187 = vector.extract_strided_slice %13 {offsets = [0, 5, 0], sizes = [2, 1, 96], strides = [1, 1, 1]} : vector<2x8x96xf32> to vector<2x1x96xf32>
    %188 = vector.shape_cast %187 : vector<2x1x96xf32> to vector<2x96xf32>
    %cst_50 = arith.constant dense<0.000000e+00> : vector<2x96xf32>
    %189 = tpu.matmul %149, %16, %cst_50 {dimension_numbers = #tpu.dot_dimension_numbers<[1], [0], [0], [1], [0, 0, 1, 1], [], []>} : vector<2x32xf32>, vector<32x96xf32>, vector<2x96xf32> -> vector<2x96xf32>
    %190 = vector.broadcast %17 : vector<1x96xf32> to vector<2x96xf32>
    %191 = arith.addf %189, %190 : vector<2x96xf32>
    %192 = vector.extract_strided_slice %188 {offsets = [0, 0], sizes = [2, 32], strides = [1, 1]} : vector<2x96xf32> to vector<2x32xf32>
    %193 = vector.extract_strided_slice %191 {offsets = [0, 0], sizes = [2, 32], strides = [1, 1]} : vector<2x96xf32> to vector<2x32xf32>
    %194 = arith.addf %192, %193 : vector<2x32xf32>
    %195 = arith.negf %194 : vector<2x32xf32>
    %196 = math.exp %195 : vector<2x32xf32>
    %cst_51 = arith.constant 1.000000e+00 : f32
    %197 = vector.broadcast %cst_51 : f32 to vector<2x32xf32>
    %198 = arith.addf %197, %196 : vector<2x32xf32>
    %199 = arith.divf %197, %198 : vector<2x32xf32>
    %200 = vector.extract_strided_slice %188 {offsets = [0, 32], sizes = [2, 32], strides = [1, 1]} : vector<2x96xf32> to vector<2x32xf32>
    %201 = vector.extract_strided_slice %191 {offsets = [0, 32], sizes = [2, 32], strides = [1, 1]} : vector<2x96xf32> to vector<2x32xf32>
    %202 = arith.addf %200, %201 : vector<2x32xf32>
    %203 = arith.negf %202 : vector<2x32xf32>
    %204 = math.exp %203 : vector<2x32xf32>
    %cst_52 = arith.constant 1.000000e+00 : f32
    %205 = vector.broadcast %cst_52 : f32 to vector<2x32xf32>
    %206 = arith.addf %205, %204 : vector<2x32xf32>
    %207 = arith.divf %205, %206 : vector<2x32xf32>
    %208 = vector.extract_strided_slice %188 {offsets = [0, 64], sizes = [2, 32], strides = [1, 1]} : vector<2x96xf32> to vector<2x32xf32>
    %209 = vector.extract_strided_slice %191 {offsets = [0, 64], sizes = [2, 32], strides = [1, 1]} : vector<2x96xf32> to vector<2x32xf32>
    %210 = arith.mulf %199, %209 : vector<2x32xf32>
    %211 = arith.addf %208, %210 : vector<2x32xf32>
    %212 = math.tanh %211 : vector<2x32xf32>
    %cst_53 = arith.constant 1.000000e+00 : f32
    %213 = vector.broadcast %cst_53 : f32 to vector<2x32xf32>
    %214 = arith.subf %213, %207 : vector<2x32xf32>
    %215 = arith.mulf %214, %212 : vector<2x32xf32>
    %216 = arith.mulf %207, %149 : vector<2x32xf32>
    %217 = arith.addf %215, %216 : vector<2x32xf32>
    %c0_54 = arith.constant 0 : index
    %c2 = arith.constant 2 : index
    %c0_55 = arith.constant 0 : index
    %218 = vector.load %arg27[%c0_54, %c2, %c0_55] : memref<2x8x32xf32, #tpu.memory_space<vmem>>, vector<2x1x32xf32>
    %219 = vector.shape_cast %218 : vector<2x1x32xf32> to vector<2x32xf32>
    %220 = vector.shape_cast %186 : vector<2x32xf32> to vector<2x1x32xf32>
    tpu.vector_store %arg27[%c0_54, %c2, %c0_55], %220 {strides = array<i32>} : memref<2x8x32xf32, #tpu.memory_space<vmem>>, vector<2x1x32xf32>,
    %c0_56 = arith.constant 0 : index
    %c5 = arith.constant 5 : index
    %c0_57 = arith.constant 0 : index
    %221 = vector.load %arg28[%c0_56, %c5, %c0_57] : memref<2x8x32xf32, #tpu.memory_space<vmem>>, vector<2x1x32xf32>
    %222 = vector.shape_cast %221 : vector<2x1x32xf32> to vector<2x32xf32>
    %223 = vector.shape_cast %217 : vector<2x32xf32> to vector<2x1x32xf32>
    tpu.vector_store %arg28[%c0_56, %c5, %c0_57], %223 {strides = array<i32>} : memref<2x8x32xf32, #tpu.memory_space<vmem>>, vector<2x1x32xf32>,
    %224 = vector.extract_strided_slice %7 {offsets = [0, 3, 0], sizes = [2, 1, 96], strides = [1, 1, 1]} : vector<2x8x96xf32> to vector<2x1x96xf32>
    %225 = vector.shape_cast %224 : vector<2x1x96xf32> to vector<2x96xf32>
    %cst_58 = arith.constant dense<0.000000e+00> : vector<2x96xf32>
    %226 = tpu.matmul %186, %14, %cst_58 {dimension_numbers = #tpu.dot_dimension_numbers<[1], [0], [0], [1], [0, 0, 1, 1], [], []>} : vector<2x32xf32>, vector<32x96xf32>, vector<2x96xf32> -> vector<2x96xf32>
    %227 = vector.broadcast %15 : vector<1x96xf32> to vector<2x96xf32>
    %228 = arith.addf %226, %227 : vector<2x96xf32>
    %229 = vector.extract_strided_slice %225 {offsets = [0, 0], sizes = [2, 32], strides = [1, 1]} : vector<2x96xf32> to vector<2x32xf32>
    %230 = vector.extract_strided_slice %228 {offsets = [0, 0], sizes = [2, 32], strides = [1, 1]} : vector<2x96xf32> to vector<2x32xf32>
    %231 = arith.addf %229, %230 : vector<2x32xf32>
    %232 = arith.negf %231 : vector<2x32xf32>
    %233 = math.exp %232 : vector<2x32xf32>
    %cst_59 = arith.constant 1.000000e+00 : f32
    %234 = vector.broadcast %cst_59 : f32 to vector<2x32xf32>
    %235 = arith.addf %234, %233 : vector<2x32xf32>
    %236 = arith.divf %234, %235 : vector<2x32xf32>
    %237 = vector.extract_strided_slice %225 {offsets = [0, 32], sizes = [2, 32], strides = [1, 1]} : vector<2x96xf32> to vector<2x32xf32>
    %238 = vector.extract_strided_slice %228 {offsets = [0, 32], sizes = [2, 32], strides = [1, 1]} : vector<2x96xf32> to vector<2x32xf32>
    %239 = arith.addf %237, %238 : vector<2x32xf32>
    %240 = arith.negf %239 : vector<2x32xf32>
    %241 = math.exp %240 : vector<2x32xf32>
    %cst_60 = arith.constant 1.000000e+00 : f32
    %242 = vector.broadcast %cst_60 : f32 to vector<2x32xf32>
    %243 = arith.addf %242, %241 : vector<2x32xf32>
    %244 = arith.divf %242, %243 : vector<2x32xf32>
    %245 = vector.extract_strided_slice %225 {offsets = [0, 64], sizes = [2, 32], strides = [1, 1]} : vector<2x96xf32> to vector<2x32xf32>
    %246 = vector.extract_strided_slice %228 {offsets = [0, 64], sizes = [2, 32], strides = [1, 1]} : vector<2x96xf32> to vector<2x32xf32>
    %247 = arith.mulf %236, %246 : vector<2x32xf32>
    %248 = arith.addf %245, %247 : vector<2x32xf32>
    %249 = math.tanh %248 : vector<2x32xf32>
    %cst_61 = arith.constant 1.000000e+00 : f32
    %250 = vector.broadcast %cst_61 : f32 to vector<2x32xf32>
    %251 = arith.subf %250, %244 : vector<2x32xf32>
    %252 = arith.mulf %251, %249 : vector<2x32xf32>
    %253 = arith.mulf %244, %186 : vector<2x32xf32>
    %254 = arith.addf %252, %253 : vector<2x32xf32>
    %255 = vector.extract_strided_slice %13 {offsets = [0, 4, 0], sizes = [2, 1, 96], strides = [1, 1, 1]} : vector<2x8x96xf32> to vector<2x1x96xf32>
    %256 = vector.shape_cast %255 : vector<2x1x96xf32> to vector<2x96xf32>
    %cst_62 = arith.constant dense<0.000000e+00> : vector<2x96xf32>
    %257 = tpu.matmul %217, %16, %cst_62 {dimension_numbers = #tpu.dot_dimension_numbers<[1], [0], [0], [1], [0, 0, 1, 1], [], []>} : vector<2x32xf32>, vector<32x96xf32>, vector<2x96xf32> -> vector<2x96xf32>
    %258 = vector.broadcast %17 : vector<1x96xf32> to vector<2x96xf32>
    %259 = arith.addf %257, %258 : vector<2x96xf32>
    %260 = vector.extract_strided_slice %256 {offsets = [0, 0], sizes = [2, 32], strides = [1, 1]} : vector<2x96xf32> to vector<2x32xf32>
    %261 = vector.extract_strided_slice %259 {offsets = [0, 0], sizes = [2, 32], strides = [1, 1]} : vector<2x96xf32> to vector<2x32xf32>
    %262 = arith.addf %260, %261 : vector<2x32xf32>
    %263 = arith.negf %262 : vector<2x32xf32>
    %264 = math.exp %263 : vector<2x32xf32>
    %cst_63 = arith.constant 1.000000e+00 : f32
    %265 = vector.broadcast %cst_63 : f32 to vector<2x32xf32>
    %266 = arith.addf %265, %264 : vector<2x32xf32>
    %267 = arith.divf %265, %266 : vector<2x32xf32>
    %268 = vector.extract_strided_slice %256 {offsets = [0, 32], sizes = [2, 32], strides = [1, 1]} : vector<2x96xf32> to vector<2x32xf32>
    %269 = vector.extract_strided_slice %259 {offsets = [0, 32], sizes = [2, 32], strides = [1, 1]} : vector<2x96xf32> to vector<2x32xf32>
    %270 = arith.addf %268, %269 : vector<2x32xf32>
    %271 = arith.negf %270 : vector<2x32xf32>
    %272 = math.exp %271 : vector<2x32xf32>
    %cst_64 = arith.constant 1.000000e+00 : f32
    %273 = vector.broadcast %cst_64 : f32 to vector<2x32xf32>
    %274 = arith.addf %273, %272 : vector<2x32xf32>
    %275 = arith.divf %273, %274 : vector<2x32xf32>
    %276 = vector.extract_strided_slice %256 {offsets = [0, 64], sizes = [2, 32], strides = [1, 1]} : vector<2x96xf32> to vector<2x32xf32>
    %277 = vector.extract_strided_slice %259 {offsets = [0, 64], sizes = [2, 32], strides = [1, 1]} : vector<2x96xf32> to vector<2x32xf32>
    %278 = arith.mulf %267, %277 : vector<2x32xf32>
    %279 = arith.addf %276, %278 : vector<2x32xf32>
    %280 = math.tanh %279 : vector<2x32xf32>
    %cst_65 = arith.constant 1.000000e+00 : f32
    %281 = vector.broadcast %cst_65 : f32 to vector<2x32xf32>
    %282 = arith.subf %281, %275 : vector<2x32xf32>
    %283 = arith.mulf %282, %280 : vector<2x32xf32>
    %284 = arith.mulf %275, %217 : vector<2x32xf32>
    %285 = arith.addf %283, %284 : vector<2x32xf32>
    %c0_66 = arith.constant 0 : index
    %c3 = arith.constant 3 : index
    %c0_67 = arith.constant 0 : index
    %286 = vector.load %arg27[%c0_66, %c3, %c0_67] : memref<2x8x32xf32, #tpu.memory_space<vmem>>, vector<2x1x32xf32>
    %287 = vector.shape_cast %286 : vector<2x1x32xf32> to vector<2x32xf32>
    %288 = vector.shape_cast %254 : vector<2x32xf32> to vector<2x1x32xf32>
    tpu.vector_store %arg27[%c0_66, %c3, %c0_67], %288 {strides = array<i32>} : memref<2x8x32xf32, #tpu.memory_space<vmem>>, vector<2x1x32xf32>,
    %c0_68 = arith.constant 0 : index
    %c4 = arith.constant 4 : index
    %c0_69 = arith.constant 0 : index
    %289 = vector.load %arg28[%c0_68, %c4, %c0_69] : memref<2x8x32xf32, #tpu.memory_space<vmem>>, vector<2x1x32xf32>
    %290 = vector.shape_cast %289 : vector<2x1x32xf32> to vector<2x32xf32>
    %291 = vector.shape_cast %285 : vector<2x32xf32> to vector<2x1x32xf32>
    tpu.vector_store %arg28[%c0_68, %c4, %c0_69], %291 {strides = array<i32>} : memref<2x8x32xf32, #tpu.memory_space<vmem>>, vector<2x1x32xf32>,
    %292 = vector.extract_strided_slice %7 {offsets = [0, 4, 0], sizes = [2, 1, 96], strides = [1, 1, 1]} : vector<2x8x96xf32> to vector<2x1x96xf32>
    %293 = vector.shape_cast %292 : vector<2x1x96xf32> to vector<2x96xf32>
    %cst_70 = arith.constant dense<0.000000e+00> : vector<2x96xf32>
    %294 = tpu.matmul %254, %14, %cst_70 {dimension_numbers = #tpu.dot_dimension_numbers<[1], [0], [0], [1], [0, 0, 1, 1], [], []>} : vector<2x32xf32>, vector<32x96xf32>, vector<2x96xf32> -> vector<2x96xf32>
    %295 = vector.broadcast %15 : vector<1x96xf32> to vector<2x96xf32>
    %296 = arith.addf %294, %295 : vector<2x96xf32>
    %297 = vector.extract_strided_slice %293 {offsets = [0, 0], sizes = [2, 32], strides = [1, 1]} : vector<2x96xf32> to vector<2x32xf32>
    %298 = vector.extract_strided_slice %296 {offsets = [0, 0], sizes = [2, 32], strides = [1, 1]} : vector<2x96xf32> to vector<2x32xf32>
    %299 = arith.addf %297, %298 : vector<2x32xf32>
    %300 = arith.negf %299 : vector<2x32xf32>
    %301 = math.exp %300 : vector<2x32xf32>
    %cst_71 = arith.constant 1.000000e+00 : f32
    %302 = vector.broadcast %cst_71 : f32 to vector<2x32xf32>
    %303 = arith.addf %302, %301 : vector<2x32xf32>
    %304 = arith.divf %302, %303 : vector<2x32xf32>
    %305 = vector.extract_strided_slice %293 {offsets = [0, 32], sizes = [2, 32], strides = [1, 1]} : vector<2x96xf32> to vector<2x32xf32>
    %306 = vector.extract_strided_slice %296 {offsets = [0, 32], sizes = [2, 32], strides = [1, 1]} : vector<2x96xf32> to vector<2x32xf32>
    %307 = arith.addf %305, %306 : vector<2x32xf32>
    %308 = arith.negf %307 : vector<2x32xf32>
    %309 = math.exp %308 : vector<2x32xf32>
    %cst_72 = arith.constant 1.000000e+00 : f32
    %310 = vector.broadcast %cst_72 : f32 to vector<2x32xf32>
    %311 = arith.addf %310, %309 : vector<2x32xf32>
    %312 = arith.divf %310, %311 : vector<2x32xf32>
    %313 = vector.extract_strided_slice %293 {offsets = [0, 64], sizes = [2, 32], strides = [1, 1]} : vector<2x96xf32> to vector<2x32xf32>
    %314 = vector.extract_strided_slice %296 {offsets = [0, 64], sizes = [2, 32], strides = [1, 1]} : vector<2x96xf32> to vector<2x32xf32>
    %315 = arith.mulf %304, %314 : vector<2x32xf32>
    %316 = arith.addf %313, %315 : vector<2x32xf32>
    %317 = math.tanh %316 : vector<2x32xf32>
    %cst_73 = arith.constant 1.000000e+00 : f32
    %318 = vector.broadcast %cst_73 : f32 to vector<2x32xf32>
    %319 = arith.subf %318, %312 : vector<2x32xf32>
    %320 = arith.mulf %319, %317 : vector<2x32xf32>
    %321 = arith.mulf %312, %254 : vector<2x32xf32>
    %322 = arith.addf %320, %321 : vector<2x32xf32>
    %323 = vector.extract_strided_slice %13 {offsets = [0, 3, 0], sizes = [2, 1, 96], strides = [1, 1, 1]} : vector<2x8x96xf32> to vector<2x1x96xf32>
    %324 = vector.shape_cast %323 : vector<2x1x96xf32> to vector<2x96xf32>
    %cst_74 = arith.constant dense<0.000000e+00> : vector<2x96xf32>
    %325 = tpu.matmul %285, %16, %cst_74 {dimension_numbers = #tpu.dot_dimension_numbers<[1], [0], [0], [1], [0, 0, 1, 1], [], []>} : vector<2x32xf32>, vector<32x96xf32>, vector<2x96xf32> -> vector<2x96xf32>
    %326 = vector.broadcast %17 : vector<1x96xf32> to vector<2x96xf32>
    %327 = arith.addf %325, %326 : vector<2x96xf32>
    %328 = vector.extract_strided_slice %324 {offsets = [0, 0], sizes = [2, 32], strides = [1, 1]} : vector<2x96xf32> to vector<2x32xf32>
    %329 = vector.extract_strided_slice %327 {offsets = [0, 0], sizes = [2, 32], strides = [1, 1]} : vector<2x96xf32> to vector<2x32xf32>
    %330 = arith.addf %328, %329 : vector<2x32xf32>
    %331 = arith.negf %330 : vector<2x32xf32>
    %332 = math.exp %331 : vector<2x32xf32>
    %cst_75 = arith.constant 1.000000e+00 : f32
    %333 = vector.broadcast %cst_75 : f32 to vector<2x32xf32>
    %334 = arith.addf %333, %332 : vector<2x32xf32>
    %335 = arith.divf %333, %334 : vector<2x32xf32>
    %336 = vector.extract_strided_slice %324 {offsets = [0, 32], sizes = [2, 32], strides = [1, 1]} : vector<2x96xf32> to vector<2x32xf32>
    %337 = vector.extract_strided_slice %327 {offsets = [0, 32], sizes = [2, 32], strides = [1, 1]} : vector<2x96xf32> to vector<2x32xf32>
    %338 = arith.addf %336, %337 : vector<2x32xf32>
    %339 = arith.negf %338 : vector<2x32xf32>
    %340 = math.exp %339 : vector<2x32xf32>
    %cst_76 = arith.constant 1.000000e+00 : f32
    %341 = vector.broadcast %cst_76 : f32 to vector<2x32xf32>
    %342 = arith.addf %341, %340 : vector<2x32xf32>
    %343 = arith.divf %341, %342 : vector<2x32xf32>
    %344 = vector.extract_strided_slice %324 {offsets = [0, 64], sizes = [2, 32], strides = [1, 1]} : vector<2x96xf32> to vector<2x32xf32>
    %345 = vector.extract_strided_slice %327 {offsets = [0, 64], sizes = [2, 32], strides = [1, 1]} : vector<2x96xf32> to vector<2x32xf32>
    %346 = arith.mulf %335, %345 : vector<2x32xf32>
    %347 = arith.addf %344, %346 : vector<2x32xf32>
    %348 = math.tanh %347 : vector<2x32xf32>
    %cst_77 = arith.constant 1.000000e+00 : f32
    %349 = vector.broadcast %cst_77 : f32 to vector<2x32xf32>
    %350 = arith.subf %349, %343 : vector<2x32xf32>
    %351 = arith.mulf %350, %348 : vector<2x32xf32>
    %352 = arith.mulf %343, %285 : vector<2x32xf32>
    %353 = arith.addf %351, %352 : vector<2x32xf32>
    %c0_78 = arith.constant 0 : index
    %c4_79 = arith.constant 4 : index
    %c0_80 = arith.constant 0 : index
    %354 = vector.load %arg27[%c0_78, %c4_79, %c0_80] : memref<2x8x32xf32, #tpu.memory_space<vmem>>, vector<2x1x32xf32>
    %355 = vector.shape_cast %354 : vector<2x1x32xf32> to vector<2x32xf32>
    %356 = vector.shape_cast %322 : vector<2x32xf32> to vector<2x1x32xf32>
    tpu.vector_store %arg27[%c0_78, %c4_79, %c0_80], %356 {strides = array<i32>} : memref<2x8x32xf32, #tpu.memory_space<vmem>>, vector<2x1x32xf32>,
    %c0_81 = arith.constant 0 : index
    %c3_82 = arith.constant 3 : index
    %c0_83 = arith.constant 0 : index
    %357 = vector.load %arg28[%c0_81, %c3_82, %c0_83] : memref<2x8x32xf32, #tpu.memory_space<vmem>>, vector<2x1x32xf32>
    %358 = vector.shape_cast %357 : vector<2x1x32xf32> to vector<2x32xf32>
    %359 = vector.shape_cast %353 : vector<2x32xf32> to vector<2x1x32xf32>
    tpu.vector_store %arg28[%c0_81, %c3_82, %c0_83], %359 {strides = array<i32>} : memref<2x8x32xf32, #tpu.memory_space<vmem>>, vector<2x1x32xf32>,
    %360 = vector.extract_strided_slice %7 {offsets = [0, 5, 0], sizes = [2, 1, 96], strides = [1, 1, 1]} : vector<2x8x96xf32> to vector<2x1x96xf32>
    %361 = vector.shape_cast %360 : vector<2x1x96xf32> to vector<2x96xf32>
    %cst_84 = arith.constant dense<0.000000e+00> : vector<2x96xf32>
    %362 = tpu.matmul %322, %14, %cst_84 {dimension_numbers = #tpu.dot_dimension_numbers<[1], [0], [0], [1], [0, 0, 1, 1], [], []>} : vector<2x32xf32>, vector<32x96xf32>, vector<2x96xf32> -> vector<2x96xf32>
    %363 = vector.broadcast %15 : vector<1x96xf32> to vector<2x96xf32>
    %364 = arith.addf %362, %363 : vector<2x96xf32>
    %365 = vector.extract_strided_slice %361 {offsets = [0, 0], sizes = [2, 32], strides = [1, 1]} : vector<2x96xf32> to vector<2x32xf32>
    %366 = vector.extract_strided_slice %364 {offsets = [0, 0], sizes = [2, 32], strides = [1, 1]} : vector<2x96xf32> to vector<2x32xf32>
    %367 = arith.addf %365, %366 : vector<2x32xf32>
    %368 = arith.negf %367 : vector<2x32xf32>
    %369 = math.exp %368 : vector<2x32xf32>
    %cst_85 = arith.constant 1.000000e+00 : f32
    %370 = vector.broadcast %cst_85 : f32 to vector<2x32xf32>
    %371 = arith.addf %370, %369 : vector<2x32xf32>
    %372 = arith.divf %370, %371 : vector<2x32xf32>
    %373 = vector.extract_strided_slice %361 {offsets = [0, 32], sizes = [2, 32], strides = [1, 1]} : vector<2x96xf32> to vector<2x32xf32>
    %374 = vector.extract_strided_slice %364 {offsets = [0, 32], sizes = [2, 32], strides = [1, 1]} : vector<2x96xf32> to vector<2x32xf32>
    %375 = arith.addf %373, %374 : vector<2x32xf32>
    %376 = arith.negf %375 : vector<2x32xf32>
    %377 = math.exp %376 : vector<2x32xf32>
    %cst_86 = arith.constant 1.000000e+00 : f32
    %378 = vector.broadcast %cst_86 : f32 to vector<2x32xf32>
    %379 = arith.addf %378, %377 : vector<2x32xf32>
    %380 = arith.divf %378, %379 : vector<2x32xf32>
    %381 = vector.extract_strided_slice %361 {offsets = [0, 64], sizes = [2, 32], strides = [1, 1]} : vector<2x96xf32> to vector<2x32xf32>
    %382 = vector.extract_strided_slice %364 {offsets = [0, 64], sizes = [2, 32], strides = [1, 1]} : vector<2x96xf32> to vector<2x32xf32>
    %383 = arith.mulf %372, %382 : vector<2x32xf32>
    %384 = arith.addf %381, %383 : vector<2x32xf32>
    %385 = math.tanh %384 : vector<2x32xf32>
    %cst_87 = arith.constant 1.000000e+00 : f32
    %386 = vector.broadcast %cst_87 : f32 to vector<2x32xf32>
    %387 = arith.subf %386, %380 : vector<2x32xf32>
    %388 = arith.mulf %387, %385 : vector<2x32xf32>
    %389 = arith.mulf %380, %322 : vector<2x32xf32>
    %390 = arith.addf %388, %389 : vector<2x32xf32>
    %391 = vector.extract_strided_slice %13 {offsets = [0, 2, 0], sizes = [2, 1, 96], strides = [1, 1, 1]} : vector<2x8x96xf32> to vector<2x1x96xf32>
    %392 = vector.shape_cast %391 : vector<2x1x96xf32> to vector<2x96xf32>
    %cst_88 = arith.constant dense<0.000000e+00> : vector<2x96xf32>
    %393 = tpu.matmul %353, %16, %cst_88 {dimension_numbers = #tpu.dot_dimension_numbers<[1], [0], [0], [1], [0, 0, 1, 1], [], []>} : vector<2x32xf32>, vector<32x96xf32>, vector<2x96xf32> -> vector<2x96xf32>
    %394 = vector.broadcast %17 : vector<1x96xf32> to vector<2x96xf32>
    %395 = arith.addf %393, %394 : vector<2x96xf32>
    %396 = vector.extract_strided_slice %392 {offsets = [0, 0], sizes = [2, 32], strides = [1, 1]} : vector<2x96xf32> to vector<2x32xf32>
    %397 = vector.extract_strided_slice %395 {offsets = [0, 0], sizes = [2, 32], strides = [1, 1]} : vector<2x96xf32> to vector<2x32xf32>
    %398 = arith.addf %396, %397 : vector<2x32xf32>
    %399 = arith.negf %398 : vector<2x32xf32>
    %400 = math.exp %399 : vector<2x32xf32>
    %cst_89 = arith.constant 1.000000e+00 : f32
    %401 = vector.broadcast %cst_89 : f32 to vector<2x32xf32>
    %402 = arith.addf %401, %400 : vector<2x32xf32>
    %403 = arith.divf %401, %402 : vector<2x32xf32>
    %404 = vector.extract_strided_slice %392 {offsets = [0, 32], sizes = [2, 32], strides = [1, 1]} : vector<2x96xf32> to vector<2x32xf32>
    %405 = vector.extract_strided_slice %395 {offsets = [0, 32], sizes = [2, 32], strides = [1, 1]} : vector<2x96xf32> to vector<2x32xf32>
    %406 = arith.addf %404, %405 : vector<2x32xf32>
    %407 = arith.negf %406 : vector<2x32xf32>
    %408 = math.exp %407 : vector<2x32xf32>
    %cst_90 = arith.constant 1.000000e+00 : f32
    %409 = vector.broadcast %cst_90 : f32 to vector<2x32xf32>
    %410 = arith.addf %409, %408 : vector<2x32xf32>
    %411 = arith.divf %409, %410 : vector<2x32xf32>
    %412 = vector.extract_strided_slice %392 {offsets = [0, 64], sizes = [2, 32], strides = [1, 1]} : vector<2x96xf32> to vector<2x32xf32>
    %413 = vector.extract_strided_slice %395 {offsets = [0, 64], sizes = [2, 32], strides = [1, 1]} : vector<2x96xf32> to vector<2x32xf32>
    %414 = arith.mulf %403, %413 : vector<2x32xf32>
    %415 = arith.addf %412, %414 : vector<2x32xf32>
    %416 = math.tanh %415 : vector<2x32xf32>
    %cst_91 = arith.constant 1.000000e+00 : f32
    %417 = vector.broadcast %cst_91 : f32 to vector<2x32xf32>
    %418 = arith.subf %417, %411 : vector<2x32xf32>
    %419 = arith.mulf %418, %416 : vector<2x32xf32>
    %420 = arith.mulf %411, %353 : vector<2x32xf32>
    %421 = arith.addf %419, %420 : vector<2x32xf32>
    %c0_92 = arith.constant 0 : index
    %c5_93 = arith.constant 5 : index
    %c0_94 = arith.constant 0 : index
    %422 = vector.load %arg27[%c0_92, %c5_93, %c0_94] : memref<2x8x32xf32, #tpu.memory_space<vmem>>, vector<2x1x32xf32>
    %423 = vector.shape_cast %422 : vector<2x1x32xf32> to vector<2x32xf32>
    %424 = vector.shape_cast %390 : vector<2x32xf32> to vector<2x1x32xf32>
    tpu.vector_store %arg27[%c0_92, %c5_93, %c0_94], %424 {strides = array<i32>} : memref<2x8x32xf32, #tpu.memory_space<vmem>>, vector<2x1x32xf32>,
    %c0_95 = arith.constant 0 : index
    %c2_96 = arith.constant 2 : index
    %c0_97 = arith.constant 0 : index
    %425 = vector.load %arg28[%c0_95, %c2_96, %c0_97] : memref<2x8x32xf32, #tpu.memory_space<vmem>>, vector<2x1x32xf32>
    %426 = vector.shape_cast %425 : vector<2x1x32xf32> to vector<2x32xf32>
    %427 = vector.shape_cast %421 : vector<2x32xf32> to vector<2x1x32xf32>
    tpu.vector_store %arg28[%c0_95, %c2_96, %c0_97], %427 {strides = array<i32>} : memref<2x8x32xf32, #tpu.memory_space<vmem>>, vector<2x1x32xf32>,
    %428 = vector.extract_strided_slice %7 {offsets = [0, 6, 0], sizes = [2, 1, 96], strides = [1, 1, 1]} : vector<2x8x96xf32> to vector<2x1x96xf32>
    %429 = vector.shape_cast %428 : vector<2x1x96xf32> to vector<2x96xf32>
    %cst_98 = arith.constant dense<0.000000e+00> : vector<2x96xf32>
    %430 = tpu.matmul %390, %14, %cst_98 {dimension_numbers = #tpu.dot_dimension_numbers<[1], [0], [0], [1], [0, 0, 1, 1], [], []>} : vector<2x32xf32>, vector<32x96xf32>, vector<2x96xf32> -> vector<2x96xf32>
    %431 = vector.broadcast %15 : vector<1x96xf32> to vector<2x96xf32>
    %432 = arith.addf %430, %431 : vector<2x96xf32>
    %433 = vector.extract_strided_slice %429 {offsets = [0, 0], sizes = [2, 32], strides = [1, 1]} : vector<2x96xf32> to vector<2x32xf32>
    %434 = vector.extract_strided_slice %432 {offsets = [0, 0], sizes = [2, 32], strides = [1, 1]} : vector<2x96xf32> to vector<2x32xf32>
    %435 = arith.addf %433, %434 : vector<2x32xf32>
    %436 = arith.negf %435 : vector<2x32xf32>
    %437 = math.exp %436 : vector<2x32xf32>
    %cst_99 = arith.constant 1.000000e+00 : f32
    %438 = vector.broadcast %cst_99 : f32 to vector<2x32xf32>
    %439 = arith.addf %438, %437 : vector<2x32xf32>
    %440 = arith.divf %438, %439 : vector<2x32xf32>
    %441 = vector.extract_strided_slice %429 {offsets = [0, 32], sizes = [2, 32], strides = [1, 1]} : vector<2x96xf32> to vector<2x32xf32>
    %442 = vector.extract_strided_slice %432 {offsets = [0, 32], sizes = [2, 32], strides = [1, 1]} : vector<2x96xf32> to vector<2x32xf32>
    %443 = arith.addf %441, %442 : vector<2x32xf32>
    %444 = arith.negf %443 : vector<2x32xf32>
    %445 = math.exp %444 : vector<2x32xf32>
    %cst_100 = arith.constant 1.000000e+00 : f32
    %446 = vector.broadcast %cst_100 : f32 to vector<2x32xf32>
    %447 = arith.addf %446, %445 : vector<2x32xf32>
    %448 = arith.divf %446, %447 : vector<2x32xf32>
    %449 = vector.extract_strided_slice %429 {offsets = [0, 64], sizes = [2, 32], strides = [1, 1]} : vector<2x96xf32> to vector<2x32xf32>
    %450 = vector.extract_strided_slice %432 {offsets = [0, 64], sizes = [2, 32], strides = [1, 1]} : vector<2x96xf32> to vector<2x32xf32>
    %451 = arith.mulf %440, %450 : vector<2x32xf32>
    %452 = arith.addf %449, %451 : vector<2x32xf32>
    %453 = math.tanh %452 : vector<2x32xf32>
    %cst_101 = arith.constant 1.000000e+00 : f32
    %454 = vector.broadcast %cst_101 : f32 to vector<2x32xf32>
    %455 = arith.subf %454, %448 : vector<2x32xf32>
    %456 = arith.mulf %455, %453 : vector<2x32xf32>
    %457 = arith.mulf %448, %390 : vector<2x32xf32>
    %458 = arith.addf %456, %457 : vector<2x32xf32>
    %459 = vector.extract_strided_slice %13 {offsets = [0, 1, 0], sizes = [2, 1, 96], strides = [1, 1, 1]} : vector<2x8x96xf32> to vector<2x1x96xf32>
    %460 = vector.shape_cast %459 : vector<2x1x96xf32> to vector<2x96xf32>
    %cst_102 = arith.constant dense<0.000000e+00> : vector<2x96xf32>
    %461 = tpu.matmul %421, %16, %cst_102 {dimension_numbers = #tpu.dot_dimension_numbers<[1], [0], [0], [1], [0, 0, 1, 1], [], []>} : vector<2x32xf32>, vector<32x96xf32>, vector<2x96xf32> -> vector<2x96xf32>
    %462 = vector.broadcast %17 : vector<1x96xf32> to vector<2x96xf32>
    %463 = arith.addf %461, %462 : vector<2x96xf32>
    %464 = vector.extract_strided_slice %460 {offsets = [0, 0], sizes = [2, 32], strides = [1, 1]} : vector<2x96xf32> to vector<2x32xf32>
    %465 = vector.extract_strided_slice %463 {offsets = [0, 0], sizes = [2, 32], strides = [1, 1]} : vector<2x96xf32> to vector<2x32xf32>
    %466 = arith.addf %464, %465 : vector<2x32xf32>
    %467 = arith.negf %466 : vector<2x32xf32>
    %468 = math.exp %467 : vector<2x32xf32>
    %cst_103 = arith.constant 1.000000e+00 : f32
    %469 = vector.broadcast %cst_103 : f32 to vector<2x32xf32>
    %470 = arith.addf %469, %468 : vector<2x32xf32>
    %471 = arith.divf %469, %470 : vector<2x32xf32>
    %472 = vector.extract_strided_slice %460 {offsets = [0, 32], sizes = [2, 32], strides = [1, 1]} : vector<2x96xf32> to vector<2x32xf32>
    %473 = vector.extract_strided_slice %463 {offsets = [0, 32], sizes = [2, 32], strides = [1, 1]} : vector<2x96xf32> to vector<2x32xf32>
    %474 = arith.addf %472, %473 : vector<2x32xf32>
    %475 = arith.negf %474 : vector<2x32xf32>
    %476 = math.exp %475 : vector<2x32xf32>
    %cst_104 = arith.constant 1.000000e+00 : f32
    %477 = vector.broadcast %cst_104 : f32 to vector<2x32xf32>
    %478 = arith.addf %477, %476 : vector<2x32xf32>
    %479 = arith.divf %477, %478 : vector<2x32xf32>
    %480 = vector.extract_strided_slice %460 {offsets = [0, 64], sizes = [2, 32], strides = [1, 1]} : vector<2x96xf32> to vector<2x32xf32>
    %481 = vector.extract_strided_slice %463 {offsets = [0, 64], sizes = [2, 32], strides = [1, 1]} : vector<2x96xf32> to vector<2x32xf32>
    %482 = arith.mulf %471, %481 : vector<2x32xf32>
    %483 = arith.addf %480, %482 : vector<2x32xf32>
    %484 = math.tanh %483 : vector<2x32xf32>
    %cst_105 = arith.constant 1.000000e+00 : f32
    %485 = vector.broadcast %cst_105 : f32 to vector<2x32xf32>
    %486 = arith.subf %485, %479 : vector<2x32xf32>
    %487 = arith.mulf %486, %484 : vector<2x32xf32>
    %488 = arith.mulf %479, %421 : vector<2x32xf32>
    %489 = arith.addf %487, %488 : vector<2x32xf32>
    %c0_106 = arith.constant 0 : index
    %c6_107 = arith.constant 6 : index
    %c0_108 = arith.constant 0 : index
    %490 = vector.load %arg27[%c0_106, %c6_107, %c0_108] : memref<2x8x32xf32, #tpu.memory_space<vmem>>, vector<2x1x32xf32>
    %491 = vector.shape_cast %490 : vector<2x1x32xf32> to vector<2x32xf32>
    %492 = vector.shape_cast %458 : vector<2x32xf32> to vector<2x1x32xf32>
    tpu.vector_store %arg27[%c0_106, %c6_107, %c0_108], %492 {strides = array<i32>} : memref<2x8x32xf32, #tpu.memory_space<vmem>>, vector<2x1x32xf32>,
    %c0_109 = arith.constant 0 : index
    %c1_110 = arith.constant 1 : index
    %c0_111 = arith.constant 0 : index
    %493 = vector.load %arg28[%c0_109, %c1_110, %c0_111] : memref<2x8x32xf32, #tpu.memory_space<vmem>>, vector<2x1x32xf32>
    %494 = vector.shape_cast %493 : vector<2x1x32xf32> to vector<2x32xf32>
    %495 = vector.shape_cast %489 : vector<2x32xf32> to vector<2x1x32xf32>
    tpu.vector_store %arg28[%c0_109, %c1_110, %c0_111], %495 {strides = array<i32>} : memref<2x8x32xf32, #tpu.memory_space<vmem>>, vector<2x1x32xf32>,
    %496 = vector.extract_strided_slice %7 {offsets = [0, 7, 0], sizes = [2, 1, 96], strides = [1, 1, 1]} : vector<2x8x96xf32> to vector<2x1x96xf32>
    %497 = vector.shape_cast %496 : vector<2x1x96xf32> to vector<2x96xf32>
    %cst_112 = arith.constant dense<0.000000e+00> : vector<2x96xf32>
    %498 = tpu.matmul %458, %14, %cst_112 {dimension_numbers = #tpu.dot_dimension_numbers<[1], [0], [0], [1], [0, 0, 1, 1], [], []>} : vector<2x32xf32>, vector<32x96xf32>, vector<2x96xf32> -> vector<2x96xf32>
    %499 = vector.broadcast %15 : vector<1x96xf32> to vector<2x96xf32>
    %500 = arith.addf %498, %499 : vector<2x96xf32>
    %501 = vector.extract_strided_slice %497 {offsets = [0, 0], sizes = [2, 32], strides = [1, 1]} : vector<2x96xf32> to vector<2x32xf32>
    %502 = vector.extract_strided_slice %500 {offsets = [0, 0], sizes = [2, 32], strides = [1, 1]} : vector<2x96xf32> to vector<2x32xf32>
    %503 = arith.addf %501, %502 : vector<2x32xf32>
    %504 = arith.negf %503 : vector<2x32xf32>
    %505 = math.exp %504 : vector<2x32xf32>
    %cst_113 = arith.constant 1.000000e+00 : f32
    %506 = vector.broadcast %cst_113 : f32 to vector<2x32xf32>
    %507 = arith.addf %506, %505 : vector<2x32xf32>
    %508 = arith.divf %506, %507 : vector<2x32xf32>
    %509 = vector.extract_strided_slice %497 {offsets = [0, 32], sizes = [2, 32], strides = [1, 1]} : vector<2x96xf32> to vector<2x32xf32>
    %510 = vector.extract_strided_slice %500 {offsets = [0, 32], sizes = [2, 32], strides = [1, 1]} : vector<2x96xf32> to vector<2x32xf32>
    %511 = arith.addf %509, %510 : vector<2x32xf32>
    %512 = arith.negf %511 : vector<2x32xf32>
    %513 = math.exp %512 : vector<2x32xf32>
    %cst_114 = arith.constant 1.000000e+00 : f32
    %514 = vector.broadcast %cst_114 : f32 to vector<2x32xf32>
    %515 = arith.addf %514, %513 : vector<2x32xf32>
    %516 = arith.divf %514, %515 : vector<2x32xf32>
    %517 = vector.extract_strided_slice %497 {offsets = [0, 64], sizes = [2, 32], strides = [1, 1]} : vector<2x96xf32> to vector<2x32xf32>
    %518 = vector.extract_strided_slice %500 {offsets = [0, 64], sizes = [2, 32], strides = [1, 1]} : vector<2x96xf32> to vector<2x32xf32>
    %519 = arith.mulf %508, %518 : vector<2x32xf32>
    %520 = arith.addf %517, %519 : vector<2x32xf32>
    %521 = math.tanh %520 : vector<2x32xf32>
    %cst_115 = arith.constant 1.000000e+00 : f32
    %522 = vector.broadcast %cst_115 : f32 to vector<2x32xf32>
    %523 = arith.subf %522, %516 : vector<2x32xf32>
    %524 = arith.mulf %523, %521 : vector<2x32xf32>
    %525 = arith.mulf %516, %458 : vector<2x32xf32>
    %526 = arith.addf %524, %525 : vector<2x32xf32>
    %527 = vector.extract_strided_slice %13 {offsets = [0, 0, 0], sizes = [2, 1, 96], strides = [1, 1, 1]} : vector<2x8x96xf32> to vector<2x1x96xf32>
    %528 = vector.shape_cast %527 : vector<2x1x96xf32> to vector<2x96xf32>
    %cst_116 = arith.constant dense<0.000000e+00> : vector<2x96xf32>
    %529 = tpu.matmul %489, %16, %cst_116 {dimension_numbers = #tpu.dot_dimension_numbers<[1], [0], [0], [1], [0, 0, 1, 1], [], []>} : vector<2x32xf32>, vector<32x96xf32>, vector<2x96xf32> -> vector<2x96xf32>
    %530 = vector.broadcast %17 : vector<1x96xf32> to vector<2x96xf32>
    %531 = arith.addf %529, %530 : vector<2x96xf32>
    %532 = vector.extract_strided_slice %528 {offsets = [0, 0], sizes = [2, 32], strides = [1, 1]} : vector<2x96xf32> to vector<2x32xf32>
    %533 = vector.extract_strided_slice %531 {offsets = [0, 0], sizes = [2, 32], strides = [1, 1]} : vector<2x96xf32> to vector<2x32xf32>
    %534 = arith.addf %532, %533 : vector<2x32xf32>
    %535 = arith.negf %534 : vector<2x32xf32>
    %536 = math.exp %535 : vector<2x32xf32>
    %cst_117 = arith.constant 1.000000e+00 : f32
    %537 = vector.broadcast %cst_117 : f32 to vector<2x32xf32>
    %538 = arith.addf %537, %536 : vector<2x32xf32>
    %539 = arith.divf %537, %538 : vector<2x32xf32>
    %540 = vector.extract_strided_slice %528 {offsets = [0, 32], sizes = [2, 32], strides = [1, 1]} : vector<2x96xf32> to vector<2x32xf32>
    %541 = vector.extract_strided_slice %531 {offsets = [0, 32], sizes = [2, 32], strides = [1, 1]} : vector<2x96xf32> to vector<2x32xf32>
    %542 = arith.addf %540, %541 : vector<2x32xf32>
    %543 = arith.negf %542 : vector<2x32xf32>
    %544 = math.exp %543 : vector<2x32xf32>
    %cst_118 = arith.constant 1.000000e+00 : f32
    %545 = vector.broadcast %cst_118 : f32 to vector<2x32xf32>
    %546 = arith.addf %545, %544 : vector<2x32xf32>
    %547 = arith.divf %545, %546 : vector<2x32xf32>
    %548 = vector.extract_strided_slice %528 {offsets = [0, 64], sizes = [2, 32], strides = [1, 1]} : vector<2x96xf32> to vector<2x32xf32>
    %549 = vector.extract_strided_slice %531 {offsets = [0, 64], sizes = [2, 32], strides = [1, 1]} : vector<2x96xf32> to vector<2x32xf32>
    %550 = arith.mulf %539, %549 : vector<2x32xf32>
    %551 = arith.addf %548, %550 : vector<2x32xf32>
    %552 = math.tanh %551 : vector<2x32xf32>
    %cst_119 = arith.constant 1.000000e+00 : f32
    %553 = vector.broadcast %cst_119 : f32 to vector<2x32xf32>
    %554 = arith.subf %553, %547 : vector<2x32xf32>
    %555 = arith.mulf %554, %552 : vector<2x32xf32>
    %556 = arith.mulf %547, %489 : vector<2x32xf32>
    %557 = arith.addf %555, %556 : vector<2x32xf32>
    %c0_120 = arith.constant 0 : index
    %c7_121 = arith.constant 7 : index
    %c0_122 = arith.constant 0 : index
    %558 = vector.load %arg27[%c0_120, %c7_121, %c0_122] : memref<2x8x32xf32, #tpu.memory_space<vmem>>, vector<2x1x32xf32>
    %559 = vector.shape_cast %558 : vector<2x1x32xf32> to vector<2x32xf32>
    %560 = vector.shape_cast %526 : vector<2x32xf32> to vector<2x1x32xf32>
    tpu.vector_store %arg27[%c0_120, %c7_121, %c0_122], %560 {strides = array<i32>} : memref<2x8x32xf32, #tpu.memory_space<vmem>>, vector<2x1x32xf32>,
    %c0_123 = arith.constant 0 : index
    %c0_124 = arith.constant 0 : index
    %c0_125 = arith.constant 0 : index
    %561 = vector.load %arg28[%c0_123, %c0_124, %c0_125] : memref<2x8x32xf32, #tpu.memory_space<vmem>>, vector<2x1x32xf32>
    %562 = vector.shape_cast %561 : vector<2x1x32xf32> to vector<2x32xf32>
    %563 = vector.shape_cast %557 : vector<2x32xf32> to vector<2x1x32xf32>
    tpu.vector_store %arg28[%c0_123, %c0_124, %c0_125], %563 {strides = array<i32>} : memref<2x8x32xf32, #tpu.memory_space<vmem>>, vector<2x1x32xf32>,
    %c0_126 = arith.constant 0 : index
    %c0_127 = arith.constant 0 : index
    %c0_128 = arith.constant 0 : index
    %564 = vector.load %arg27[%c0_126, %c0_127, %c0_128] : memref<2x8x32xf32, #tpu.memory_space<vmem>>, vector<2x8x32xf32>
    %c0_129 = arith.constant 0 : index
    %c0_130 = arith.constant 0 : index
    %c0_131 = arith.constant 0 : index
    %565 = vector.load %arg28[%c0_129, %c0_130, %c0_131] : memref<2x8x32xf32, #tpu.memory_space<vmem>>, vector<2x8x32xf32>
    %566 = arith.addf %564, %565 : vector<2x8x32xf32>
    %c0_132 = arith.constant 0 : index
    %c0_133 = arith.constant 0 : index
    %c0_134 = arith.constant 0 : index
    %567 = vector.load %arg1[%c0_132, %c0_133, %c0_134] : memref<2x8x32xf32, #tpu.memory_space<vmem>>, vector<2x8x32xf32>
    %568 = vector.shape_cast %567 : vector<2x8x32xf32> to vector<16x32xf32>
    %c0_135 = arith.constant 0 : index
    %c0_136 = arith.constant 0 : index
    %569 = vector.load %arg10[%c0_135, %c0_136] : memref<32x96xf32, #tpu.memory_space<vmem>>, vector<32x96xf32>
    %cst_137 = arith.constant dense<0.000000e+00> : vector<16x96xf32>
    %570 = tpu.matmul %568, %569, %cst_137 {dimension_numbers = #tpu.dot_dimension_numbers<[1], [0], [0], [1], [0, 0, 1, 1], [], []>} : vector<16x32xf32>, vector<32x96xf32>, vector<16x96xf32> -> vector<16x96xf32>
    %c0_138 = arith.constant 0 : index
    %c0_139 = arith.constant 0 : index
    %571 = vector.load %arg12[%c0_138, %c0_139] : memref<1x96xf32, #tpu.memory_space<vmem>>, vector<1x96xf32>
    %572 = vector.broadcast %571 : vector<1x96xf32> to vector<16x96xf32>
    %573 = arith.addf %570, %572 : vector<16x96xf32>
    %574 = vector.shape_cast %573 : vector<16x96xf32> to vector<2x8x96xf32>
    %c0_140 = arith.constant 0 : index
    %c0_141 = arith.constant 0 : index
    %575 = vector.load %arg11[%c0_140, %c0_141] : memref<32x96xf32, #tpu.memory_space<vmem>>, vector<32x96xf32>
    %c0_142 = arith.constant 0 : index
    %c0_143 = arith.constant 0 : index
    %576 = vector.load %arg13[%c0_142, %c0_143] : memref<1x96xf32, #tpu.memory_space<vmem>>, vector<1x96xf32>
    %cst_144 = arith.constant 0.000000e+00 : f32
    %577 = vector.broadcast %cst_144 : f32 to vector<2x32xf32>
    %578 = vector.extract_strided_slice %574 {offsets = [0, 0, 0], sizes = [2, 1, 96], strides = [1, 1, 1]} : vector<2x8x96xf32> to vector<2x1x96xf32>
    %579 = vector.shape_cast %578 : vector<2x1x96xf32> to vector<2x96xf32>
    %cst_145 = arith.constant dense<0.000000e+00> : vector<2x96xf32>
    %580 = tpu.matmul %577, %575, %cst_145 {dimension_numbers = #tpu.dot_dimension_numbers<[1], [0], [0], [1], [0, 0, 1, 1], [], []>} : vector<2x32xf32>, vector<32x96xf32>, vector<2x96xf32> -> vector<2x96xf32>
    %581 = vector.broadcast %576 : vector<1x96xf32> to vector<2x96xf32>
    %582 = arith.addf %580, %581 : vector<2x96xf32>
    %583 = vector.extract_strided_slice %579 {offsets = [0, 0], sizes = [2, 32], strides = [1, 1]} : vector<2x96xf32> to vector<2x32xf32>
    %584 = vector.extract_strided_slice %582 {offsets = [0, 0], sizes = [2, 32], strides = [1, 1]} : vector<2x96xf32> to vector<2x32xf32>
    %585 = arith.addf %583, %584 : vector<2x32xf32>
    %586 = arith.negf %585 : vector<2x32xf32>
    %587 = math.exp %586 : vector<2x32xf32>
    %cst_146 = arith.constant 1.000000e+00 : f32
    %588 = vector.broadcast %cst_146 : f32 to vector<2x32xf32>
    %589 = arith.addf %588, %587 : vector<2x32xf32>
    %590 = arith.divf %588, %589 : vector<2x32xf32>
    %591 = vector.extract_strided_slice %579 {offsets = [0, 32], sizes = [2, 32], strides = [1, 1]} : vector<2x96xf32> to vector<2x32xf32>
    %592 = vector.extract_strided_slice %582 {offsets = [0, 32], sizes = [2, 32], strides = [1, 1]} : vector<2x96xf32> to vector<2x32xf32>
    %593 = arith.addf %591, %592 : vector<2x32xf32>
    %594 = arith.negf %593 : vector<2x32xf32>
    %595 = math.exp %594 : vector<2x32xf32>
    %cst_147 = arith.constant 1.000000e+00 : f32
    %596 = vector.broadcast %cst_147 : f32 to vector<2x32xf32>
    %597 = arith.addf %596, %595 : vector<2x32xf32>
    %598 = arith.divf %596, %597 : vector<2x32xf32>
    %599 = vector.extract_strided_slice %579 {offsets = [0, 64], sizes = [2, 32], strides = [1, 1]} : vector<2x96xf32> to vector<2x32xf32>
    %600 = vector.extract_strided_slice %582 {offsets = [0, 64], sizes = [2, 32], strides = [1, 1]} : vector<2x96xf32> to vector<2x32xf32>
    %601 = arith.mulf %590, %600 : vector<2x32xf32>
    %602 = arith.addf %599, %601 : vector<2x32xf32>
    %603 = math.tanh %602 : vector<2x32xf32>
    %cst_148 = arith.constant 1.000000e+00 : f32
    %604 = vector.broadcast %cst_148 : f32 to vector<2x32xf32>
    %605 = arith.subf %604, %598 : vector<2x32xf32>
    %606 = arith.mulf %605, %603 : vector<2x32xf32>
    %607 = arith.mulf %598, %577 : vector<2x32xf32>
    %608 = arith.addf %606, %607 : vector<2x32xf32>
    %609 = vector.extract_strided_slice %574 {offsets = [0, 1, 0], sizes = [2, 1, 96], strides = [1, 1, 1]} : vector<2x8x96xf32> to vector<2x1x96xf32>
    %610 = vector.shape_cast %609 : vector<2x1x96xf32> to vector<2x96xf32>
    %cst_149 = arith.constant dense<0.000000e+00> : vector<2x96xf32>
    %611 = tpu.matmul %608, %575, %cst_149 {dimension_numbers = #tpu.dot_dimension_numbers<[1], [0], [0], [1], [0, 0, 1, 1], [], []>} : vector<2x32xf32>, vector<32x96xf32>, vector<2x96xf32> -> vector<2x96xf32>
    %612 = vector.broadcast %576 : vector<1x96xf32> to vector<2x96xf32>
    %613 = arith.addf %611, %612 : vector<2x96xf32>
    %614 = vector.extract_strided_slice %610 {offsets = [0, 0], sizes = [2, 32], strides = [1, 1]} : vector<2x96xf32> to vector<2x32xf32>
    %615 = vector.extract_strided_slice %613 {offsets = [0, 0], sizes = [2, 32], strides = [1, 1]} : vector<2x96xf32> to vector<2x32xf32>
    %616 = arith.addf %614, %615 : vector<2x32xf32>
    %617 = arith.negf %616 : vector<2x32xf32>
    %618 = math.exp %617 : vector<2x32xf32>
    %cst_150 = arith.constant 1.000000e+00 : f32
    %619 = vector.broadcast %cst_150 : f32 to vector<2x32xf32>
    %620 = arith.addf %619, %618 : vector<2x32xf32>
    %621 = arith.divf %619, %620 : vector<2x32xf32>
    %622 = vector.extract_strided_slice %610 {offsets = [0, 32], sizes = [2, 32], strides = [1, 1]} : vector<2x96xf32> to vector<2x32xf32>
    %623 = vector.extract_strided_slice %613 {offsets = [0, 32], sizes = [2, 32], strides = [1, 1]} : vector<2x96xf32> to vector<2x32xf32>
    %624 = arith.addf %622, %623 : vector<2x32xf32>
    %625 = arith.negf %624 : vector<2x32xf32>
    %626 = math.exp %625 : vector<2x32xf32>
    %cst_151 = arith.constant 1.000000e+00 : f32
    %627 = vector.broadcast %cst_151 : f32 to vector<2x32xf32>
    %628 = arith.addf %627, %626 : vector<2x32xf32>
    %629 = arith.divf %627, %628 : vector<2x32xf32>
    %630 = vector.extract_strided_slice %610 {offsets = [0, 64], sizes = [2, 32], strides = [1, 1]} : vector<2x96xf32> to vector<2x32xf32>
    %631 = vector.extract_strided_slice %613 {offsets = [0, 64], sizes = [2, 32], strides = [1, 1]} : vector<2x96xf32> to vector<2x32xf32>
    %632 = arith.mulf %621, %631 : vector<2x32xf32>
    %633 = arith.addf %630, %632 : vector<2x32xf32>
    %634 = math.tanh %633 : vector<2x32xf32>
    %cst_152 = arith.constant 1.000000e+00 : f32
    %635 = vector.broadcast %cst_152 : f32 to vector<2x32xf32>
    %636 = arith.subf %635, %629 : vector<2x32xf32>
    %637 = arith.mulf %636, %634 : vector<2x32xf32>
    %638 = arith.mulf %629, %608 : vector<2x32xf32>
    %639 = arith.addf %637, %638 : vector<2x32xf32>
    %640 = vector.extract_strided_slice %574 {offsets = [0, 2, 0], sizes = [2, 1, 96], strides = [1, 1, 1]} : vector<2x8x96xf32> to vector<2x1x96xf32>
    %641 = vector.shape_cast %640 : vector<2x1x96xf32> to vector<2x96xf32>
    %cst_153 = arith.constant dense<0.000000e+00> : vector<2x96xf32>
    %642 = tpu.matmul %639, %575, %cst_153 {dimension_numbers = #tpu.dot_dimension_numbers<[1], [0], [0], [1], [0, 0, 1, 1], [], []>} : vector<2x32xf32>, vector<32x96xf32>, vector<2x96xf32> -> vector<2x96xf32>
    %643 = vector.broadcast %576 : vector<1x96xf32> to vector<2x96xf32>
    %644 = arith.addf %642, %643 : vector<2x96xf32>
    %645 = vector.extract_strided_slice %641 {offsets = [0, 0], sizes = [2, 32], strides = [1, 1]} : vector<2x96xf32> to vector<2x32xf32>
    %646 = vector.extract_strided_slice %644 {offsets = [0, 0], sizes = [2, 32], strides = [1, 1]} : vector<2x96xf32> to vector<2x32xf32>
    %647 = arith.addf %645, %646 : vector<2x32xf32>
    %648 = arith.negf %647 : vector<2x32xf32>
    %649 = math.exp %648 : vector<2x32xf32>
    %cst_154 = arith.constant 1.000000e+00 : f32
    %650 = vector.broadcast %cst_154 : f32 to vector<2x32xf32>
    %651 = arith.addf %650, %649 : vector<2x32xf32>
    %652 = arith.divf %650, %651 : vector<2x32xf32>
    %653 = vector.extract_strided_slice %641 {offsets = [0, 32], sizes = [2, 32], strides = [1, 1]} : vector<2x96xf32> to vector<2x32xf32>
    %654 = vector.extract_strided_slice %644 {offsets = [0, 32], sizes = [2, 32], strides = [1, 1]} : vector<2x96xf32> to vector<2x32xf32>
    %655 = arith.addf %653, %654 : vector<2x32xf32>
    %656 = arith.negf %655 : vector<2x32xf32>
    %657 = math.exp %656 : vector<2x32xf32>
    %cst_155 = arith.constant 1.000000e+00 : f32
    %658 = vector.broadcast %cst_155 : f32 to vector<2x32xf32>
    %659 = arith.addf %658, %657 : vector<2x32xf32>
    %660 = arith.divf %658, %659 : vector<2x32xf32>
    %661 = vector.extract_strided_slice %641 {offsets = [0, 64], sizes = [2, 32], strides = [1, 1]} : vector<2x96xf32> to vector<2x32xf32>
    %662 = vector.extract_strided_slice %644 {offsets = [0, 64], sizes = [2, 32], strides = [1, 1]} : vector<2x96xf32> to vector<2x32xf32>
    %663 = arith.mulf %652, %662 : vector<2x32xf32>
    %664 = arith.addf %661, %663 : vector<2x32xf32>
    %665 = math.tanh %664 : vector<2x32xf32>
    %cst_156 = arith.constant 1.000000e+00 : f32
    %666 = vector.broadcast %cst_156 : f32 to vector<2x32xf32>
    %667 = arith.subf %666, %660 : vector<2x32xf32>
    %668 = arith.mulf %667, %665 : vector<2x32xf32>
    %669 = arith.mulf %660, %639 : vector<2x32xf32>
    %670 = arith.addf %668, %669 : vector<2x32xf32>
    %671 = vector.extract_strided_slice %574 {offsets = [0, 3, 0], sizes = [2, 1, 96], strides = [1, 1, 1]} : vector<2x8x96xf32> to vector<2x1x96xf32>
    %672 = vector.shape_cast %671 : vector<2x1x96xf32> to vector<2x96xf32>
    %cst_157 = arith.constant dense<0.000000e+00> : vector<2x96xf32>
    %673 = tpu.matmul %670, %575, %cst_157 {dimension_numbers = #tpu.dot_dimension_numbers<[1], [0], [0], [1], [0, 0, 1, 1], [], []>} : vector<2x32xf32>, vector<32x96xf32>, vector<2x96xf32> -> vector<2x96xf32>
    %674 = vector.broadcast %576 : vector<1x96xf32> to vector<2x96xf32>
    %675 = arith.addf %673, %674 : vector<2x96xf32>
    %676 = vector.extract_strided_slice %672 {offsets = [0, 0], sizes = [2, 32], strides = [1, 1]} : vector<2x96xf32> to vector<2x32xf32>
    %677 = vector.extract_strided_slice %675 {offsets = [0, 0], sizes = [2, 32], strides = [1, 1]} : vector<2x96xf32> to vector<2x32xf32>
    %678 = arith.addf %676, %677 : vector<2x32xf32>
    %679 = arith.negf %678 : vector<2x32xf32>
    %680 = math.exp %679 : vector<2x32xf32>
    %cst_158 = arith.constant 1.000000e+00 : f32
    %681 = vector.broadcast %cst_158 : f32 to vector<2x32xf32>
    %682 = arith.addf %681, %680 : vector<2x32xf32>
    %683 = arith.divf %681, %682 : vector<2x32xf32>
    %684 = vector.extract_strided_slice %672 {offsets = [0, 32], sizes = [2, 32], strides = [1, 1]} : vector<2x96xf32> to vector<2x32xf32>
    %685 = vector.extract_strided_slice %675 {offsets = [0, 32], sizes = [2, 32], strides = [1, 1]} : vector<2x96xf32> to vector<2x32xf32>
    %686 = arith.addf %684, %685 : vector<2x32xf32>
    %687 = arith.negf %686 : vector<2x32xf32>
    %688 = math.exp %687 : vector<2x32xf32>
    %cst_159 = arith.constant 1.000000e+00 : f32
    %689 = vector.broadcast %cst_159 : f32 to vector<2x32xf32>
    %690 = arith.addf %689, %688 : vector<2x32xf32>
    %691 = arith.divf %689, %690 : vector<2x32xf32>
    %692 = vector.extract_strided_slice %672 {offsets = [0, 64], sizes = [2, 32], strides = [1, 1]} : vector<2x96xf32> to vector<2x32xf32>
    %693 = vector.extract_strided_slice %675 {offsets = [0, 64], sizes = [2, 32], strides = [1, 1]} : vector<2x96xf32> to vector<2x32xf32>
    %694 = arith.mulf %683, %693 : vector<2x32xf32>
    %695 = arith.addf %692, %694 : vector<2x32xf32>
    %696 = math.tanh %695 : vector<2x32xf32>
    %cst_160 = arith.constant 1.000000e+00 : f32
    %697 = vector.broadcast %cst_160 : f32 to vector<2x32xf32>
    %698 = arith.subf %697, %691 : vector<2x32xf32>
    %699 = arith.mulf %698, %696 : vector<2x32xf32>
    %700 = arith.mulf %691, %670 : vector<2x32xf32>
    %701 = arith.addf %699, %700 : vector<2x32xf32>
    %702 = vector.extract_strided_slice %574 {offsets = [0, 4, 0], sizes = [2, 1, 96], strides = [1, 1, 1]} : vector<2x8x96xf32> to vector<2x1x96xf32>
    %703 = vector.shape_cast %702 : vector<2x1x96xf32> to vector<2x96xf32>
    %cst_161 = arith.constant dense<0.000000e+00> : vector<2x96xf32>
    %704 = tpu.matmul %701, %575, %cst_161 {dimension_numbers = #tpu.dot_dimension_numbers<[1], [0], [0], [1], [0, 0, 1, 1], [], []>} : vector<2x32xf32>, vector<32x96xf32>, vector<2x96xf32> -> vector<2x96xf32>
    %705 = vector.broadcast %576 : vector<1x96xf32> to vector<2x96xf32>
    %706 = arith.addf %704, %705 : vector<2x96xf32>
    %707 = vector.extract_strided_slice %703 {offsets = [0, 0], sizes = [2, 32], strides = [1, 1]} : vector<2x96xf32> to vector<2x32xf32>
    %708 = vector.extract_strided_slice %706 {offsets = [0, 0], sizes = [2, 32], strides = [1, 1]} : vector<2x96xf32> to vector<2x32xf32>
    %709 = arith.addf %707, %708 : vector<2x32xf32>
    %710 = arith.negf %709 : vector<2x32xf32>
    %711 = math.exp %710 : vector<2x32xf32>
    %cst_162 = arith.constant 1.000000e+00 : f32
    %712 = vector.broadcast %cst_162 : f32 to vector<2x32xf32>
    %713 = arith.addf %712, %711 : vector<2x32xf32>
    %714 = arith.divf %712, %713 : vector<2x32xf32>
    %715 = vector.extract_strided_slice %703 {offsets = [0, 32], sizes = [2, 32], strides = [1, 1]} : vector<2x96xf32> to vector<2x32xf32>
    %716 = vector.extract_strided_slice %706 {offsets = [0, 32], sizes = [2, 32], strides = [1, 1]} : vector<2x96xf32> to vector<2x32xf32>
    %717 = arith.addf %715, %716 : vector<2x32xf32>
    %718 = arith.negf %717 : vector<2x32xf32>
    %719 = math.exp %718 : vector<2x32xf32>
    %cst_163 = arith.constant 1.000000e+00 : f32
    %720 = vector.broadcast %cst_163 : f32 to vector<2x32xf32>
    %721 = arith.addf %720, %719 : vector<2x32xf32>
    %722 = arith.divf %720, %721 : vector<2x32xf32>
    %723 = vector.extract_strided_slice %703 {offsets = [0, 64], sizes = [2, 32], strides = [1, 1]} : vector<2x96xf32> to vector<2x32xf32>
    %724 = vector.extract_strided_slice %706 {offsets = [0, 64], sizes = [2, 32], strides = [1, 1]} : vector<2x96xf32> to vector<2x32xf32>
    %725 = arith.mulf %714, %724 : vector<2x32xf32>
    %726 = arith.addf %723, %725 : vector<2x32xf32>
    %727 = math.tanh %726 : vector<2x32xf32>
    %cst_164 = arith.constant 1.000000e+00 : f32
    %728 = vector.broadcast %cst_164 : f32 to vector<2x32xf32>
    %729 = arith.subf %728, %722 : vector<2x32xf32>
    %730 = arith.mulf %729, %727 : vector<2x32xf32>
    %731 = arith.mulf %722, %701 : vector<2x32xf32>
    %732 = arith.addf %730, %731 : vector<2x32xf32>
    %733 = vector.extract_strided_slice %574 {offsets = [0, 5, 0], sizes = [2, 1, 96], strides = [1, 1, 1]} : vector<2x8x96xf32> to vector<2x1x96xf32>
    %734 = vector.shape_cast %733 : vector<2x1x96xf32> to vector<2x96xf32>
    %cst_165 = arith.constant dense<0.000000e+00> : vector<2x96xf32>
    %735 = tpu.matmul %732, %575, %cst_165 {dimension_numbers = #tpu.dot_dimension_numbers<[1], [0], [0], [1], [0, 0, 1, 1], [], []>} : vector<2x32xf32>, vector<32x96xf32>, vector<2x96xf32> -> vector<2x96xf32>
    %736 = vector.broadcast %576 : vector<1x96xf32> to vector<2x96xf32>
    %737 = arith.addf %735, %736 : vector<2x96xf32>
    %738 = vector.extract_strided_slice %734 {offsets = [0, 0], sizes = [2, 32], strides = [1, 1]} : vector<2x96xf32> to vector<2x32xf32>
    %739 = vector.extract_strided_slice %737 {offsets = [0, 0], sizes = [2, 32], strides = [1, 1]} : vector<2x96xf32> to vector<2x32xf32>
    %740 = arith.addf %738, %739 : vector<2x32xf32>
    %741 = arith.negf %740 : vector<2x32xf32>
    %742 = math.exp %741 : vector<2x32xf32>
    %cst_166 = arith.constant 1.000000e+00 : f32
    %743 = vector.broadcast %cst_166 : f32 to vector<2x32xf32>
    %744 = arith.addf %743, %742 : vector<2x32xf32>
    %745 = arith.divf %743, %744 : vector<2x32xf32>
    %746 = vector.extract_strided_slice %734 {offsets = [0, 32], sizes = [2, 32], strides = [1, 1]} : vector<2x96xf32> to vector<2x32xf32>
    %747 = vector.extract_strided_slice %737 {offsets = [0, 32], sizes = [2, 32], strides = [1, 1]} : vector<2x96xf32> to vector<2x32xf32>
    %748 = arith.addf %746, %747 : vector<2x32xf32>
    %749 = arith.negf %748 : vector<2x32xf32>
    %750 = math.exp %749 : vector<2x32xf32>
    %cst_167 = arith.constant 1.000000e+00 : f32
    %751 = vector.broadcast %cst_167 : f32 to vector<2x32xf32>
    %752 = arith.addf %751, %750 : vector<2x32xf32>
    %753 = arith.divf %751, %752 : vector<2x32xf32>
    %754 = vector.extract_strided_slice %734 {offsets = [0, 64], sizes = [2, 32], strides = [1, 1]} : vector<2x96xf32> to vector<2x32xf32>
    %755 = vector.extract_strided_slice %737 {offsets = [0, 64], sizes = [2, 32], strides = [1, 1]} : vector<2x96xf32> to vector<2x32xf32>
    %756 = arith.mulf %745, %755 : vector<2x32xf32>
    %757 = arith.addf %754, %756 : vector<2x32xf32>
    %758 = math.tanh %757 : vector<2x32xf32>
    %cst_168 = arith.constant 1.000000e+00 : f32
    %759 = vector.broadcast %cst_168 : f32 to vector<2x32xf32>
    %760 = arith.subf %759, %753 : vector<2x32xf32>
    %761 = arith.mulf %760, %758 : vector<2x32xf32>
    %762 = arith.mulf %753, %732 : vector<2x32xf32>
    %763 = arith.addf %761, %762 : vector<2x32xf32>
    %764 = vector.extract_strided_slice %574 {offsets = [0, 6, 0], sizes = [2, 1, 96], strides = [1, 1, 1]} : vector<2x8x96xf32> to vector<2x1x96xf32>
    %765 = vector.shape_cast %764 : vector<2x1x96xf32> to vector<2x96xf32>
    %cst_169 = arith.constant dense<0.000000e+00> : vector<2x96xf32>
    %766 = tpu.matmul %763, %575, %cst_169 {dimension_numbers = #tpu.dot_dimension_numbers<[1], [0], [0], [1], [0, 0, 1, 1], [], []>} : vector<2x32xf32>, vector<32x96xf32>, vector<2x96xf32> -> vector<2x96xf32>
    %767 = vector.broadcast %576 : vector<1x96xf32> to vector<2x96xf32>
    %768 = arith.addf %766, %767 : vector<2x96xf32>
    %769 = vector.extract_strided_slice %765 {offsets = [0, 0], sizes = [2, 32], strides = [1, 1]} : vector<2x96xf32> to vector<2x32xf32>
    %770 = vector.extract_strided_slice %768 {offsets = [0, 0], sizes = [2, 32], strides = [1, 1]} : vector<2x96xf32> to vector<2x32xf32>
    %771 = arith.addf %769, %770 : vector<2x32xf32>
    %772 = arith.negf %771 : vector<2x32xf32>
    %773 = math.exp %772 : vector<2x32xf32>
    %cst_170 = arith.constant 1.000000e+00 : f32
    %774 = vector.broadcast %cst_170 : f32 to vector<2x32xf32>
    %775 = arith.addf %774, %773 : vector<2x32xf32>
    %776 = arith.divf %774, %775 : vector<2x32xf32>
    %777 = vector.extract_strided_slice %765 {offsets = [0, 32], sizes = [2, 32], strides = [1, 1]} : vector<2x96xf32> to vector<2x32xf32>
    %778 = vector.extract_strided_slice %768 {offsets = [0, 32], sizes = [2, 32], strides = [1, 1]} : vector<2x96xf32> to vector<2x32xf32>
    %779 = arith.addf %777, %778 : vector<2x32xf32>
    %780 = arith.negf %779 : vector<2x32xf32>
    %781 = math.exp %780 : vector<2x32xf32>
    %cst_171 = arith.constant 1.000000e+00 : f32
    %782 = vector.broadcast %cst_171 : f32 to vector<2x32xf32>
    %783 = arith.addf %782, %781 : vector<2x32xf32>
    %784 = arith.divf %782, %783 : vector<2x32xf32>
    %785 = vector.extract_strided_slice %765 {offsets = [0, 64], sizes = [2, 32], strides = [1, 1]} : vector<2x96xf32> to vector<2x32xf32>
    %786 = vector.extract_strided_slice %768 {offsets = [0, 64], sizes = [2, 32], strides = [1, 1]} : vector<2x96xf32> to vector<2x32xf32>
    %787 = arith.mulf %776, %786 : vector<2x32xf32>
    %788 = arith.addf %785, %787 : vector<2x32xf32>
    %789 = math.tanh %788 : vector<2x32xf32>
    %cst_172 = arith.constant 1.000000e+00 : f32
    %790 = vector.broadcast %cst_172 : f32 to vector<2x32xf32>
    %791 = arith.subf %790, %784 : vector<2x32xf32>
    %792 = arith.mulf %791, %789 : vector<2x32xf32>
    %793 = arith.mulf %784, %763 : vector<2x32xf32>
    %794 = arith.addf %792, %793 : vector<2x32xf32>
    %795 = vector.extract_strided_slice %574 {offsets = [0, 7, 0], sizes = [2, 1, 96], strides = [1, 1, 1]} : vector<2x8x96xf32> to vector<2x1x96xf32>
    %796 = vector.shape_cast %795 : vector<2x1x96xf32> to vector<2x96xf32>
    %cst_173 = arith.constant dense<0.000000e+00> : vector<2x96xf32>
    %797 = tpu.matmul %794, %575, %cst_173 {dimension_numbers = #tpu.dot_dimension_numbers<[1], [0], [0], [1], [0, 0, 1, 1], [], []>} : vector<2x32xf32>, vector<32x96xf32>, vector<2x96xf32> -> vector<2x96xf32>
    %798 = vector.broadcast %576 : vector<1x96xf32> to vector<2x96xf32>
    %799 = arith.addf %797, %798 : vector<2x96xf32>
    %800 = vector.extract_strided_slice %796 {offsets = [0, 0], sizes = [2, 32], strides = [1, 1]} : vector<2x96xf32> to vector<2x32xf32>
    %801 = vector.extract_strided_slice %799 {offsets = [0, 0], sizes = [2, 32], strides = [1, 1]} : vector<2x96xf32> to vector<2x32xf32>
    %802 = arith.addf %800, %801 : vector<2x32xf32>
    %803 = arith.negf %802 : vector<2x32xf32>
    %804 = math.exp %803 : vector<2x32xf32>
    %cst_174 = arith.constant 1.000000e+00 : f32
    %805 = vector.broadcast %cst_174 : f32 to vector<2x32xf32>
    %806 = arith.addf %805, %804 : vector<2x32xf32>
    %807 = arith.divf %805, %806 : vector<2x32xf32>
    %808 = vector.extract_strided_slice %796 {offsets = [0, 32], sizes = [2, 32], strides = [1, 1]} : vector<2x96xf32> to vector<2x32xf32>
    %809 = vector.extract_strided_slice %799 {offsets = [0, 32], sizes = [2, 32], strides = [1, 1]} : vector<2x96xf32> to vector<2x32xf32>
    %810 = arith.addf %808, %809 : vector<2x32xf32>
    %811 = arith.negf %810 : vector<2x32xf32>
    %812 = math.exp %811 : vector<2x32xf32>
    %cst_175 = arith.constant 1.000000e+00 : f32
    %813 = vector.broadcast %cst_175 : f32 to vector<2x32xf32>
    %814 = arith.addf %813, %812 : vector<2x32xf32>
    %815 = arith.divf %813, %814 : vector<2x32xf32>
    %816 = vector.extract_strided_slice %796 {offsets = [0, 64], sizes = [2, 32], strides = [1, 1]} : vector<2x96xf32> to vector<2x32xf32>
    %817 = vector.extract_strided_slice %799 {offsets = [0, 64], sizes = [2, 32], strides = [1, 1]} : vector<2x96xf32> to vector<2x32xf32>
    %818 = arith.mulf %807, %817 : vector<2x32xf32>
    %819 = arith.addf %816, %818 : vector<2x32xf32>
    %820 = math.tanh %819 : vector<2x32xf32>
    %cst_176 = arith.constant 1.000000e+00 : f32
    %821 = vector.broadcast %cst_176 : f32 to vector<2x32xf32>
    %822 = arith.subf %821, %815 : vector<2x32xf32>
    %823 = arith.mulf %822, %820 : vector<2x32xf32>
    %824 = arith.mulf %815, %794 : vector<2x32xf32>
    %825 = arith.addf %823, %824 : vector<2x32xf32>
    %826 = vector.shape_cast %566 : vector<2x8x32xf32> to vector<16x32xf32>
    %c0_177 = arith.constant 0 : index
    %c0_178 = arith.constant 0 : index
    %827 = vector.load %arg18[%c0_177, %c0_178] : memref<32x64xf32, #tpu.memory_space<vmem>>, vector<32x64xf32>
    %cst_179 = arith.constant dense<0.000000e+00> : vector<16x64xf32>
    %828 = tpu.matmul %826, %827, %cst_179 {dimension_numbers = #tpu.dot_dimension_numbers<[1], [0], [0], [1], [0, 0, 1, 1], [], []>} : vector<16x32xf32>, vector<32x64xf32>, vector<16x64xf32> -> vector<16x64xf32>
    %c0_180 = arith.constant 0 : index
    %c0_181 = arith.constant 0 : index
    %829 = vector.load %arg19[%c0_180, %c0_181] : memref<1x64xf32, #tpu.memory_space<vmem>>, vector<1x64xf32>
    %830 = vector.broadcast %829 : vector<1x64xf32> to vector<16x64xf32>
    %831 = arith.addf %828, %830 : vector<16x64xf32>
    %832 = vector.shape_cast %831 : vector<16x64xf32> to vector<2x8x64xf32>
    %c0_182 = arith.constant 0 : index
    %c0_183 = arith.constant 0 : index
    %833 = vector.load %arg20[%c0_182, %c0_183] : memref<32x64xf32, #tpu.memory_space<vmem>>, vector<32x64xf32>
    %c0_184 = arith.constant 0 : index
    %c0_185 = arith.constant 0 : index
    %834 = vector.load %arg21[%c0_184, %c0_185] : memref<1x64xf32, #tpu.memory_space<vmem>>, vector<1x64xf32>
    %c0_186 = arith.constant 0 : index
    %c0_187 = arith.constant 0 : index
    %835 = vector.load %arg14[%c0_186, %c0_187] : memref<128x32xf32, #tpu.memory_space<vmem>>, vector<128x32xf32>
    %c0_188 = arith.constant 0 : index
    %c0_189 = arith.constant 0 : index
    %836 = vector.load %arg15[%c0_188, %c0_189] : memref<1x32xf32, #tpu.memory_space<vmem>>, vector<1x32xf32>
    %c0_190 = arith.constant 0 : index
    %c0_191 = arith.constant 0 : index
    %837 = vector.load %arg16[%c0_190, %c0_191] : memref<1x32xf32, #tpu.memory_space<vmem>>, vector<1x32xf32>
    %c0_192 = arith.constant 0 : index
    %c0_193 = arith.constant 0 : index
    %838 = vector.load %arg17[%c0_192, %c0_193] : memref<1x1xf32, #tpu.memory_space<vmem>>, vector<1x1xf32>
    %c0_194 = arith.constant 0 : index
    %c0_195 = arith.constant 0 : index
    %839 = vector.load %arg22[%c0_194, %c0_195] : memref<96x32xf32, #tpu.memory_space<vmem>>, vector<96x32xf32>
    %c0_196 = arith.constant 0 : index
    %c0_197 = arith.constant 0 : index
    %840 = vector.load %arg23[%c0_196, %c0_197] : memref<1x32xf32, #tpu.memory_space<vmem>>, vector<1x32xf32>
    %841 = vector.shape_cast %825 : vector<2x32xf32> to vector<2x1x32xf32>
    %842 = vector.shape_cast %825 : vector<2x32xf32> to vector<2x1x32xf32>
    %843 = vector.broadcast %841 : vector<2x1x32xf32> to vector<2x8x32xf32>
    %844 = arith.mulf %566, %843 : vector<2x8x32xf32>
    %845 = vector.broadcast %842 : vector<2x1x32xf32> to vector<2x8x32xf32>
    %846 = arith.mulf %566, %845 : vector<2x8x32xf32>
    %847 = vector.broadcast %841 : vector<2x1x32xf32> to vector<2x8x32xf32>
    %848 = arith.subf %566, %847 : vector<2x8x32xf32>
    %849 = math.absf %848 : vector<2x8x32xf32>
    %850 = vector.broadcast %842 : vector<2x1x32xf32> to vector<2x8x32xf32>
    %851 = arith.subf %566, %850 : vector<2x8x32xf32>
    %852 = math.absf %851 : vector<2x8x32xf32>
    %853 = tpu.concatenate %844, %846, %849, %852 in 2 : vector<2x8x32xf32>, vector<2x8x32xf32>, vector<2x8x32xf32>, vector<2x8x32xf32> -> vector<2x8x128xf32>
    %854 = vector.shape_cast %853 : vector<2x8x128xf32> to vector<16x128xf32>
    %cst_198 = arith.constant dense<0.000000e+00> : vector<16x32xf32>
    %855 = tpu.matmul %854, %835, %cst_198 {dimension_numbers = #tpu.dot_dimension_numbers<[1], [0], [0], [1], [0, 0, 1, 1], [], []>} : vector<16x128xf32>, vector<128x32xf32>, vector<16x32xf32> -> vector<16x32xf32>
    %856 = vector.broadcast %836 : vector<1x32xf32> to vector<16x32xf32>
    %857 = arith.addf %855, %856 : vector<16x32xf32>
    %858 = math.tanh %857 : vector<16x32xf32>
    %859 = vector.shape_cast %858 : vector<16x32xf32> to vector<2x8x32xf32>
    %860 = vector.shape_cast %837 : vector<1x32xf32> to vector<1x1x32xf32>
    %861 = vector.broadcast %860 : vector<1x1x32xf32> to vector<2x8x32xf32>
    %862 = arith.mulf %859, %861 : vector<2x8x32xf32>
    %cst_199 = arith.constant dense<0.000000e+00> : vector<2x8xf32>
    %863 = vector.multi_reduction <add>, %862, %cst_199 [2] : vector<2x8x32xf32> to vector<2x8xf32>
    %864 = vector.broadcast %838 : vector<1x1xf32> to vector<2x8xf32>
    %865 = arith.addf %863, %864 : vector<2x8xf32>
    %cst_200 = arith.constant dense<0xFF800000> : vector<2xf32>
    %866 = vector.multi_reduction <maximumf>, %865, %cst_200 [1] : vector<2x8xf32> to vector<2xf32>
    %cst_201 = arith.constant 0xFF800000 : f32
    %867 = vector.broadcast %cst_201 : f32 to vector<2xf32>
    %868 = arith.maximumf %867, %866 : vector<2xf32>
    %869 = vector.shape_cast %868 : vector<2xf32> to vector<2x1xf32>
    %870 = vector.broadcast %869 : vector<2x1xf32> to vector<2x8xf32>
    %871 = arith.subf %865, %870 : vector<2x8xf32>
    %872 = math.exp %871 : vector<2x8xf32>
    %cst_202 = arith.constant dense<0.000000e+00> : vector<2xf32>
    %873 = vector.multi_reduction <add>, %872, %cst_202 [1] : vector<2x8xf32> to vector<2xf32>
    %874 = vector.shape_cast %873 : vector<2xf32> to vector<2x1xf32>
    %875 = vector.broadcast %874 : vector<2x1xf32> to vector<2x8xf32>
    %876 = arith.divf %872, %875 : vector<2x8xf32>
    %cst_203 = arith.constant 0.000000e+00 : f32
    %877 = vector.broadcast %cst_203 : f32 to vector<2x32xf32>
    %cst_204 = arith.constant dense<0.000000e+00> : vector<2x64xf32>
    %878 = tpu.matmul %877, %833, %cst_204 {dimension_numbers = #tpu.dot_dimension_numbers<[1], [0], [0], [1], [0, 0, 1, 1], [], []>} : vector<2x32xf32>, vector<32x64xf32>, vector<2x64xf32> -> vector<2x64xf32>
    %879 = vector.broadcast %834 : vector<1x64xf32> to vector<2x64xf32>
    %880 = arith.addf %878, %879 : vector<2x64xf32>
    %881 = vector.extract_strided_slice %832 {offsets = [0, 0, 0], sizes = [2, 1, 32], strides = [1, 1, 1]} : vector<2x8x64xf32> to vector<2x1x32xf32>
    %882 = vector.shape_cast %881 : vector<2x1x32xf32> to vector<2x32xf32>
    %883 = vector.extract_strided_slice %880 {offsets = [0, 0], sizes = [2, 32], strides = [1, 1]} : vector<2x64xf32> to vector<2x32xf32>
    %884 = arith.addf %882, %883 : vector<2x32xf32>
    %885 = arith.negf %884 : vector<2x32xf32>
    %886 = math.exp %885 : vector<2x32xf32>
    %cst_205 = arith.constant 1.000000e+00 : f32
    %887 = vector.broadcast %cst_205 : f32 to vector<2x32xf32>
    %888 = arith.addf %887, %886 : vector<2x32xf32>
    %889 = arith.divf %887, %888 : vector<2x32xf32>
    %890 = vector.extract_strided_slice %832 {offsets = [0, 0, 32], sizes = [2, 1, 32], strides = [1, 1, 1]} : vector<2x8x64xf32> to vector<2x1x32xf32>
    %891 = vector.shape_cast %890 : vector<2x1x32xf32> to vector<2x32xf32>
    %892 = vector.extract_strided_slice %880 {offsets = [0, 32], sizes = [2, 32], strides = [1, 1]} : vector<2x64xf32> to vector<2x32xf32>
    %893 = arith.mulf %889, %892 : vector<2x32xf32>
    %894 = arith.addf %891, %893 : vector<2x32xf32>
    %895 = math.tanh %894 : vector<2x32xf32>
    %896 = vector.extract_strided_slice %876 {offsets = [0, 0], sizes = [2, 1], strides = [1, 1]} : vector<2x8xf32> to vector<2x1xf32>
    %897 = vector.broadcast %896 : vector<2x1xf32> to vector<2x32xf32>
    %898 = arith.mulf %897, %895 : vector<2x32xf32>
    %cst_206 = arith.constant 1.000000e+00 : f32
    %899 = vector.broadcast %cst_206 : f32 to vector<2x1xf32>
    %900 = arith.subf %899, %896 : vector<2x1xf32>
    %901 = vector.broadcast %900 : vector<2x1xf32> to vector<2x32xf32>
    %902 = arith.mulf %901, %877 : vector<2x32xf32>
    %903 = arith.addf %898, %902 : vector<2x32xf32>
    %cst_207 = arith.constant dense<0.000000e+00> : vector<2x64xf32>
    %904 = tpu.matmul %903, %833, %cst_207 {dimension_numbers = #tpu.dot_dimension_numbers<[1], [0], [0], [1], [0, 0, 1, 1], [], []>} : vector<2x32xf32>, vector<32x64xf32>, vector<2x64xf32> -> vector<2x64xf32>
    %905 = vector.broadcast %834 : vector<1x64xf32> to vector<2x64xf32>
    %906 = arith.addf %904, %905 : vector<2x64xf32>
    %907 = vector.extract_strided_slice %832 {offsets = [0, 1, 0], sizes = [2, 1, 32], strides = [1, 1, 1]} : vector<2x8x64xf32> to vector<2x1x32xf32>
    %908 = vector.shape_cast %907 : vector<2x1x32xf32> to vector<2x32xf32>
    %909 = vector.extract_strided_slice %906 {offsets = [0, 0], sizes = [2, 32], strides = [1, 1]} : vector<2x64xf32> to vector<2x32xf32>
    %910 = arith.addf %908, %909 : vector<2x32xf32>
    %911 = arith.negf %910 : vector<2x32xf32>
    %912 = math.exp %911 : vector<2x32xf32>
    %cst_208 = arith.constant 1.000000e+00 : f32
    %913 = vector.broadcast %cst_208 : f32 to vector<2x32xf32>
    %914 = arith.addf %913, %912 : vector<2x32xf32>
    %915 = arith.divf %913, %914 : vector<2x32xf32>
    %916 = vector.extract_strided_slice %832 {offsets = [0, 1, 32], sizes = [2, 1, 32], strides = [1, 1, 1]} : vector<2x8x64xf32> to vector<2x1x32xf32>
    %917 = vector.shape_cast %916 : vector<2x1x32xf32> to vector<2x32xf32>
    %918 = vector.extract_strided_slice %906 {offsets = [0, 32], sizes = [2, 32], strides = [1, 1]} : vector<2x64xf32> to vector<2x32xf32>
    %919 = arith.mulf %915, %918 : vector<2x32xf32>
    %920 = arith.addf %917, %919 : vector<2x32xf32>
    %921 = math.tanh %920 : vector<2x32xf32>
    %922 = vector.extract_strided_slice %876 {offsets = [0, 1], sizes = [2, 1], strides = [1, 1]} : vector<2x8xf32> to vector<2x1xf32>
    %923 = vector.broadcast %922 : vector<2x1xf32> to vector<2x32xf32>
    %924 = arith.mulf %923, %921 : vector<2x32xf32>
    %cst_209 = arith.constant 1.000000e+00 : f32
    %925 = vector.broadcast %cst_209 : f32 to vector<2x1xf32>
    %926 = arith.subf %925, %922 : vector<2x1xf32>
    %927 = vector.broadcast %926 : vector<2x1xf32> to vector<2x32xf32>
    %928 = arith.mulf %927, %903 : vector<2x32xf32>
    %929 = arith.addf %924, %928 : vector<2x32xf32>
    %cst_210 = arith.constant dense<0.000000e+00> : vector<2x64xf32>
    %930 = tpu.matmul %929, %833, %cst_210 {dimension_numbers = #tpu.dot_dimension_numbers<[1], [0], [0], [1], [0, 0, 1, 1], [], []>} : vector<2x32xf32>, vector<32x64xf32>, vector<2x64xf32> -> vector<2x64xf32>
    %931 = vector.broadcast %834 : vector<1x64xf32> to vector<2x64xf32>
    %932 = arith.addf %930, %931 : vector<2x64xf32>
    %933 = vector.extract_strided_slice %832 {offsets = [0, 2, 0], sizes = [2, 1, 32], strides = [1, 1, 1]} : vector<2x8x64xf32> to vector<2x1x32xf32>
    %934 = vector.shape_cast %933 : vector<2x1x32xf32> to vector<2x32xf32>
    %935 = vector.extract_strided_slice %932 {offsets = [0, 0], sizes = [2, 32], strides = [1, 1]} : vector<2x64xf32> to vector<2x32xf32>
    %936 = arith.addf %934, %935 : vector<2x32xf32>
    %937 = arith.negf %936 : vector<2x32xf32>
    %938 = math.exp %937 : vector<2x32xf32>
    %cst_211 = arith.constant 1.000000e+00 : f32
    %939 = vector.broadcast %cst_211 : f32 to vector<2x32xf32>
    %940 = arith.addf %939, %938 : vector<2x32xf32>
    %941 = arith.divf %939, %940 : vector<2x32xf32>
    %942 = vector.extract_strided_slice %832 {offsets = [0, 2, 32], sizes = [2, 1, 32], strides = [1, 1, 1]} : vector<2x8x64xf32> to vector<2x1x32xf32>
    %943 = vector.shape_cast %942 : vector<2x1x32xf32> to vector<2x32xf32>
    %944 = vector.extract_strided_slice %932 {offsets = [0, 32], sizes = [2, 32], strides = [1, 1]} : vector<2x64xf32> to vector<2x32xf32>
    %945 = arith.mulf %941, %944 : vector<2x32xf32>
    %946 = arith.addf %943, %945 : vector<2x32xf32>
    %947 = math.tanh %946 : vector<2x32xf32>
    %948 = vector.extract_strided_slice %876 {offsets = [0, 2], sizes = [2, 1], strides = [1, 1]} : vector<2x8xf32> to vector<2x1xf32>
    %949 = vector.broadcast %948 : vector<2x1xf32> to vector<2x32xf32>
    %950 = arith.mulf %949, %947 : vector<2x32xf32>
    %cst_212 = arith.constant 1.000000e+00 : f32
    %951 = vector.broadcast %cst_212 : f32 to vector<2x1xf32>
    %952 = arith.subf %951, %948 : vector<2x1xf32>
    %953 = vector.broadcast %952 : vector<2x1xf32> to vector<2x32xf32>
    %954 = arith.mulf %953, %929 : vector<2x32xf32>
    %955 = arith.addf %950, %954 : vector<2x32xf32>
    %cst_213 = arith.constant dense<0.000000e+00> : vector<2x64xf32>
    %956 = tpu.matmul %955, %833, %cst_213 {dimension_numbers = #tpu.dot_dimension_numbers<[1], [0], [0], [1], [0, 0, 1, 1], [], []>} : vector<2x32xf32>, vector<32x64xf32>, vector<2x64xf32> -> vector<2x64xf32>
    %957 = vector.broadcast %834 : vector<1x64xf32> to vector<2x64xf32>
    %958 = arith.addf %956, %957 : vector<2x64xf32>
    %959 = vector.extract_strided_slice %832 {offsets = [0, 3, 0], sizes = [2, 1, 32], strides = [1, 1, 1]} : vector<2x8x64xf32> to vector<2x1x32xf32>
    %960 = vector.shape_cast %959 : vector<2x1x32xf32> to vector<2x32xf32>
    %961 = vector.extract_strided_slice %958 {offsets = [0, 0], sizes = [2, 32], strides = [1, 1]} : vector<2x64xf32> to vector<2x32xf32>
    %962 = arith.addf %960, %961 : vector<2x32xf32>
    %963 = arith.negf %962 : vector<2x32xf32>
    %964 = math.exp %963 : vector<2x32xf32>
    %cst_214 = arith.constant 1.000000e+00 : f32
    %965 = vector.broadcast %cst_214 : f32 to vector<2x32xf32>
    %966 = arith.addf %965, %964 : vector<2x32xf32>
    %967 = arith.divf %965, %966 : vector<2x32xf32>
    %968 = vector.extract_strided_slice %832 {offsets = [0, 3, 32], sizes = [2, 1, 32], strides = [1, 1, 1]} : vector<2x8x64xf32> to vector<2x1x32xf32>
    %969 = vector.shape_cast %968 : vector<2x1x32xf32> to vector<2x32xf32>
    %970 = vector.extract_strided_slice %958 {offsets = [0, 32], sizes = [2, 32], strides = [1, 1]} : vector<2x64xf32> to vector<2x32xf32>
    %971 = arith.mulf %967, %970 : vector<2x32xf32>
    %972 = arith.addf %969, %971 : vector<2x32xf32>
    %973 = math.tanh %972 : vector<2x32xf32>
    %974 = vector.extract_strided_slice %876 {offsets = [0, 3], sizes = [2, 1], strides = [1, 1]} : vector<2x8xf32> to vector<2x1xf32>
    %975 = vector.broadcast %974 : vector<2x1xf32> to vector<2x32xf32>
    %976 = arith.mulf %975, %973 : vector<2x32xf32>
    %cst_215 = arith.constant 1.000000e+00 : f32
    %977 = vector.broadcast %cst_215 : f32 to vector<2x1xf32>
    %978 = arith.subf %977, %974 : vector<2x1xf32>
    %979 = vector.broadcast %978 : vector<2x1xf32> to vector<2x32xf32>
    %980 = arith.mulf %979, %955 : vector<2x32xf32>
    %981 = arith.addf %976, %980 : vector<2x32xf32>
    %cst_216 = arith.constant dense<0.000000e+00> : vector<2x64xf32>
    %982 = tpu.matmul %981, %833, %cst_216 {dimension_numbers = #tpu.dot_dimension_numbers<[1], [0], [0], [1], [0, 0, 1, 1], [], []>} : vector<2x32xf32>, vector<32x64xf32>, vector<2x64xf32> -> vector<2x64xf32>
    %983 = vector.broadcast %834 : vector<1x64xf32> to vector<2x64xf32>
    %984 = arith.addf %982, %983 : vector<2x64xf32>
    %985 = vector.extract_strided_slice %832 {offsets = [0, 4, 0], sizes = [2, 1, 32], strides = [1, 1, 1]} : vector<2x8x64xf32> to vector<2x1x32xf32>
    %986 = vector.shape_cast %985 : vector<2x1x32xf32> to vector<2x32xf32>
    %987 = vector.extract_strided_slice %984 {offsets = [0, 0], sizes = [2, 32], strides = [1, 1]} : vector<2x64xf32> to vector<2x32xf32>
    %988 = arith.addf %986, %987 : vector<2x32xf32>
    %989 = arith.negf %988 : vector<2x32xf32>
    %990 = math.exp %989 : vector<2x32xf32>
    %cst_217 = arith.constant 1.000000e+00 : f32
    %991 = vector.broadcast %cst_217 : f32 to vector<2x32xf32>
    %992 = arith.addf %991, %990 : vector<2x32xf32>
    %993 = arith.divf %991, %992 : vector<2x32xf32>
    %994 = vector.extract_strided_slice %832 {offsets = [0, 4, 32], sizes = [2, 1, 32], strides = [1, 1, 1]} : vector<2x8x64xf32> to vector<2x1x32xf32>
    %995 = vector.shape_cast %994 : vector<2x1x32xf32> to vector<2x32xf32>
    %996 = vector.extract_strided_slice %984 {offsets = [0, 32], sizes = [2, 32], strides = [1, 1]} : vector<2x64xf32> to vector<2x32xf32>
    %997 = arith.mulf %993, %996 : vector<2x32xf32>
    %998 = arith.addf %995, %997 : vector<2x32xf32>
    %999 = math.tanh %998 : vector<2x32xf32>
    %1000 = vector.extract_strided_slice %876 {offsets = [0, 4], sizes = [2, 1], strides = [1, 1]} : vector<2x8xf32> to vector<2x1xf32>
    %1001 = vector.broadcast %1000 : vector<2x1xf32> to vector<2x32xf32>
    %1002 = arith.mulf %1001, %999 : vector<2x32xf32>
    %cst_218 = arith.constant 1.000000e+00 : f32
    %1003 = vector.broadcast %cst_218 : f32 to vector<2x1xf32>
    %1004 = arith.subf %1003, %1000 : vector<2x1xf32>
    %1005 = vector.broadcast %1004 : vector<2x1xf32> to vector<2x32xf32>
    %1006 = arith.mulf %1005, %981 : vector<2x32xf32>
    %1007 = arith.addf %1002, %1006 : vector<2x32xf32>
    %cst_219 = arith.constant dense<0.000000e+00> : vector<2x64xf32>
    %1008 = tpu.matmul %1007, %833, %cst_219 {dimension_numbers = #tpu.dot_dimension_numbers<[1], [0], [0], [1], [0, 0, 1, 1], [], []>} : vector<2x32xf32>, vector<32x64xf32>, vector<2x64xf32> -> vector<2x64xf32>
    %1009 = vector.broadcast %834 : vector<1x64xf32> to vector<2x64xf32>
    %1010 = arith.addf %1008, %1009 : vector<2x64xf32>
    %1011 = vector.extract_strided_slice %832 {offsets = [0, 5, 0], sizes = [2, 1, 32], strides = [1, 1, 1]} : vector<2x8x64xf32> to vector<2x1x32xf32>
    %1012 = vector.shape_cast %1011 : vector<2x1x32xf32> to vector<2x32xf32>
    %1013 = vector.extract_strided_slice %1010 {offsets = [0, 0], sizes = [2, 32], strides = [1, 1]} : vector<2x64xf32> to vector<2x32xf32>
    %1014 = arith.addf %1012, %1013 : vector<2x32xf32>
    %1015 = arith.negf %1014 : vector<2x32xf32>
    %1016 = math.exp %1015 : vector<2x32xf32>
    %cst_220 = arith.constant 1.000000e+00 : f32
    %1017 = vector.broadcast %cst_220 : f32 to vector<2x32xf32>
    %1018 = arith.addf %1017, %1016 : vector<2x32xf32>
    %1019 = arith.divf %1017, %1018 : vector<2x32xf32>
    %1020 = vector.extract_strided_slice %832 {offsets = [0, 5, 32], sizes = [2, 1, 32], strides = [1, 1, 1]} : vector<2x8x64xf32> to vector<2x1x32xf32>
    %1021 = vector.shape_cast %1020 : vector<2x1x32xf32> to vector<2x32xf32>
    %1022 = vector.extract_strided_slice %1010 {offsets = [0, 32], sizes = [2, 32], strides = [1, 1]} : vector<2x64xf32> to vector<2x32xf32>
    %1023 = arith.mulf %1019, %1022 : vector<2x32xf32>
    %1024 = arith.addf %1021, %1023 : vector<2x32xf32>
    %1025 = math.tanh %1024 : vector<2x32xf32>
    %1026 = vector.extract_strided_slice %876 {offsets = [0, 5], sizes = [2, 1], strides = [1, 1]} : vector<2x8xf32> to vector<2x1xf32>
    %1027 = vector.broadcast %1026 : vector<2x1xf32> to vector<2x32xf32>
    %1028 = arith.mulf %1027, %1025 : vector<2x32xf32>
    %cst_221 = arith.constant 1.000000e+00 : f32
    %1029 = vector.broadcast %cst_221 : f32 to vector<2x1xf32>
    %1030 = arith.subf %1029, %1026 : vector<2x1xf32>
    %1031 = vector.broadcast %1030 : vector<2x1xf32> to vector<2x32xf32>
    %1032 = arith.mulf %1031, %1007 : vector<2x32xf32>
    %1033 = arith.addf %1028, %1032 : vector<2x32xf32>
    %cst_222 = arith.constant dense<0.000000e+00> : vector<2x64xf32>
    %1034 = tpu.matmul %1033, %833, %cst_222 {dimension_numbers = #tpu.dot_dimension_numbers<[1], [0], [0], [1], [0, 0, 1, 1], [], []>} : vector<2x32xf32>, vector<32x64xf32>, vector<2x64xf32> -> vector<2x64xf32>
    %1035 = vector.broadcast %834 : vector<1x64xf32> to vector<2x64xf32>
    %1036 = arith.addf %1034, %1035 : vector<2x64xf32>
    %1037 = vector.extract_strided_slice %832 {offsets = [0, 6, 0], sizes = [2, 1, 32], strides = [1, 1, 1]} : vector<2x8x64xf32> to vector<2x1x32xf32>
    %1038 = vector.shape_cast %1037 : vector<2x1x32xf32> to vector<2x32xf32>
    %1039 = vector.extract_strided_slice %1036 {offsets = [0, 0], sizes = [2, 32], strides = [1, 1]} : vector<2x64xf32> to vector<2x32xf32>
    %1040 = arith.addf %1038, %1039 : vector<2x32xf32>
    %1041 = arith.negf %1040 : vector<2x32xf32>
    %1042 = math.exp %1041 : vector<2x32xf32>
    %cst_223 = arith.constant 1.000000e+00 : f32
    %1043 = vector.broadcast %cst_223 : f32 to vector<2x32xf32>
    %1044 = arith.addf %1043, %1042 : vector<2x32xf32>
    %1045 = arith.divf %1043, %1044 : vector<2x32xf32>
    %1046 = vector.extract_strided_slice %832 {offsets = [0, 6, 32], sizes = [2, 1, 32], strides = [1, 1, 1]} : vector<2x8x64xf32> to vector<2x1x32xf32>
    %1047 = vector.shape_cast %1046 : vector<2x1x32xf32> to vector<2x32xf32>
    %1048 = vector.extract_strided_slice %1036 {offsets = [0, 32], sizes = [2, 32], strides = [1, 1]} : vector<2x64xf32> to vector<2x32xf32>
    %1049 = arith.mulf %1045, %1048 : vector<2x32xf32>
    %1050 = arith.addf %1047, %1049 : vector<2x32xf32>
    %1051 = math.tanh %1050 : vector<2x32xf32>
    %1052 = vector.extract_strided_slice %876 {offsets = [0, 6], sizes = [2, 1], strides = [1, 1]} : vector<2x8xf32> to vector<2x1xf32>
    %1053 = vector.broadcast %1052 : vector<2x1xf32> to vector<2x32xf32>
    %1054 = arith.mulf %1053, %1051 : vector<2x32xf32>
    %cst_224 = arith.constant 1.000000e+00 : f32
    %1055 = vector.broadcast %cst_224 : f32 to vector<2x1xf32>
    %1056 = arith.subf %1055, %1052 : vector<2x1xf32>
    %1057 = vector.broadcast %1056 : vector<2x1xf32> to vector<2x32xf32>
    %1058 = arith.mulf %1057, %1033 : vector<2x32xf32>
    %1059 = arith.addf %1054, %1058 : vector<2x32xf32>
    %cst_225 = arith.constant dense<0.000000e+00> : vector<2x64xf32>
    %1060 = tpu.matmul %1059, %833, %cst_225 {dimension_numbers = #tpu.dot_dimension_numbers<[1], [0], [0], [1], [0, 0, 1, 1], [], []>} : vector<2x32xf32>, vector<32x64xf32>, vector<2x64xf32> -> vector<2x64xf32>
    %1061 = vector.broadcast %834 : vector<1x64xf32> to vector<2x64xf32>
    %1062 = arith.addf %1060, %1061 : vector<2x64xf32>
    %1063 = vector.extract_strided_slice %832 {offsets = [0, 7, 0], sizes = [2, 1, 32], strides = [1, 1, 1]} : vector<2x8x64xf32> to vector<2x1x32xf32>
    %1064 = vector.shape_cast %1063 : vector<2x1x32xf32> to vector<2x32xf32>
    %1065 = vector.extract_strided_slice %1062 {offsets = [0, 0], sizes = [2, 32], strides = [1, 1]} : vector<2x64xf32> to vector<2x32xf32>
    %1066 = arith.addf %1064, %1065 : vector<2x32xf32>
    %1067 = arith.negf %1066 : vector<2x32xf32>
    %1068 = math.exp %1067 : vector<2x32xf32>
    %cst_226 = arith.constant 1.000000e+00 : f32
    %1069 = vector.broadcast %cst_226 : f32 to vector<2x32xf32>
    %1070 = arith.addf %1069, %1068 : vector<2x32xf32>
    %1071 = arith.divf %1069, %1070 : vector<2x32xf32>
    %1072 = vector.extract_strided_slice %832 {offsets = [0, 7, 32], sizes = [2, 1, 32], strides = [1, 1, 1]} : vector<2x8x64xf32> to vector<2x1x32xf32>
    %1073 = vector.shape_cast %1072 : vector<2x1x32xf32> to vector<2x32xf32>
    %1074 = vector.extract_strided_slice %1062 {offsets = [0, 32], sizes = [2, 32], strides = [1, 1]} : vector<2x64xf32> to vector<2x32xf32>
    %1075 = arith.mulf %1071, %1074 : vector<2x32xf32>
    %1076 = arith.addf %1073, %1075 : vector<2x32xf32>
    %1077 = math.tanh %1076 : vector<2x32xf32>
    %1078 = vector.extract_strided_slice %876 {offsets = [0, 7], sizes = [2, 1], strides = [1, 1]} : vector<2x8xf32> to vector<2x1xf32>
    %1079 = vector.broadcast %1078 : vector<2x1xf32> to vector<2x32xf32>
    %1080 = arith.mulf %1079, %1077 : vector<2x32xf32>
    %cst_227 = arith.constant 1.000000e+00 : f32
    %1081 = vector.broadcast %cst_227 : f32 to vector<2x1xf32>
    %1082 = arith.subf %1081, %1078 : vector<2x1xf32>
    %1083 = vector.broadcast %1082 : vector<2x1xf32> to vector<2x32xf32>
    %1084 = arith.mulf %1083, %1059 : vector<2x32xf32>
    %1085 = arith.addf %1080, %1084 : vector<2x32xf32>
    %1086 = tpu.concatenate %825, %1085, %825 in 1 : vector<2x32xf32>, vector<2x32xf32>, vector<2x32xf32> -> vector<2x96xf32>
    %cst_228 = arith.constant dense<0.000000e+00> : vector<2x32xf32>
    %1087 = tpu.matmul %1086, %839, %cst_228 {dimension_numbers = #tpu.dot_dimension_numbers<[1], [0], [0], [1], [0, 0, 1, 1], [], []>} : vector<2x96xf32>, vector<96x32xf32>, vector<2x32xf32> -> vector<2x32xf32>
    %1088 = vector.broadcast %840 : vector<1x32xf32> to vector<2x32xf32>
    %1089 = arith.addf %1087, %1088 : vector<2x32xf32>
    %cst_229 = arith.constant 0.000000e+00 : f32
    %1090 = vector.broadcast %cst_229 : f32 to vector<2x32xf32>
    %1091 = arith.maximumf %1089, %1090 : vector<2x32xf32>
    %1092 = vector.shape_cast %1091 : vector<2x32xf32> to vector<2x1x32xf32>
    %1093 = vector.broadcast %841 : vector<2x1x32xf32> to vector<2x8x32xf32>
    %1094 = arith.mulf %566, %1093 : vector<2x8x32xf32>
    %1095 = vector.broadcast %1092 : vector<2x1x32xf32> to vector<2x8x32xf32>
    %1096 = arith.mulf %566, %1095 : vector<2x8x32xf32>
    %1097 = vector.broadcast %841 : vector<2x1x32xf32> to vector<2x8x32xf32>
    %1098 = arith.subf %566, %1097 : vector<2x8x32xf32>
    %1099 = math.absf %1098 : vector<2x8x32xf32>
    %1100 = vector.broadcast %1092 : vector<2x1x32xf32> to vector<2x8x32xf32>
    %1101 = arith.subf %566, %1100 : vector<2x8x32xf32>
    %1102 = math.absf %1101 : vector<2x8x32xf32>
    %1103 = tpu.concatenate %1094, %1096, %1099, %1102 in 2 : vector<2x8x32xf32>, vector<2x8x32xf32>, vector<2x8x32xf32>, vector<2x8x32xf32> -> vector<2x8x128xf32>
    %1104 = vector.shape_cast %1103 : vector<2x8x128xf32> to vector<16x128xf32>
    %cst_230 = arith.constant dense<0.000000e+00> : vector<16x32xf32>
    %1105 = tpu.matmul %1104, %835, %cst_230 {dimension_numbers = #tpu.dot_dimension_numbers<[1], [0], [0], [1], [0, 0, 1, 1], [], []>} : vector<16x128xf32>, vector<128x32xf32>, vector<16x32xf32> -> vector<16x32xf32>
    %1106 = vector.broadcast %836 : vector<1x32xf32> to vector<16x32xf32>
    %1107 = arith.addf %1105, %1106 : vector<16x32xf32>
    %1108 = math.tanh %1107 : vector<16x32xf32>
    %1109 = vector.shape_cast %1108 : vector<16x32xf32> to vector<2x8x32xf32>
    %1110 = vector.shape_cast %837 : vector<1x32xf32> to vector<1x1x32xf32>
    %1111 = vector.broadcast %1110 : vector<1x1x32xf32> to vector<2x8x32xf32>
    %1112 = arith.mulf %1109, %1111 : vector<2x8x32xf32>
    %cst_231 = arith.constant dense<0.000000e+00> : vector<2x8xf32>
    %1113 = vector.multi_reduction <add>, %1112, %cst_231 [2] : vector<2x8x32xf32> to vector<2x8xf32>
    %1114 = vector.broadcast %838 : vector<1x1xf32> to vector<2x8xf32>
    %1115 = arith.addf %1113, %1114 : vector<2x8xf32>
    %cst_232 = arith.constant dense<0xFF800000> : vector<2xf32>
    %1116 = vector.multi_reduction <maximumf>, %1115, %cst_232 [1] : vector<2x8xf32> to vector<2xf32>
    %cst_233 = arith.constant 0xFF800000 : f32
    %1117 = vector.broadcast %cst_233 : f32 to vector<2xf32>
    %1118 = arith.maximumf %1117, %1116 : vector<2xf32>
    %1119 = vector.shape_cast %1118 : vector<2xf32> to vector<2x1xf32>
    %1120 = vector.broadcast %1119 : vector<2x1xf32> to vector<2x8xf32>
    %1121 = arith.subf %1115, %1120 : vector<2x8xf32>
    %1122 = math.exp %1121 : vector<2x8xf32>
    %cst_234 = arith.constant dense<0.000000e+00> : vector<2xf32>
    %1123 = vector.multi_reduction <add>, %1122, %cst_234 [1] : vector<2x8xf32> to vector<2xf32>
    %1124 = vector.shape_cast %1123 : vector<2xf32> to vector<2x1xf32>
    %1125 = vector.broadcast %1124 : vector<2x1xf32> to vector<2x8xf32>
    %1126 = arith.divf %1122, %1125 : vector<2x8xf32>
    %cst_235 = arith.constant 0.000000e+00 : f32
    %1127 = vector.broadcast %cst_235 : f32 to vector<2x32xf32>
    %cst_236 = arith.constant dense<0.000000e+00> : vector<2x64xf32>
    %1128 = tpu.matmul %1127, %833, %cst_236 {dimension_numbers = #tpu.dot_dimension_numbers<[1], [0], [0], [1], [0, 0, 1, 1], [], []>} : vector<2x32xf32>, vector<32x64xf32>, vector<2x64xf32> -> vector<2x64xf32>
    %1129 = vector.broadcast %834 : vector<1x64xf32> to vector<2x64xf32>
    %1130 = arith.addf %1128, %1129 : vector<2x64xf32>
    %1131 = vector.extract_strided_slice %832 {offsets = [0, 0, 0], sizes = [2, 1, 32], strides = [1, 1, 1]} : vector<2x8x64xf32> to vector<2x1x32xf32>
    %1132 = vector.shape_cast %1131 : vector<2x1x32xf32> to vector<2x32xf32>
    %1133 = vector.extract_strided_slice %1130 {offsets = [0, 0], sizes = [2, 32], strides = [1, 1]} : vector<2x64xf32> to vector<2x32xf32>
    %1134 = arith.addf %1132, %1133 : vector<2x32xf32>
    %1135 = arith.negf %1134 : vector<2x32xf32>
    %1136 = math.exp %1135 : vector<2x32xf32>
    %cst_237 = arith.constant 1.000000e+00 : f32
    %1137 = vector.broadcast %cst_237 : f32 to vector<2x32xf32>
    %1138 = arith.addf %1137, %1136 : vector<2x32xf32>
    %1139 = arith.divf %1137, %1138 : vector<2x32xf32>
    %1140 = vector.extract_strided_slice %832 {offsets = [0, 0, 32], sizes = [2, 1, 32], strides = [1, 1, 1]} : vector<2x8x64xf32> to vector<2x1x32xf32>
    %1141 = vector.shape_cast %1140 : vector<2x1x32xf32> to vector<2x32xf32>
    %1142 = vector.extract_strided_slice %1130 {offsets = [0, 32], sizes = [2, 32], strides = [1, 1]} : vector<2x64xf32> to vector<2x32xf32>
    %1143 = arith.mulf %1139, %1142 : vector<2x32xf32>
    %1144 = arith.addf %1141, %1143 : vector<2x32xf32>
    %1145 = math.tanh %1144 : vector<2x32xf32>
    %1146 = vector.extract_strided_slice %1126 {offsets = [0, 0], sizes = [2, 1], strides = [1, 1]} : vector<2x8xf32> to vector<2x1xf32>
    %1147 = vector.broadcast %1146 : vector<2x1xf32> to vector<2x32xf32>
    %1148 = arith.mulf %1147, %1145 : vector<2x32xf32>
    %cst_238 = arith.constant 1.000000e+00 : f32
    %1149 = vector.broadcast %cst_238 : f32 to vector<2x1xf32>
    %1150 = arith.subf %1149, %1146 : vector<2x1xf32>
    %1151 = vector.broadcast %1150 : vector<2x1xf32> to vector<2x32xf32>
    %1152 = arith.mulf %1151, %1127 : vector<2x32xf32>
    %1153 = arith.addf %1148, %1152 : vector<2x32xf32>
    %cst_239 = arith.constant dense<0.000000e+00> : vector<2x64xf32>
    %1154 = tpu.matmul %1153, %833, %cst_239 {dimension_numbers = #tpu.dot_dimension_numbers<[1], [0], [0], [1], [0, 0, 1, 1], [], []>} : vector<2x32xf32>, vector<32x64xf32>, vector<2x64xf32> -> vector<2x64xf32>
    %1155 = vector.broadcast %834 : vector<1x64xf32> to vector<2x64xf32>
    %1156 = arith.addf %1154, %1155 : vector<2x64xf32>
    %1157 = vector.extract_strided_slice %832 {offsets = [0, 1, 0], sizes = [2, 1, 32], strides = [1, 1, 1]} : vector<2x8x64xf32> to vector<2x1x32xf32>
    %1158 = vector.shape_cast %1157 : vector<2x1x32xf32> to vector<2x32xf32>
    %1159 = vector.extract_strided_slice %1156 {offsets = [0, 0], sizes = [2, 32], strides = [1, 1]} : vector<2x64xf32> to vector<2x32xf32>
    %1160 = arith.addf %1158, %1159 : vector<2x32xf32>
    %1161 = arith.negf %1160 : vector<2x32xf32>
    %1162 = math.exp %1161 : vector<2x32xf32>
    %cst_240 = arith.constant 1.000000e+00 : f32
    %1163 = vector.broadcast %cst_240 : f32 to vector<2x32xf32>
    %1164 = arith.addf %1163, %1162 : vector<2x32xf32>
    %1165 = arith.divf %1163, %1164 : vector<2x32xf32>
    %1166 = vector.extract_strided_slice %832 {offsets = [0, 1, 32], sizes = [2, 1, 32], strides = [1, 1, 1]} : vector<2x8x64xf32> to vector<2x1x32xf32>
    %1167 = vector.shape_cast %1166 : vector<2x1x32xf32> to vector<2x32xf32>
    %1168 = vector.extract_strided_slice %1156 {offsets = [0, 32], sizes = [2, 32], strides = [1, 1]} : vector<2x64xf32> to vector<2x32xf32>
    %1169 = arith.mulf %1165, %1168 : vector<2x32xf32>
    %1170 = arith.addf %1167, %1169 : vector<2x32xf32>
    %1171 = math.tanh %1170 : vector<2x32xf32>
    %1172 = vector.extract_strided_slice %1126 {offsets = [0, 1], sizes = [2, 1], strides = [1, 1]} : vector<2x8xf32> to vector<2x1xf32>
    %1173 = vector.broadcast %1172 : vector<2x1xf32> to vector<2x32xf32>
    %1174 = arith.mulf %1173, %1171 : vector<2x32xf32>
    %cst_241 = arith.constant 1.000000e+00 : f32
    %1175 = vector.broadcast %cst_241 : f32 to vector<2x1xf32>
    %1176 = arith.subf %1175, %1172 : vector<2x1xf32>
    %1177 = vector.broadcast %1176 : vector<2x1xf32> to vector<2x32xf32>
    %1178 = arith.mulf %1177, %1153 : vector<2x32xf32>
    %1179 = arith.addf %1174, %1178 : vector<2x32xf32>
    %cst_242 = arith.constant dense<0.000000e+00> : vector<2x64xf32>
    %1180 = tpu.matmul %1179, %833, %cst_242 {dimension_numbers = #tpu.dot_dimension_numbers<[1], [0], [0], [1], [0, 0, 1, 1], [], []>} : vector<2x32xf32>, vector<32x64xf32>, vector<2x64xf32> -> vector<2x64xf32>
    %1181 = vector.broadcast %834 : vector<1x64xf32> to vector<2x64xf32>
    %1182 = arith.addf %1180, %1181 : vector<2x64xf32>
    %1183 = vector.extract_strided_slice %832 {offsets = [0, 2, 0], sizes = [2, 1, 32], strides = [1, 1, 1]} : vector<2x8x64xf32> to vector<2x1x32xf32>
    %1184 = vector.shape_cast %1183 : vector<2x1x32xf32> to vector<2x32xf32>
    %1185 = vector.extract_strided_slice %1182 {offsets = [0, 0], sizes = [2, 32], strides = [1, 1]} : vector<2x64xf32> to vector<2x32xf32>
    %1186 = arith.addf %1184, %1185 : vector<2x32xf32>
    %1187 = arith.negf %1186 : vector<2x32xf32>
    %1188 = math.exp %1187 : vector<2x32xf32>
    %cst_243 = arith.constant 1.000000e+00 : f32
    %1189 = vector.broadcast %cst_243 : f32 to vector<2x32xf32>
    %1190 = arith.addf %1189, %1188 : vector<2x32xf32>
    %1191 = arith.divf %1189, %1190 : vector<2x32xf32>
    %1192 = vector.extract_strided_slice %832 {offsets = [0, 2, 32], sizes = [2, 1, 32], strides = [1, 1, 1]} : vector<2x8x64xf32> to vector<2x1x32xf32>
    %1193 = vector.shape_cast %1192 : vector<2x1x32xf32> to vector<2x32xf32>
    %1194 = vector.extract_strided_slice %1182 {offsets = [0, 32], sizes = [2, 32], strides = [1, 1]} : vector<2x64xf32> to vector<2x32xf32>
    %1195 = arith.mulf %1191, %1194 : vector<2x32xf32>
    %1196 = arith.addf %1193, %1195 : vector<2x32xf32>
    %1197 = math.tanh %1196 : vector<2x32xf32>
    %1198 = vector.extract_strided_slice %1126 {offsets = [0, 2], sizes = [2, 1], strides = [1, 1]} : vector<2x8xf32> to vector<2x1xf32>
    %1199 = vector.broadcast %1198 : vector<2x1xf32> to vector<2x32xf32>
    %1200 = arith.mulf %1199, %1197 : vector<2x32xf32>
    %cst_244 = arith.constant 1.000000e+00 : f32
    %1201 = vector.broadcast %cst_244 : f32 to vector<2x1xf32>
    %1202 = arith.subf %1201, %1198 : vector<2x1xf32>
    %1203 = vector.broadcast %1202 : vector<2x1xf32> to vector<2x32xf32>
    %1204 = arith.mulf %1203, %1179 : vector<2x32xf32>
    %1205 = arith.addf %1200, %1204 : vector<2x32xf32>
    %cst_245 = arith.constant dense<0.000000e+00> : vector<2x64xf32>
    %1206 = tpu.matmul %1205, %833, %cst_245 {dimension_numbers = #tpu.dot_dimension_numbers<[1], [0], [0], [1], [0, 0, 1, 1], [], []>} : vector<2x32xf32>, vector<32x64xf32>, vector<2x64xf32> -> vector<2x64xf32>
    %1207 = vector.broadcast %834 : vector<1x64xf32> to vector<2x64xf32>
    %1208 = arith.addf %1206, %1207 : vector<2x64xf32>
    %1209 = vector.extract_strided_slice %832 {offsets = [0, 3, 0], sizes = [2, 1, 32], strides = [1, 1, 1]} : vector<2x8x64xf32> to vector<2x1x32xf32>
    %1210 = vector.shape_cast %1209 : vector<2x1x32xf32> to vector<2x32xf32>
    %1211 = vector.extract_strided_slice %1208 {offsets = [0, 0], sizes = [2, 32], strides = [1, 1]} : vector<2x64xf32> to vector<2x32xf32>
    %1212 = arith.addf %1210, %1211 : vector<2x32xf32>
    %1213 = arith.negf %1212 : vector<2x32xf32>
    %1214 = math.exp %1213 : vector<2x32xf32>
    %cst_246 = arith.constant 1.000000e+00 : f32
    %1215 = vector.broadcast %cst_246 : f32 to vector<2x32xf32>
    %1216 = arith.addf %1215, %1214 : vector<2x32xf32>
    %1217 = arith.divf %1215, %1216 : vector<2x32xf32>
    %1218 = vector.extract_strided_slice %832 {offsets = [0, 3, 32], sizes = [2, 1, 32], strides = [1, 1, 1]} : vector<2x8x64xf32> to vector<2x1x32xf32>
    %1219 = vector.shape_cast %1218 : vector<2x1x32xf32> to vector<2x32xf32>
    %1220 = vector.extract_strided_slice %1208 {offsets = [0, 32], sizes = [2, 32], strides = [1, 1]} : vector<2x64xf32> to vector<2x32xf32>
    %1221 = arith.mulf %1217, %1220 : vector<2x32xf32>
    %1222 = arith.addf %1219, %1221 : vector<2x32xf32>
    %1223 = math.tanh %1222 : vector<2x32xf32>
    %1224 = vector.extract_strided_slice %1126 {offsets = [0, 3], sizes = [2, 1], strides = [1, 1]} : vector<2x8xf32> to vector<2x1xf32>
    %1225 = vector.broadcast %1224 : vector<2x1xf32> to vector<2x32xf32>
    %1226 = arith.mulf %1225, %1223 : vector<2x32xf32>
    %cst_247 = arith.constant 1.000000e+00 : f32
    %1227 = vector.broadcast %cst_247 : f32 to vector<2x1xf32>
    %1228 = arith.subf %1227, %1224 : vector<2x1xf32>
    %1229 = vector.broadcast %1228 : vector<2x1xf32> to vector<2x32xf32>
    %1230 = arith.mulf %1229, %1205 : vector<2x32xf32>
    %1231 = arith.addf %1226, %1230 : vector<2x32xf32>
    %cst_248 = arith.constant dense<0.000000e+00> : vector<2x64xf32>
    %1232 = tpu.matmul %1231, %833, %cst_248 {dimension_numbers = #tpu.dot_dimension_numbers<[1], [0], [0], [1], [0, 0, 1, 1], [], []>} : vector<2x32xf32>, vector<32x64xf32>, vector<2x64xf32> -> vector<2x64xf32>
    %1233 = vector.broadcast %834 : vector<1x64xf32> to vector<2x64xf32>
    %1234 = arith.addf %1232, %1233 : vector<2x64xf32>
    %1235 = vector.extract_strided_slice %832 {offsets = [0, 4, 0], sizes = [2, 1, 32], strides = [1, 1, 1]} : vector<2x8x64xf32> to vector<2x1x32xf32>
    %1236 = vector.shape_cast %1235 : vector<2x1x32xf32> to vector<2x32xf32>
    %1237 = vector.extract_strided_slice %1234 {offsets = [0, 0], sizes = [2, 32], strides = [1, 1]} : vector<2x64xf32> to vector<2x32xf32>
    %1238 = arith.addf %1236, %1237 : vector<2x32xf32>
    %1239 = arith.negf %1238 : vector<2x32xf32>
    %1240 = math.exp %1239 : vector<2x32xf32>
    %cst_249 = arith.constant 1.000000e+00 : f32
    %1241 = vector.broadcast %cst_249 : f32 to vector<2x32xf32>
    %1242 = arith.addf %1241, %1240 : vector<2x32xf32>
    %1243 = arith.divf %1241, %1242 : vector<2x32xf32>
    %1244 = vector.extract_strided_slice %832 {offsets = [0, 4, 32], sizes = [2, 1, 32], strides = [1, 1, 1]} : vector<2x8x64xf32> to vector<2x1x32xf32>
    %1245 = vector.shape_cast %1244 : vector<2x1x32xf32> to vector<2x32xf32>
    %1246 = vector.extract_strided_slice %1234 {offsets = [0, 32], sizes = [2, 32], strides = [1, 1]} : vector<2x64xf32> to vector<2x32xf32>
    %1247 = arith.mulf %1243, %1246 : vector<2x32xf32>
    %1248 = arith.addf %1245, %1247 : vector<2x32xf32>
    %1249 = math.tanh %1248 : vector<2x32xf32>
    %1250 = vector.extract_strided_slice %1126 {offsets = [0, 4], sizes = [2, 1], strides = [1, 1]} : vector<2x8xf32> to vector<2x1xf32>
    %1251 = vector.broadcast %1250 : vector<2x1xf32> to vector<2x32xf32>
    %1252 = arith.mulf %1251, %1249 : vector<2x32xf32>
    %cst_250 = arith.constant 1.000000e+00 : f32
    %1253 = vector.broadcast %cst_250 : f32 to vector<2x1xf32>
    %1254 = arith.subf %1253, %1250 : vector<2x1xf32>
    %1255 = vector.broadcast %1254 : vector<2x1xf32> to vector<2x32xf32>
    %1256 = arith.mulf %1255, %1231 : vector<2x32xf32>
    %1257 = arith.addf %1252, %1256 : vector<2x32xf32>
    %cst_251 = arith.constant dense<0.000000e+00> : vector<2x64xf32>
    %1258 = tpu.matmul %1257, %833, %cst_251 {dimension_numbers = #tpu.dot_dimension_numbers<[1], [0], [0], [1], [0, 0, 1, 1], [], []>} : vector<2x32xf32>, vector<32x64xf32>, vector<2x64xf32> -> vector<2x64xf32>
    %1259 = vector.broadcast %834 : vector<1x64xf32> to vector<2x64xf32>
    %1260 = arith.addf %1258, %1259 : vector<2x64xf32>
    %1261 = vector.extract_strided_slice %832 {offsets = [0, 5, 0], sizes = [2, 1, 32], strides = [1, 1, 1]} : vector<2x8x64xf32> to vector<2x1x32xf32>
    %1262 = vector.shape_cast %1261 : vector<2x1x32xf32> to vector<2x32xf32>
    %1263 = vector.extract_strided_slice %1260 {offsets = [0, 0], sizes = [2, 32], strides = [1, 1]} : vector<2x64xf32> to vector<2x32xf32>
    %1264 = arith.addf %1262, %1263 : vector<2x32xf32>
    %1265 = arith.negf %1264 : vector<2x32xf32>
    %1266 = math.exp %1265 : vector<2x32xf32>
    %cst_252 = arith.constant 1.000000e+00 : f32
    %1267 = vector.broadcast %cst_252 : f32 to vector<2x32xf32>
    %1268 = arith.addf %1267, %1266 : vector<2x32xf32>
    %1269 = arith.divf %1267, %1268 : vector<2x32xf32>
    %1270 = vector.extract_strided_slice %832 {offsets = [0, 5, 32], sizes = [2, 1, 32], strides = [1, 1, 1]} : vector<2x8x64xf32> to vector<2x1x32xf32>
    %1271 = vector.shape_cast %1270 : vector<2x1x32xf32> to vector<2x32xf32>
    %1272 = vector.extract_strided_slice %1260 {offsets = [0, 32], sizes = [2, 32], strides = [1, 1]} : vector<2x64xf32> to vector<2x32xf32>
    %1273 = arith.mulf %1269, %1272 : vector<2x32xf32>
    %1274 = arith.addf %1271, %1273 : vector<2x32xf32>
    %1275 = math.tanh %1274 : vector<2x32xf32>
    %1276 = vector.extract_strided_slice %1126 {offsets = [0, 5], sizes = [2, 1], strides = [1, 1]} : vector<2x8xf32> to vector<2x1xf32>
    %1277 = vector.broadcast %1276 : vector<2x1xf32> to vector<2x32xf32>
    %1278 = arith.mulf %1277, %1275 : vector<2x32xf32>
    %cst_253 = arith.constant 1.000000e+00 : f32
    %1279 = vector.broadcast %cst_253 : f32 to vector<2x1xf32>
    %1280 = arith.subf %1279, %1276 : vector<2x1xf32>
    %1281 = vector.broadcast %1280 : vector<2x1xf32> to vector<2x32xf32>
    %1282 = arith.mulf %1281, %1257 : vector<2x32xf32>
    %1283 = arith.addf %1278, %1282 : vector<2x32xf32>
    %cst_254 = arith.constant dense<0.000000e+00> : vector<2x64xf32>
    %1284 = tpu.matmul %1283, %833, %cst_254 {dimension_numbers = #tpu.dot_dimension_numbers<[1], [0], [0], [1], [0, 0, 1, 1], [], []>} : vector<2x32xf32>, vector<32x64xf32>, vector<2x64xf32> -> vector<2x64xf32>
    %1285 = vector.broadcast %834 : vector<1x64xf32> to vector<2x64xf32>
    %1286 = arith.addf %1284, %1285 : vector<2x64xf32>
    %1287 = vector.extract_strided_slice %832 {offsets = [0, 6, 0], sizes = [2, 1, 32], strides = [1, 1, 1]} : vector<2x8x64xf32> to vector<2x1x32xf32>
    %1288 = vector.shape_cast %1287 : vector<2x1x32xf32> to vector<2x32xf32>
    %1289 = vector.extract_strided_slice %1286 {offsets = [0, 0], sizes = [2, 32], strides = [1, 1]} : vector<2x64xf32> to vector<2x32xf32>
    %1290 = arith.addf %1288, %1289 : vector<2x32xf32>
    %1291 = arith.negf %1290 : vector<2x32xf32>
    %1292 = math.exp %1291 : vector<2x32xf32>
    %cst_255 = arith.constant 1.000000e+00 : f32
    %1293 = vector.broadcast %cst_255 : f32 to vector<2x32xf32>
    %1294 = arith.addf %1293, %1292 : vector<2x32xf32>
    %1295 = arith.divf %1293, %1294 : vector<2x32xf32>
    %1296 = vector.extract_strided_slice %832 {offsets = [0, 6, 32], sizes = [2, 1, 32], strides = [1, 1, 1]} : vector<2x8x64xf32> to vector<2x1x32xf32>
    %1297 = vector.shape_cast %1296 : vector<2x1x32xf32> to vector<2x32xf32>
    %1298 = vector.extract_strided_slice %1286 {offsets = [0, 32], sizes = [2, 32], strides = [1, 1]} : vector<2x64xf32> to vector<2x32xf32>
    %1299 = arith.mulf %1295, %1298 : vector<2x32xf32>
    %1300 = arith.addf %1297, %1299 : vector<2x32xf32>
    %1301 = math.tanh %1300 : vector<2x32xf32>
    %1302 = vector.extract_strided_slice %1126 {offsets = [0, 6], sizes = [2, 1], strides = [1, 1]} : vector<2x8xf32> to vector<2x1xf32>
    %1303 = vector.broadcast %1302 : vector<2x1xf32> to vector<2x32xf32>
    %1304 = arith.mulf %1303, %1301 : vector<2x32xf32>
    %cst_256 = arith.constant 1.000000e+00 : f32
    %1305 = vector.broadcast %cst_256 : f32 to vector<2x1xf32>
    %1306 = arith.subf %1305, %1302 : vector<2x1xf32>
    %1307 = vector.broadcast %1306 : vector<2x1xf32> to vector<2x32xf32>
    %1308 = arith.mulf %1307, %1283 : vector<2x32xf32>
    %1309 = arith.addf %1304, %1308 : vector<2x32xf32>
    %cst_257 = arith.constant dense<0.000000e+00> : vector<2x64xf32>
    %1310 = tpu.matmul %1309, %833, %cst_257 {dimension_numbers = #tpu.dot_dimension_numbers<[1], [0], [0], [1], [0, 0, 1, 1], [], []>} : vector<2x32xf32>, vector<32x64xf32>, vector<2x64xf32> -> vector<2x64xf32>
    %1311 = vector.broadcast %834 : vector<1x64xf32> to vector<2x64xf32>
    %1312 = arith.addf %1310, %1311 : vector<2x64xf32>
    %1313 = vector.extract_strided_slice %832 {offsets = [0, 7, 0], sizes = [2, 1, 32], strides = [1, 1, 1]} : vector<2x8x64xf32> to vector<2x1x32xf32>
    %1314 = vector.shape_cast %1313 : vector<2x1x32xf32> to vector<2x32xf32>
    %1315 = vector.extract_strided_slice %1312 {offsets = [0, 0], sizes = [2, 32], strides = [1, 1]} : vector<2x64xf32> to vector<2x32xf32>
    %1316 = arith.addf %1314, %1315 : vector<2x32xf32>
    %1317 = arith.negf %1316 : vector<2x32xf32>
    %1318 = math.exp %1317 : vector<2x32xf32>
    %cst_258 = arith.constant 1.000000e+00 : f32
    %1319 = vector.broadcast %cst_258 : f32 to vector<2x32xf32>
    %1320 = arith.addf %1319, %1318 : vector<2x32xf32>
    %1321 = arith.divf %1319, %1320 : vector<2x32xf32>
    %1322 = vector.extract_strided_slice %832 {offsets = [0, 7, 32], sizes = [2, 1, 32], strides = [1, 1, 1]} : vector<2x8x64xf32> to vector<2x1x32xf32>
    %1323 = vector.shape_cast %1322 : vector<2x1x32xf32> to vector<2x32xf32>
    %1324 = vector.extract_strided_slice %1312 {offsets = [0, 32], sizes = [2, 32], strides = [1, 1]} : vector<2x64xf32> to vector<2x32xf32>
    %1325 = arith.mulf %1321, %1324 : vector<2x32xf32>
    %1326 = arith.addf %1323, %1325 : vector<2x32xf32>
    %1327 = math.tanh %1326 : vector<2x32xf32>
    %1328 = vector.extract_strided_slice %1126 {offsets = [0, 7], sizes = [2, 1], strides = [1, 1]} : vector<2x8xf32> to vector<2x1xf32>
    %1329 = vector.broadcast %1328 : vector<2x1xf32> to vector<2x32xf32>
    %1330 = arith.mulf %1329, %1327 : vector<2x32xf32>
    %cst_259 = arith.constant 1.000000e+00 : f32
    %1331 = vector.broadcast %cst_259 : f32 to vector<2x1xf32>
    %1332 = arith.subf %1331, %1328 : vector<2x1xf32>
    %1333 = vector.broadcast %1332 : vector<2x1xf32> to vector<2x32xf32>
    %1334 = arith.mulf %1333, %1309 : vector<2x32xf32>
    %1335 = arith.addf %1330, %1334 : vector<2x32xf32>
    %1336 = tpu.concatenate %1091, %1335, %825 in 1 : vector<2x32xf32>, vector<2x32xf32>, vector<2x32xf32> -> vector<2x96xf32>
    %cst_260 = arith.constant dense<0.000000e+00> : vector<2x32xf32>
    %1337 = tpu.matmul %1336, %839, %cst_260 {dimension_numbers = #tpu.dot_dimension_numbers<[1], [0], [0], [1], [0, 0, 1, 1], [], []>} : vector<2x96xf32>, vector<96x32xf32>, vector<2x32xf32> -> vector<2x32xf32>
    %1338 = vector.broadcast %840 : vector<1x32xf32> to vector<2x32xf32>
    %1339 = arith.addf %1337, %1338 : vector<2x32xf32>
    %cst_261 = arith.constant 0.000000e+00 : f32
    %1340 = vector.broadcast %cst_261 : f32 to vector<2x32xf32>
    %1341 = arith.maximumf %1339, %1340 : vector<2x32xf32>
    %1342 = tpu.concatenate %1341, %825 in 1 : vector<2x32xf32>, vector<2x32xf32> -> vector<2x64xf32>
    %c0_262 = arith.constant 0 : index
    %c0_263 = arith.constant 0 : index
    %1343 = vector.load %arg24[%c0_262, %c0_263] : memref<64x2xf32, #tpu.memory_space<vmem>>, vector<64x2xf32>
    %cst_264 = arith.constant dense<0.000000e+00> : vector<2x2xf32>
    %1344 = tpu.matmul %1342, %1343, %cst_264 {dimension_numbers = #tpu.dot_dimension_numbers<[1], [0], [0], [1], [0, 0, 1, 1], [], []>} : vector<2x64xf32>, vector<64x2xf32>, vector<2x2xf32> -> vector<2x2xf32>
    %c0_265 = arith.constant 0 : index
    %c0_266 = arith.constant 0 : index
    %1345 = vector.load %arg25[%c0_265, %c0_266] : memref<1x2xf32, #tpu.memory_space<vmem>>, vector<1x2xf32>
    %1346 = vector.broadcast %1345 : vector<1x2xf32> to vector<2x2xf32>
    %1347 = arith.addf %1344, %1346 : vector<2x2xf32>
    %c0_267 = arith.constant 0 : index
    %c0_268 = arith.constant 0 : index
    %1348 = vector.load %arg26[%c0_267, %c0_268] : memref<2x2xf32, #tpu.memory_space<vmem>>, vector<2x2xf32>
    tpu.vector_store %arg26[%c0_267, %c0_268], %1347 {strides = array<i32>} : memref<2x2xf32, #tpu.memory_space<vmem>>, vector<2x2xf32>,
    return
  }
}

</mosaic_0001>

<bundles_post_ra>
// kernel: tpu_custom_call.1
= control target key start
LH: loop header
LB: loop body
LE: loop exit
PB: predicated region body
PF: predicated region fallthrough
CT: control target
= control target key end

     0   :  { %s13389_s0 = inlined_call_operand.vmem [shape: f32[2,8,32], index: 0, kind: input, shape index: {}]   ;;  %s13390_s1 = inlined_call_operand.vmem [shape: f32[2,8,32], index: 1, kind: input, shape index: {}]   ;;  %s13391_s2 = inlined_call_operand.vmem [shape: f32[32,96], index: 2, kind: input, shape index: {}]   ;;  %s13392_s3 = inlined_call_operand.vmem [shape: f32[32,96], index: 3, kind: input, shape index: {}]   ;;  %s13393_s4 = inlined_call_operand.vmem [shape: f32[1,96], index: 4, kind: input, shape index: {}]   ;;  %s13394_s5 = inlined_call_operand.vmem [shape: f32[1,96], index: 5, kind: input, shape index: {}]   ;;  %s13395_s6 = inlined_call_operand.vmem [shape: f32[32,96], index: 6, kind: input, shape index: {}]   ;;  %s13396_s7 = inlined_call_operand.vmem [shape: f32[32,96], index: 7, kind: input, shape index: {}]   ;;  %s13397_s8 = inlined_call_operand.vmem [shape: f32[1,96], index: 8, kind: input, shape index: {}]   ;;  %s13398_s9 = inlined_call_operand.vmem [shape: f32[1,96], index: 9, kind: input, shape index: {}]   ;;  %s13399_s10 = inlined_call_operand.vmem [shape: f32[32,96], index: 10, kind: input, shape index: {}]   ;;  %s13400_s11 = inlined_call_operand.vmem [shape: f32[32,96], index: 11, kind: input, shape index: {}]   ;;  %s13401_s12 = inlined_call_operand.vmem [shape: f32[1,96], index: 12, kind: input, shape index: {}]   ;;  %s13402_s13 = inlined_call_operand.vmem [shape: f32[1,96], index: 13, kind: input, shape index: {}]   ;;  %s13403_s14 = inlined_call_operand.vmem [shape: f32[128,32], index: 14, kind: input, shape index: {}]   ;;  %s13404_s15 = inlined_call_operand.vmem [shape: f32[1,32], index: 15, kind: input, shape index: {}]   ;;  %s13405_s16 = inlined_call_operand.vmem [shape: f32[1,32], index: 16, kind: input, shape index: {}]   ;;  %s13406_s17 = inlined_call_operand.<no memory space> [shape: f32[1,1], index: 17, kind: input, shape index: {}]   ;;  %s13407_s18 = inlined_call_operand.vmem [shape: f32[32,64], index: 18, kind: input, shape index: {}]   ;;  %s13408_s19 = inlined_call_operand.vmem [shape: f32[1,64], index: 19, kind: input, shape index: {}]   ;;  %s13409_s20 = inlined_call_operand.vmem [shape: f32[32,64], index: 20, kind: input, shape index: {}]   ;;  %s13410_s21 = inlined_call_operand.vmem [shape: f32[1,64], index: 21, kind: input, shape index: {}]   ;;  %s13411_s22 = inlined_call_operand.vmem [shape: f32[96,32], index: 22, kind: input, shape index: {}]   ;;  %s13412_s23 = inlined_call_operand.vmem [shape: f32[1,32], index: 23, kind: input, shape index: {}]   ;;  %s13413_s24 = inlined_call_operand.vmem [shape: f32[64,2], index: 24, kind: input, shape index: {}]   ;;  %s13414_s25 = inlined_call_operand.vmem [shape: f32[1,2], index: 25, kind: input, shape index: {}]   ;;  %s13415_s26 = inlined_call_operand.hbm [shape: f32[2,2], index: 26, kind: output, shape index: {}]  }
   0x1   :  { %13445 = sst [smem:[#allocation18_spill]] %s13389_s0  ;;  %v31_v0 = vstv %s13406_s17 }
   0x2   :  { %13446 = sst [smem:[#allocation19_spill]] %s13390_s1  ;;  %32 = vst [vmem:[#allocation4] sm:$0x1] %v31_v0 }
   0x3   :  { %13447 = sst [smem:[#allocation20_spill]] %s13391_s2 }
   0x4   :  { %13448 = sst [smem:[#allocation21_spill]] %s13392_s3 }
   0x5   :  { %13449 = sst [smem:[#allocation22_spill]] %s13393_s4 }
   0x6   :  { %13450 = sst [smem:[#allocation23_spill]] %s13394_s5 }
   0x7   :  { %13451 = sst [smem:[#allocation24_spill]] %s13395_s6 }
   0x8   :  { %13452 = sst [smem:[#allocation25_spill]] %s13396_s7 }
   0x9   :  { %13453 = sst [smem:[#allocation26_spill]] %s13397_s8 }
   0xa   :  { %13454 = sst [smem:[#allocation27_spill]] %s13398_s9 }
   0xb   :  { %13455 = sst [smem:[#allocation28_spill]] %s13399_s10 }
   0xc   :  { %s13456_s8 = sld [smem:[#allocation20_spill]]  ;;  %s13457_s30 = sld [smem:[#allocation24_spill]]  ;;  %vm99_vm0 = vcmask 261120  }
   0xd   :  { %s13458_s0 = sld [smem:[#allocation18_spill]]  ;;  %s13459_s2 = sld [smem:[#allocation21_spill]] }
   0xe   :  { %s13460_s6 = sld [smem:[#allocation25_spill]] }
  0x12   :  { %v88_v1 = vld [vmem:[%s13456_s8] sm:$0xff]  ;;  %v89_v2 = vld [vmem:[%s13456_s8 + $0x8] sm:$0xff]  ;;  %v90_v6 = vld [vmem:[%s13456_s8 + $0x10] sm:$0xff] }
  0x13   :  { %v181_v3 = vld [vmem:[%s13457_s30] sm:$0xff]  ;;  %v9912_v4 = vpack.c.bf16 %v89_v2, %v88_v1  ;;  %v182_v5 = vld [vmem:[%s13457_s30 + $0x8] sm:$0xff]  ;;  %v91_v7 = vld [vmem:[%s13456_s8 + $0x18] sm:$0xff] }
  0x14   :  { %v9920_v8 = vpack.c.bf16 %v182_v5, %v181_v3  ;;  %v9916_v9 = vpack.c.bf16 %v91_v7, %v90_v6  ;;  %v183_v10 = vld [vmem:[%s13457_s30 + $0x10] sm:$0xff]  ;;  %v184_v11 = vld [vmem:[%s13457_s30 + $0x18] sm:$0xff]  ;;  %v86_v12 = vld [vmem:[%s13458_s0] sm:$0xff] }
  0x15   :  { %9913 = vmatprep.subr.bf16.mxu0 %v9912_v4  ;;  %v9924_v13 = vpack.c.bf16 %v184_v11, %v183_v10  ;;  %9315 = vmatprep.mubr.msk.f32.mxu1 %vm99_vm0, %v86_v12  ;;  %v267_v14 = vld [vmem:[%s13459_s2] sm:$0xff]  ;;  %v268_v15 = vld [vmem:[%s13459_s2 + $0x8] sm:$0xff] }
  0x16   :  { %9921 = vmatprep.subr.bf16.mxu1 %v9920_v8  ;;  %9915 = vmatpush3.bf16.msra.mxu0 %v9912_v4  ;;  %v272_v16 = vld [vmem:[%s13460_s6] sm:$0xff]  ;;  %v273_v17 = vld [vmem:[%s13460_s6 + $0x8] sm:$0xff] }
  0x17   :  { %9923 = vmatpush3.bf16.msra.mxu1 %v9920_v8  ;;  %9917 = vmatprep.subr.bf16.mxu0 %v9916_v9 }
  0x18   :  { %9925 = vmatprep.subr.bf16.mxu1 %v9924_v13  ;;  %9304 = vmatprep.mubr.msk.f32.mxu0 %vm99_vm0, %v86_v12 }
  0x19   :  { %33 = vsyncpa [#allocation6], 0  ;;  %v87_v18 = vld [vmem:[%s13458_s0 + $0x8] sm:$0xff]  ;;  %v11043_v19 = vpack.c.bf16 %v268_v15, %v267_v14  ;;  %v13427_v20 = vmov 0.0|0.0   ;;  %v11046_v21 = vpack.c.bf16 %v273_v17, %v272_v16  ;;  %v269_v22 = vld [vmem:[%s13459_s2 + $0x10] sm:$0xff]  ;;  %vm10853_vm1 = vmmov 0  }
  0x1a   :  { %9919 = vmatpush3.bf16.msra.mxu0 %v9916_v9  ;;  %v270_v23 = vld [vmem:[%s13459_s2 + $0x18] sm:$0xff]  ;;  %v274_v24 = vld [vmem:[%s13460_s6 + $0x10] sm:$0xff]  ;;  %v13429_v28 = vmov 0.0   ;;  %s13461_s10 = sld [smem:[#allocation23_spill]]  ;;  %s13462_s27 = sld [smem:[#allocation27_spill]]  ;;  %vm564_vm2 = vcmask 1041409  }
  0x1b   :  { %9927 = vmatpush3.bf16.msra.mxu1 %v9924_v13  ;;  %9928 = vmatprep.subr.bf16.mxu0 %v13427_v20  ;;  %v275_v25 = vld [vmem:[%s13460_s6 + $0x18] sm:$0xff]  ;;  %v11064_v26 = vpack.c.bf16 %v270_v23, %v269_v22  ;;  %s10855_s3 = smov 64   ;;  %s13463_s4 = sld [smem:[#allocation26_spill]]  ;;  %vm560_vm3 = vcmask 261127   ;;  %vm549_vm4 = vcmask 253952   ;;  %vm852_vm5 = vcmask 260102  }
  0x1c   :  { %9934 = vmatprep.subr.bf16.mxu1 %v13427_v20  ;;  %v11068_v27 = vpack.c.bf16 %v275_v25, %v274_v24  ;;  %s13464_s9 = sld [smem:[#allocation22_spill]]  ;;  %s10856_s0 = smov 96   ;;  %vm841_vm6 = vcmask 254977   ;;  %vm1145_vm7 = vcmask 259077   ;;  %vm1134_vm8 = vcmask 256002  }
  0x1d   :  { %9305 = vmatmul.mubr.msk.f32.vlgmr.msra.gmra.mrb[0].mxu0 %vm99_vm0, %v87_v18  ;;  %s13465_s7 = sld [smem:[#allocation28_spill]]  ;;  %vm1439_vm9 = vcmask 258052   ;;  %vm1428_vm10 = vcmask 257027   ;;  %vm3977_vm11 = vcmask 523264   ;;  %vm3980_vm12 = vcmask 785408   ;;  %s10860_s8 = smov [#allocation5]  }
  0x1e   :  { %9316 = vmatmul.mubr.msk.f32.vlgmr.msra.gmra.mrb[0].mxu1 %vm99_vm0, %v87_v18  ;;  %9930 = vmatpush3.bf16.msra.mxu0 %v11043_v19  ;;  %vm4105_vm13 = vcmask 58368   ;;  %vm4403_vm14 = vcmask 130112   ;;  %vm4410_vm15 = vcmask 195712  }
  0x1f   :  { %9936 = vmatpush3.bf16.msra.mxu1 %v11046_v21  ;;  %9931 = vmatprep.subr.bf16.mxu0 %v13427_v20 }
  0x20   :  { %9937 = vmatprep.subr.bf16.mxu1 %v13427_v20  ;;  %9326 = vmatprep.mubr.msk.f32.mxu0 %vm10853_vm1, %v13429_v28  ;;  %v11096_v33 = vld [vmem:[%s13461_s10] ss:$0 sm:$0xff] }
  0x21   :  { %9337 = vmatprep.mubr.msk.f32.mxu1 %vm10853_vm1, %v13429_v28  ;;  %v11101_v34 = vld [vmem:[%s13462_s27] ss:$0 sm:$0xff] }
  0x22   :  { %9933 = vmatpush3.bf16.msra.mxu0 %v11064_v26  ;;  %v8872_v44 = vld [vmem:[%s13463_s4] ss:$0 sm:$0xff] }
  0x23   :  { %9939 = vmatpush3.bf16.msra.mxu1 %v11068_v27  ;;  %9940 = vmatprep.subr.bf16.mxu0 %v13427_v20  ;;  %v8869_v45 = vld [vmem:[%s13464_s9] ss:$0 sm:$0xff]  ;;  %s13466_s9 = sld [smem:[#allocation19_spill]] }
  0x24   :  { %9946 = vmatprep.subr.bf16.mxu1 %v13427_v20 }
  0x25   :  { %9327 = vmatmul.mubr.f32.vlgmr.msra.gmra.mrb[2].mxu0 %v13429_v28 }
  0x26   :  { %9338 = vmatmul.mubr.f32.vlgmr.msra.gmra.mrb[2].mxu1 %v13429_v28  ;;  %9942 = vmatpush3.bf16.msra.mxu0 %v11043_v19 }
  0x27   :  { %9948 = vmatpush3.bf16.msra.mxu1 %v11046_v21  ;;  %9943 = vmatprep.subr.bf16.mxu0 %v13427_v20 }
  0x28   :  { %9949 = vmatprep.subr.bf16.mxu1 %v13427_v20  ;;  %9359 = vmatprep.mubr.msk.f32.mxu1 %vm10853_vm1, %v13429_v28 }
  0x29   :  { %9348 = vmatprep.mubr.msk.f32.mxu0 %vm10853_vm1, %v13429_v28 }
  0x2a   :  { %9945 = vmatpush3.bf16.msra.mxu0 %v11064_v26 }
  0x2b   :  { %9951 = vmatpush3.bf16.msra.mxu1 %v11068_v27  ;;  %9952 = vmatprep.subr.bf16.mxu0 %v13427_v20 }
  0x2c   :  { %9958 = vmatprep.subr.bf16.mxu1 %v13427_v20 }
  0xf0   :  { %v9306_v29 = vpop.f32.mrb[0].mxu0 }
  0xf1   :  { %v9317_v30 = vpop.f32.mrb[0].mxu1  ;;  %v172_v31 = vpop.f32.mrb[1].mxu0  ;;  %v11117_v47 = vadd.f32 %v9306_v29, %v8869_v45 }
  0xf2   :  { %v258_v32 = vpop.f32.mrb[1].mxu1  ;;  %v11120_v49 = vadd.f32 %v9317_v30, %v8872_v44  ;;  %v11123_v51 = vadd.f32 %v8869_v45, %v172_v31 }
  0xf3   :  { %v11115_v46 = vadd.f32 %v8872_v44, %v258_v32 }
  0xf8   :  { %v352_v35 = vpop.f32.mrb[2].mxu0 }
  0xf9   :  { %v353_v36 = vadd.f32 %v11096_v33, %v352_v35  ;;  %v482_v37 = vpop.f32.mrb[2].mxu1  ;;  %v9328_v38 = vpop.f32.mrb[3].mxu0 }
  0xfa   :  { %v483_v39 = vadd.f32 %v11101_v34, %v482_v37  ;;  %v9339_v40 = vpop.f32.mrb[3].mxu1 }
  0xfb   :  { %v357_v41 = vrot.slane %v353_v36, 1  ;;  %v360_v55 = vadd.f32 %v353_v36, %v11123_v51 }
  0xfc   :  { %v487_v42 = vrot.slane %v483_v39, 1  ;;  %v488_v43 = vrot.slane %v483_v39, 2 }
  0xfd   :  { %376 = vrot.lane.b32.xlu1 %v357_v41, %s10855_s3  ;;  %v361_v50 = vadd.f32 %v357_v41, %v11117_v47  ;;  %v8876_v57 = vmul.f32 -1.442695, %v360_v55 }
  0xfe   :  { %505 = vrot.lane.b32.xlu0 %v487_v42, %s10855_s3  ;;  %v491_v48 = vadd.f32 %v487_v42, %v11115_v46  ;;  %v492_v52 = vadd.f32 %v488_v43, %v11120_v49 }
  0xff   :  { %v8877_v54 = vmul.f32 -1.442695, %v361_v50 }
 0x100   :  { %v8879_v53 = vmul.f32 -1.442695, %v491_v48  ;;  %v8880_v56 = vmul.f32 -1.442695, %v492_v52 }
 0x101   :  { %374 = vrot.lane.b32.xlu1 %v353_v36, %s10855_s3 }
 0x102   :  { %507 = vrot.lane.b32.xlu0 %v488_v43, %s10855_s3  ;;  %10326 = vpow2.f32 %v8879_v53 }
 0x103   :  { %10328 = vpow2.f32 %v8877_v54 }
 0x104   :  { %10330 = vpow2.f32 %v8880_v56 }
 0x105   :  { %10332 = vpow2.f32 %v8876_v57 }
 0x10c   :  { %v10327_v58 = vpop.eup %10326 }
 0x10d   :  { %v10329_v59 = vpop.eup %10328  ;;  %v499_v60 = vadd.f32 1.0, %v10327_v58 }
 0x10e   :  { %v10331_v61 = vpop.eup %10330  ;;  %v369_v62 = vadd.f32 1.0, %v10329_v59 }
 0x10f   :  { %v500_v63 = vadd.f32 1.0, %v10331_v61  ;;  %10334 = vrcp.f32 %v499_v60  ;;  %v10333_v0 = vpop.eup %10332 }
 0x110   :  { %10336 = vrcp.f32 %v369_v62  ;;  %v368_v1 = vadd.f32 1.0, %v10333_v0 }
 0x111   :  { %10338 = vrcp.f32 %v500_v63 }
 0x112   :  { %10340 = vrcp.f32 %v368_v1 }
 0x119   :  { %v10335_v2 = vpop.eup %10334 }
 0x11a   :  { %v10337_v6 = vpop.eup %10336  ;;  %v525_v32 = vsub.f32 1.0, %v10335_v2  ;;  %v537_v37 = vmul.f32 0.0, %v10335_v2 }
 0x11b   :  { %v10339_v7 = vpop.eup %10338  ;;  %v395_v39 = vsub.f32 1.0, %v10337_v6  ;;  %v407_v45 = vmul.f32 0.0, %v10337_v6 }
 0x11c   :  { %v10341_v12 = vpop.eup %10340  ;;  %v526_v38 = vsub.f32 1.0, %v10339_v7  ;;  %v538_v43 = vmul.f32 0.0, %v10339_v7 }
 0x11d   :  { %v394_v52 = vsub.f32 1.0, %v10341_v12  ;;  %v406_v55 = vmul.f32 0.0, %v10341_v12 }
 0x16f   :  { %v377_v4 = vpop.permute.xlu1 %376 }
 0x170   :  { %v506_v3 = vpop.permute.xlu0 %505  ;;  %v381_v9 = vmul.f32 %v10337_v6, %v377_v4 }
 0x171   :  { %v511_v5 = vmul.f32 %v10335_v2, %v506_v3 }
 0x173   :  { %515 = vrot.lane.b32.xlu0 %v511_v5, %s10855_s3  ;;  %v375_v11 = vpop.permute.xlu1 %374 }
 0x174   :  { %v508_v8 = vpop.permute.xlu0 %507  ;;  %v380_v13 = vmul.f32 %v10341_v12, %v375_v11 }
 0x175   :  { %v512_v10 = vmul.f32 %v10339_v7, %v508_v8 }
 0x177   :  { %517 = vrot.lane.b32.xlu1 %v512_v10, %s10855_s3  ;;  %386 = vrot.lane.b32.xlu0 %v381_v9, %s10855_s3 }
 0x17b   :  { %384 = vrot.lane.b32.xlu1 %v380_v13, %s10855_s3 }
 0x1e5   :  { %v516_v14 = vpop.permute.xlu0 %515 }
 0x1e6   :  { %v521_v15 = vadd.f32 %v516_v14, %v11115_v46 }
 0x1e8   :  { %10342 = vtanh.f32 %v521_v15 }
 0x1e9   :  { %v518_v16 = vpop.permute.xlu1 %517  ;;  %v387_v17 = vpop.permute.xlu0 %386 }
 0x1ea   :  { %v522_v18 = vadd.f32 %v518_v16, %v11120_v49  ;;  %v391_v22 = vadd.f32 %v387_v17, %v11117_v47 }
 0x1ec   :  { %10344 = vtanh.f32 %v522_v18 }
 0x1ed   :  { %10346 = vtanh.f32 %v391_v22  ;;  %v385_v23 = vpop.permute.xlu1 %384 }
 0x1ee   :  { %v390_v24 = vadd.f32 %v385_v23, %v11123_v51 }
 0x1f0   :  { %10348 = vtanh.f32 %v390_v24 }
 0x1f2   :  { %v10343_v25 = vpop.eup %10342 }
 0x1f3   :  { %529 = vrot.lane.b32.xlu0 %v10343_v25, %s10856_s0 }
 0x1f6   :  { %v10345_v29 = vpop.eup %10344 }
 0x1f7   :  { %v10347_v30 = vpop.eup %10346  ;;  %531 = vrot.lane.b32.xlu1 %v10345_v29, %s10856_s0 }
 0x1f8   :  { %400 = vrot.lane.b32.xlu0 %v10347_v30, %s10856_s0 }
 0x1fa   :  { %v10349_v31 = vpop.eup %10348 }
 0x1fb   :  { %398 = vrot.lane.b32.xlu1 %v10349_v31, %s10856_s0 }
 0x265   :  { %v530_v35 = vpop.permute.xlu0 %529 }
 0x266   :  { %v535_v36 = vmul.f32 %v530_v35, %v525_v32 }
 0x268   :  { %v11139_v41 = vadd.f32 %v537_v37, %v535_v36 }
 0x269   :  { %v532_v40 = vpop.permute.xlu1 %531 }
 0x26a   :  { %v401_v42 = vpop.permute.xlu0 %400  ;;  %v536_v44 = vmul.f32 %v532_v40, %v526_v38  ;;  %v697_v57 = vrot.slane %v11139_v41, 7 }
 0x26b   :  { %v405_v48 = vmul.f32 %v401_v42, %v395_v39 }
 0x26c   :  { %v11141_v50 = vadd.f32 %v538_v43, %v536_v44 }
 0x26d   :  { %v11143_v53 = vadd.f32 %v407_v45, %v405_v48  ;;  %v399_v54 = vpop.permute.xlu1 %398 }
 0x26e   :  { %v404_v56 = vmul.f32 %v399_v54, %v394_v52  ;;  %v698_v58 = vrot.slane %v11141_v50, 6 }
 0x26f   :  { %v563_v59 = vrot.slane %v11143_v53, 7 }
 0x270   :  { %v11148_v60 = vadd.f32 %v406_v55, %v404_v56  ;;  %v699_v61 = vsel %vm564_vm2, %v698_v58, %v697_v57 }
 0x271   :  { %700 = vrot.lane.b32.xlu0 %v699_v61, %s10856_s0 }
 0x272   :  { %v565_v62 = vsel %vm564_vm2, %v563_v59, %v11148_v60 }
 0x273   :  { %566 = vrot.lane.b32.xlu1 %v565_v62, %s10856_s0 }
 0x2e3   :  { %v701_v63 = vpop.permute.xlu0 %700 }
 0x2e4   :  { %9360 = vmatmul.mubr.msk.f32.vlgmr.msra.gmra.mrb[4].mxu1 %vm99_vm0, %v701_v63 }
 0x2e5   :  { %v567_v0 = vpop.permute.xlu1 %566  ;;  %9960 = vmatpush3.bf16.msra.mxu1 %v11046_v21  ;;  %9381 = vmatprep.mubr.msk.f32.mxu1 %vm10853_vm1, %v13429_v28 }
 0x2e6   :  { %9349 = vmatmul.mubr.msk.f32.vlgmr.msra.gmra.mrb[4].mxu0 %vm99_vm0, %v567_v0  ;;  %9961 = vmatprep.subr.bf16.mxu1 %v13427_v20 }
 0x2e7   :  { %9954 = vmatpush3.bf16.msra.mxu0 %v11043_v19  ;;  %9370 = vmatprep.mubr.msk.f32.mxu0 %vm10853_vm1, %v13429_v28 }
 0x2e8   :  { %9955 = vmatprep.subr.bf16.mxu0 %v13427_v20 }
 0x2e9   :  { %9963 = vmatpush3.bf16.msra.mxu1 %v11068_v27 }
 0x2ea   :  { %9970 = vmatprep.subr.bf16.mxu1 %v13427_v20 }
 0x2eb   :  { %9957 = vmatpush3.bf16.msra.mxu0 %v11064_v26 }
 0x2ec   :  { %9964 = vmatprep.subr.bf16.mxu0 %v13427_v20 }
 0x3b7   :  { %v770_v1 = vpop.f32.mrb[4].mxu1 }
 0x3b8   :  { %v771_v2 = vadd.f32 %v11101_v34, %v770_v1  ;;  %v9361_v3 = vpop.f32.mrb[5].mxu1 }
 0x3b9   :  { %v636_v4 = vpop.f32.mrb[4].mxu0 }
 0x3ba   :  { %v775_v5 = vrot.slane %v771_v2, 2  ;;  %v776_v6 = vrot.slane %v771_v2, 3  ;;  %v637_v7 = vadd.f32 %v11096_v33, %v636_v4  ;;  %v9350_v8 = vpop.f32.mrb[5].mxu0  ;;  %v825_v4 = vrot.slane %v11139_v41, 1 }
 0x3bc   :  { %793 = vrot.lane.b32.xlu0 %v775_v5, %s10855_s3  ;;  %795 = vrot.lane.b32.xlu1 %v776_v6, %s10855_s3  ;;  %v641_v9 = vrot.slane %v637_v7, 7  ;;  %v779_v10 = vadd.f32 %v775_v5, %v11115_v46  ;;  %v780_v11 = vadd.f32 %v776_v6, %v11120_v49  ;;  %v645_v13 = vadd.f32 %v637_v7, %v11117_v47 }
 0x3be   :  { %v8885_v12 = vmul.f32 -1.442695, %v779_v10  ;;  %v8886_v14 = vmul.f32 -1.442695, %v780_v11  ;;  %v644_v15 = vadd.f32 %v641_v9, %v11123_v51  ;;  %v8883_v16 = vmul.f32 -1.442695, %v645_v13 }
 0x3c0   :  { %660 = vrot.lane.b32.xlu1 %v637_v7, %s10855_s3  ;;  %658 = vrot.lane.b32.xlu0 %v641_v9, %s10855_s3  ;;  %10350 = vpow2.f32 %v8885_v12  ;;  %v8882_v17 = vmul.f32 -1.442695, %v644_v15  ;;  %v826_v7 = vrot.slane %v11141_v50, 1  ;;  %v690_v15 = vrot.slane %v11148_v60, 7 }
 0x3c1   :  { %10352 = vpow2.f32 %v8886_v14 }
 0x3c2   :  { %10354 = vpow2.f32 %v8883_v16 }
 0x3c3   :  { %10356 = vpow2.f32 %v8882_v17 }
 0x3ca   :  { %v10351_v18 = vpop.eup %10350 }
 0x3cb   :  { %v10353_v22 = vpop.eup %10352  ;;  %v787_v23 = vadd.f32 1.0, %v10351_v18 }
 0x3cc   :  { %v10355_v24 = vpop.eup %10354  ;;  %v788_v25 = vadd.f32 1.0, %v10353_v22 }
 0x3cd   :  { %v10357_v29 = vpop.eup %10356  ;;  %10358 = vrcp.f32 %v787_v23  ;;  %v653_v30 = vadd.f32 1.0, %v10355_v24 }
 0x3ce   :  { %10360 = vrcp.f32 %v788_v25  ;;  %v652_v31 = vadd.f32 1.0, %v10357_v29 }
 0x3cf   :  { %10362 = vrcp.f32 %v653_v30 }
 0x3d0   :  { %10364 = vrcp.f32 %v652_v31 }
 0x3d7   :  { %v10359_v32 = vpop.eup %10358 }
 0x3d8   :  { %v10361_v35 = vpop.eup %10360  ;;  %v813_v3 = vsub.f32 1.0, %v10359_v32  ;;  %v829_v8 = vmul.f32 %v10359_v32, %v825_v4 }
 0x3d9   :  { %v10363_v40 = vpop.eup %10362  ;;  %v814_v6 = vsub.f32 1.0, %v10361_v35  ;;  %v830_v11 = vmul.f32 %v10361_v35, %v826_v7 }
 0x3da   :  { %v10365_v42 = vpop.eup %10364  ;;  %v679_v18 = vsub.f32 1.0, %v10363_v40 }
 0x3db   :  { %v678_v14 = vsub.f32 1.0, %v10365_v42  ;;  %v693_v22 = vmul.f32 %v10365_v42, %v690_v15 }
 0x42e   :  { %v794_v36 = vpop.permute.xlu0 %793  ;;  %v796_v37 = vpop.permute.xlu1 %795 }
 0x42f   :  { %v799_v38 = vmul.f32 %v10359_v32, %v794_v36  ;;  %v800_v39 = vmul.f32 %v10361_v35, %v796_v37  ;;  %v694_v32 = vmul.f32 %v10363_v40, %v563_v59 }
 0x431   :  { %803 = vrot.lane.b32.xlu0 %v799_v38, %s10855_s3  ;;  %805 = vrot.lane.b32.xlu1 %v800_v39, %s10855_s3 }
 0x432   :  { %v659_v43 = vpop.permute.xlu0 %658  ;;  %v661_v44 = vpop.permute.xlu1 %660 }
 0x433   :  { %v664_v45 = vmul.f32 %v10365_v42, %v659_v43  ;;  %v665_v48 = vmul.f32 %v10363_v40, %v661_v44 }
 0x435   :  { %668 = vrot.lane.b32.xlu0 %v664_v45, %s10855_s3  ;;  %670 = vrot.lane.b32.xlu1 %v665_v48, %s10855_s3 }
 0x4a3   :  { %v804_v52 = vpop.permute.xlu0 %803  ;;  %v806_v54 = vpop.permute.xlu1 %805 }
 0x4a4   :  { %v809_v55 = vadd.f32 %v804_v52, %v11115_v46  ;;  %v810_v56 = vadd.f32 %v806_v54, %v11120_v49 }
 0x4a6   :  { %10366 = vtanh.f32 %v809_v55 }
 0x4a7   :  { %10368 = vtanh.f32 %v810_v56  ;;  %v669_v57 = vpop.permute.xlu0 %668  ;;  %v671_v58 = vpop.permute.xlu1 %670 }
 0x4a8   :  { %v674_v61 = vadd.f32 %v669_v57, %v11123_v51  ;;  %v675_v62 = vadd.f32 %v671_v58, %v11117_v47 }
 0x4aa   :  { %10370 = vtanh.f32 %v674_v61 }
 0x4ab   :  { %10372 = vtanh.f32 %v675_v62 }
 0x4b0   :  { %v10367_v63 = vpop.eup %10366 }
 0x4b1   :  { %v10369_v0 = vpop.eup %10368  ;;  %817 = vrot.lane.b32.xlu0 %v10367_v63, %s10856_s0 }
 0x4b2   :  { %819 = vrot.lane.b32.xlu1 %v10369_v0, %s10856_s0 }
 0x4b4   :  { %v10371_v1 = vpop.eup %10370 }
 0x4b5   :  { %v10373_v2 = vpop.eup %10372  ;;  %682 = vrot.lane.b32.xlu0 %v10371_v1, %s10856_s0 }
 0x4b6   :  { %684 = vrot.lane.b32.xlu1 %v10373_v2, %s10856_s0 }
 0x523   :  { %v818_v5 = vpop.permute.xlu0 %817 }
 0x524   :  { %v823_v9 = vmul.f32 %v818_v5, %v813_v3  ;;  %v820_v10 = vpop.permute.xlu1 %819 }
 0x525   :  { %v824_v12 = vmul.f32 %v820_v10, %v814_v6 }
 0x526   :  { %v11195_v13 = vadd.f32 %v829_v8, %v823_v9 }
 0x527   :  { %v11198_v16 = vadd.f32 %v830_v11, %v824_v12  ;;  %v683_v17 = vpop.permute.xlu0 %682 }
 0x528   :  { %v688_v23 = vmul.f32 %v683_v17, %v678_v14  ;;  %v685_v24 = vpop.permute.xlu1 %684  ;;  %v990_v25 = vrot.slane %v11195_v13, 6 }
 0x529   :  { %v689_v29 = vmul.f32 %v685_v24, %v679_v18  ;;  %v991_v30 = vrot.slane %v11198_v16, 5 }
 0x52a   :  { %v11202_v31 = vadd.f32 %v693_v22, %v688_v23 }
 0x52b   :  { %v992_v35 = vsel %vm564_vm2, %v991_v30, %v990_v25  ;;  %v11207_v36 = vadd.f32 %v694_v32, %v689_v29 }
 0x52c   :  { %993 = vrot.lane.b32.xlu0 %v992_v35, %s10856_s0  ;;  %v855_v37 = vrot.slane %v11202_v31, 1 }
 0x52e   :  { %v856_v38 = vsel %vm564_vm2, %v11207_v36, %v855_v37 }
 0x52f   :  { %857 = vrot.lane.b32.xlu1 %v856_v38, %s10856_s0 }
 0x59e   :  { %v994_v39 = vpop.permute.xlu0 %993 }
 0x59f   :  { %9382 = vmatmul.mubr.msk.f32.vlgmr.msra.gmra.mrb[6].mxu1 %vm99_vm0, %v994_v39 }
 0x5a0   :  { %9972 = vmatpush3.bf16.msra.mxu1 %v11046_v21  ;;  %9403 = vmatprep.mubr.msk.f32.mxu1 %vm10853_vm1, %v13429_v28 }
 0x5a1   :  { %v858_v59 = vpop.permute.xlu1 %857  ;;  %9973 = vmatprep.subr.bf16.mxu1 %v13427_v20 }
 0x5a2   :  { %9371 = vmatmul.mubr.msk.f32.vlgmr.msra.gmra.mrb[6].mxu0 %vm99_vm0, %v858_v59 }
 0x5a3   :  { %9966 = vmatpush3.bf16.msra.mxu0 %v11043_v19  ;;  %9392 = vmatprep.mubr.msk.f32.mxu0 %vm10853_vm1, %v13429_v28 }
 0x5a4   :  { %9975 = vmatpush3.bf16.msra.mxu1 %v11068_v27  ;;  %9967 = vmatprep.subr.bf16.mxu0 %v13427_v20 }
 0x5a5   :  { %9982 = vmatprep.subr.bf16.mxu1 %v13427_v20 }
 0x5a7   :  { %9969 = vmatpush3.bf16.msra.mxu0 %v11064_v26 }
 0x5a8   :  { %9976 = vmatprep.subr.bf16.mxu0 %v13427_v20 }
 0x672   :  { %v1063_v40 = vpop.f32.mrb[6].mxu1 }
 0x673   :  { %v1064_v42 = vadd.f32 %v11101_v34, %v1063_v40  ;;  %v9383_v43 = vpop.f32.mrb[7].mxu1 }
 0x675   :  { %v1068_v44 = vrot.slane %v1064_v42, 3  ;;  %v1069_v45 = vrot.slane %v1064_v42, 4  ;;  %v927_v48 = vpop.f32.mrb[6].mxu0 }
 0x676   :  { %v928_v52 = vadd.f32 %v11096_v33, %v927_v48  ;;  %v9372_v54 = vpop.f32.mrb[7].mxu0 }
 0x677   :  { %1086 = vrot.lane.b32.xlu0 %v1068_v44, %s10855_s3  ;;  %1088 = vrot.lane.b32.xlu1 %v1069_v45, %s10855_s3  ;;  %v1072_v57 = vadd.f32 %v1068_v44, %v11115_v46  ;;  %v1073_v58 = vadd.f32 %v1069_v45, %v11120_v49  ;;  %v1118_v54 = vrot.slane %v11195_v13, 1 }
 0x678   :  { %v932_v55 = vrot.slane %v928_v52, 6  ;;  %v933_v56 = vrot.slane %v928_v52, 7 }
 0x679   :  { %v8891_v61 = vmul.f32 -1.442695, %v1072_v57  ;;  %v8892_v63 = vmul.f32 -1.442695, %v1073_v58  ;;  %v1119_v57 = vrot.slane %v11198_v16, 1 }
 0x67a   :  { %v936_v62 = vadd.f32 %v932_v55, %v11123_v51  ;;  %v937_v0 = vadd.f32 %v933_v56, %v11117_v47 }
 0x67b   :  { %952 = vrot.lane.b32.xlu1 %v933_v56, %s10855_s3  ;;  %950 = vrot.lane.b32.xlu0 %v932_v55, %s10855_s3  ;;  %10374 = vpow2.f32 %v8891_v61 }
 0x67c   :  { %v8888_v1 = vmul.f32 -1.442695, %v936_v62  ;;  %10376 = vpow2.f32 %v8892_v63  ;;  %v8889_v2 = vmul.f32 -1.442695, %v937_v0 }
 0x67e   :  { %10378 = vpow2.f32 %v8888_v1 }
 0x67f   :  { %10380 = vpow2.f32 %v8889_v2 }
 0x685   :  { %v10375_v3 = vpop.eup %10374 }
 0x686   :  { %v10377_v4 = vpop.eup %10376  ;;  %v1080_v5 = vadd.f32 1.0, %v10375_v3  ;;  %v982_v3 = vrot.slane %v11202_v31, 7 }
 0x687   :  { %v1081_v7 = vadd.f32 1.0, %v10377_v4 }
 0x688   :  { %v10379_v6 = vpop.eup %10378  ;;  %10382 = vrcp.f32 %v1080_v5 }
 0x689   :  { %v10381_v8 = vpop.eup %10380  ;;  %v944_v9 = vadd.f32 1.0, %v10379_v6  ;;  %10384 = vrcp.f32 %v1081_v7  ;;  %v983_v7 = vrot.slane %v11207_v36, 7 }
 0x68a   :  { %v945_v10 = vadd.f32 1.0, %v10381_v8 }
 0x68b   :  { %10386 = vrcp.f32 %v944_v9 }
 0x68c   :  { %10388 = vrcp.f32 %v945_v10 }
 0x692   :  { %v10383_v11 = vpop.eup %10382 }
 0x693   :  { %v10385_v12 = vpop.eup %10384  ;;  %v1106_v52 = vsub.f32 1.0, %v10383_v11  ;;  %v1122_v58 = vmul.f32 %v10383_v11, %v1118_v54 }
 0x694   :  { %v1107_v56 = vsub.f32 1.0, %v10385_v12  ;;  %v1123_v63 = vmul.f32 %v10385_v12, %v1119_v57 }
 0x695   :  { %v10387_v22 = vpop.eup %10386 }
 0x696   :  { %v10389_v23 = vpop.eup %10388  ;;  %v970_v2 = vsub.f32 1.0, %v10387_v22  ;;  %v986_v8 = vmul.f32 %v10387_v22, %v982_v3 }
 0x697   :  { %v971_v6 = vsub.f32 1.0, %v10389_v23 }
 0x6e9   :  { %v1087_v14 = vpop.permute.xlu0 %1086  ;;  %v1089_v15 = vpop.permute.xlu1 %1088 }
 0x6ea   :  { %v1092_v17 = vmul.f32 %v10383_v11, %v1087_v14  ;;  %v1093_v18 = vmul.f32 %v10385_v12, %v1089_v15  ;;  %v987_v14 = vmul.f32 %v10389_v23, %v983_v7 }
 0x6ec   :  { %1096 = vrot.lane.b32.xlu0 %v1092_v17, %s10855_s3  ;;  %1098 = vrot.lane.b32.xlu1 %v1093_v18, %s10855_s3 }
 0x6ed   :  { %v951_v24 = vpop.permute.xlu0 %950  ;;  %v953_v25 = vpop.permute.xlu1 %952 }
 0x6ee   :  { %v956_v29 = vmul.f32 %v10387_v22, %v951_v24  ;;  %v957_v30 = vmul.f32 %v10389_v23, %v953_v25 }
 0x6f0   :  { %960 = vrot.lane.b32.xlu0 %v956_v29, %s10855_s3  ;;  %962 = vrot.lane.b32.xlu1 %v957_v30, %s10855_s3 }
 0x75e   :  { %v1097_v32 = vpop.permute.xlu0 %1096  ;;  %v1099_v35 = vpop.permute.xlu1 %1098 }
 0x75f   :  { %v1102_v37 = vadd.f32 %v1097_v32, %v11115_v46  ;;  %v1103_v38 = vadd.f32 %v1099_v35, %v11120_v49 }
 0x761   :  { %10390 = vtanh.f32 %v1102_v37 }
 0x762   :  { %10392 = vtanh.f32 %v1103_v38  ;;  %v961_v39 = vpop.permute.xlu0 %960  ;;  %v963_v59 = vpop.permute.xlu1 %962 }
 0x763   :  { %v966_v40 = vadd.f32 %v961_v39, %v11123_v51  ;;  %v967_v42 = vadd.f32 %v963_v59, %v11117_v47 }
 0x765   :  { %10394 = vtanh.f32 %v966_v40 }
 0x766   :  { %10396 = vtanh.f32 %v967_v42 }
 0x76b   :  { %v10391_v43 = vpop.eup %10390 }
 0x76c   :  { %v10393_v44 = vpop.eup %10392  ;;  %1110 = vrot.lane.b32.xlu0 %v10391_v43, %s10856_s0 }
 0x76d   :  { %1112 = vrot.lane.b32.xlu1 %v10393_v44, %s10856_s0 }
 0x76f   :  { %v10395_v45 = vpop.eup %10394 }
 0x770   :  { %v10397_v48 = vpop.eup %10396  ;;  %974 = vrot.lane.b32.xlu0 %v10395_v45, %s10856_s0 }
 0x771   :  { %976 = vrot.lane.b32.xlu1 %v10397_v48, %s10856_s0 }
 0x7de   :  { %v1111_v55 = vpop.permute.xlu0 %1110 }
 0x7df   :  { %v1116_v61 = vmul.f32 %v1111_v55, %v1106_v52  ;;  %v1113_v62 = vpop.permute.xlu1 %1112 }
 0x7e0   :  { %v1117_v0 = vmul.f32 %v1113_v62, %v1107_v56 }
 0x7e1   :  { %v11252_v1 = vadd.f32 %v1122_v58, %v1116_v61 }
 0x7e2   :  { %v11255_v4 = vadd.f32 %v1123_v63, %v1117_v0  ;;  %v975_v5 = vpop.permute.xlu0 %974 }
 0x7e3   :  { %v980_v9 = vmul.f32 %v975_v5, %v970_v2  ;;  %v977_v10 = vpop.permute.xlu1 %976  ;;  %v1284_v11 = vrot.slane %v11252_v1, 5 }
 0x7e4   :  { %v981_v15 = vmul.f32 %v977_v10, %v971_v6  ;;  %v1285_v12 = vrot.slane %v11255_v4, 4 }
 0x7e5   :  { %v11260_v17 = vadd.f32 %v986_v8, %v980_v9 }
 0x7e6   :  { %v11262_v18 = vadd.f32 %v987_v14, %v981_v15  ;;  %v1286_v24 = vsel %vm564_vm2, %v1285_v12, %v1284_v11 }
 0x7e7   :  { %1287 = vrot.lane.b32.xlu0 %v1286_v24, %s10856_s0  ;;  %v1148_v25 = vrot.slane %v11260_v17, 2 }
 0x7e8   :  { %v1149_v22 = vrot.slane %v11262_v18, 1 }
 0x7ea   :  { %v1150_v29 = vsel %vm564_vm2, %v1149_v22, %v1148_v25 }
 0x7eb   :  { %1151 = vrot.lane.b32.xlu1 %v1150_v29, %s10856_s0 }
 0x859   :  { %v1288_v23 = vpop.permute.xlu0 %1287 }
 0x85a   :  { %9404 = vmatmul.mubr.msk.f32.vlgmr.msra.gmra.mrb[8].mxu1 %vm99_vm0, %v1288_v23 }
 0x85b   :  { %9984 = vmatpush3.bf16.msra.mxu1 %v11046_v21  ;;  %9425 = vmatprep.mubr.msk.f32.mxu1 %vm10853_vm1, %v13429_v28 }
 0x85c   :  { %9985 = vmatprep.subr.bf16.mxu1 %v13427_v20 }
 0x85d   :  { %v1152_v30 = vpop.permute.xlu1 %1151 }
 0x85e   :  { %9393 = vmatmul.mubr.msk.f32.vlgmr.msra.gmra.mrb[8].mxu0 %vm99_vm0, %v1152_v30 }
 0x85f   :  { %9978 = vmatpush3.bf16.msra.mxu0 %v11043_v19  ;;  %9987 = vmatpush3.bf16.msra.mxu1 %v11068_v27 }
 0x860   :  { %9979 = vmatprep.subr.bf16.mxu0 %v13427_v20  ;;  %9414 = vmatprep.mubr.msk.f32.mxu0 %vm10853_vm1, %v13429_v28 }
 0x861   :  { %9994 = vmatprep.subr.bf16.mxu1 %v13427_v20 }
 0x863   :  { %9981 = vmatpush3.bf16.msra.mxu0 %v11064_v26 }
 0x864   :  { %9988 = vmatprep.subr.bf16.mxu0 %v13427_v20 }
 0x92d   :  { %v1357_v32 = vpop.f32.mrb[8].mxu1 }
 0x92e   :  { %v1358_v35 = vadd.f32 %v11101_v34, %v1357_v32  ;;  %v9405_v37 = vpop.f32.mrb[9].mxu1 }
 0x930   :  { %v1362_v38 = vrot.slane %v1358_v35, 4  ;;  %v1363_v39 = vrot.slane %v1358_v35, 5 }
 0x931   :  { %v1221_v59 = vpop.f32.mrb[8].mxu0 }
 0x932   :  { %v1222_v40 = vadd.f32 %v11096_v33, %v1221_v59  ;;  %1380 = vrot.lane.b32.xlu0 %v1362_v38, %s10855_s3  ;;  %1382 = vrot.lane.b32.xlu1 %v1363_v39, %s10855_s3  ;;  %v9394_v42 = vpop.f32.mrb[9].mxu0  ;;  %v1366_v45 = vadd.f32 %v1362_v38, %v11115_v46  ;;  %v1367_v48 = vadd.f32 %v1363_v39, %v11120_v49 }
 0x934   :  { %v1226_v43 = vrot.slane %v1222_v40, 5  ;;  %v1227_v44 = vrot.slane %v1222_v40, 6  ;;  %v8897_v52 = vmul.f32 -1.442695, %v1366_v45  ;;  %v8898_v55 = vmul.f32 -1.442695, %v1367_v48 }
 0x935   :  { %v1412_v48 = vrot.slane %v11252_v1, 1 }
 0x936   :  { %1246 = vrot.lane.b32.xlu1 %v1227_v44, %s10855_s3  ;;  %1244 = vrot.lane.b32.xlu0 %v1226_v43, %s10855_s3  ;;  %v1230_v54 = vadd.f32 %v1226_v43, %v11123_v51  ;;  %v1231_v56 = vadd.f32 %v1227_v44, %v11117_v47  ;;  %10398 = vpow2.f32 %v8897_v52 }
 0x937   :  { %10400 = vpow2.f32 %v8898_v55  ;;  %v1413_v55 = vrot.slane %v11255_v4, 1 }
 0x938   :  { %v8894_v57 = vmul.f32 -1.442695, %v1230_v54  ;;  %v8895_v58 = vmul.f32 -1.442695, %v1231_v56 }
 0x93a   :  { %10402 = vpow2.f32 %v8894_v57 }
 0x93b   :  { %10404 = vpow2.f32 %v8895_v58 }
 0x940   :  { %v10399_v61 = vpop.eup %10398 }
 0x941   :  { %v10401_v62 = vpop.eup %10400  ;;  %v1374_v63 = vadd.f32 1.0, %v10399_v61 }
 0x942   :  { %v1375_v2 = vadd.f32 1.0, %v10401_v62 }
 0x943   :  { %10406 = vrcp.f32 %v1374_v63 }
 0x944   :  { %v10403_v0 = vpop.eup %10402  ;;  %10408 = vrcp.f32 %v1375_v2  ;;  %v1276_v2 = vrot.slane %v11260_v17, 7 }
 0x945   :  { %v10405_v3 = vpop.eup %10404  ;;  %v1238_v5 = vadd.f32 1.0, %v10403_v0 }
 0x946   :  { %v1239_v6 = vadd.f32 1.0, %v10405_v3 }
 0x947   :  { %10410 = vrcp.f32 %v1238_v5 }
 0x948   :  { %10412 = vrcp.f32 %v1239_v6 }
 0x94d   :  { %v10407_v7 = vpop.eup %10406 }
 0x94e   :  { %v10409_v8 = vpop.eup %10408  ;;  %v1400_v45 = vsub.f32 1.0, %v10407_v7  ;;  %v1416_v56 = vmul.f32 %v10407_v7, %v1412_v48 }
 0x94f   :  { %v1401_v54 = vsub.f32 1.0, %v10409_v8  ;;  %v1417_v61 = vmul.f32 %v10409_v8, %v1413_v55 }
 0x951   :  { %v10411_v15 = vpop.eup %10410 }
 0x952   :  { %v10413_v12 = vpop.eup %10412  ;;  %v1264_v0 = vsub.f32 1.0, %v10411_v15 }
 0x953   :  { %v1265_v6 = vsub.f32 1.0, %v10413_v12 }
 0x9a4   :  { %v1381_v9 = vpop.permute.xlu0 %1380  ;;  %v1383_v10 = vpop.permute.xlu1 %1382 }
 0x9a5   :  { %v1386_v11 = vmul.f32 %v10407_v7, %v1381_v9  ;;  %v1387_v14 = vmul.f32 %v10409_v8, %v1383_v10  ;;  %v1277_v9 = vrot.slane %v11262_v18, 7  ;;  %v1280_v10 = vmul.f32 %v10411_v15, %v1276_v2 }
 0x9a7   :  { %1390 = vrot.lane.b32.xlu0 %v1386_v11, %s10855_s3  ;;  %1392 = vrot.lane.b32.xlu1 %v1387_v14, %s10855_s3 }
 0x9a8   :  { %v1245_v24 = vpop.permute.xlu0 %1244  ;;  %v1247_v25 = vpop.permute.xlu1 %1246 }
 0x9a9   :  { %v1250_v22 = vmul.f32 %v10411_v15, %v1245_v24  ;;  %v1251_v29 = vmul.f32 %v10413_v12, %v1247_v25  ;;  %v1281_v24 = vmul.f32 %v10413_v12, %v1277_v9 }
 0x9ab   :  { %1254 = vrot.lane.b32.xlu0 %v1250_v22, %s10855_s3  ;;  %1256 = vrot.lane.b32.xlu1 %v1251_v29, %s10855_s3 }
 0xa19   :  { %v1391_v23 = vpop.permute.xlu0 %1390  ;;  %v1393_v30 = vpop.permute.xlu1 %1392 }
 0xa1a   :  { %v1396_v32 = vadd.f32 %v1391_v23, %v11115_v46  ;;  %v1397_v35 = vadd.f32 %v1393_v30, %v11120_v49 }
 0xa1c   :  { %10414 = vtanh.f32 %v1396_v32 }
 0xa1d   :  { %10416 = vtanh.f32 %v1397_v35  ;;  %v1255_v37 = vpop.permute.xlu0 %1254  ;;  %v1257_v38 = vpop.permute.xlu1 %1256 }
 0xa1e   :  { %v1260_v39 = vadd.f32 %v1255_v37, %v11123_v51  ;;  %v1261_v59 = vadd.f32 %v1257_v38, %v11117_v47 }
 0xa20   :  { %10418 = vtanh.f32 %v1260_v39 }
 0xa21   :  { %10420 = vtanh.f32 %v1261_v59 }
 0xa26   :  { %v10415_v40 = vpop.eup %10414 }
 0xa27   :  { %v10417_v42 = vpop.eup %10416  ;;  %1404 = vrot.lane.b32.xlu0 %v10415_v40, %s10856_s0 }
 0xa28   :  { %1406 = vrot.lane.b32.xlu1 %v10417_v42, %s10856_s0 }
 0xa2a   :  { %v10419_v43 = vpop.eup %10418 }
 0xa2b   :  { %v10421_v44 = vpop.eup %10420  ;;  %1268 = vrot.lane.b32.xlu0 %v10419_v43, %s10856_s0 }
 0xa2c   :  { %1270 = vrot.lane.b32.xlu1 %v10421_v44, %s10856_s0 }
 0xa99   :  { %v1405_v52 = vpop.permute.xlu0 %1404 }
 0xa9a   :  { %v1410_v57 = vmul.f32 %v1405_v52, %v1400_v45  ;;  %v1407_v58 = vpop.permute.xlu1 %1406 }
 0xa9b   :  { %v1411_v62 = vmul.f32 %v1407_v58, %v1401_v54 }
 0xa9c   :  { %v11308_v63 = vadd.f32 %v1416_v56, %v1410_v57 }
 0xa9d   :  { %v11311_v3 = vadd.f32 %v1417_v61, %v1411_v62  ;;  %v1269_v5 = vpop.permute.xlu0 %1268 }
 0xa9e   :  { %v1274_v11 = vmul.f32 %v1269_v5, %v1264_v0  ;;  %v1271_v14 = vpop.permute.xlu1 %1270  ;;  %v1578_v7 = vrot.slane %v11308_v63, 4 }
 0xa9f   :  { %v1275_v25 = vmul.f32 %v1271_v14, %v1265_v6  ;;  %v1579_v8 = vrot.slane %v11311_v3, 3 }
 0xaa0   :  { %v11316_v22 = vadd.f32 %v1280_v10, %v1274_v11 }
 0xaa1   :  { %v11318_v29 = vadd.f32 %v1281_v24, %v1275_v25  ;;  %v1580_v23 = vsel %vm564_vm2, %v1579_v8, %v1578_v7 }
 0xaa2   :  { %1581 = vrot.lane.b32.xlu0 %v1580_v23, %s10856_s0  ;;  %v1442_v30 = vrot.slane %v11316_v22, 3 }
 0xaa3   :  { %v1443_v15 = vrot.slane %v11318_v29, 2 }
 0xaa5   :  { %v1444_v32 = vsel %vm564_vm2, %v1443_v15, %v1442_v30 }
 0xaa6   :  { %1445 = vrot.lane.b32.xlu1 %v1444_v32, %s10856_s0 }
 0xb14   :  { %v1582_v12 = vpop.permute.xlu0 %1581 }
 0xb15   :  { %9426 = vmatmul.mubr.msk.f32.vlgmr.msra.gmra.mrb[10].mxu1 %vm99_vm0, %v1582_v12 }
 0xb16   :  { %9996 = vmatpush3.bf16.msra.mxu1 %v11046_v21  ;;  %9447 = vmatprep.mubr.msk.f32.mxu1 %vm10853_vm1, %v13429_v28 }
 0xb17   :  { %9997 = vmatprep.subr.bf16.mxu1 %v13427_v20 }
 0xb18   :  { %v1446_v35 = vpop.permute.xlu1 %1445 }
 0xb19   :  { %9415 = vmatmul.mubr.msk.f32.vlgmr.msra.gmra.mrb[10].mxu0 %vm99_vm0, %v1446_v35 }
 0xb1a   :  { %9990 = vmatpush3.bf16.msra.mxu0 %v11043_v19  ;;  %9999 = vmatpush3.bf16.msra.mxu1 %v11068_v27 }
 0xb1b   :  { %9991 = vmatprep.subr.bf16.mxu0 %v13427_v20  ;;  %9436 = vmatprep.mubr.msk.f32.mxu0 %vm10853_vm1, %v13429_v28 }
 0xb1c   :  { %10006 = vmatprep.subr.bf16.mxu1 %v13427_v20 }
 0xb1e   :  { %9993 = vmatpush3.bf16.msra.mxu0 %v11064_v26 }
 0xb1f   :  { %10000 = vmatprep.subr.bf16.mxu0 %v13427_v20 }
 0xbe8   :  { %v1651_v37 = vpop.f32.mrb[10].mxu1 }
 0xbe9   :  { %v1652_v38 = vadd.f32 %v11101_v34, %v1651_v37  ;;  %v9427_v39 = vpop.f32.mrb[11].mxu1 }
 0xbeb   :  { %v1656_v59 = vrot.slane %v1652_v38, 5  ;;  %v1657_v40 = vrot.slane %v1652_v38, 6 }
 0xbec   :  { %v1515_v42 = vpop.f32.mrb[10].mxu0 }
 0xbed   :  { %v1516_v43 = vadd.f32 %v11096_v33, %v1515_v42  ;;  %1674 = vrot.lane.b32.xlu0 %v1656_v59, %s10855_s3  ;;  %1676 = vrot.lane.b32.xlu1 %v1657_v40, %s10855_s3  ;;  %v9416_v44 = vpop.f32.mrb[11].mxu0  ;;  %v1660_v52 = vadd.f32 %v1656_v59, %v11115_v46  ;;  %v1661_v34 = vadd.f32 %v1657_v40, %v11120_v49 }
 0xbef   :  { %v1520_v45 = vrot.slane %v1516_v43, 4  ;;  %v1521_v48 = vrot.slane %v1516_v43, 5  ;;  %v8903_v54 = vmul.f32 -1.442695, %v1660_v52  ;;  %v8904_v56 = vmul.f32 -1.442695, %v1661_v34 }
 0xbf1   :  { %1540 = vrot.lane.b32.xlu1 %v1521_v48, %s10855_s3  ;;  %1538 = vrot.lane.b32.xlu0 %v1520_v45, %s10855_s3  ;;  %v1524_v55 = vadd.f32 %v1520_v45, %v11123_v51  ;;  %v1525_v33 = vadd.f32 %v1521_v48, %v11117_v47  ;;  %10422 = vpow2.f32 %v8903_v54 }
 0xbf2   :  { %10424 = vpow2.f32 %v8904_v56 }
 0xbf3   :  { %v8900_v57 = vmul.f32 -1.442695, %v1524_v55  ;;  %v8901_v58 = vmul.f32 -1.442695, %v1525_v33  ;;  %v1706_v55 = vrot.slane %v11308_v63, 1 }
 0xbf5   :  { %10426 = vpow2.f32 %v8900_v57  ;;  %v1707_v57 = vrot.slane %v11311_v3, 1 }
 0xbf6   :  { %10428 = vpow2.f32 %v8901_v58 }
 0xbfb   :  { %v10423_v61 = vpop.eup %10422 }
 0xbfc   :  { %v10425_v62 = vpop.eup %10424  ;;  %v1668_v0 = vadd.f32 1.0, %v10423_v61 }
 0xbfd   :  { %v1669_v5 = vadd.f32 1.0, %v10425_v62 }
 0xbfe   :  { %10430 = vrcp.f32 %v1668_v0 }
 0xbff   :  { %v10427_v2 = vpop.eup %10426  ;;  %10432 = vrcp.f32 %v1669_v5 }
 0xc00   :  { %v10429_v6 = vpop.eup %10428  ;;  %v1532_v9 = vadd.f32 1.0, %v10427_v2 }
 0xc01   :  { %v1533_v10 = vadd.f32 1.0, %v10429_v6 }
 0xc02   :  { %10434 = vrcp.f32 %v1532_v9  ;;  %v1570_v9 = vrot.slane %v11316_v22, 7 }
 0xc03   :  { %10436 = vrcp.f32 %v1533_v10 }
 0xc08   :  { %v10431_v11 = vpop.eup %10430 }
 0xc09   :  { %v10433_v14 = vpop.eup %10432  ;;  %v1694_v54 = vsub.f32 1.0, %v10431_v11  ;;  %v1710_v58 = vmul.f32 %v10431_v11, %v1706_v55  ;;  %v11405_v55 = vld [vmem:[%s13461_s10] ss:$0 sm:$0xff] }
 0xc0a   :  { %v1695_v33 = vsub.f32 1.0, %v10433_v14  ;;  %v1711_v0 = vmul.f32 %v10433_v14, %v1707_v57 }
 0xc0c   :  { %v10435_v23 = vpop.eup %10434 }
 0xc0d   :  { %v10437_v30 = vpop.eup %10436  ;;  %v1558_v6 = vsub.f32 1.0, %v10435_v23 }
 0xc5f   :  { %v1675_v7 = vpop.permute.xlu0 %1674  ;;  %v1677_v24 = vpop.permute.xlu1 %1676 }
 0xc60   :  { %v1680_v25 = vmul.f32 %v10431_v11, %v1675_v7  ;;  %v1681_v8 = vmul.f32 %v10433_v14, %v1677_v24  ;;  %v1559_v24 = vsub.f32 1.0, %v10437_v30 }
 0xc62   :  { %1684 = vrot.lane.b32.xlu0 %v1680_v25, %s10855_s3  ;;  %1686 = vrot.lane.b32.xlu1 %v1681_v8, %s10855_s3  ;;  %v1571_v25 = vrot.slane %v11318_v29, 7  ;;  %v1574_v8 = vmul.f32 %v10435_v23, %v1570_v9 }
 0xc63   :  { %v1539_v15 = vpop.permute.xlu0 %1538  ;;  %v1541_v32 = vpop.permute.xlu1 %1540 }
 0xc64   :  { %v1544_v12 = vmul.f32 %v10435_v23, %v1539_v15  ;;  %v1545_v35 = vmul.f32 %v10437_v30, %v1541_v32 }
 0xc66   :  { %1548 = vrot.lane.b32.xlu0 %v1544_v12, %s10855_s3  ;;  %1550 = vrot.lane.b32.xlu1 %v1545_v35, %s10855_s3  ;;  %v1575_v12 = vmul.f32 %v10437_v30, %v1571_v25 }
 0xcd4   :  { %v1685_v37 = vpop.permute.xlu0 %1684  ;;  %v1687_v38 = vpop.permute.xlu1 %1686 }
 0xcd5   :  { %v1690_v39 = vadd.f32 %v1685_v37, %v11115_v46  ;;  %v1691_v59 = vadd.f32 %v1687_v38, %v11120_v49 }
 0xcd7   :  { %10438 = vtanh.f32 %v1690_v39 }
 0xcd8   :  { %10440 = vtanh.f32 %v1691_v59  ;;  %v1549_v40 = vpop.permute.xlu0 %1548  ;;  %v1551_v42 = vpop.permute.xlu1 %1550 }
 0xcd9   :  { %v1554_v43 = vadd.f32 %v1549_v40, %v11123_v51  ;;  %v1555_v44 = vadd.f32 %v1551_v42, %v11117_v47 }
 0xcdb   :  { %10442 = vtanh.f32 %v1554_v43 }
 0xcdc   :  { %10444 = vtanh.f32 %v1555_v44  ;;  %v11399_v44 = vld [vmem:[%s13462_s27] ss:$0 sm:$0xff] }
 0xce1   :  { %v10439_v45 = vpop.eup %10438 }
 0xce2   :  { %v10441_v48 = vpop.eup %10440  ;;  %1698 = vrot.lane.b32.xlu0 %v10439_v45, %s10856_s0 }
 0xce3   :  { %1700 = vrot.lane.b32.xlu1 %v10441_v48, %s10856_s0 }
 0xce5   :  { %v10443_v52 = vpop.eup %10442 }
 0xce6   :  { %v10445_v34 = vpop.eup %10444  ;;  %1562 = vrot.lane.b32.xlu0 %v10443_v52, %s10856_s0 }
 0xce7   :  { %1564 = vrot.lane.b32.xlu1 %v10445_v34, %s10856_s0 }
 0xd54   :  { %v1699_v56 = vpop.permute.xlu0 %1698 }
 0xd55   :  { %v1704_v61 = vmul.f32 %v1699_v56, %v1694_v54  ;;  %v1701_v62 = vpop.permute.xlu1 %1700 }
 0xd56   :  { %v1705_v2 = vmul.f32 %v1701_v62, %v1695_v33 }
 0xd57   :  { %v11364_v5 = vadd.f32 %v1710_v58, %v1704_v61 }
 0xd58   :  { %v11367_v10 = vadd.f32 %v1711_v0, %v1705_v2  ;;  %v1563_v7 = vpop.permute.xlu0 %1562 }
 0xd59   :  { %v1568_v15 = vmul.f32 %v1563_v7, %v1558_v6  ;;  %v1565_v32 = vpop.permute.xlu1 %1564  ;;  %v1870_v11 = vrot.slane %v11364_v5, 3 }
 0xd5a   :  { %v1569_v35 = vmul.f32 %v1565_v32, %v1559_v24  ;;  %v1871_v14 = vrot.slane %v11367_v10, 2 }
 0xd5b   :  { %v11372_v37 = vadd.f32 %v1574_v8, %v1568_v15 }
 0xd5c   :  { %v11374_v38 = vadd.f32 %v1575_v12, %v1569_v35  ;;  %v1872_v39 = vsel %vm564_vm2, %v1871_v14, %v1870_v11 }
 0xd5d   :  { %1873 = vrot.lane.b32.xlu0 %v1872_v39, %s10856_s0  ;;  %v1734_v59 = vrot.slane %v11372_v37, 4 }
 0xd5e   :  { %v1735_v23 = vrot.slane %v11374_v38, 3 }
 0xd60   :  { %v1736_v40 = vsel %vm564_vm2, %v1735_v23, %v1734_v59 }
 0xd61   :  { %1737 = vrot.lane.b32.xlu1 %v1736_v40, %s10856_s0 }
 0xdcf   :  { %v1874_v30 = vpop.permute.xlu0 %1873 }
 0xdd0   :  { %9448 = vmatmul.mubr.msk.f32.vlgmr.msra.gmra.mrb[12].mxu1 %vm99_vm0, %v1874_v30 }
 0xdd1   :  { %10008 = vmatpush3.bf16.msra.mxu1 %v11046_v21  ;;  %9469 = vmatprep.mubr.msk.f32.mxu1 %vm10853_vm1, %v13429_v28 }
 0xdd2   :  { %10009 = vmatprep.subr.bf16.mxu1 %v13427_v20 }
 0xdd3   :  { %v1738_v42 = vpop.permute.xlu1 %1737 }
 0xdd4   :  { %9437 = vmatmul.mubr.msk.f32.vlgmr.msra.gmra.mrb[12].mxu0 %vm99_vm0, %v1738_v42 }
 0xdd5   :  { %10002 = vmatpush3.bf16.msra.mxu0 %v11043_v19  ;;  %10011 = vmatpush3.bf16.msra.mxu1 %v11068_v27 }
 0xdd6   :  { %10003 = vmatprep.subr.bf16.mxu0 %v13427_v20  ;;  %9458 = vmatprep.mubr.msk.f32.mxu0 %vm10853_vm1, %v13429_v28 }
 0xdd7   :  { %10018 = vmatprep.subr.bf16.mxu1 %v13427_v20 }
 0xdd9   :  { %10005 = vmatpush3.bf16.msra.mxu0 %v11064_v26 }
 0xdda   :  { %10012 = vmatprep.subr.bf16.mxu0 %v13427_v20 }
 0xea3   :  { %v1943_v43 = vpop.f32.mrb[12].mxu1 }
 0xea4   :  { %v1944_v45 = vadd.f32 %v11399_v44, %v1943_v43  ;;  %v9449_v48 = vpop.f32.mrb[13].mxu1 }
 0xea6   :  { %v1948_v52 = vrot.slane %v1944_v45, 6  ;;  %v1949_v34 = vrot.slane %v1944_v45, 7 }
 0xea7   :  { %v1807_v54 = vpop.f32.mrb[12].mxu0 }
 0xea8   :  { %v1808_v56 = vadd.f32 %v11405_v55, %v1807_v54  ;;  %1966 = vrot.lane.b32.xlu0 %v1948_v52, %s10855_s3  ;;  %1968 = vrot.lane.b32.xlu1 %v1949_v34, %s10855_s3  ;;  %v9438_v33 = vpop.f32.mrb[13].mxu0  ;;  %v1952_v61 = vadd.f32 %v1948_v52, %v11115_v46  ;;  %v1953_v62 = vadd.f32 %v1949_v34, %v11120_v49 }
 0xeaa   :  { %v1812_v57 = vrot.slane %v1808_v56, 3  ;;  %v1813_v58 = vrot.slane %v1808_v56, 4  ;;  %v8909_v0 = vmul.f32 -1.442695, %v1952_v61  ;;  %v8910_v6 = vmul.f32 -1.442695, %v1953_v62 }
 0xeac   :  { %1832 = vrot.lane.b32.xlu1 %v1813_v58, %s10855_s3  ;;  %1830 = vrot.lane.b32.xlu0 %v1812_v57, %s10855_s3  ;;  %v1816_v2 = vadd.f32 %v1812_v57, %v11123_v51  ;;  %v1817_v9 = vadd.f32 %v1813_v58, %v11117_v47  ;;  %10446 = vpow2.f32 %v8909_v0 }
 0xead   :  { %10448 = vpow2.f32 %v8910_v6 }
 0xeae   :  { %v8906_v7 = vmul.f32 -1.442695, %v1816_v2  ;;  %v8907_v24 = vmul.f32 -1.442695, %v1817_v9 }
 0xeb0   :  { %10450 = vpow2.f32 %v8906_v7 }
 0xeb1   :  { %10452 = vpow2.f32 %v8907_v24 }
 0xeb6   :  { %v10447_v25 = vpop.eup %10446 }
 0xeb7   :  { %v10449_v8 = vpop.eup %10448  ;;  %v1960_v15 = vadd.f32 1.0, %v10447_v25 }
 0xeb8   :  { %v1961_v11 = vadd.f32 1.0, %v10449_v8  ;;  %v1998_v8 = vrot.slane %v11364_v5, 1 }
 0xeb9   :  { %10454 = vrcp.f32 %v1960_v15 }
 0xeba   :  { %v10451_v32 = vpop.eup %10450  ;;  %10456 = vrcp.f32 %v1961_v11  ;;  %v1999_v11 = vrot.slane %v11367_v10, 1 }
 0xebb   :  { %v10453_v12 = vpop.eup %10452  ;;  %v1824_v35 = vadd.f32 1.0, %v10451_v32 }
 0xebc   :  { %v1825_v14 = vadd.f32 1.0, %v10453_v12 }
 0xebd   :  { %10458 = vrcp.f32 %v1824_v35 }
 0xebe   :  { %10460 = vrcp.f32 %v1825_v14 }
 0xec3   :  { %v10455_v39 = vpop.eup %10454 }
 0xec4   :  { %v10457_v59 = vpop.eup %10456  ;;  %v1986_v25 = vsub.f32 1.0, %v10455_v39  ;;  %v2002_v12 = vmul.f32 %v10455_v39, %v1998_v8 }
 0xec5   :  { %v1987_v32 = vsub.f32 1.0, %v10457_v59 }
 0xec7   :  { %v10459_v43 = vpop.eup %10458 }
 0xec8   :  { %v10461_v45 = vpop.eup %10460 }
 0xf1a   :  { %v1967_v23 = vpop.permute.xlu0 %1966  ;;  %v1969_v40 = vpop.permute.xlu1 %1968 }
 0xf1b   :  { %v1972_v30 = vmul.f32 %v10455_v39, %v1967_v23  ;;  %v1973_v42 = vmul.f32 %v10457_v59, %v1969_v40  ;;  %v2003_v23 = vmul.f32 %v10457_v59, %v1999_v11 }
 0xf1d   :  { %1976 = vrot.lane.b32.xlu0 %v1972_v30, %s10855_s3  ;;  %1978 = vrot.lane.b32.xlu1 %v1973_v42, %s10855_s3  ;;  %v1850_v42 = vsub.f32 1.0, %v10459_v43 }
 0xf1e   :  { %v1831_v48 = vpop.permute.xlu0 %1830  ;;  %v1833_v52 = vpop.permute.xlu1 %1832 }
 0xf1f   :  { %v1836_v34 = vmul.f32 %v10459_v43, %v1831_v48  ;;  %v1837_v54 = vmul.f32 %v10461_v45, %v1833_v52  ;;  %v1862_v48 = vrot.slane %v11372_v37, 7 }
 0xf21   :  { %1840 = vrot.lane.b32.xlu0 %v1836_v34, %s10855_s3  ;;  %1842 = vrot.lane.b32.xlu1 %v1837_v54, %s10855_s3  ;;  %v1851_v54 = vsub.f32 1.0, %v10461_v45 }
 0xf8f   :  { %v1977_v56 = vpop.permute.xlu0 %1976  ;;  %v1979_v33 = vpop.permute.xlu1 %1978 }
 0xf90   :  { %v1982_v57 = vadd.f32 %v1977_v56, %v11115_v46  ;;  %v1983_v58 = vadd.f32 %v1979_v33, %v11120_v49  ;;  %v1863_v56 = vrot.slane %v11374_v38, 7  ;;  %v1866_v33 = vmul.f32 %v10459_v43, %v1862_v48 }
 0xf92   :  { %10462 = vtanh.f32 %v1982_v57  ;;  %v1867_v59 = vmul.f32 %v10461_v45, %v1863_v56 }
 0xf93   :  { %10464 = vtanh.f32 %v1983_v58  ;;  %v1841_v61 = vpop.permute.xlu0 %1840  ;;  %v1843_v62 = vpop.permute.xlu1 %1842 }
 0xf94   :  { %v1846_v0 = vadd.f32 %v1841_v61, %v11123_v51  ;;  %v1847_v2 = vadd.f32 %v1843_v62, %v11117_v47 }
 0xf96   :  { %10466 = vtanh.f32 %v1846_v0 }
 0xf97   :  { %10468 = vtanh.f32 %v1847_v2 }
 0xf9c   :  { %v10463_v6 = vpop.eup %10462 }
 0xf9d   :  { %v10465_v9 = vpop.eup %10464  ;;  %1990 = vrot.lane.b32.xlu0 %v10463_v6, %s10856_s0 }
 0xf9e   :  { %1992 = vrot.lane.b32.xlu1 %v10465_v9, %s10856_s0 }
 0xfa0   :  { %v10467_v7 = vpop.eup %10466 }
 0xfa1   :  { %v10469_v24 = vpop.eup %10468  ;;  %1854 = vrot.lane.b32.xlu0 %v10467_v7, %s10856_s0 }
 0xfa2   :  { %1856 = vrot.lane.b32.xlu1 %v10469_v24, %s10856_s0 }
0x100f   :  { %v1991_v15 = vpop.permute.xlu0 %1990 }
0x1010   :  { %v1996_v35 = vmul.f32 %v1991_v15, %v1986_v25  ;;  %v1993_v14 = vpop.permute.xlu1 %1992 }
0x1011   :  { %v1997_v40 = vmul.f32 %v1993_v14, %v1987_v32 }
0x1012   :  { %v11430_v30 = vadd.f32 %v2002_v12, %v1996_v35 }
0x1013   :  { %v11433_v52 = vadd.f32 %v2003_v23, %v1997_v40  ;;  %v1855_v34 = vpop.permute.xlu0 %1854 }
0x1014   :  { %v1860_v57 = vmul.f32 %v1855_v34, %v1850_v42  ;;  %v1857_v58 = vpop.permute.xlu1 %1856  ;;  %v2162_v39 = vrot.slane %v11430_v30, 2 }
0x1015   :  { %v2163_v61 = vrot.slane %v11433_v52, 1  ;;  %v1861_v62 = vmul.f32 %v1857_v58, %v1851_v54 }
0x1016   :  { %v11438_v0 = vadd.f32 %v1866_v33, %v1860_v57 }
0x1017   :  { %v11440_v2 = vadd.f32 %v1867_v59, %v1861_v62  ;;  %v2164_v6 = vsel %vm564_vm2, %v2163_v61, %v2162_v39 }
0x1018   :  { %2165 = vrot.lane.b32.xlu0 %v2164_v6, %s10856_s0  ;;  %v2026_v43 = vrot.slane %v11438_v0, 5 }
0x1019   :  { %v2027_v9 = vrot.slane %v11440_v2, 4 }
0x101b   :  { %v2028_v7 = vsel %vm564_vm2, %v2027_v9, %v2026_v43 }
0x101c   :  { %2029 = vrot.lane.b32.xlu1 %v2028_v7, %s10856_s0 }
0x108a   :  { %v2166_v45 = vpop.permute.xlu0 %2165 }
0x108b   :  { %9470 = vmatmul.mubr.msk.f32.vlgmr.msra.gmra.mrb[14].mxu1 %vm99_vm0, %v2166_v45 }
0x108c   :  { %10020 = vmatpush3.bf16.msra.mxu1 %v11046_v21  ;;  %9491 = vmatprep.mubr.msk.f32.mxu1 %vm10853_vm1, %v13429_v28 }
0x108d   :  { %10021 = vmatprep.subr.bf16.mxu1 %v13427_v20 }
0x108e   :  { %v2030_v24 = vpop.permute.xlu1 %2029 }
0x108f   :  { %9459 = vmatmul.mubr.msk.f32.vlgmr.msra.gmra.mrb[14].mxu0 %vm99_vm0, %v2030_v24 }
0x1090   :  { %10014 = vmatpush3.bf16.msra.mxu0 %v11043_v19  ;;  %10023 = vmatpush3.bf16.msra.mxu1 %v11068_v27 }
0x1091   :  { %10015 = vmatprep.subr.bf16.mxu0 %v13427_v20  ;;  %10032 = vmatprep.subr.bf16.mxu1 %v13427_v20 }
0x1092   :  { %9480 = vmatprep.mubr.msk.f32.mxu0 %vm10853_vm1, %v13429_v28 }
0x1094   :  { %10017 = vmatpush3.bf16.msra.mxu0 %v11064_v26 }
0x115e   :  { %v2235_v21 = vpop.f32.mrb[14].mxu1 }
0x115f   :  { %v2236_v25 = vadd.f32 %v11399_v44, %v2235_v21  ;;  %v9471_v8 = vpop.f32.mrb[15].mxu1 }
0x1161   :  { %2259 = vrot.lane.b32.xlu1 %v2236_v25, %s10855_s3  ;;  %v2240_v15 = vrot.slane %v2236_v25, 7  ;;  %v2244_v26 = vadd.f32 %v2236_v25, %v11120_v49 }
0x1162   :  { %v2099_v32 = vpop.f32.mrb[14].mxu0 }
0x1163   :  { %v2100_v19 = vadd.f32 %v11405_v55, %v2099_v32  ;;  %2257 = vrot.lane.b32.xlu0 %v2240_v15, %s10855_s3  ;;  %v9460_v27 = vpop.f32.mrb[15].mxu0  ;;  %v2243_v44 = vadd.f32 %v2240_v15, %v11115_v46  ;;  %v8916_v35 = vmul.f32 -1.442695, %v2244_v26 }
0x1165   :  { %v2104_v11 = vrot.slane %v2100_v19, 2  ;;  %v2105_v12 = vrot.slane %v2100_v19, 3  ;;  %v8915_v40 = vmul.f32 -1.442695, %v2243_v44  ;;  %10470 = vpow2.f32 %v8916_v35 }
0x1167   :  { %2124 = vrot.lane.b32.xlu1 %v2105_v12, %s10855_s3  ;;  %2122 = vrot.lane.b32.xlu0 %v2104_v11, %s10855_s3  ;;  %v2108_v14 = vadd.f32 %v2104_v11, %v11123_v51  ;;  %v2109_v23 = vadd.f32 %v2105_v12, %v11117_v47  ;;  %10472 = vpow2.f32 %v8915_v40 }
0x1169   :  { %v8912_v55 = vmul.f32 -1.442695, %v2108_v14  ;;  %v8913_v42 = vmul.f32 -1.442695, %v2109_v23 }
0x116b   :  { %10474 = vpow2.f32 %v8912_v55 }
0x116c   :  { %10476 = vpow2.f32 %v8913_v42  ;;  %v2613_v42 = vld [vmem:[%s13465_s7] sm:$0xff] }
0x116f   :  { %v10471_v48 = vpop.eup %10470 }
0x1170   :  { %v2252_v54 = vadd.f32 1.0, %v10471_v48  ;;  %v2614_v48 = vld [vmem:[%s13465_s7 + $0x8] sm:$0xff] }
0x1171   :  { %v10473_v34 = vpop.eup %10472 }
0x1172   :  { %v2251_v33 = vadd.f32 1.0, %v10473_v34  ;;  %10478 = vrcp.f32 %v2252_v54  ;;  %v10024_v34 = vpack.c.bf16 %v2614_v48, %v2613_v42  ;;  %v2707_v42 = vld [vmem:[%s13400_s11 + $0x10] sm:$0xff]  ;;  %v2708_v48 = vld [vmem:[%s13400_s11 + $0x18] sm:$0xff] }
0x1174   :  { %10480 = vrcp.f32 %v2251_v33  ;;  %10025 = vmatprep.subr.bf16.mxu0 %v10024_v34 }
0x1175   :  { %v10475_v56 = vpop.eup %10474 }
0x1176   :  { %v10477_v57 = vpop.eup %10476  ;;  %v2116_v58 = vadd.f32 1.0, %v10475_v56 }
0x1177   :  { %v2117_v39 = vadd.f32 1.0, %v10477_v57  ;;  %v2289_v57 = vrot.slane %v11430_v30, 1 }
0x1178   :  { %10482 = vrcp.f32 %v2116_v58 }
0x1179   :  { %10484 = vrcp.f32 %v2117_v39 }
0x117c   :  { %v10479_v59 = vpop.eup %10478 }
0x117d   :  { %v2278_v56 = vsub.f32 1.0, %v10479_v59 }
0x117e   :  { %v10481_v43 = vpop.eup %10480 }
0x117f   :  { %v2277_v33 = vsub.f32 1.0, %v10481_v43 }
0x1182   :  { %v10483_v45 = vpop.eup %10482 }
0x1183   :  { %v10485_v24 = vpop.eup %10484 }
0x11d3   :  { %v2260_v62 = vpop.permute.xlu1 %2259 }
0x11d4   :  { %v2264_v6 = vmul.f32 %v10479_v59, %v2260_v62  ;;  %v2292_v62 = vmul.f32 %v10481_v43, %v2289_v57  ;;  %v11536_v57 = vpack.c.bf16 %v2708_v48, %v2707_v42 }
0x11d5   :  { %v2258_v9 = vpop.permute.xlu0 %2257 }
0x11d6   :  { %v2263_v7 = vmul.f32 %v10481_v43, %v2258_v9  ;;  %2269 = vrot.lane.b32.xlu1 %v2264_v6, %s10855_s3  ;;  %v2293_v9 = vmul.f32 %v10479_v59, %v2163_v61 }
0x11d8   :  { %2267 = vrot.lane.b32.xlu0 %v2263_v7, %s10855_s3 }
0x11d9   :  { %v2123_v21 = vpop.permute.xlu0 %2122  ;;  %v2125_v25 = vpop.permute.xlu1 %2124 }
0x11da   :  { %v2128_v8 = vmul.f32 %v10483_v45, %v2123_v21  ;;  %v2129_v15 = vmul.f32 %v10485_v24, %v2125_v25  ;;  %v2142_v21 = vsub.f32 1.0, %v10483_v45  ;;  %v2154_v25 = vrot.slane %v11438_v0, 7 }
0x11dc   :  { %2132 = vrot.lane.b32.xlu0 %v2128_v8, %s10855_s3  ;;  %2134 = vrot.lane.b32.xlu1 %v2129_v15, %s10855_s3  ;;  %v2143_v15 = vsub.f32 1.0, %v10485_v24 }
0x1248   :  { %v2270_v32 = vpop.permute.xlu1 %2269 }
0x1249   :  { %v2274_v19 = vadd.f32 %v2270_v32, %v11120_v49  ;;  %v2155_v32 = vrot.slane %v11440_v2, 7 }
0x124a   :  { %v2268_v27 = vpop.permute.xlu0 %2267 }
0x124b   :  { %10486 = vtanh.f32 %v2274_v19  ;;  %v2273_v11 = vadd.f32 %v2268_v27, %v11115_v46 }
0x124d   :  { %10488 = vtanh.f32 %v2273_v11  ;;  %v2158_v11 = vmul.f32 %v10483_v45, %v2154_v25 }
0x124e   :  { %v2133_v12 = vpop.permute.xlu0 %2132  ;;  %v2135_v26 = vpop.permute.xlu1 %2134 }
0x124f   :  { %v2138_v44 = vadd.f32 %v2133_v12, %v11123_v51  ;;  %v2139_v35 = vadd.f32 %v2135_v26, %v11117_v47  ;;  %v2159_v26 = vmul.f32 %v10485_v24, %v2155_v32  ;;  %v2705_v24 = vld [vmem:[%s13400_s11] sm:$0xff] }
0x1251   :  { %10490 = vtanh.f32 %v2138_v44 }
0x1252   :  { %10492 = vtanh.f32 %v2139_v35 }
0x1255   :  { %v10487_v14 = vpop.eup %10486 }
0x1256   :  { %2283 = vrot.lane.b32.xlu1 %v10487_v14, %s10856_s0 }
0x1257   :  { %v10489_v23 = vpop.eup %10488 }
0x1258   :  { %2281 = vrot.lane.b32.xlu0 %v10489_v23, %s10856_s0 }
0x125b   :  { %v10491_v40 = vpop.eup %10490 }
0x125c   :  { %v10493_v55 = vpop.eup %10492  ;;  %2146 = vrot.lane.b32.xlu0 %v10491_v40, %s10856_s0  ;;  %v2706_v40 = vld [vmem:[%s13400_s11 + $0x8] sm:$0xff] }
0x125d   :  { %2148 = vrot.lane.b32.xlu1 %v10493_v55, %s10856_s0  ;;  %v11520_v55 = vpack.c.bf16 %v2706_v40, %v2705_v24 }
0x12c8   :  { %v2284_v54 = vpop.permute.xlu1 %2283 }
0x12c9   :  { %v2288_v39 = vmul.f32 %v2284_v54, %v2278_v56  ;;  %v2615_v56 = vld [vmem:[%s13465_s7 + $0x10] sm:$0xff] }
0x12ca   :  { %v2282_v58 = vpop.permute.xlu0 %2281 }
0x12cb   :  { %v2287_v6 = vmul.f32 %v2282_v58, %v2277_v33  ;;  %v11498_v19 = vadd.f32 %v2293_v9, %v2288_v39  ;;  %v2616_v33 = vld [vmem:[%s13465_s7 + $0x18] sm:$0xff]  ;;  %v2611_v39 = vld [vmem:[%s13466_s9] sm:$0xff] }
0x12cc   :  { %v10028_v58 = vpack.c.bf16 %v2616_v33, %v2615_v56 }
0x12cd   :  { %v11494_v7 = vadd.f32 %v2292_v62, %v2287_v6  ;;  %v2612_v6 = vld [vmem:[%s13466_s9 + $0x8] sm:$0xff] }
0x12ce   :  { %v2147_v8 = vpop.permute.xlu0 %2146 }
0x12cf   :  { %v2452_v27 = vrot.slane %v11494_v7, 1  ;;  %v2152_v12 = vmul.f32 %v2147_v8, %v2142_v21  ;;  %v2149_v43 = vpop.permute.xlu1 %2148  ;;  %v11573_v8 = vld [vmem:[%s13402_s13] ss:$0 sm:$0xff] }
0x12d0   :  { %v2153_v44 = vmul.f32 %v2149_v43, %v2143_v15 }
0x12d1   :  { %v11501_v35 = vadd.f32 %v2158_v11, %v2152_v12  ;;  %v2453_v61 = vsel %vm564_vm2, %v11498_v19, %v2452_v27 }
0x12d2   :  { %v11507_v59 = vadd.f32 %v2159_v26, %v2153_v44  ;;  %2454 = vrot.lane.b32.xlu0 %v2453_v61, %s10856_s0  ;;  %v8923_v44 = vld [vmem:[%s13401_s12] ss:$0 sm:$0xff] }
0x12d3   :  { %v2316_v14 = vrot.slane %v11501_v35, 6 }
0x12d4   :  { %v2317_v23 = vrot.slane %v11507_v59, 5 }
0x12d6   :  { %v2318_v45 = vsel %vm564_vm2, %v2317_v23, %v2316_v14 }
0x12d7   :  { %2319 = vrot.lane.b32.xlu1 %v2318_v45, %s10856_s0 }
0x1344   :  { %v2455_v54 = vpop.permute.xlu0 %2454 }
0x1345   :  { %9492 = vmatmul.mubr.msk.f32.vlgmr.msra.gmra.mrb[16].mxu1 %vm99_vm0, %v2455_v54 }
0x1346   :  { %10034 = vmatpush3.bf16.msra.mxu1 %v11520_v55  ;;  %9513 = vmatprep.mubr.msk.f32.mxu1 %vm10853_vm1, %v13429_v28 }
0x1347   :  { %10035 = vmatprep.subr.bf16.mxu1 %v13427_v20 }
0x1349   :  { %v2320_v62 = vpop.permute.xlu1 %2319 }
0x134a   :  { %9481 = vmatmul.mubr.msk.f32.vlgmr.msra.gmra.mrb[16].mxu0 %vm99_vm0, %v2320_v62  ;;  %10037 = vmatpush3.bf16.msra.mxu1 %v11536_v57 }
0x134b   :  { %10027 = vmatpush3.bf16.msra.mxu0 %v10024_v34  ;;  %9502 = vmatprep.mubr.msk.f32.mxu0 %vm99_vm0, %v2611_v39 }
0x134c   :  { %10029 = vmatprep.subr.bf16.mxu0 %v10028_v58  ;;  %10044 = vmatprep.subr.bf16.mxu1 %v13427_v20 }
0x134d   :  { %9514 = vmatmul.mubr.f32.vlgmr.msra.gmra.mrb[18].mxu1 %v13429_v28 }
0x134e   :  { %10046 = vmatpush3.bf16.msra.mxu1 %v11520_v55  ;;  %9535 = vmatprep.mubr.msk.f32.mxu1 %vm10853_vm1, %v13429_v28 }
0x134f   :  { %10031 = vmatpush3.bf16.msra.mxu0 %v10028_v58  ;;  %10047 = vmatprep.subr.bf16.mxu1 %v13427_v20 }
0x1350   :  { %10038 = vmatprep.subr.bf16.mxu0 %v13427_v20 }
0x1352   :  { %9503 = vmatmul.mubr.msk.f32.vlgmr.msra.gmra.mrb[18].mxu0 %vm99_vm0, %v2612_v6  ;;  %10049 = vmatpush3.bf16.msra.mxu1 %v11536_v57 }
0x1353   :  { %10040 = vmatpush3.bf16.msra.mxu0 %v11520_v55  ;;  %9524 = vmatprep.mubr.msk.f32.mxu0 %vm10853_vm1, %v13429_v28 }
0x1354   :  { %10041 = vmatprep.subr.bf16.mxu0 %v13427_v20  ;;  %10056 = vmatprep.subr.bf16.mxu1 %v13427_v20 }
0x1357   :  { %10043 = vmatpush3.bf16.msra.mxu0 %v11536_v57 }
0x1358   :  { %10050 = vmatprep.subr.bf16.mxu0 %v13427_v20 }
0x1418   :  { %v11566_v34 = vpop.f32.mrb[16].mxu1 }
0x1419   :  { %v9493_v9 = vpop.f32.mrb[17].mxu1 }
0x141d   :  { %v11568_v21 = vpop.f32.mrb[16].mxu0 }
0x141e   :  { %v9482_v25 = vpop.f32.mrb[17].mxu0 }
0x1420   :  { %v2782_v15 = vpop.f32.mrb[18].mxu1 }
0x1421   :  { %v2783_v32 = vadd.f32 %v11573_v8, %v2782_v15  ;;  %v9515_v11 = vpop.f32.mrb[19].mxu1 }
0x1423   :  { %v2787_v12 = vrot.slane %v2783_v32, 1  ;;  %2804 = vrot.lane.b32.xlu1 %v2783_v32, %s10855_s3 }
0x1425   :  { %v9504_v43 = vpop.f32.mrb[18].mxu0  ;;  %2806 = vrot.lane.b32.xlu0 %v2787_v12, %s10855_s3 }
0x1426   :  { %v2696_v26 = vpop.f32.mrb[19].mxu0  ;;  %v11583_v14 = vadd.f32 %v9504_v43, %v8923_v44 }
0x1427   :  { %v11581_v61 = vadd.f32 %v8923_v44, %v2696_v26 }
0x1428   :  { %v2791_v45 = vadd.f32 %v2787_v12, %v11583_v14 }
0x1429   :  { %v2790_v23 = vadd.f32 %v2783_v32, %v11581_v61 }
0x142a   :  { %v8928_v40 = vmul.f32 -1.442695, %v2791_v45 }
0x142b   :  { %v8927_v24 = vmul.f32 -1.442695, %v2790_v23 }
0x142d   :  { %10494 = vpow2.f32 %v8927_v24 }
0x142e   :  { %10496 = vpow2.f32 %v8928_v40 }
0x1437   :  { %v10495_v42 = vpop.eup %10494 }
0x1438   :  { %v10497_v48 = vpop.eup %10496  ;;  %v2798_v54 = vadd.f32 1.0, %v10495_v42 }
0x1439   :  { %v2799_v56 = vadd.f32 1.0, %v10497_v48 }
0x143a   :  { %10498 = vrcp.f32 %v2798_v54 }
0x143b   :  { %10500 = vrcp.f32 %v2799_v56 }
0x1444   :  { %v10499_v33 = vpop.eup %10498 }
0x1445   :  { %v10501_v62 = vpop.eup %10500  ;;  %v2824_v44 = vsub.f32 1.0, %v10499_v33  ;;  %v2836_v48 = vmul.f32 0.0, %v10499_v33 }
0x1446   :  { %v2825_v23 = vsub.f32 1.0, %v10501_v62  ;;  %v2837_v40 = vmul.f32 0.0, %v10501_v62 }
0x1495   :  { %v2805_v58 = vpop.permute.xlu1 %2804 }
0x1496   :  { %v2810_v39 = vmul.f32 %v10499_v33, %v2805_v58 }
0x1497   :  { %v2807_v6 = vpop.permute.xlu0 %2806 }
0x1498   :  { %v2811_v9 = vmul.f32 %v10501_v62, %v2807_v6  ;;  %2814 = vrot.lane.b32.xlu1 %v2810_v39, %s10855_s3 }
0x149a   :  { %2816 = vrot.lane.b32.xlu0 %v2811_v9, %s10855_s3 }
0x150a   :  { %v2815_v25 = vpop.permute.xlu1 %2814 }
0x150b   :  { %v2820_v15 = vadd.f32 %v2815_v25, %v11581_v61 }
0x150c   :  { %v2817_v32 = vpop.permute.xlu0 %2816 }
0x150d   :  { %10502 = vtanh.f32 %v2820_v15  ;;  %v2821_v11 = vadd.f32 %v2817_v32, %v11583_v14 }
0x150f   :  { %10504 = vtanh.f32 %v2821_v11 }
0x1517   :  { %v10503_v12 = vpop.eup %10502 }
0x1518   :  { %2828 = vrot.lane.b32.xlu1 %v10503_v12, %s10856_s0 }
0x1519   :  { %v10505_v43 = vpop.eup %10504 }
0x151a   :  { %2830 = vrot.lane.b32.xlu0 %v10505_v43, %s10856_s0 }
0x158a   :  { %v2829_v26 = vpop.permute.xlu1 %2828 }
0x158b   :  { %v2834_v24 = vmul.f32 %v2829_v26, %v2824_v44 }
0x158c   :  { %v2831_v45 = vpop.permute.xlu0 %2830 }
0x158d   :  { %v2835_v42 = vmul.f32 %v2831_v45, %v2825_v23  ;;  %v2838_v56 = vadd.f32 %v2836_v48, %v2834_v24 }
0x158f   :  { %v2839_v54 = vadd.f32 %v2837_v40, %v2835_v42 }
0x1591   :  { %v2842_v58 = vrot.slane %v2839_v54, 7 }
0x1593   :  { %v2843_v39 = vsel %vm564_vm2, %v2842_v58, %v2838_v56 }
0x1594   :  { %2844 = vrot.lane.b32.xlu0 %v2843_v39, %s10856_s0 }
0x1606   :  { %v2845_v6 = vpop.permute.xlu0 %2844 }
0x1607   :  { %9525 = vmatmul.mubr.msk.f32.vlgmr.msra.gmra.mrb[20].mxu0 %vm99_vm0, %v2845_v6 }
0x1608   :  { %10052 = vmatpush3.bf16.msra.mxu0 %v11520_v55  ;;  %9546 = vmatprep.mubr.msk.f32.mxu0 %vm10853_vm1, %v13429_v28 }
0x1609   :  { %10053 = vmatprep.subr.bf16.mxu0 %v13427_v20 }
0x160c   :  { %10055 = vmatpush3.bf16.msra.mxu0 %v11536_v57 }
0x160d   :  { %10062 = vmatprep.subr.bf16.mxu0 %v13427_v20 }
0x16da   :  { %v2914_v33 = vpop.f32.mrb[20].mxu0 }
0x16db   :  { %v2915_v62 = vadd.f32 %v11573_v8, %v2914_v33  ;;  %v9526_v9 = vpop.f32.mrb[21].mxu0 }
0x16dd   :  { %v2919_v25 = vrot.slane %v2915_v62, 7  ;;  %2938 = vrot.lane.b32.xlu0 %v2915_v62, %s10855_s3  ;;  %v2923_v15 = vadd.f32 %v2915_v62, %v11583_v14 }
0x16df   :  { %2936 = vrot.lane.b32.xlu1 %v2919_v25, %s10855_s3  ;;  %v2922_v32 = vadd.f32 %v2919_v25, %v11581_v61  ;;  %v8931_v11 = vmul.f32 -1.442695, %v2923_v15 }
0x16e1   :  { %v8930_v12 = vmul.f32 -1.442695, %v2922_v32  ;;  %10506 = vpow2.f32 %v8931_v11  ;;  %v2968_v32 = vrot.slane %v2838_v56, 7 }
0x16e3   :  { %10508 = vpow2.f32 %v8930_v12 }
0x16eb   :  { %v10507_v43 = vpop.eup %10506 }
0x16ec   :  { %v2931_v44 = vadd.f32 1.0, %v10507_v43 }
0x16ed   :  { %v10509_v26 = vpop.eup %10508 }
0x16ee   :  { %v2930_v23 = vadd.f32 1.0, %v10509_v26  ;;  %10510 = vrcp.f32 %v2931_v44 }
0x16f0   :  { %10512 = vrcp.f32 %v2930_v23 }
0x16f8   :  { %v10511_v45 = vpop.eup %10510 }
0x16f9   :  { %v2957_v11 = vsub.f32 1.0, %v10511_v45 }
0x16fa   :  { %v10513_v42 = vpop.eup %10512 }
0x16fb   :  { %v2956_v12 = vsub.f32 1.0, %v10513_v42  ;;  %v2971_v44 = vmul.f32 %v10513_v42, %v2968_v32 }
0x174f   :  { %v2939_v24 = vpop.permute.xlu0 %2938 }
0x1750   :  { %v2943_v40 = vmul.f32 %v10511_v45, %v2939_v24  ;;  %v2972_v24 = vmul.f32 %v10511_v45, %v2842_v58 }
0x1751   :  { %v2937_v48 = vpop.permute.xlu1 %2936 }
0x1752   :  { %v2942_v54 = vmul.f32 %v10513_v42, %v2937_v48  ;;  %2948 = vrot.lane.b32.xlu0 %v2943_v40, %s10855_s3 }
0x1754   :  { %2946 = vrot.lane.b32.xlu1 %v2942_v54, %s10855_s3 }
0x17c4   :  { %v2949_v39 = vpop.permute.xlu0 %2948 }
0x17c5   :  { %v2953_v6 = vadd.f32 %v2949_v39, %v11583_v14 }
0x17c6   :  { %v2947_v33 = vpop.permute.xlu1 %2946 }
0x17c7   :  { %10514 = vtanh.f32 %v2953_v6  ;;  %v2952_v62 = vadd.f32 %v2947_v33, %v11581_v61 }
0x17c9   :  { %10516 = vtanh.f32 %v2952_v62 }
0x17d1   :  { %v10515_v9 = vpop.eup %10514 }
0x17d2   :  { %2962 = vrot.lane.b32.xlu0 %v10515_v9, %s10856_s0 }
0x17d3   :  { %v10517_v25 = vpop.eup %10516 }
0x17d4   :  { %2960 = vrot.lane.b32.xlu1 %v10517_v25, %s10856_s0 }
0x1844   :  { %v2963_v15 = vpop.permute.xlu0 %2962 }
0x1845   :  { %v2967_v26 = vmul.f32 %v2963_v15, %v2957_v11 }
0x1846   :  { %v2961_v43 = vpop.permute.xlu1 %2960 }
0x1847   :  { %v2966_v23 = vmul.f32 %v2961_v43, %v2956_v12  ;;  %v2974_v48 = vadd.f32 %v2972_v24, %v2967_v26 }
0x1849   :  { %v2973_v40 = vadd.f32 %v2971_v44, %v2966_v23 }
0x184b   :  { %v2977_v54 = vrot.slane %v2973_v40, 1 }
0x184d   :  { %v2978_v39 = vsel %vm564_vm2, %v2974_v48, %v2977_v54 }
0x184e   :  { %2979 = vrot.lane.b32.xlu1 %v2978_v39, %s10856_s0 }
0x18c0   :  { %v2980_v6 = vpop.permute.xlu1 %2979 }
0x18c1   :  { %9536 = vmatmul.mubr.msk.f32.vlgmr.msra.gmra.mrb[20].mxu1 %vm99_vm0, %v2980_v6 }
0x18c2   :  { %10058 = vmatpush3.bf16.msra.mxu1 %v11520_v55  ;;  %9557 = vmatprep.mubr.msk.f32.mxu1 %vm10853_vm1, %v13429_v28 }
0x18c3   :  { %10059 = vmatprep.subr.bf16.mxu1 %v13427_v20 }
0x18c6   :  { %10061 = vmatpush3.bf16.msra.mxu1 %v11536_v57 }
0x18c7   :  { %10068 = vmatprep.subr.bf16.mxu1 %v13427_v20 }
0x1994   :  { %v3049_v56 = vpop.f32.mrb[20].mxu1 }
0x1995   :  { %v3050_v58 = vadd.f32 %v11573_v8, %v3049_v56  ;;  %v9537_v45 = vpop.f32.mrb[21].mxu1 }
0x1997   :  { %v3054_v42 = vrot.slane %v3050_v58, 6  ;;  %v3055_v33 = vrot.slane %v3050_v58, 7 }
0x1999   :  { %3074 = vrot.lane.b32.xlu1 %v3055_v33, %s10855_s3  ;;  %3072 = vrot.lane.b32.xlu0 %v3054_v42, %s10855_s3  ;;  %v3058_v62 = vadd.f32 %v3054_v42, %v11581_v61  ;;  %v3059_v9 = vadd.f32 %v3055_v33, %v11583_v14 }
0x199b   :  { %v8933_v25 = vmul.f32 -1.442695, %v3058_v62  ;;  %v8934_v15 = vmul.f32 -1.442695, %v3059_v9  ;;  %v3105_v62 = vrot.slane %v2974_v48, 7 }
0x199d   :  { %10518 = vpow2.f32 %v8933_v25  ;;  %v3104_v25 = vrot.slane %v2973_v40, 7 }
0x199e   :  { %10520 = vpow2.f32 %v8934_v15 }
0x19a7   :  { %v10519_v32 = vpop.eup %10518 }
0x19a8   :  { %v10521_v11 = vpop.eup %10520  ;;  %v3066_v12 = vadd.f32 1.0, %v10519_v32 }
0x19a9   :  { %v3067_v43 = vadd.f32 1.0, %v10521_v11 }
0x19aa   :  { %10522 = vrcp.f32 %v3066_v12 }
0x19ab   :  { %10524 = vrcp.f32 %v3067_v43 }
0x19b4   :  { %v10523_v26 = vpop.eup %10522 }
0x19b5   :  { %v10525_v44 = vpop.eup %10524  ;;  %v3092_v32 = vsub.f32 1.0, %v10523_v26 }
0x19b6   :  { %v3093_v9 = vsub.f32 1.0, %v10525_v44  ;;  %v3109_v11 = vmul.f32 %v10525_v44, %v3105_v62 }
0x1a0b   :  { %v3075_v23 = vpop.permute.xlu1 %3074  ;;  %v3073_v24 = vpop.permute.xlu0 %3072 }
0x1a0c   :  { %v3079_v54 = vmul.f32 %v10525_v44, %v3075_v23  ;;  %v3078_v39 = vmul.f32 %v10523_v26, %v3073_v24  ;;  %v3108_v23 = vmul.f32 %v10523_v26, %v3104_v25 }
0x1a0e   :  { %3084 = vrot.lane.b32.xlu1 %v3079_v54, %s10855_s3  ;;  %3082 = vrot.lane.b32.xlu0 %v3078_v39, %s10855_s3 }
0x1a80   :  { %v3085_v6 = vpop.permute.xlu1 %3084  ;;  %v3083_v56 = vpop.permute.xlu0 %3082 }
0x1a81   :  { %v3089_v58 = vadd.f32 %v3085_v6, %v11583_v14  ;;  %v3088_v45 = vadd.f32 %v3083_v56, %v11581_v61 }
0x1a83   :  { %10526 = vtanh.f32 %v3089_v58 }
0x1a84   :  { %10528 = vtanh.f32 %v3088_v45 }
0x1a8d   :  { %v10527_v42 = vpop.eup %10526 }
0x1a8e   :  { %v10529_v33 = vpop.eup %10528  ;;  %3098 = vrot.lane.b32.xlu1 %v10527_v42, %s10856_s0 }
0x1a8f   :  { %3096 = vrot.lane.b32.xlu0 %v10529_v33, %s10856_s0 }
0x1b00   :  { %v3099_v15 = vpop.permute.xlu1 %3098 }
0x1b01   :  { %v3103_v12 = vmul.f32 %v3099_v15, %v3093_v9  ;;  %v3097_v43 = vpop.permute.xlu0 %3096 }
0x1b02   :  { %v3102_v24 = vmul.f32 %v3097_v43, %v3092_v32 }
0x1b03   :  { %v3111_v54 = vadd.f32 %v3109_v11, %v3103_v12 }
0x1b04   :  { %v3110_v39 = vadd.f32 %v3108_v23, %v3102_v24 }
0x1b05   :  { %v3115_v6 = vrot.slane %v3111_v54, 1 }
0x1b06   :  { %v3114_v56 = vrot.slane %v3110_v39, 2 }
0x1b08   :  { %v3116_v58 = vsel %vm564_vm2, %v3115_v6, %v3114_v56 }
0x1b09   :  { %3117 = vrot.lane.b32.xlu0 %v3116_v58, %s10856_s0 }
0x1b7b   :  { %v3118_v45 = vpop.permute.xlu0 %3117 }
0x1b7c   :  { %9547 = vmatmul.mubr.msk.f32.vlgmr.msra.gmra.mrb[22].mxu0 %vm99_vm0, %v3118_v45 }
0x1b7d   :  { %10064 = vmatpush3.bf16.msra.mxu0 %v11520_v55  ;;  %9568 = vmatprep.mubr.msk.f32.mxu0 %vm10853_vm1, %v13429_v28 }
0x1b7e   :  { %10065 = vmatprep.subr.bf16.mxu0 %v13427_v20 }
0x1b81   :  { %10067 = vmatpush3.bf16.msra.mxu0 %v11536_v57 }
0x1b82   :  { %10074 = vmatprep.subr.bf16.mxu0 %v13427_v20 }
0x1c4f   :  { %v3187_v40 = vpop.f32.mrb[22].mxu0 }
0x1c50   :  { %v3188_v48 = vadd.f32 %v11573_v8, %v3187_v40  ;;  %v9548_v26 = vpop.f32.mrb[23].mxu0 }
0x1c52   :  { %v3192_v44 = vrot.slane %v3188_v48, 5  ;;  %v3193_v42 = vrot.slane %v3188_v48, 6 }
0x1c54   :  { %3212 = vrot.lane.b32.xlu0 %v3193_v42, %s10855_s3  ;;  %3210 = vrot.lane.b32.xlu1 %v3192_v44, %s10855_s3  ;;  %v3196_v33 = vadd.f32 %v3192_v44, %v11581_v61  ;;  %v3197_v62 = vadd.f32 %v3193_v42, %v11583_v14 }
0x1c56   :  { %v8936_v9 = vmul.f32 -1.442695, %v3196_v33  ;;  %v8937_v25 = vmul.f32 -1.442695, %v3197_v62  ;;  %v3243_v33 = vrot.slane %v3111_v54, 7 }
0x1c58   :  { %10530 = vpow2.f32 %v8936_v9  ;;  %v3242_v9 = vrot.slane %v3110_v39, 7 }
0x1c59   :  { %10532 = vpow2.f32 %v8937_v25 }
0x1c62   :  { %v10531_v15 = vpop.eup %10530 }
0x1c63   :  { %v10533_v32 = vpop.eup %10532  ;;  %v3204_v11 = vadd.f32 1.0, %v10531_v15 }
0x1c64   :  { %v3205_v12 = vadd.f32 1.0, %v10533_v32 }
0x1c65   :  { %10534 = vrcp.f32 %v3204_v11 }
0x1c66   :  { %10536 = vrcp.f32 %v3205_v12 }
0x1c6f   :  { %v10535_v43 = vpop.eup %10534 }
0x1c70   :  { %v10537_v23 = vpop.eup %10536  ;;  %v3230_v15 = vsub.f32 1.0, %v10535_v43 }
0x1c71   :  { %v3231_v62 = vsub.f32 1.0, %v10537_v23  ;;  %v3247_v32 = vmul.f32 %v10537_v23, %v3243_v33 }
0x1cc6   :  { %v3213_v24 = vpop.permute.xlu0 %3212  ;;  %v3211_v6 = vpop.permute.xlu1 %3210 }
0x1cc7   :  { %v3217_v56 = vmul.f32 %v10537_v23, %v3213_v24  ;;  %v3216_v58 = vmul.f32 %v10535_v43, %v3211_v6  ;;  %v3246_v24 = vmul.f32 %v10535_v43, %v3242_v9 }
0x1cc9   :  { %3222 = vrot.lane.b32.xlu0 %v3217_v56, %s10855_s3  ;;  %3220 = vrot.lane.b32.xlu1 %v3216_v58, %s10855_s3 }
0x1d3b   :  { %v3223_v45 = vpop.permute.xlu0 %3222  ;;  %v3221_v40 = vpop.permute.xlu1 %3220 }
0x1d3c   :  { %v3227_v48 = vadd.f32 %v3223_v45, %v11583_v14  ;;  %v3226_v26 = vadd.f32 %v3221_v40, %v11581_v61 }
0x1d3e   :  { %10538 = vtanh.f32 %v3227_v48 }
0x1d3f   :  { %10540 = vtanh.f32 %v3226_v26 }
0x1d48   :  { %v10539_v44 = vpop.eup %10538 }
0x1d49   :  { %v10541_v42 = vpop.eup %10540  ;;  %3236 = vrot.lane.b32.xlu0 %v10539_v44, %s10856_s0 }
0x1d4a   :  { %3234 = vrot.lane.b32.xlu1 %v10541_v42, %s10856_s0 }
0x1dbb   :  { %v3237_v25 = vpop.permute.xlu0 %3236 }
0x1dbc   :  { %v3241_v11 = vmul.f32 %v3237_v25, %v3231_v62  ;;  %v3235_v12 = vpop.permute.xlu1 %3234 }
0x1dbd   :  { %v3240_v6 = vmul.f32 %v3235_v12, %v3230_v15 }
0x1dbe   :  { %v3249_v56 = vadd.f32 %v3247_v32, %v3241_v11 }
0x1dbf   :  { %v3248_v58 = vadd.f32 %v3246_v24, %v3240_v6 }
0x1dc0   :  { %v3253_v45 = vrot.slane %v3249_v56, 2 }
0x1dc1   :  { %v3252_v40 = vrot.slane %v3248_v58, 3 }
0x1dc3   :  { %v3254_v48 = vsel %vm564_vm2, %v3253_v45, %v3252_v40 }
0x1dc4   :  { %3255 = vrot.lane.b32.xlu1 %v3254_v48, %s10856_s0 }
0x1e36   :  { %v3256_v26 = vpop.permute.xlu1 %3255 }
0x1e37   :  { %9558 = vmatmul.mubr.msk.f32.vlgmr.msra.gmra.mrb[22].mxu1 %vm99_vm0, %v3256_v26 }
0x1e38   :  { %10070 = vmatpush3.bf16.msra.mxu1 %v11520_v55  ;;  %9579 = vmatprep.mubr.msk.f32.mxu1 %vm10853_vm1, %v13429_v28 }
0x1e39   :  { %10071 = vmatprep.subr.bf16.mxu1 %v13427_v20 }
0x1e3c   :  { %10073 = vmatpush3.bf16.msra.mxu1 %v11536_v57 }
0x1f0a   :  { %v3325_v54 = vpop.f32.mrb[22].mxu1 }
0x1f0b   :  { %v3326_v39 = vadd.f32 %v11573_v8, %v3325_v54  ;;  %v9559_v43 = vpop.f32.mrb[23].mxu1 }
0x1f0d   :  { %v3330_v23 = vrot.slane %v3326_v39, 4  ;;  %v3331_v44 = vrot.slane %v3326_v39, 5 }
0x1f0f   :  { %3350 = vrot.lane.b32.xlu1 %v3331_v44, %s10855_s3  ;;  %3348 = vrot.lane.b32.xlu0 %v3330_v23, %s10855_s3  ;;  %v3334_v42 = vadd.f32 %v3330_v23, %v11581_v61  ;;  %v3335_v33 = vadd.f32 %v3331_v44, %v11583_v14 }
0x1f11   :  { %v8939_v62 = vmul.f32 -1.442695, %v3334_v42  ;;  %v8940_v9 = vmul.f32 -1.442695, %v3335_v33  ;;  %v3381_v42 = vrot.slane %v3249_v56, 7 }
0x1f13   :  { %10542 = vpow2.f32 %v8939_v62  ;;  %v3380_v62 = vrot.slane %v3248_v58, 7 }
0x1f14   :  { %10544 = vpow2.f32 %v8940_v9 }
0x1f1d   :  { %v10543_v25 = vpop.eup %10542 }
0x1f1e   :  { %v10545_v15 = vpop.eup %10544  ;;  %v3342_v32 = vadd.f32 1.0, %v10543_v25 }
0x1f1f   :  { %v3343_v11 = vadd.f32 1.0, %v10545_v15 }
0x1f20   :  { %10546 = vrcp.f32 %v3342_v32 }
0x1f21   :  { %10548 = vrcp.f32 %v3343_v11 }
0x1f2a   :  { %v10547_v12 = vpop.eup %10546 }
0x1f2b   :  { %v10549_v24 = vpop.eup %10548  ;;  %v3368_v25 = vsub.f32 1.0, %v10547_v12 }
0x1f2c   :  { %v3369_v33 = vsub.f32 1.0, %v10549_v24  ;;  %v3385_v15 = vmul.f32 %v10549_v24, %v3381_v42 }
0x1f81   :  { %v3351_v6 = vpop.permute.xlu1 %3350  ;;  %v3349_v45 = vpop.permute.xlu0 %3348 }
0x1f82   :  { %v3355_v40 = vmul.f32 %v10549_v24, %v3351_v6  ;;  %v3354_v48 = vmul.f32 %v10547_v12, %v3349_v45  ;;  %v3384_v6 = vmul.f32 %v10547_v12, %v3380_v62 }
0x1f84   :  { %3360 = vrot.lane.b32.xlu1 %v3355_v40, %s10855_s3  ;;  %3358 = vrot.lane.b32.xlu0 %v3354_v48, %s10855_s3 }
0x1ff6   :  { %v3361_v26 = vpop.permute.xlu1 %3360  ;;  %v3359_v54 = vpop.permute.xlu0 %3358 }
0x1ff7   :  { %v3365_v39 = vadd.f32 %v3361_v26, %v11583_v14  ;;  %v3364_v43 = vadd.f32 %v3359_v54, %v11581_v61 }
0x1ff9   :  { %10550 = vtanh.f32 %v3365_v39 }
0x1ffa   :  { %10552 = vtanh.f32 %v3364_v43 }
0x2003   :  { %v10551_v23 = vpop.eup %10550 }
0x2004   :  { %v10553_v44 = vpop.eup %10552  ;;  %3374 = vrot.lane.b32.xlu1 %v10551_v23, %s10856_s0 }
0x2005   :  { %3372 = vrot.lane.b32.xlu0 %v10553_v44, %s10856_s0 }
0x2076   :  { %v3375_v9 = vpop.permute.xlu1 %3374 }
0x2077   :  { %v3379_v32 = vmul.f32 %v3375_v9, %v3369_v33  ;;  %v3373_v11 = vpop.permute.xlu0 %3372 }
0x2078   :  { %v3378_v45 = vmul.f32 %v3373_v11, %v3368_v25 }
0x2079   :  { %v3387_v40 = vadd.f32 %v3385_v15, %v3379_v32 }
0x207a   :  { %v3386_v48 = vadd.f32 %v3384_v6, %v3378_v45 }
0x207b   :  { %v3391_v26 = vrot.slane %v3387_v40, 3 }
0x207c   :  { %v3390_v54 = vrot.slane %v3386_v48, 4 }
0x207e   :  { %v3392_v39 = vsel %vm564_vm2, %v3391_v26, %v3390_v54 }
0x207f   :  { %3393 = vrot.lane.b32.xlu0 %v3392_v39, %s10856_s0 }
0x20f1   :  { %v3394_v43 = vpop.permute.xlu0 %3393 }
0x20f2   :  { %9569 = vmatmul.mubr.msk.f32.vlgmr.msra.gmra.mrb[24].mxu0 %vm99_vm0, %v3394_v43 }
0x20f3   :  { %10076 = vmatpush3.bf16.msra.mxu0 %v11520_v55  ;;  %9590 = vmatprep.mubr.msk.f32.mxu0 %vm10853_vm1, %v13429_v28 }
0x20f4   :  { %10077 = vmatprep.subr.bf16.mxu0 %v13427_v20 }
0x20f7   :  { %10079 = vmatpush3.bf16.msra.mxu0 %v11536_v57 }
0x21c5   :  { %v3463_v56 = vpop.f32.mrb[24].mxu0 }
0x21c6   :  { %v3464_v58 = vadd.f32 %v11573_v8, %v3463_v56  ;;  %v9570_v12 = vpop.f32.mrb[25].mxu0 }
0x21c8   :  { %v3468_v24 = vrot.slane %v3464_v58, 3  ;;  %v3469_v23 = vrot.slane %v3464_v58, 4 }
0x21ca   :  { %3488 = vrot.lane.b32.xlu0 %v3469_v23, %s10855_s3  ;;  %3486 = vrot.lane.b32.xlu1 %v3468_v24, %s10855_s3  ;;  %v3472_v44 = vadd.f32 %v3468_v24, %v11581_v61  ;;  %v3473_v55 = vadd.f32 %v3469_v23, %v11583_v14  ;;  %v3519_v24 = vrot.slane %v3387_v40, 7 }
0x21cc   :  { %v8942_v42 = vmul.f32 -1.442695, %v3472_v44  ;;  %v8943_v33 = vmul.f32 -1.442695, %v3473_v55  ;;  %v3518_v44 = vrot.slane %v3386_v48, 7 }
0x21ce   :  { %10554 = vpow2.f32 %v8942_v42 }
0x21cf   :  { %10556 = vpow2.f32 %v8943_v33 }
0x21d8   :  { %v10555_v62 = vpop.eup %10554 }
0x21d9   :  { %v10557_v57 = vpop.eup %10556  ;;  %v3480_v9 = vadd.f32 1.0, %v10555_v62 }
0x21da   :  { %v3481_v25 = vadd.f32 1.0, %v10557_v57 }
0x21db   :  { %10558 = vrcp.f32 %v3480_v9 }
0x21dc   :  { %10560 = vrcp.f32 %v3481_v25 }
0x21e5   :  { %v10559_v15 = vpop.eup %10558 }
0x21e6   :  { %v10561_v32 = vpop.eup %10560  ;;  %v3506_v42 = vsub.f32 1.0, %v10559_v15  ;;  %v3522_v9 = vmul.f32 %v10559_v15, %v3518_v44 }
0x21e7   :  { %v3507_v23 = vsub.f32 1.0, %v10561_v32  ;;  %v3523_v33 = vmul.f32 %v10561_v32, %v3519_v24 }
0x223c   :  { %v3489_v11 = vpop.permute.xlu0 %3488  ;;  %v3487_v6 = vpop.permute.xlu1 %3486 }
0x223d   :  { %v3493_v45 = vmul.f32 %v10561_v32, %v3489_v11  ;;  %v3492_v26 = vmul.f32 %v10559_v15, %v3487_v6 }
0x223f   :  { %3498 = vrot.lane.b32.xlu0 %v3493_v45, %s10855_s3  ;;  %3496 = vrot.lane.b32.xlu1 %v3492_v26, %s10855_s3 }
0x22b1   :  { %v3499_v54 = vpop.permute.xlu0 %3498  ;;  %v3497_v39 = vpop.permute.xlu1 %3496 }
0x22b2   :  { %v3503_v43 = vadd.f32 %v3499_v54, %v11583_v14  ;;  %v3502_v56 = vadd.f32 %v3497_v39, %v11581_v61 }
0x22b4   :  { %10562 = vtanh.f32 %v3503_v43 }
0x22b5   :  { %10564 = vtanh.f32 %v3502_v56 }
0x22be   :  { %v10563_v58 = vpop.eup %10562 }
0x22bf   :  { %v10565_v12 = vpop.eup %10564  ;;  %3512 = vrot.lane.b32.xlu0 %v10563_v58, %s10856_s0 }
0x22c0   :  { %3510 = vrot.lane.b32.xlu1 %v10565_v12, %s10856_s0 }
0x2331   :  { %v3513_v55 = vpop.permute.xlu0 %3512 }
0x2332   :  { %v3517_v62 = vmul.f32 %v3513_v55, %v3507_v23  ;;  %v3511_v57 = vpop.permute.xlu1 %3510 }
0x2333   :  { %v3516_v25 = vmul.f32 %v3511_v57, %v3506_v42 }
0x2334   :  { %v3525_v11 = vadd.f32 %v3523_v33, %v3517_v62 }
0x2335   :  { %v3524_v6 = vadd.f32 %v3522_v9, %v3516_v25 }
0x2336   :  { %v3529_v45 = vrot.slane %v3525_v11, 4 }
0x2337   :  { %v3528_v26 = vrot.slane %v3524_v6, 5 }
0x2339   :  { %v3530_v54 = vsel %vm564_vm2, %v3529_v45, %v3528_v26 }
0x233a   :  { %3531 = vrot.lane.b32.xlu1 %v3530_v54, %s10856_s0 }
0x23ac   :  { %v3532_v39 = vpop.permute.xlu1 %3531 }
0x23ad   :  { %9580 = vmatmul.mubr.msk.f32.vlgmr.msra.gmra.mrb[24].mxu1 %vm99_vm0, %v3532_v39 }
0x2480   :  { %v3601_v40 = vpop.f32.mrb[24].mxu1 }
0x2481   :  { %v3602_v48 = vadd.f32 %v11573_v8, %v3601_v40  ;;  %v9581_v43 = vpop.f32.mrb[25].mxu1 }
0x2483   :  { %v3606_v32 = vrot.slane %v3602_v48, 2  ;;  %v3607_v56 = vrot.slane %v3602_v48, 3  ;;  %v10820_v48 = vld [vmem:[%s13461_s10] ss:$0 sm:$0xff] }
0x2484   :  { %v2390_v43 = vadd.f32 %v10820_v48, %v11568_v21 }
0x2485   :  { %3626 = vrot.lane.b32.xlu1 %v3607_v56, %s10855_s3  ;;  %3624 = vrot.lane.b32.xlu0 %v3606_v32, %s10855_s3  ;;  %v3610_v15 = vadd.f32 %v3606_v32, %v11581_v61  ;;  %v3611_v58 = vadd.f32 %v3607_v56, %v11583_v14 }
0x2487   :  { %v8945_v12 = vmul.f32 -1.442695, %v3610_v15  ;;  %v8946_v24 = vmul.f32 -1.442695, %v3611_v58  ;;  %v2394_v15 = vrot.slane %v2390_v43, 1  ;;  %v2395_v58 = vrot.slane %v2390_v43, 2 }
0x2489   :  { %10566 = vpow2.f32 %v8945_v12  ;;  %v3657_v12 = vrot.slane %v3525_v11, 7  ;;  %v10821_v11 = vld [vmem:[%s13462_s27] ss:$0 sm:$0xff]  ;;  %v2398_v43 = vadd.f32 %v2394_v15, %v11123_v51 }
0x248a   :  { %10568 = vpow2.f32 %v8946_v24 }
0x2493   :  { %v10567_v23 = vpop.eup %10566 }
0x2494   :  { %v10569_v44 = vpop.eup %10568  ;;  %v3618_v55 = vadd.f32 1.0, %v10567_v23  ;;  %v3656_v23 = vrot.slane %v3524_v6, 7  ;;  %v2525_v6 = vadd.f32 %v10821_v11, %v11566_v34 }
0x2495   :  { %v3619_v42 = vadd.f32 1.0, %v10569_v44 }
0x2496   :  { %10570 = vrcp.f32 %v3618_v55  ;;  %v2532_v48 = vadd.f32 %v2525_v6, %v11115_v46 }
0x2497   :  { %10572 = vrcp.f32 %v3619_v42 }
0x24a0   :  { %v10571_v33 = vpop.eup %10570 }
0x24a1   :  { %v10573_v62 = vpop.eup %10572  ;;  %v3644_v55 = vsub.f32 1.0, %v10571_v33 }
0x24a2   :  { %v3645_v24 = vsub.f32 1.0, %v10573_v62  ;;  %v3661_v42 = vmul.f32 %v10573_v62, %v3657_v12  ;;  %v2399_v12 = vadd.f32 %v2395_v58, %v11117_v47 }
0x24f7   :  { %v3627_v57 = vpop.permute.xlu1 %3626  ;;  %v3625_v9 = vpop.permute.xlu0 %3624 }
0x24f8   :  { %v3631_v25 = vmul.f32 %v10573_v62, %v3627_v57  ;;  %v3630_v45 = vmul.f32 %v10571_v33, %v3625_v9  ;;  %v3660_v9 = vmul.f32 %v10571_v33, %v3656_v23  ;;  %v2529_v33 = vrot.slane %v2525_v6, 1 }
0x24f9   :  { %v8919_v23 = vmul.f32 -1.442695, %v2399_v12 }
0x24fa   :  { %3636 = vrot.lane.b32.xlu1 %v3631_v25, %s10855_s3  ;;  %3634 = vrot.lane.b32.xlu0 %v3630_v45, %s10855_s3 }
0x256c   :  { %v3637_v26 = vpop.permute.xlu1 %3636  ;;  %v3635_v54 = vpop.permute.xlu0 %3634 }
0x256d   :  { %v3641_v39 = vadd.f32 %v3637_v26, %v11583_v14  ;;  %v3640_v40 = vadd.f32 %v3635_v54, %v11581_v61 }
0x256f   :  { %10574 = vtanh.f32 %v3641_v39 }
0x2570   :  { %10576 = vtanh.f32 %v3640_v40 }
0x2579   :  { %v10575_v32 = vpop.eup %10574 }
0x257a   :  { %v10577_v56 = vpop.eup %10576  ;;  %3650 = vrot.lane.b32.xlu1 %v10575_v32, %s10856_s0  ;;  %v2533_v32 = vadd.f32 %v2529_v33, %v11120_v49 }
0x257b   :  { %3648 = vrot.lane.b32.xlu0 %v10577_v56, %s10856_s0  ;;  %v8921_v56 = vmul.f32 -1.442695, %v2532_v48 }
0x257c   :  { %v8922_v34 = vmul.f32 -1.442695, %v2533_v32 }
0x257d   :  { %10578 = vpow2.f32 %v8921_v56 }
0x257e   :  { %2412 = vrot.lane.b32.xlu1 %v2394_v15, %s10855_s3 }
0x2582   :  { %2414 = vrot.lane.b32.xlu1 %v2395_v58, %s10855_s3 }
0x25ec   :  { %v3651_v44 = vpop.permute.xlu1 %3650 }
0x25ed   :  { %v3655_v57 = vmul.f32 %v3651_v44, %v3645_v24  ;;  %v3649_v21 = vpop.permute.xlu0 %3648  ;;  %v8918_v24 = vmul.f32 -1.442695, %v2398_v43  ;;  %v10579_v44 = vpop.eup %10578 }
0x25ee   :  { %v3654_v25 = vmul.f32 %v3649_v21, %v3644_v55 }
0x25ef   :  { %v11711_v45 = vadd.f32 %v3661_v42, %v3655_v57  ;;  %10580 = vpow2.f32 %v8918_v24  ;;  %v2540_v42 = vadd.f32 1.0, %v10579_v44 }
0x25f0   :  { %v11713_v26 = vadd.f32 %v3660_v9, %v3654_v25  ;;  %10582 = vpow2.f32 %v8922_v34 }
0x25f1   :  { %v3667_v54 = vrot.slane %v11711_v45, 5  ;;  %10584 = vpow2.f32 %v8919_v23 }
0x25f2   :  { %v3666_v39 = vrot.slane %v11713_v26, 6  ;;  %10586 = vrcp.f32 %v2540_v42 }
0x25f4   :  { %v3668_v40 = vsel %vm564_vm2, %v3667_v54, %v3666_v39 }
0x25f5   :  { %3669 = vrot.lane.b32.xlu0 %v3668_v40, %s10856_s0  ;;  %v2413_v40 = vpop.permute.xlu1 %2412 }
0x25f9   :  { %2546 = vrot.lane.b32.xlu0 %v2525_v6, %s10855_s3  ;;  %v10581_v55 = vpop.eup %10580  ;;  %v2415_v56 = vpop.permute.xlu1 %2414 }
0x25fa   :  { %v10583_v57 = vpop.eup %10582  ;;  %v2406_v21 = vadd.f32 1.0, %v10581_v55 }
0x25fb   :  { %v10585_v9 = vpop.eup %10584  ;;  %v2541_v25 = vadd.f32 1.0, %v10583_v57 }
0x25fc   :  { %v2407_v15 = vadd.f32 1.0, %v10585_v9  ;;  %10588 = vrcp.f32 %v2406_v21 }
0x25fd   :  { %2548 = vrot.lane.b32.xlu0 %v2529_v33, %s10855_s3  ;;  %10590 = vrcp.f32 %v2541_v25 }
0x25fe   :  { %10592 = vrcp.f32 %v2407_v15 }
0x2667   :  { %v3670_v62 = vpop.permute.xlu0 %3669 }
0x2668   :  { %9591 = vmatmul.mubr.msk.f32.vlgmr.msra.gmra.mrb[26].mxu0 %vm99_vm0, %v3670_v62  ;;  %v11731_v62 = vpop.eup %10586 }
0x2669   :  { %v11735_v48 = vpop.eup %10588 }
0x266a   :  { %v2418_v43 = vmul.f32 %v11735_v48, %v2413_v40 }
0x266b   :  { %v2547_v11 = vpop.permute.xlu0 %2546 }
0x266c   :  { %v2552_v32 = vmul.f32 %v11731_v62, %v2547_v11 }
0x266f   :  { %v2549_v12 = vpop.permute.xlu0 %2548 }
0x273b   :  { %v3739_v58 = vpop.f32.mrb[26].mxu0 }
0x273c   :  { %v3740_v54 = vadd.f32 %v11573_v8, %v3739_v58  ;;  %v9592_v39 = vpop.f32.mrb[27].mxu0  ;;  %v11739_v8 = vpop.eup %10590 }
0x273d   :  { %v11743_v24 = vpop.eup %10592  ;;  %v2553_v23 = vmul.f32 %v11739_v8, %v2549_v12 }
0x273e   :  { %v3744_v6 = vrot.slane %v3740_v54, 1  ;;  %v3745_v33 = vrot.slane %v3740_v54, 2  ;;  %v2419_v34 = vmul.f32 %v11743_v24, %v2415_v56 }
0x2740   :  { %3764 = vrot.lane.b32.xlu0 %v3745_v33, %s10855_s3  ;;  %3762 = vrot.lane.b32.xlu1 %v3744_v6, %s10855_s3  ;;  %v3748_v44 = vadd.f32 %v3744_v6, %v11581_v61  ;;  %v3749_v55 = vadd.f32 %v3745_v33, %v11583_v14 }
0x2742   :  { %v8948_v42 = vmul.f32 -1.442695, %v3748_v44  ;;  %v8949_v57 = vmul.f32 -1.442695, %v3749_v55 }
0x2744   :  { %2556 = vrot.lane.b32.xlu0 %v2552_v32, %s10855_s3  ;;  %2422 = vrot.lane.b32.xlu1 %v2418_v43, %s10855_s3  ;;  %10594 = vpow2.f32 %v8948_v42 }
0x2745   :  { %10596 = vpow2.f32 %v8949_v57 }
0x2748   :  { %2558 = vrot.lane.b32.xlu0 %v2553_v23, %s10855_s3  ;;  %2424 = vrot.lane.b32.xlu1 %v2419_v34, %s10855_s3 }
0x274e   :  { %v10595_v21 = vpop.eup %10594 }
0x274f   :  { %v10597_v9 = vpop.eup %10596  ;;  %v3756_v25 = vadd.f32 1.0, %v10595_v21 }
0x2750   :  { %v3757_v15 = vadd.f32 1.0, %v10597_v9 }
0x2751   :  { %10598 = vrcp.f32 %v3756_v25 }
0x2752   :  { %10600 = vrcp.f32 %v3757_v15  ;;  %v2444_v15 = vrot.slane %v11501_v35, 7 }
0x275b   :  { %v11751_v58 = vpop.eup %10598 }
0x275c   :  { %v11753_v54 = vpop.eup %10600 }
0x27b2   :  { %v3765_v39 = vpop.permute.xlu0 %3764  ;;  %v3763_v40 = vpop.permute.xlu1 %3762 }
0x27b3   :  { %v3769_v11 = vmul.f32 %v11753_v54, %v3765_v39  ;;  %v3768_v6 = vmul.f32 %v11751_v58, %v3763_v40  ;;  %v2581_v39 = vmul.f32 %v11731_v62, %v2452_v27  ;;  %v2448_v40 = vmul.f32 %v11735_v48, %v2444_v15  ;;  %v3909_v15 = vld [vmem:[%s13403_s14 + $0x50] sm:$0xff] }
0x27b5   :  { %3774 = vrot.lane.b32.xlu0 %v3769_v11, %s10855_s3  ;;  %3772 = vrot.lane.b32.xlu1 %v3768_v6, %s10855_s3  ;;  %v3783_v6 = vsub.f32 1.0, %v11753_v54 }
0x27b6   :  { %v2557_v33 = vpop.permute.xlu0 %2556  ;;  %v2423_v43 = vpop.permute.xlu1 %2422 }
0x27b7   :  { %v2562_v32 = vadd.f32 %v2557_v33, %v11115_v46  ;;  %v2428_v56 = vadd.f32 %v2423_v43, %v11123_v51  ;;  %v3782_v33 = vsub.f32 1.0, %v11751_v58 }
0x27b9   :  { %10602 = vtanh.f32 %v2562_v32 }
0x27ba   :  { %10604 = vtanh.f32 %v2428_v56  ;;  %v2559_v12 = vpop.permute.xlu0 %2558  ;;  %v2425_v34 = vpop.permute.xlu1 %2424 }
0x27bb   :  { %v2563_v23 = vadd.f32 %v2559_v12, %v11120_v49  ;;  %v2429_v44 = vadd.f32 %v2425_v34, %v11117_v47 }
0x27bd   :  { %10606 = vtanh.f32 %v2563_v23 }
0x27be   :  { %10608 = vtanh.f32 %v2429_v44 }
0x27c3   :  { %v10603_v55 = vpop.eup %10602 }
0x27c4   :  { %v10605_v42 = vpop.eup %10604  ;;  %2570 = vrot.lane.b32.xlu0 %v10603_v55, %s10856_s0 }
0x27c5   :  { %2436 = vrot.lane.b32.xlu1 %v10605_v42, %s10856_s0  ;;  %v3902_v42 = vld [vmem:[%s13403_s14 + $0x18] sm:$0xff] }
0x27c7   :  { %v10607_v57 = vpop.eup %10606 }
0x27c8   :  { %v10609_v46 = vpop.eup %10608  ;;  %2572 = vrot.lane.b32.xlu0 %v10607_v57, %s10856_s0 }
0x27c9   :  { %2438 = vrot.lane.b32.xlu1 %v10609_v46, %s10856_s0 }
0x27cc   :  { %554 = vrot.lane.b32.xlu0 %v11139_v41, %s10856_s0 }
0x27cd   :  { %543 = vrot.lane.b32.xlu1 %v11148_v60, %s10856_s0 }
0x27d0   :  { %846 = vrot.lane.b32.xlu0 %v11195_v13, %s10856_s0 }
0x27d1   :  { %835 = vrot.lane.b32.xlu1 %v11202_v31, %s10856_s0 }
0x2827   :  { %v3775_v47 = vpop.permute.xlu0 %3774  ;;  %v3773_v49 = vpop.permute.xlu1 %3772 }
0x2828   :  { %v3779_v51 = vadd.f32 %v3775_v47, %v11583_v14  ;;  %v3778_v21 = vadd.f32 %v3773_v49, %v11581_v61  ;;  %v3903_v49 = vld [vmem:[%s13403_s14 + $0x20] sm:$0xff] }
0x282a   :  { %10610 = vtanh.f32 %v3779_v51  ;;  %v3904_v51 = vld [vmem:[%s13403_s14 + $0x28] sm:$0xff] }
0x282b   :  { %10612 = vtanh.f32 %v3778_v21 }
0x2834   :  { %v10611_v9 = vpop.eup %10610 }
0x2835   :  { %v10613_v25 = vpop.eup %10612  ;;  %3788 = vrot.lane.b32.xlu0 %v10611_v9, %s10856_s0 }
0x2836   :  { %3786 = vrot.lane.b32.xlu1 %v10613_v25, %s10856_s0  ;;  %v2571_v41 = vpop.permute.xlu0 %2570  ;;  %v11910_v25 = vpack.c.bf16 %v3904_v51, %v3903_v49  ;;  %v3914_v49 = vld [vmem:[%s13403_s14 + $0x78] sm:$0xff] }
0x2837   :  { %v2437_v60 = vpop.permute.xlu1 %2436 }
0x2839   :  { %1139 = vrot.lane.b32.xlu0 %v11252_v1, %s10856_s0 }
0x283a   :  { %1128 = vrot.lane.b32.xlu1 %v11260_v17, %s10856_s0  ;;  %v2573_v13 = vpop.permute.xlu0 %2572 }
0x283b   :  { %v2439_v31 = vpop.permute.xlu1 %2438 }
0x283d   :  { %1433 = vrot.lane.b32.xlu0 %v11308_v63, %s10856_s0  ;;  %v2566_v63 = vsub.f32 1.0, %v11731_v62  ;;  %v3931_v62 = vlaneseq }
0x283e   :  { %1422 = vrot.lane.b32.xlu1 %v11316_v22, %s10856_s0  ;;  %v555_v61 = vpop.permute.xlu0 %554  ;;  %v2432_v22 = vsub.f32 1.0, %v11735_v48 }
0x283f   :  { %561 = vst.msk [vmem:[#allocation3] sm:$0x80] %vm560_vm3, %v555_v61  ;;  %v544_v14 = vpop.permute.xlu1 %543  ;;  %v11862_v48 = vshrl.u32 %v3931_v62, 7 }
0x2840   :  { %550 = vst.msk [vmem:[#allocation2] sm:$0x1] %vm549_vm4, %v544_v14 }
0x2841   :  { %1726 = vrot.lane.b32.xlu0 %v11364_v5, %s10856_s0  ;;  %v2576_v5 = vmul.f32 %v2571_v41, %v2566_v63  ;;  %v11870_v56 = vsub.s32 7, %v11862_v48 }
0x2842   :  { %1716 = vrot.lane.b32.xlu1 %v11372_v37, %s10856_s0  ;;  %v847_v1 = vpop.permute.xlu0 %846  ;;  %v2442_v37 = vmul.f32 %v2437_v60, %v2432_v22  ;;  %v3905_v60 = vld [vmem:[%s13403_s14 + $0x30] sm:$0xff] }
0x2843   :  { %853 = vst.msk [vmem:[#allocation3] sm:$0x40] %vm852_vm5, %v847_v1  ;;  %v836_v17 = vpop.permute.xlu1 %835  ;;  %v3907_v1 = vld [vmem:[%s13403_s14 + $0x40] sm:$0xff] }
0x2844   :  { %842 = vst.msk [vmem:[#allocation2] sm:$0x2] %vm841_vm6, %v836_v17  ;;  %v2450_v11 = vadd.f32 %v2448_v40, %v2442_v37  ;;  %v3908_v17 = vld [vmem:[%s13403_s14 + $0x48] sm:$0xff]  ;;  %v3910_v37 = vld [vmem:[%s13403_s14 + $0x58] sm:$0xff] }
0x2845   :  { %2018 = vrot.lane.b32.xlu0 %v11430_v30, %s10856_s0  ;;  %v2583_v30 = vadd.f32 %v2581_v39, %v2576_v5  ;;  %v11934_v22 = vpack.c.bf16 %v3908_v17, %v3907_v1  ;;  %v11946_v40 = vpack.c.bf16 %v3910_v37, %v3909_v15 }
0x2846   :  { %2008 = vrot.lane.b32.xlu1 %v11438_v0, %s10856_s0 }
0x2849   :  { %2308 = vrot.lane.b32.xlu0 %v11494_v7, %s10856_s0 }
0x284a   :  { %2298 = vrot.lane.b32.xlu1 %v11501_v35, %s10856_s0 }
0x284d   :  { %2597 = vrot.lane.b32.xlu0 %v2583_v30, %s10856_s0 }
0x284e   :  { %2587 = vrot.lane.b32.xlu1 %v2450_v11, %s10856_s0 }
0x2851   :  { %556 = vrot.lane.b32.xlu0 %v11141_v50, %s10856_s0  ;;  %v3802_v50 = vld [vmem:[%s13407_s18] sm:$0xff] }
0x2852   :  { %545 = vrot.lane.b32.xlu1 %v11143_v53, %s10856_s0  ;;  %v3803_v53 = vld [vmem:[%s13407_s18 + $0x8] sm:$0xff] }
0x2855   :  { %848 = vrot.lane.b32.xlu0 %v11198_v16, %s10856_s0  ;;  %v10080_v16 = vpack.c.bf16 %v3803_v53, %v3802_v50 }
0x2856   :  { %837 = vrot.lane.b32.xlu1 %v11207_v36, %s10856_s0  ;;  %v3804_v36 = vld [vmem:[%s13407_s18 + $0x10] sm:$0xff] }
0x2857   :  { %10081 = vmatprep.subr.bf16.mxu1 %v10080_v16 }
0x2858   :  { %10083 = vmatpush3.bf16.msra.mxu1 %v10080_v16 }
0x2859   :  { %1141 = vrot.lane.b32.xlu0 %v11255_v4, %s10856_s0  ;;  %v3805_v4 = vld [vmem:[%s13407_s18 + $0x18] sm:$0xff] }
0x285a   :  { %1130 = vrot.lane.b32.xlu1 %v11262_v18, %s10856_s0  ;;  %v10084_v18 = vpack.c.bf16 %v3805_v4, %v3804_v36 }
0x285c   :  { %10085 = vmatprep.subr.bf16.mxu1 %v10084_v18 }
0x285d   :  { %1435 = vrot.lane.b32.xlu0 %v11311_v3, %s10856_s0  ;;  %v2567_v3 = vsub.f32 1.0, %v11739_v8  ;;  %10087 = vmatpush3.bf16.msra.mxu1 %v10084_v18 }
0x285e   :  { %1424 = vrot.lane.b32.xlu1 %v11318_v29, %s10856_s0  ;;  %v2433_v29 = vsub.f32 1.0, %v11743_v24  ;;  %10120 = vmatprep.subr.bf16.mxu1 %v13427_v20 }
0x285f   :  { %v2577_v0 = vmul.f32 %v2573_v13, %v2567_v3  ;;  %v3906_v13 = vld [vmem:[%s13403_s14 + $0x38] sm:$0xff] }
0x2860   :  { %v2443_v7 = vmul.f32 %v2439_v31, %v2433_v29  ;;  %v11922_v61 = vpack.c.bf16 %v3906_v13, %v3905_v60 }
0x2861   :  { %1728 = vrot.lane.b32.xlu0 %v11367_v10, %s10856_s0  ;;  %v2578_v10 = vrot.slane %v11498_v19, 1 }
0x2862   :  { %1718 = vrot.lane.b32.xlu1 %v11374_v38, %s10856_s0  ;;  %v2445_v38 = vrot.slane %v11507_v59, 7 }
0x2863   :  { %v2582_v27 = vmul.f32 %v11739_v8, %v2578_v10  ;;  %v3795_v8 = vrot.slane %v11711_v45, 7  ;;  %v3899_v45 = vld [vmem:[%s13403_s14] sm:$0xff] }
0x2865   :  { %2020 = vrot.lane.b32.xlu0 %v11433_v52, %s10856_s0  ;;  %v2449_v52 = vmul.f32 %v11743_v24, %v2445_v38 }
0x2866   :  { %2010 = vrot.lane.b32.xlu1 %v11440_v2, %s10856_s0  ;;  %v2584_v2 = vadd.f32 %v2582_v27, %v2577_v0 }
0x2867   :  { %v2451_v35 = vadd.f32 %v2449_v52, %v2443_v7 }
0x2869   :  { %2310 = vrot.lane.b32.xlu0 %v11498_v19, %s10856_s0  ;;  %v3794_v19 = vrot.slane %v11713_v26, 7  ;;  %v3900_v26 = vld [vmem:[%s13403_s14 + $0x8] sm:$0xff] }
0x286a   :  { %2300 = vrot.lane.b32.xlu1 %v11507_v59, %s10856_s0  ;;  %v3799_v59 = vmul.f32 %v11753_v54, %v3795_v8  ;;  %v3901_v54 = vld [vmem:[%s13403_s14 + $0x10] sm:$0xff]  ;;  %v11886_v55 = vpack.c.bf16 %v3900_v26, %v3899_v45  ;;  %v3897_v26 = vld [vmem:[%s13409_s20 + $0x18] sm:$0xff] }
0x286b   :  { %v3798_v12 = vmul.f32 %v11751_v58, %v3794_v19  ;;  %v11894_v47 = vpack.c.bf16 %v3902_v42, %v3901_v54  ;;  %v3896_v45 = vld [vmem:[%s13409_s20 + $0x10] sm:$0xff]  ;;  %v3912_v42 = vld [vmem:[%s13403_s14 + $0x68] sm:$0xff] }
0x286c   :  { %10089 = vmatprep.subr.bf16.mxu0 %v11886_v55  ;;  %v11994_v54 = vpack.c.bf16 %v3897_v26, %v3896_v45 }
0x286d   :  { %2599 = vrot.lane.b32.xlu0 %v2584_v2, %s10856_s0  ;;  %10091 = vmatpush3.bf16.msra.mxu0 %v11886_v55 }
0x286e   :  { %2589 = vrot.lane.b32.xlu1 %v2451_v35, %s10856_s0  ;;  %10093 = vmatprep.subr.bf16.mxu0 %v11894_v47 }
0x2871   :  { %10095 = vmatpush3.bf16.msra.mxu0 %v11894_v47 }
0x2872   :  { %10097 = vmatprep.subr.bf16.mxu0 %v11910_v25 }
0x2875   :  { %10099 = vmatpush3.bf16.msra.mxu0 %v11910_v25 }
0x2876   :  { %10101 = vmatprep.subr.bf16.mxu0 %v11922_v61 }
0x2879   :  { %10103 = vmatpush3.bf16.msra.mxu0 %v11922_v61 }
0x287a   :  { %10105 = vmatprep.subr.bf16.mxu0 %v11934_v22 }
0x287d   :  { %10107 = vmatpush3.bf16.msra.mxu0 %v11934_v22 }
0x287e   :  { %10109 = vmatprep.subr.bf16.mxu0 %v11946_v40 }
0x2881   :  { %10111 = vmatpush3.bf16.msra.mxu0 %v11946_v40 }
0x28a7   :  { %v3789_v24 = vpop.permute.xlu0 %3788 }
0x28a8   :  { %v3793_v43 = vmul.f32 %v3789_v24, %v3783_v6  ;;  %v3787_v32 = vpop.permute.xlu1 %3786 }
0x28a9   :  { %v3792_v34 = vmul.f32 %v3787_v32, %v3782_v33  ;;  %v3894_v33 = vld [vmem:[%s13409_s20] sm:$0xff] }
0x28aa   :  { %v11873_v23 = vadd.f32 %v3799_v59, %v3793_v43  ;;  %v3895_v59 = vld [vmem:[%s13409_s20 + $0x8] sm:$0xff] }
0x28ab   :  { %v11884_v44 = vadd.f32 %v3798_v12, %v3792_v34  ;;  %v1140_v58 = vpop.permute.xlu0 %1139  ;;  %v11981_v12 = vpack.c.bf16 %v3895_v59, %v3894_v33  ;;  %v8954_v33 = vld [vmem:[%s13405_s16] ss:$0 sm:$0xff] }
0x28ac   :  { %1146 = vst.msk [vmem:[#allocation3] sm:$0x20] %vm1145_vm7, %v1140_v58  ;;  %v1129_v57 = vpop.permute.xlu1 %1128  ;;  %v3938_v46 = vrot.slane %v11873_v23, %v11870_v56  ;;  %v3911_v58 = vld [vmem:[%s13403_s14 + $0x60] sm:$0xff] }
0x28ad   :  { %1135 = vst.msk [vmem:[#allocation2] sm:$0x4] %vm1134_vm8, %v1129_v57  ;;  %v3934_v21 = vrot.slane %v11884_v44, %v11870_v56  ;;  %v12014_v57 = vpack.c.bf16 %v3912_v42, %v3911_v58  ;;  %v8955_v42 = vld [vmem:[#allocation4] ss:$0 sm:$0xff] }
0x28ae   :  { %3943 = vrot.lane.b32.xlu0 %v3938_v46, %s10856_s0  ;;  %v3913_v46 = vld [vmem:[%s13403_s14 + $0x70] sm:$0xff]  ;;  %s10857_s14 = smov 32  }
0x28af   :  { %3941 = vrot.lane.b32.xlu1 %v3934_v21, %s10856_s0  ;;  %v1434_v9 = vpop.permute.xlu0 %1433  ;;  %10113 = vmatprep.subr.bf16.mxu0 %v12014_v57  ;;  %v12024_v51 = vpack.c.bf16 %v3914_v49, %v3913_v46  ;;  %v12073_v46 = vand.u32 127, %v3931_v62 }
0x28b0   :  { %1440 = vst.msk [vmem:[#allocation3] sm:$0x10] %vm1439_vm9, %v1434_v9  ;;  %v1423_v41 = vpop.permute.xlu1 %1422  ;;  %10115 = vmatpush3.bf16.msra.mxu0 %v12014_v57 }
0x28b1   :  { %1429 = vst.msk [vmem:[#allocation2] sm:$0x8] %vm1428_vm10, %v1423_v41  ;;  %10117 = vmatprep.subr.bf16.mxu0 %v12024_v51 }
0x28b3   :  { %v1727_v31 = vpop.permute.xlu0 %1726 }
0x28b4   :  { %1732 = vst.msk [vmem:[#allocation3] sm:$0x8] %vm1428_vm10, %v1727_v31  ;;  %v1717_v14 = vpop.permute.xlu1 %1716  ;;  %10119 = vmatpush3.bf16.msra.mxu0 %v12024_v51 }
0x28b5   :  { %1722 = vst.msk [vmem:[#allocation2] sm:$0x10] %vm1439_vm9, %v1717_v14  ;;  %10144 = vmatprep.subr.bf16.mxu0 %v13427_v20 }
0x28b7   :  { %v2019_v63 = vpop.permute.xlu0 %2018 }
0x28b8   :  { %2024 = vst.msk [vmem:[#allocation3] sm:$0x4] %vm1134_vm8, %v2019_v63  ;;  %v2009_v5 = vpop.permute.xlu1 %2008 }
0x28b9   :  { %2014 = vst.msk [vmem:[#allocation2] sm:$0x20] %vm1145_vm7, %v2009_v5 }
0x28bb   :  { %v2309_v39 = vpop.permute.xlu0 %2308 }
0x28bc   :  { %2314 = vst.msk [vmem:[#allocation3] sm:$0x2] %vm841_vm6, %v2309_v39  ;;  %v2299_v30 = vpop.permute.xlu1 %2298 }
0x28bd   :  { %2304 = vst.msk [vmem:[#allocation2] sm:$0x40] %vm852_vm5, %v2299_v30 }
0x28bf   :  { %v2598_v11 = vpop.permute.xlu0 %2597 }
0x28c0   :  { %2603 = vst.msk [vmem:[#allocation3] sm:$0x1] %vm549_vm4, %v2598_v11  ;;  %v2588_v50 = vpop.permute.xlu1 %2587 }
0x28c1   :  { %2593 = vst.msk [vmem:[#allocation2] sm:$0x80] %vm560_vm3, %v2588_v50 }
0x28c3   :  { %v557_v53 = vpop.permute.xlu0 %556 }
0x28c4   :  { %562 = vst.msk [vmem:[#allocation3 + $0x8] sm:$0x80] %vm560_vm3, %v557_v53  ;;  %v546_v16 = vpop.permute.xlu1 %545 }
0x28c5   :  { %551 = vst.msk [vmem:[#allocation2 + $0x8] sm:$0x1] %vm549_vm4, %v546_v16 }
0x28c7   :  { %v849_v36 = vpop.permute.xlu0 %848  ;;  %v2607_v4 = vld [vmem:[#allocation3] sm:$0xff] }
0x28c8   :  { %854 = vst.msk [vmem:[#allocation3 + $0x8] sm:$0x40] %vm852_vm5, %v849_v36  ;;  %v838_v18 = vpop.permute.xlu1 %837  ;;  %v2605_v3 = vld [vmem:[#allocation2] sm:$0xff] }
0x28c9   :  { %843 = vst.msk [vmem:[#allocation2 + $0x8] sm:$0x2] %vm841_vm6, %v838_v18  ;;  %v11959_v29 = vadd.f32 %v2607_v4, %v2605_v3 }
0x28cb   :  { %9601 = vmatprep.mubr.msk.f32.mxu1 %vm99_vm0, %v11959_v29  ;;  %v1142_v10 = vpop.permute.xlu0 %1141 }
0x28cc   :  { %1147 = vst.msk [vmem:[#allocation3 + $0x8] sm:$0x20] %vm1145_vm7, %v1142_v10  ;;  %v1131_v0 = vpop.permute.xlu1 %1130 }
0x28cd   :  { %1136 = vst.msk [vmem:[#allocation2 + $0x8] sm:$0x4] %vm1134_vm8, %v1131_v0 }
0x28cf   :  { %v1436_v38 = vpop.permute.xlu0 %1435 }
0x28d0   :  { %1441 = vst.msk [vmem:[#allocation3 + $0x8] sm:$0x10] %vm1439_vm9, %v1436_v38  ;;  %v1425_v7 = vpop.permute.xlu1 %1424 }
0x28d1   :  { %1430 = vst.msk [vmem:[#allocation2 + $0x8] sm:$0x8] %vm1428_vm10, %v1425_v7 }
0x28d3   :  { %v1729_v27 = vpop.permute.xlu0 %1728 }
0x28d4   :  { %1733 = vst.msk [vmem:[#allocation3 + $0x8] sm:$0x8] %vm1428_vm10, %v1729_v27  ;;  %v1719_v52 = vpop.permute.xlu1 %1718 }
0x28d5   :  { %1723 = vst.msk [vmem:[#allocation2 + $0x8] sm:$0x10] %vm1439_vm9, %v1719_v52 }
0x28d7   :  { %v2021_v2 = vpop.permute.xlu0 %2020 }
0x28d8   :  { %2025 = vst.msk [vmem:[#allocation3 + $0x8] sm:$0x4] %vm1134_vm8, %v2021_v2  ;;  %v2011_v35 = vpop.permute.xlu1 %2010  ;;  %v10858_v2 = vmov 0  }
0x28d9   :  { %2015 = vst.msk [vmem:[#allocation2 + $0x8] sm:$0x20] %vm1145_vm7, %v2011_v35  ;;  %10314 = vset.pattern.permute.xlu0 %v10858_v2  ;;  %10315 = vset.pattern.permute.xlu1 %v10858_v2  ;;  %v8953_v35 = vld [vmem:[%s13404_s15] ss:$0 sm:$0xff]  ;;  %vm6377_vm7 = vcmask 1040384  }
0x28db   :  { %v2311_v8 = vpop.permute.xlu0 %2310 }
0x28dc   :  { %2315 = vst.msk [vmem:[#allocation3 + $0x8] sm:$0x2] %vm841_vm6, %v2311_v8  ;;  %v2301_v6 = vpop.permute.xlu1 %2300  ;;  %vm6336_vm6 = vcmask 523712  }
0x28dd   :  { %2305 = vst.msk [vmem:[#allocation2 + $0x8] sm:$0x40] %vm852_vm5, %v2301_v6  ;;  %vm6329_vm5 = vcmask 458112  }
0x28df   :  { %v2600_v19 = vpop.permute.xlu0 %2599 }
0x28e0   :  { %2604 = vst.msk [vmem:[#allocation3 + $0x8] sm:$0x1] %vm549_vm4, %v2600_v19  ;;  %v2590_v24 = vpop.permute.xlu1 %2589  ;;  %vm6322_vm4 = vcmask 392512  }
0x28e1   :  { %2594 = vst.msk [vmem:[#allocation2 + $0x8] sm:$0x80] %vm560_vm3, %v2590_v24  ;;  %vm4417_vm3 = vcmask 261312  }
0x28e7   :  { %v2608_v43 = vld [vmem:[#allocation3 + $0x8] sm:$0xff] }
0x28e8   :  { %v2606_v32 = vld [vmem:[#allocation2 + $0x8] sm:$0xff] }
0x28e9   :  { %v11983_v34 = vadd.f32 %v2608_v43, %v2606_v32 }
0x28eb   :  { %9602 = vmatmul.mubr.msk.f32.vlgmr.msra.gmra.mrb[26].mxu1 %vm99_vm0, %v11983_v34 }
0x28ec   :  { %10122 = vmatpush3.bf16.msra.mxu1 %v11981_v12  ;;  %9647 = vmatprep.mubr.msk.f32.mxu1 %vm10853_vm1, %v13429_v28 }
0x28ed   :  { %10123 = vmatprep.subr.bf16.mxu1 %v13427_v20 }
0x28f0   :  { %10125 = vmatpush3.bf16.msra.mxu1 %v11994_v54 }
0x28f1   :  { %10126 = vmatprep.subr.bf16.mxu1 %v13427_v20 }
0x28f3   :  { %9648 = vmatmul.mubr.f32.vlgmr.msra.gmra.mrb[28].mxu1 %v13429_v28 }
0x28f4   :  { %10128 = vmatpush3.bf16.msra.mxu1 %v11981_v12  ;;  %9658 = vmatprep.mubr.msk.f32.mxu1 %vm10853_vm1, %v13429_v28 }
0x28f5   :  { %10129 = vmatprep.subr.bf16.mxu1 %v13427_v20 }
0x28f8   :  { %10131 = vmatpush3.bf16.msra.mxu1 %v11994_v54 }
0x28f9   :  { %10132 = vmatprep.subr.bf16.mxu1 %v13427_v20 }
0x2920   :  { %v3944_v21 = vpop.permute.xlu0 %3943 }
0x2921   :  { %v12030_v9 = vmul.f32 %v3944_v21, %v11983_v34  ;;  %v3950_v41 = vsub.f32 %v11983_v34, %v3944_v21  ;;  %v3942_v60 = vpop.permute.xlu1 %3941  ;;  %v12077_v21 = vsub.s32 %v12073_v46, %v11862_v48 }
0x2922   :  { %v12034_v13 = vmul.f32 %v3942_v60, %v11959_v29  ;;  %v3949_v31 = vsub.f32 %v11959_v29, %v3942_v60 }
0x2923   :  { %v3952_v14 = vand.u32 2147483647, %v3950_v41 }
0x2924   :  { %v3951_v1 = vand.u32 2147483647, %v3949_v31  ;;  %v10299_v17 = vpack.i.bf16 %v12030_v9, %v12034_v13 }
0x2926   :  { %v10304_v63 = vpack.i.bf16 %v3952_v14, %v3951_v1  ;;  %10300 = vrot.lane.b32.xlu1 %v10299_v17, %s10857_s14 }
0x2928   :  { %10305 = vrot.lane.b32.xlu0 %v10304_v63, %s10855_s3 }
0x292a   :  { %10310 = vrot.lane.b32.xlu1 %v10304_v63, %s10856_s0 }
0x2998   :  { %v10301_v5 = vpop.permute.xlu1 %10300 }
0x2999   :  { %v10303_v15 = vunpack.i.h.bf16 %v10301_v5  ;;  %v10302_v37 = vunpack.i.l.bf16 %v10301_v5  ;;  %v12090_v5 = vld [vmem:[%s13410_s21] ss:$0 sm:$0xff] }
0x299a   :  { %v12042_v39 = vpop.permute.xlu0 %10305 }
0x299b   :  { %v13425_v30 = vunpack.i.h.bf16 %v12042_v39  ;;  %v13426_v11 = vunpack.i.l.bf16 %v12042_v39  ;;  %v3975_v50 = vsel %vm99_vm0, %v12034_v13, %v10302_v37  ;;  %v3976_v53 = vsel %vm99_vm0, %v12030_v9, %v10303_v15 }
0x299c   :  { %v10311_v16 = vpop.permute.xlu1 %10310 }
0x299d   :  { %v10313_v36 = vunpack.i.h.bf16 %v10311_v16  ;;  %v10312_v4 = vunpack.i.l.bf16 %v10311_v16  ;;  %v3978_v18 = vsel %vm3977_vm11, %v3975_v50, %v13426_v11  ;;  %v3979_v3 = vsel %vm3977_vm11, %v3976_v53, %v13425_v30  ;;  %v8950_v50 = vld [vmem:[%s13408_s19] ss:$0 sm:$0xff] }
0x299f   :  { %v3981_v10 = vsel %vm3980_vm12, %v3978_v18, %v10312_v4  ;;  %v3982_v0 = vsel %vm3980_vm12, %v3979_v3, %v10313_v36 }
0x29a0   :  { %9636 = vmatprep.mubr.f32.mxu0 %v3981_v10  ;;  %v12105_v10 = vsub.s32 0, %v11862_v48 }
0x29a1   :  { %9637 = vmatmul.mubr.f32.vlgmr.msra.gmra.mrb[28].mxu0 %v3982_v0  ;;  %v12108_v0 = vsub.s32 1, %v11862_v48 }
0x29a2   :  { %10146 = vmatpush3.bf16.msra.mxu0 %v11981_v12  ;;  %9691 = vmatprep.mubr.msk.f32.mxu0 %vm10853_vm1, %v13429_v28 }
0x29a3   :  { %10147 = vmatprep.subr.bf16.mxu0 %v13427_v20 }
0x29a6   :  { %10149 = vmatpush3.bf16.msra.mxu0 %v11994_v54 }
0x29a7   :  { %10156 = vmatprep.subr.bf16.mxu0 %v13427_v20 }
0x29be   :  { %v9603_v38 = vpop.f32.mrb[26].mxu1 }
0x29bf   :  { %v3885_v7 = vpop.f32.mrb[27].mxu1  ;;  %v12101_v36 = vadd.f32 %v9603_v38, %v8950_v50 }
0x29c0   :  { %v12098_v53 = vadd.f32 %v8950_v50, %v3885_v7 }
0x29c6   :  { %v4234_v27 = vpop.f32.mrb[28].mxu1 }
0x29c7   :  { %v9649_v52 = vpop.f32.mrb[29].mxu1  ;;  %v4235_v15 = vadd.f32 %v12090_v5, %v4234_v27 }
0x29c9   :  { %v4239_v37 = vrot.slane %v4235_v15, 1  ;;  %v4242_v16 = vadd.f32 %v4235_v15, %v12098_v53 }
0x29cb   :  { %v4243_v4 = vadd.f32 %v4239_v37, %v12101_v36  ;;  %v8957_v18 = vmul.f32 -1.442695, %v4242_v16 }
0x29cd   :  { %v8958_v3 = vmul.f32 -1.442695, %v4243_v4 }
0x2a74   :  { %v9638_v8 = vpop.f32.mrb[28].mxu0 }
0x2a75   :  { %v4061_v6 = vadd.f32 %v9638_v8, %v8953_v35  ;;  %v4055_v19 = vpop.f32.mrb[29].mxu0 }
0x2a76   :  { %v4056_v24 = vadd.f32 %v8953_v35, %v4055_v19 }
0x2a77   :  { %10614 = vtanh.f32 %v4061_v6 }
0x2a78   :  { %10616 = vtanh.f32 %v4056_v24 }
0x2a79   :  { %10618 = vpow2.f32 %v8957_v18 }
0x2a7a   :  { %10620 = vpow2.f32 %v8958_v3 }
0x2a81   :  { %v10615_v59 = vpop.eup %10614 }
0x2a82   :  { %v10617_v43 = vpop.eup %10616  ;;  %v4073_v32 = vmul.f32 %v10615_v59, %v8954_v33 }
0x2a83   :  { %v4072_v45 = vmul.f32 %v10617_v43, %v8954_v33  ;;  %v10619_v8 = vpop.eup %10618 }
0x2a84   :  { %v4077_v26 = vsel %vm99_vm0, %v4073_v32, 0.0  ;;  %v4250_v19 = vadd.f32 1.0, %v10619_v8  ;;  %v10621_v24 = vpop.eup %10620 }
0x2a85   :  { %4078 = vadd.xlane.f32.xlu1 %v4077_v26  ;;  %v4074_v58 = vsel %vm99_vm0, %v4072_v45, 0.0  ;;  %v4251_v33 = vadd.f32 1.0, %v10621_v24 }
0x2a86   :  { %4075 = vadd.xlane.f32.xlu0 %v4074_v58 }
0x2a9c   :  { %4086 = vperm.xlu0 %10314, %v8955_v42  }
0x2b12   :  { %v4079_v41 = vpop.xlane.xlu1 %4078 }
0x2b13   :  { %v4076_v49 = vpop.xlane.xlu0 %4075 }
0x2b1b   :  { %v12079_v60 = vpop.permute.xlu0 %4086 }
0x2b1c   :  { %v4089_v31 = vadd.f32 %v12079_v60, %v4076_v49  ;;  %v4090_v14 = vadd.f32 %v12079_v60, %v4079_v41 }
0x2b1e   :  { %v4098_v1 = vrot.slane %v4089_v31, %v12077_v21  ;;  %v4102_v17 = vrot.slane %v4090_v14, %v12077_v21 }
0x2b20   :  { %v4103_v62 = vsel %vm564_vm2, %v4102_v17, %v4098_v1 }
0x2b21   :  { %v4106_v63 = vsel %vm4105_vm13, %v4103_v62, -inf }
0x2b22   :  { %4107 = vmax.xlane.f32.xlu1 %v4106_v63 }
0x2b33   :  { %4256 = vrot.lane.b32.xlu1 %v4235_v15, %s10856_s0 }
0x2b37   :  { %4258 = vrot.lane.b32.xlu1 %v4239_v37, %s10856_s0 }
0x2baf   :  { %v4108_v27 = vpop.xlane.xlu1 %4107 }
0x2bb0   :  { %v4113_v7 = vrot.slane %v4108_v27, %v12105_v10  ;;  %v4117_v52 = vrot.slane %v4108_v27, %v12108_v0 }
0x2bb2   :  { %v4120_v2 = vsub.f32 %v4089_v31, %v4113_v7  ;;  %v4121_v38 = vsub.f32 %v4090_v14, %v4117_v52 }
0x2bb3   :  { %v4257_v43 = vpop.permute.xlu1 %4256 }
0x2bb4   :  { %v4122_v35 = vmul.f32 1.442695, %v4120_v2  ;;  %v4124_v6 = vmul.f32 1.442695, %v4121_v38 }
0x2bb6   :  { %10622 = vpow2.f32 %v4122_v35 }
0x2bb7   :  { %10624 = vpow2.f32 %v4124_v6  ;;  %v4259_v58 = vpop.permute.xlu1 %4258 }
0x2bb8   :  { %10626 = vrcp.f32 %v4250_v19 }
0x2bb9   :  { %10628 = vrcp.f32 %v4251_v33 }
0x2bc0   :  { %v10623_v59 = vpop.eup %10622 }
0x2bc1   :  { %4129 = vperm.xlu1 %10315, %v10623_v59   ;;  %v10625_v32 = vpop.eup %10624 }
0x2bc2   :  { %v10627_v45 = vpop.eup %10626 }
0x2bc3   :  { %v4262_v26 = vmul.f32 %v10627_v45, %v4257_v43  ;;  %v10629_v42 = vpop.eup %10628 }
0x2bc4   :  { %v4263_v49 = vmul.f32 %v10629_v42, %v4259_v58 }
0x2bc5   :  { %4132 = vperm.xlu1 %10315, %v10625_v32  }
0x2bc9   :  { %4266 = vrot.lane.b32.xlu1 %v4262_v26, %s10857_s14 }
0x2bcd   :  { %4268 = vrot.lane.b32.xlu1 %v4263_v49, %s10857_s14 }
0x2c40   :  { %v4130_v41 = vpop.permute.xlu1 %4129 }
0x2c41   :  { %v4137_v14 = vrot.slane %v4130_v41, %v12077_v21 }
0x2c44   :  { %v4133_v31 = vpop.permute.xlu1 %4132 }
0x2c45   :  { %v4141_v1 = vrot.slane %v4133_v31, %v12077_v21 }
0x2c47   :  { %v4142_v17 = vsel %vm564_vm2, %v4141_v1, %v4137_v14 }
0x2c48   :  { %v4267_v62 = vpop.permute.xlu1 %4266  ;;  %v4144_v63 = vsel %vm4105_vm13, %v4142_v17, 0.0 }
0x2c49   :  { %v4272_v15 = vadd.f32 %v4267_v62, %v12098_v53  ;;  %4145 = vadd.xlane.f32.xlu0 %v4144_v63 }
0x2c4b   :  { %10630 = vtanh.f32 %v4272_v15 }
0x2c4c   :  { %v4269_v37 = vpop.permute.xlu1 %4268 }
0x2c4d   :  { %v4273_v50 = vadd.f32 %v4269_v37, %v12101_v36 }
0x2c4f   :  { %10632 = vtanh.f32 %v4273_v50 }
0x2c55   :  { %v10631_v16 = vpop.eup %10630 }
0x2c56   :  { %v4289_v4 = vrot.slane %v10631_v16, %v12105_v10 }
0x2c58   :  { %4292 = vbcast.lane.b32.xlu1 %v4289_v4, 288 }
0x2c59   :  { %v10633_v18 = vpop.eup %10632 }
0x2c5a   :  { %v4309_v3 = vrot.slane %v10633_v18, %v12105_v10 }
0x2c5c   :  { %4296 = vbcast.lane.b32.xlu1 %v4289_v4, 296 }
0x2c60   :  { %4312 = vbcast.lane.b32.xlu1 %v4309_v3, 288 }
0x2c64   :  { %4316 = vbcast.lane.b32.xlu1 %v4309_v3, 296 }
0x2c68   :  { %4300 = vbcast.lane.b32.xlu1 %v4289_v4, 304 }
0x2c6c   :  { %4320 = vbcast.lane.b32.xlu1 %v4309_v3, 304 }
0x2c70   :  { %4304 = vbcast.lane.b32.xlu1 %v4289_v4, 312 }
0x2c74   :  { %4324 = vbcast.lane.b32.xlu1 %v4309_v3, 312 }
0x2cca   :  { %v12122_v27 = vpop.permute.xlu1 %4292 }
0x2cce   :  { %v12124_v7 = vpop.permute.xlu1 %4296 }
0x2cd2   :  { %v12126_v52 = vpop.permute.xlu1 %4312 }
0x2cd3   :  { %13467 = vst [vmem:[#allocation8_spill] sm:$0xff] %v12126_v52 }
0x2cd6   :  { %v4146_v2 = vpop.xlane.xlu0 %4145  ;;  %v12128_v38 = vpop.permute.xlu1 %4316 }
0x2cd7   :  { %13468 = vst [vmem:[#allocation9_spill] sm:$0xff] %v12128_v38  ;;  %v4151_v35 = vrot.slane %v4146_v2, %v12105_v10  ;;  %v4155_v8 = vrot.slane %v4146_v2, %v12108_v0 }
0x2cd9   :  { %10634 = vrcp.f32 %v4151_v35 }
0x2cda   :  { %10636 = vrcp.f32 %v4155_v8  ;;  %v12132_v6 = vpop.permute.xlu1 %4300 }
0x2cdb   :  { %13469 = vst [vmem:[#allocation10_spill] sm:$0xff] %v12132_v6 }
0x2cde   :  { %v12134_v19 = vpop.permute.xlu1 %4320 }
0x2cdf   :  { %13470 = vst [vmem:[#allocation11_spill] sm:$0xff] %v12134_v19 }
0x2ce2   :  { %v12136_v24 = vpop.permute.xlu1 %4304 }
0x2ce3   :  { %13471 = vst [vmem:[#allocation12_spill] sm:$0xff] %v12136_v24  ;;  %v10635_v33 = vpop.eup %10634 }
0x2ce4   :  { %v10637_v43 = vpop.eup %10636  ;;  %v12138_v45 = vmul.f32 %v10635_v33, %v10623_v59 }
0x2ce5   :  { %v12140_v26 = vmul.f32 %v10637_v43, %v10625_v32 }
0x2ce6   :  { %v4279_v58 = vrot.slane %v12138_v45, %v12105_v10  ;;  %v12145_v42 = vsub.f32 1.0, %v12138_v45  ;;  %v12152_v31 = vpop.permute.xlu1 %4324 }
0x2ce7   :  { %v4283_v49 = vrot.slane %v12140_v26, %v12105_v10  ;;  %v12150_v41 = vsub.f32 1.0, %v12140_v26  ;;  %13472 = vst [vmem:[#allocation13_spill] sm:$0xff] %v12152_v31 }
0x2ce8   :  { %v4347_v59 = vrot.slane %v12145_v42, %v12105_v10  ;;  %v4336_v32 = vmul.f32 %v12132_v6, %v4279_v58  ;;  %v4337_v17 = vmul.f32 %v12136_v24, %v4279_v58  ;;  %v4334_v62 = vmul.f32 %v12122_v27, %v4279_v58 }
0x2ce9   :  { %v4351_v14 = vrot.slane %v12150_v41, %v12105_v10  ;;  %v4339_v1 = vmul.f32 %v12128_v38, %v4283_v49  ;;  %v4340_v15 = vmul.f32 %v12134_v19, %v4283_v49  ;;  %v4341_v37 = vmul.f32 %v12152_v31, %v4283_v49 }
0x2cea   :  { %v4352_v63 = vmul.f32 0.0, %v4347_v59  ;;  %v4335_v50 = vmul.f32 %v12124_v7, %v4279_v58  ;;  %v4338_v4 = vmul.f32 %v12126_v52, %v4283_v49  ;;  %v4622_v18 = vrot.slane %v12150_v41, %v12108_v0 }
0x2ceb   :  { %v4353_v16 = vmul.f32 0.0, %v4351_v14  ;;  %v4618_v3 = vrot.slane %v12145_v42, %v12108_v0 }
0x2cec   :  { %v4356_v2 = vadd.f32 %v4352_v63, %v4336_v32  ;;  %v4357_v35 = vadd.f32 %v4352_v63, %v4337_v17  ;;  %v4354_v8 = vadd.f32 %v4352_v63, %v4334_v62  ;;  %v4355_v33 = vadd.f32 %v4352_v63, %v4335_v50 }
0x2ced   :  { %v4359_v43 = vadd.f32 %v4353_v16, %v4339_v1  ;;  %v4360_v59 = vadd.f32 %v4353_v16, %v4340_v15  ;;  %v4361_v30 = vadd.f32 %v4353_v16, %v4341_v37  ;;  %v4358_v11 = vadd.f32 %v4353_v16, %v4338_v4 }
0x2cee   :  { %4371 = vperm.xlu0 %10314, %v4354_v8   ;;  %4374 = vperm.xlu1 %10315, %v4355_v33   ;;  %v12170_v58 = vmul.f32 %v4618_v3, %v4354_v8  ;;  %v12172_v14 = vmul.f32 %v4618_v3, %v4355_v33  ;;  %v12174_v49 = vmul.f32 %v4618_v3, %v4356_v2  ;;  %v4398_v15 = vadd.s32 4294967288, %v12073_v46 }
0x2cef   :  { %v12176_v20 = vmul.f32 %v4622_v18, %v4359_v43  ;;  %v12178_v28 = vmul.f32 %v4622_v18, %v4358_v11  ;;  %v12180_v32 = vmul.f32 %v4622_v18, %v4360_v59  ;;  %v12182_v17 = vmul.f32 %v4622_v18, %v4361_v30 }
0x2cf0   :  { %v12184_v1 = vmul.f32 %v4618_v3, %v4357_v35  ;;  %v4405_v37 = vadd.s32 4294967280, %v12073_v46  ;;  %v12189_v16 = vsub.s32 %v4398_v15, %v11862_v48  ;;  %v4412_v3 = vadd.s32 4294967272, %v12073_v46 }
0x2cf2   :  { %4383 = vperm.xlu1 %10315, %v4358_v11   ;;  %4380 = vperm.xlu0 %10314, %v4357_v35   ;;  %v12192_v4 = vsub.s32 %v4405_v37, %v11862_v48  ;;  %v12199_v33 = vsub.s32 %v4412_v3, %v11862_v48 }
0x2cf6   :  { %4386 = vperm.xlu1 %10315, %v4359_v43  }
0x2cfa   :  { %4377 = vperm.xlu1 %10315, %v4356_v2  }
0x2cfe   :  { %4389 = vperm.xlu1 %10315, %v4360_v59  }
0x2d02   :  { %4392 = vperm.xlu1 %10315, %v4361_v30  }
0x2d6d   :  { %v4375_v62 = vpop.permute.xlu1 %4374  ;;  %v4372_v18 = vpop.permute.xlu0 %4371 }
0x2d6e   :  { %v4397_v2 = vrot.slane %v4372_v18, %v12077_v21  ;;  %v4402_v30 = vrot.slane %v4375_v62, %v12189_v16 }
0x2d70   :  { %v4404_v37 = vsel %vm4403_vm14, %v4402_v30, %v4397_v2  ;;  %v13474_v30 = vmov 0.0|0.0  }
0x2d71   :  { %v4384_v63 = vpop.permute.xlu1 %4383  ;;  %v4381_v59 = vpop.permute.xlu0 %4380 }
0x2d72   :  { %v4422_v31 = vrot.slane %v4384_v63, %v12077_v21  ;;  %v13473_v63 = vmov 0.0  }
0x2d75   :  { %v4387_v50 = vpop.permute.xlu1 %4386 }
0x2d76   :  { %v4426_v43 = vrot.slane %v4387_v50, %v12189_v16 }
0x2d78   :  { %v4427_v24 = vsel %vm4403_vm14, %v4426_v43, %v4422_v31 }
0x2d79   :  { %v4378_v11 = vpop.permute.xlu1 %4377 }
0x2d7a   :  { %v4409_v35 = vrot.slane %v4378_v11, %v12192_v4  ;;  %v4416_v11 = vrot.slane %v4381_v59, %v12199_v33 }
0x2d7c   :  { %v4411_v18 = vsel %vm4410_vm15, %v4409_v35, %v4404_v37 }
0x2d7d   :  { %v4390_v8 = vpop.permute.xlu1 %4389 }
0x2d7e   :  { %v4431_v15 = vrot.slane %v4390_v8, %v12192_v4  ;;  %v4418_v8 = vsel %vm4417_vm3, %v4416_v11, %v4411_v18 }
0x2d80   :  { %v4432_v50 = vsel %vm4410_vm15, %v4431_v15, %v4427_v24 }
0x2d81   :  { %v4393_v62 = vpop.permute.xlu1 %4392 }
0x2d82   :  { %v4436_v3 = vrot.slane %v4393_v62, %v12199_v33 }
0x2d84   :  { %v4437_v19 = vsel %vm4417_vm3, %v4436_v3, %v4432_v50 }
0x2d85   :  { %v4438_v2 = vsel %vm564_vm2, %v4437_v19, %v4418_v8 }
0x2d86   :  { %9659 = vmatmul.mubr.msk.f32.vlgmr.msra.gmra.mrb[30].mxu1 %vm99_vm0, %v4438_v2 }
0x2d87   :  { %10134 = vmatpush3.bf16.msra.mxu1 %v11981_v12  ;;  %9669 = vmatprep.mubr.msk.f32.mxu1 %vm10853_vm1, %v13473_v63 }
0x2d88   :  { %10135 = vmatprep.subr.bf16.mxu1 %v13474_v30 }
0x2d8b   :  { %10137 = vmatpush3.bf16.msra.mxu1 %v11994_v54 }
0x2d8c   :  { %10138 = vmatprep.subr.bf16.mxu1 %v13474_v30 }
0x2e59   :  { %v4507_v24 = vpop.f32.mrb[30].mxu1 }
0x2e5a   :  { %v4508_v31 = vadd.f32 %v12090_v5, %v4507_v24  ;;  %v9660_v35 = vpop.f32.mrb[31].mxu1 }
0x2e5c   :  { %v4512_v43 = vrot.slane %v4508_v31, 7  ;;  %4531 = vrot.lane.b32.xlu1 %v4508_v31, %s10856_s0  ;;  %v4516_v19 = vadd.f32 %v4508_v31, %v12101_v36 }
0x2e5e   :  { %4529 = vrot.lane.b32.xlu0 %v4512_v43, %s10856_s0  ;;  %v4515_v59 = vadd.f32 %v4512_v43, %v12098_v53  ;;  %v8961_v15 = vmul.f32 -1.442695, %v4516_v19 }
0x2e60   :  { %v8960_v37 = vmul.f32 -1.442695, %v4515_v59  ;;  %10638 = vpow2.f32 %v8961_v15 }
0x2e62   :  { %10640 = vpow2.f32 %v8960_v37 }
0x2e6a   :  { %v10639_v18 = vpop.eup %10638 }
0x2e6b   :  { %v4524_v11 = vadd.f32 1.0, %v10639_v18 }
0x2e6c   :  { %v10641_v62 = vpop.eup %10640 }
0x2e6d   :  { %v4523_v3 = vadd.f32 1.0, %v10641_v62  ;;  %10642 = vrcp.f32 %v4524_v11 }
0x2e6f   :  { %10644 = vrcp.f32 %v4523_v3 }
0x2e77   :  { %v10643_v50 = vpop.eup %10642 }
0x2e79   :  { %v10645_v24 = vpop.eup %10644 }
0x2ece   :  { %v4532_v8 = vpop.permute.xlu1 %4531 }
0x2ecf   :  { %v4536_v2 = vmul.f32 %v10643_v50, %v4532_v8 }
0x2ed0   :  { %v4530_v35 = vpop.permute.xlu0 %4529 }
0x2ed1   :  { %v4535_v38 = vmul.f32 %v10645_v24, %v4530_v35  ;;  %4541 = vrot.lane.b32.xlu1 %v4536_v2, %s10857_s14  ;;  %v12234_v2 = vsub.s32 2, %v11862_v48 }
0x2ed3   :  { %4539 = vrot.lane.b32.xlu0 %v4535_v38, %s10857_s14  ;;  %v4556_v38 = vrot.slane %v12140_v26, %v12108_v0  ;;  %13475 = vst [vmem:[#allocation14_spill] sm:$0xff] %v12234_v2 }
0x2f43   :  { %v4542_v31 = vpop.permute.xlu1 %4541 }
0x2f44   :  { %v4546_v43 = vadd.f32 %v4542_v31, %v12101_v36  ;;  %v4552_v31 = vrot.slane %v12138_v45, %v12108_v0 }
0x2f45   :  { %v4540_v19 = vpop.permute.xlu0 %4539 }
0x2f46   :  { %10646 = vtanh.f32 %v4546_v43  ;;  %v4545_v59 = vadd.f32 %v4540_v19, %v12098_v53  ;;  %v4894_v43 = vrot.slane %v12150_v41, %v12234_v2 }
0x2f48   :  { %10648 = vtanh.f32 %v4545_v59 }
0x2f50   :  { %v10647_v15 = vpop.eup %10646 }
0x2f51   :  { %v4582_v37 = vrot.slane %v10647_v15, %v12108_v0 }
0x2f52   :  { %v10649_v18 = vpop.eup %10648 }
0x2f53   :  { %4589 = vbcast.lane.b32.xlu1 %v4582_v37, 296  ;;  %4585 = vbcast.lane.b32.xlu0 %v4582_v37, 288  ;;  %v4562_v62 = vrot.slane %v10649_v18, %v12108_v0 }
0x2f57   :  { %4593 = vbcast.lane.b32.xlu1 %v4582_v37, 304  ;;  %4565 = vbcast.lane.b32.xlu0 %v4562_v62, 288 }
0x2f5b   :  { %4569 = vbcast.lane.b32.xlu1 %v4562_v62, 296  ;;  %4573 = vbcast.lane.b32.xlu0 %v4562_v62, 304 }
0x2f5f   :  { %4597 = vbcast.lane.b32.xlu1 %v4582_v37, 312  ;;  %4577 = vbcast.lane.b32.xlu0 %v4562_v62, 312 }
0x2fc5   :  { %v4590_v11 = vpop.permute.xlu1 %4589  ;;  %v4586_v3 = vpop.permute.xlu0 %4585 }
0x2fc6   :  { %v4612_v50 = vmul.f32 %v4590_v11, %v4556_v38  ;;  %v4611_v8 = vmul.f32 %v4586_v3, %v4556_v38  ;;  %v4890_v11 = vrot.slane %v12145_v42, %v12234_v2 }
0x2fc8   :  { %v4636_v24 = vadd.f32 %v12176_v20, %v4612_v50  ;;  %v4635_v35 = vadd.f32 %v12178_v28, %v4611_v8 }
0x2fc9   :  { %v4594_v19 = vpop.permute.xlu1 %4593  ;;  %v4566_v59 = vpop.permute.xlu0 %4565 }
0x2fca   :  { %v4613_v15 = vmul.f32 %v4594_v19, %v4556_v38  ;;  %v4607_v37 = vmul.f32 %v4566_v59, %v4552_v31  ;;  %4663 = vperm.xlu1 %10315, %v4636_v24   ;;  %4660 = vperm.xlu0 %10314, %v4635_v35   ;;  %v12242_v18 = vmul.f32 %v4894_v43, %v4636_v24 }
0x2fcb   :  { %v12244_v62 = vmul.f32 %v4894_v43, %v4635_v35 }
0x2fcc   :  { %v4637_v20 = vadd.f32 %v12180_v32, %v4613_v15  ;;  %v4631_v28 = vadd.f32 %v12170_v58, %v4607_v37 }
0x2fcd   :  { %v4570_v3 = vpop.permute.xlu1 %4569  ;;  %v4574_v50 = vpop.permute.xlu0 %4573 }
0x2fce   :  { %v4608_v8 = vmul.f32 %v4570_v3, %v4552_v31  ;;  %v4609_v6 = vmul.f32 %v4574_v50, %v4552_v31  ;;  %4666 = vperm.xlu1 %10315, %v4637_v20   ;;  %4648 = vperm.xlu0 %10314, %v4631_v28   ;;  %v12250_v19 = vmul.f32 %v4890_v11, %v4631_v28 }
0x2fcf   :  { %v12252_v59 = vmul.f32 %v4894_v43, %v4637_v20 }
0x2fd0   :  { %v4632_v24 = vadd.f32 %v12172_v14, %v4608_v8  ;;  %v4633_v35 = vadd.f32 %v12174_v49, %v4609_v6 }
0x2fd1   :  { %v4598_v32 = vpop.permute.xlu1 %4597  ;;  %v4578_v15 = vpop.permute.xlu0 %4577 }
0x2fd2   :  { %v4614_v58 = vmul.f32 %v4598_v32, %v4556_v38  ;;  %v4610_v37 = vmul.f32 %v4578_v15, %v4552_v31  ;;  %4651 = vperm.xlu1 %10315, %v4632_v24   ;;  %4654 = vperm.xlu0 %10314, %v4633_v35   ;;  %v12256_v52 = vmul.f32 %v4890_v11, %v4632_v24 }
0x2fd3   :  { %v12258_v3 = vmul.f32 %v4890_v11, %v4633_v35 }
0x2fd4   :  { %v4638_v50 = vadd.f32 %v12182_v17, %v4614_v58  ;;  %v4634_v28 = vadd.f32 %v12184_v1, %v4610_v37 }
0x2fd6   :  { %4669 = vperm.xlu1 %10315, %v4638_v50   ;;  %4657 = vperm.xlu0 %10314, %v4634_v28   ;;  %v12262_v20 = vmul.f32 %v4894_v43, %v4638_v50  ;;  %v12264_v14 = vmul.f32 %v4890_v11, %v4634_v28 }
0x3049   :  { %v4664_v6 = vpop.permute.xlu1 %4663  ;;  %v4661_v49 = vpop.permute.xlu0 %4660 }
0x304a   :  { %v4697_v24 = vrot.slane %v4664_v6, %v12189_v16  ;;  %v4693_v35 = vrot.slane %v4661_v49, %v12077_v21 }
0x304c   :  { %v4698_v50 = vsel %vm4403_vm14, %v4697_v24, %v4693_v35 }
0x304d   :  { %v4667_v38 = vpop.permute.xlu1 %4666  ;;  %v4649_v31 = vpop.permute.xlu0 %4648 }
0x304e   :  { %v4674_v17 = vrot.slane %v4649_v31, %v12077_v21  ;;  %v4702_v15 = vrot.slane %v4667_v38, %v12192_v4 }
0x3050   :  { %v4703_v49 = vsel %vm4410_vm15, %v4702_v15, %v4698_v50 }
0x3051   :  { %v4652_v8 = vpop.permute.xlu1 %4651  ;;  %v4655_v32 = vpop.permute.xlu0 %4654 }
0x3052   :  { %v4678_v1 = vrot.slane %v4652_v8, %v12189_v16  ;;  %v4683_v43 = vrot.slane %v4655_v32, %v12192_v4 }
0x3054   :  { %v4679_v11 = vsel %vm4403_vm14, %v4678_v1, %v4674_v17 }
0x3055   :  { %v4670_v58 = vpop.permute.xlu1 %4669  ;;  %v4658_v37 = vpop.permute.xlu0 %4657  ;;  %v4684_v31 = vsel %vm4410_vm15, %v4683_v43, %v4679_v11 }
0x3056   :  { %v4707_v28 = vrot.slane %v4670_v58, %v12199_v33  ;;  %v4688_v6 = vrot.slane %v4658_v37, %v12199_v33 }
0x3058   :  { %v4708_v8 = vsel %vm4417_vm3, %v4707_v28, %v4703_v49  ;;  %v4689_v38 = vsel %vm4417_vm3, %v4688_v6, %v4684_v31 }
0x3059   :  { %v4709_v32 = vsel %vm564_vm2, %v4708_v8, %v4689_v38 }
0x305a   :  { %9670 = vmatmul.mubr.msk.f32.vlgmr.msra.gmra.mrb[32].mxu1 %vm99_vm0, %v4709_v32 }
0x305b   :  { %10140 = vmatpush3.bf16.msra.mxu1 %v11981_v12  ;;  %9680 = vmatprep.mubr.msk.f32.mxu1 %vm10853_vm1, %v13473_v63 }
0x305c   :  { %10141 = vmatprep.subr.bf16.mxu1 %v13474_v30 }
0x305f   :  { %10143 = vmatpush3.bf16.msra.mxu1 %v11994_v54 }
0x3060   :  { %10150 = vmatprep.subr.bf16.mxu1 %v13474_v30 }
0x312d   :  { %v4778_v24 = vpop.f32.mrb[32].mxu1 }
0x312e   :  { %v4779_v35 = vadd.f32 %v12090_v5, %v4778_v24  ;;  %v9671_v17 = vpop.f32.mrb[33].mxu1 }
0x3130   :  { %v4783_v1 = vrot.slane %v4779_v35, 6  ;;  %v4784_v15 = vrot.slane %v4779_v35, 7 }
0x3132   :  { %4803 = vrot.lane.b32.xlu1 %v4784_v15, %s10856_s0  ;;  %4801 = vrot.lane.b32.xlu0 %v4783_v1, %s10856_s0  ;;  %v4787_v43 = vadd.f32 %v4783_v1, %v12098_v53  ;;  %v4788_v11 = vadd.f32 %v4784_v15, %v12101_v36 }
0x3134   :  { %v8963_v58 = vmul.f32 -1.442695, %v4787_v43  ;;  %v8964_v37 = vmul.f32 -1.442695, %v4788_v11 }
0x3136   :  { %10650 = vpow2.f32 %v8963_v58 }
0x3137   :  { %10652 = vpow2.f32 %v8964_v37 }
0x3140   :  { %v10651_v50 = vpop.eup %10650 }
0x3141   :  { %v10653_v28 = vpop.eup %10652  ;;  %v4795_v6 = vadd.f32 1.0, %v10651_v50 }
0x3142   :  { %v4796_v49 = vadd.f32 1.0, %v10653_v28  ;;  %v4824_v28 = vrot.slane %v12138_v45, %v12234_v2 }
0x3143   :  { %10654 = vrcp.f32 %v4795_v6 }
0x3144   :  { %10656 = vrcp.f32 %v4796_v49 }
0x314d   :  { %v10655_v31 = vpop.eup %10654 }
0x314e   :  { %v10657_v8 = vpop.eup %10656 }
0x31a4   :  { %v4804_v38 = vpop.permute.xlu1 %4803  ;;  %v4802_v32 = vpop.permute.xlu0 %4801 }
0x31a5   :  { %v4808_v24 = vmul.f32 %v10657_v8, %v4804_v38  ;;  %v4807_v35 = vmul.f32 %v10655_v31, %v4802_v32  ;;  %v12302_v38 = vsub.s32 3, %v11862_v48 }
0x31a7   :  { %4813 = vrot.lane.b32.xlu1 %v4808_v24, %s10857_s14  ;;  %4811 = vrot.lane.b32.xlu0 %v4807_v35, %s10857_s14  ;;  %13476 = vst [vmem:[#allocation15_spill] sm:$0xff] %v12302_v38  ;;  %v4828_v35 = vrot.slane %v12140_v26, %v12234_v2 }
0x3219   :  { %v4814_v17 = vpop.permute.xlu1 %4813  ;;  %v4812_v1 = vpop.permute.xlu0 %4811 }
0x321a   :  { %v4817_v15 = vadd.f32 %v4812_v1, %v12098_v53  ;;  %v4818_v43 = vadd.f32 %v4814_v17, %v12101_v36  ;;  %v5162_v17 = vrot.slane %v12145_v42, %v12302_v38 }
0x321c   :  { %10658 = vtanh.f32 %v4817_v15 }
0x321d   :  { %10660 = vtanh.f32 %v4818_v43 }
0x3226   :  { %v10659_v11 = vpop.eup %10658 }
0x3227   :  { %v4834_v58 = vrot.slane %v10659_v11, %v12234_v2  ;;  %v10661_v37 = vpop.eup %10660 }
0x3228   :  { %v4854_v50 = vrot.slane %v10661_v37, %v12234_v2 }
0x3229   :  { %4841 = vbcast.lane.b32.xlu1 %v4834_v58, 296  ;;  %4837 = vbcast.lane.b32.xlu0 %v4834_v58, 288 }
0x322d   :  { %4861 = vbcast.lane.b32.xlu1 %v4854_v50, 296  ;;  %4857 = vbcast.lane.b32.xlu0 %v4854_v50, 288 }
0x3231   :  { %4865 = vbcast.lane.b32.xlu1 %v4854_v50, 304  ;;  %4845 = vbcast.lane.b32.xlu0 %v4834_v58, 304 }
0x3235   :  { %4869 = vbcast.lane.b32.xlu1 %v4854_v50, 312  ;;  %4849 = vbcast.lane.b32.xlu0 %v4834_v58, 312  ;;  %v5166_v50 = vrot.slane %v12150_v41, %v12302_v38 }
0x329b   :  { %v4842_v6 = vpop.permute.xlu1 %4841  ;;  %v4838_v49 = vpop.permute.xlu0 %4837 }
0x329c   :  { %v4880_v31 = vmul.f32 %v4842_v6, %v4824_v28  ;;  %v4879_v8 = vmul.f32 %v4838_v49, %v4824_v28 }
0x329e   :  { %v4904_v32 = vadd.f32 %v12256_v52, %v4880_v31  ;;  %v4903_v24 = vadd.f32 %v12250_v19, %v4879_v8 }
0x329f   :  { %v4862_v1 = vpop.permute.xlu1 %4861  ;;  %v4858_v15 = vpop.permute.xlu0 %4857 }
0x32a0   :  { %v4884_v43 = vmul.f32 %v4862_v1, %v4828_v35  ;;  %v4883_v11 = vmul.f32 %v4858_v15, %v4828_v35  ;;  %4923 = vperm.xlu1 %10315, %v4904_v32   ;;  %4920 = vperm.xlu0 %10314, %v4903_v24   ;;  %v12310_v58 = vmul.f32 %v5162_v17, %v4904_v32 }
0x32a1   :  { %v12312_v37 = vmul.f32 %v5162_v17, %v4903_v24 }
0x32a2   :  { %v4908_v52 = vadd.f32 %v12242_v18, %v4884_v43  ;;  %v4907_v19 = vadd.f32 %v12244_v62, %v4883_v11 }
0x32a3   :  { %v4866_v6 = vpop.permute.xlu1 %4865  ;;  %v4846_v49 = vpop.permute.xlu0 %4845 }
0x32a4   :  { %v4885_v31 = vmul.f32 %v4866_v6, %v4828_v35  ;;  %v4881_v8 = vmul.f32 %v4846_v49, %v4824_v28  ;;  %4935 = vperm.xlu1 %10315, %v4908_v52   ;;  %4932 = vperm.xlu0 %10314, %v4907_v19   ;;  %v12318_v1 = vmul.f32 %v5166_v50, %v4908_v52 }
0x32a5   :  { %v12320_v15 = vmul.f32 %v5166_v50, %v4907_v19 }
0x32a6   :  { %v4909_v32 = vadd.f32 %v12252_v59, %v4885_v31  ;;  %v4905_v24 = vadd.f32 %v12258_v3, %v4881_v8 }
0x32a7   :  { %v4870_v18 = vpop.permute.xlu1 %4869  ;;  %v4850_v43 = vpop.permute.xlu0 %4849 }
0x32a8   :  { %v4886_v62 = vmul.f32 %v4870_v18, %v4828_v35  ;;  %v4882_v11 = vmul.f32 %v4850_v43, %v4824_v28  ;;  %4938 = vperm.xlu1 %10315, %v4909_v32   ;;  %4926 = vperm.xlu0 %10314, %v4905_v24   ;;  %v12324_v2 = vmul.f32 %v5166_v50, %v4909_v32 }
0x32a9   :  { %v12326_v6 = vmul.f32 %v5162_v17, %v4905_v24 }
0x32aa   :  { %v4910_v49 = vadd.f32 %v12262_v20, %v4886_v62  ;;  %v4906_v52 = vadd.f32 %v12264_v14, %v4882_v11 }
0x32ac   :  { %4941 = vperm.xlu1 %10315, %v4910_v49   ;;  %4929 = vperm.xlu0 %10314, %v4906_v52   ;;  %v12330_v19 = vmul.f32 %v5166_v50, %v4910_v49  ;;  %v12332_v59 = vmul.f32 %v5162_v17, %v4906_v52 }
0x331f   :  { %v4924_v3 = vpop.permute.xlu1 %4923  ;;  %v4921_v31 = vpop.permute.xlu0 %4920 }
0x3320   :  { %v4950_v32 = vrot.slane %v4924_v3, %v12189_v16  ;;  %v4946_v24 = vrot.slane %v4921_v31, %v12077_v21 }
0x3322   :  { %v4951_v11 = vsel %vm4403_vm14, %v4950_v32, %v4946_v24 }
0x3323   :  { %v4936_v35 = vpop.permute.xlu1 %4935  ;;  %v4933_v28 = vpop.permute.xlu0 %4932 }
0x3324   :  { %v4969_v20 = vrot.slane %v4936_v35, %v12189_v16  ;;  %v4965_v14 = vrot.slane %v4933_v28, %v12077_v21 }
0x3326   :  { %v4970_v49 = vsel %vm4403_vm14, %v4969_v20, %v4965_v14 }
0x3327   :  { %v4939_v8 = vpop.permute.xlu1 %4938  ;;  %v4927_v18 = vpop.permute.xlu0 %4926 }
0x3328   :  { %v4974_v43 = vrot.slane %v4939_v8, %v12192_v4  ;;  %v4955_v50 = vrot.slane %v4927_v18, %v12192_v4 }
0x332a   :  { %v4975_v31 = vsel %vm4410_vm15, %v4974_v43, %v4970_v49  ;;  %v4956_v35 = vsel %vm4410_vm15, %v4955_v50, %v4951_v11 }
0x332b   :  { %v4942_v17 = vpop.permute.xlu1 %4941  ;;  %v4930_v62 = vpop.permute.xlu0 %4929 }
0x332c   :  { %v4979_v52 = vrot.slane %v4942_v17, %v12199_v33  ;;  %v4960_v3 = vrot.slane %v4930_v62, %v12199_v33 }
0x332e   :  { %v4980_v28 = vsel %vm4417_vm3, %v4979_v52, %v4975_v31  ;;  %v4961_v8 = vsel %vm4417_vm3, %v4960_v3, %v4956_v35 }
0x332f   :  { %v4981_v18 = vsel %vm564_vm2, %v4980_v28, %v4961_v8 }
0x3330   :  { %9681 = vmatmul.mubr.msk.f32.vlgmr.msra.gmra.mrb[34].mxu1 %vm99_vm0, %v4981_v18 }
0x3331   :  { %10152 = vmatpush3.bf16.msra.mxu1 %v11981_v12  ;;  %9702 = vmatprep.mubr.msk.f32.mxu1 %vm10853_vm1, %v13473_v63 }
0x3332   :  { %10153 = vmatprep.subr.bf16.mxu1 %v13474_v30 }
0x3335   :  { %10155 = vmatpush3.bf16.msra.mxu1 %v11994_v54 }
0x3336   :  { %10162 = vmatprep.subr.bf16.mxu1 %v13474_v30 }
0x3403   :  { %v5050_v32 = vpop.f32.mrb[34].mxu1 }
0x3404   :  { %v5051_v24 = vadd.f32 %v12090_v5, %v5050_v32  ;;  %v9682_v20 = vpop.f32.mrb[35].mxu1 }
0x3406   :  { %v5055_v14 = vrot.slane %v5051_v24, 5  ;;  %v5056_v43 = vrot.slane %v5051_v24, 6 }
0x3408   :  { %5075 = vrot.lane.b32.xlu1 %v5056_v43, %s10856_s0  ;;  %5073 = vrot.lane.b32.xlu0 %v5055_v14, %s10856_s0  ;;  %v5059_v50 = vadd.f32 %v5055_v14, %v12098_v53  ;;  %v5060_v17 = vadd.f32 %v5056_v43, %v12101_v36 }
0x340a   :  { %v8966_v62 = vmul.f32 -1.442695, %v5059_v50  ;;  %v8967_v11 = vmul.f32 -1.442695, %v5060_v17 }
0x340c   :  { %10662 = vpow2.f32 %v8966_v62 }
0x340d   :  { %10664 = vpow2.f32 %v8967_v11 }
0x3416   :  { %v10663_v49 = vpop.eup %10662 }
0x3417   :  { %v10665_v52 = vpop.eup %10664  ;;  %v5067_v3 = vadd.f32 1.0, %v10663_v49  ;;  %v5096_v49 = vrot.slane %v12138_v45, %v12302_v38 }
0x3418   :  { %v5068_v31 = vadd.f32 1.0, %v10665_v52 }
0x3419   :  { %10666 = vrcp.f32 %v5067_v3 }
0x341a   :  { %10668 = vrcp.f32 %v5068_v31 }
0x3423   :  { %v10667_v5 = vpop.eup %10666 }
0x3424   :  { %v10669_v35 = vpop.eup %10668 }
0x347a   :  { %v5076_v28 = vpop.permute.xlu1 %5075  ;;  %v5074_v8 = vpop.permute.xlu0 %5073 }
0x347b   :  { %v5080_v18 = vmul.f32 %v10669_v35, %v5076_v28  ;;  %v5079_v32 = vmul.f32 %v10667_v5, %v5074_v8  ;;  %v12370_v35 = vsub.s32 4, %v11862_v48 }
0x347d   :  { %5085 = vrot.lane.b32.xlu1 %v5080_v18, %s10857_s14  ;;  %5083 = vrot.lane.b32.xlu0 %v5079_v32, %s10857_s14  ;;  %13477 = vst [vmem:[#allocation16_spill] sm:$0xff] %v12370_v35  ;;  %v5100_v18 = vrot.slane %v12140_v26, %v12302_v38  ;;  %v5434_v32 = vrot.slane %v12145_v42, %v12370_v35 }
0x34ef   :  { %v5086_v24 = vpop.permute.xlu1 %5085  ;;  %v5084_v20 = vpop.permute.xlu0 %5083 }
0x34f0   :  { %v5089_v14 = vadd.f32 %v5084_v20, %v12098_v53  ;;  %v5090_v43 = vadd.f32 %v5086_v24, %v12101_v36 }
0x34f2   :  { %10670 = vtanh.f32 %v5089_v14 }
0x34f3   :  { %10672 = vtanh.f32 %v5090_v43 }
0x34fc   :  { %v10671_v50 = vpop.eup %10670 }
0x34fd   :  { %v5106_v17 = vrot.slane %v10671_v50, %v12302_v38  ;;  %v10673_v62 = vpop.eup %10672 }
0x34fe   :  { %v5126_v11 = vrot.slane %v10673_v62, %v12302_v38  ;;  %v5438_v62 = vrot.slane %v12150_v41, %v12370_v35 }
0x34ff   :  { %5113 = vbcast.lane.b32.xlu1 %v5106_v17, 296  ;;  %5109 = vbcast.lane.b32.xlu0 %v5106_v17, 288 }
0x3503   :  { %5133 = vbcast.lane.b32.xlu1 %v5126_v11, 296  ;;  %5129 = vbcast.lane.b32.xlu0 %v5126_v11, 288 }
0x3507   :  { %5137 = vbcast.lane.b32.xlu1 %v5126_v11, 304  ;;  %5117 = vbcast.lane.b32.xlu0 %v5106_v17, 304 }
0x350b   :  { %5141 = vbcast.lane.b32.xlu1 %v5126_v11, 312  ;;  %5121 = vbcast.lane.b32.xlu0 %v5106_v17, 312 }
0x3571   :  { %v5114_v52 = vpop.permute.xlu1 %5113  ;;  %v5110_v3 = vpop.permute.xlu0 %5109 }
0x3572   :  { %v5152_v31 = vmul.f32 %v5114_v52, %v5096_v49  ;;  %v5151_v5 = vmul.f32 %v5110_v3, %v5096_v49 }
0x3574   :  { %v5176_v28 = vadd.f32 %v12310_v58, %v5152_v31  ;;  %v5175_v8 = vadd.f32 %v12312_v37, %v5151_v5 }
0x3575   :  { %v5134_v24 = vpop.permute.xlu1 %5133  ;;  %v5130_v20 = vpop.permute.xlu0 %5129 }
0x3576   :  { %v5156_v14 = vmul.f32 %v5134_v24, %v5100_v18  ;;  %v5155_v43 = vmul.f32 %v5130_v20, %v5100_v18  ;;  %5195 = vperm.xlu1 %10315, %v5176_v28   ;;  %5192 = vperm.xlu0 %10314, %v5175_v8   ;;  %v12378_v50 = vmul.f32 %v5434_v32, %v5176_v28 }
0x3577   :  { %v12380_v17 = vmul.f32 %v5434_v32, %v5175_v8 }
0x3578   :  { %v5180_v58 = vadd.f32 %v12318_v1, %v5156_v14  ;;  %v5179_v37 = vadd.f32 %v12320_v15, %v5155_v43 }
0x3579   :  { %v5138_v11 = vpop.permute.xlu1 %5137  ;;  %v5118_v52 = vpop.permute.xlu0 %5117 }
0x357a   :  { %v5157_v3 = vmul.f32 %v5138_v11, %v5100_v18  ;;  %v5153_v31 = vmul.f32 %v5118_v52, %v5096_v49  ;;  %5207 = vperm.xlu1 %10315, %v5180_v58   ;;  %5204 = vperm.xlu0 %10314, %v5179_v37   ;;  %v12386_v5 = vmul.f32 %v5438_v62, %v5180_v58 }
0x357b   :  { %v12388_v24 = vmul.f32 %v5438_v62, %v5179_v37 }
0x357c   :  { %v5181_v28 = vadd.f32 %v12324_v2, %v5157_v3  ;;  %v5177_v8 = vadd.f32 %v12326_v6, %v5153_v31 }
0x357d   :  { %v5142_v1 = vpop.permute.xlu1 %5141  ;;  %v5122_v20 = vpop.permute.xlu0 %5121 }
0x357e   :  { %v5158_v15 = vmul.f32 %v5142_v1, %v5100_v18  ;;  %v5154_v14 = vmul.f32 %v5122_v20, %v5096_v49  ;;  %5210 = vperm.xlu1 %10315, %v5181_v28   ;;  %5198 = vperm.xlu0 %10314, %v5177_v8   ;;  %v12392_v43 = vmul.f32 %v5438_v62, %v5181_v28 }
0x357f   :  { %v12394_v11 = vmul.f32 %v5434_v32, %v5177_v8 }
0x3580   :  { %v5182_v52 = vadd.f32 %v12330_v19, %v5158_v15  ;;  %v5178_v58 = vadd.f32 %v12332_v59, %v5154_v14 }
0x3582   :  { %5213 = vperm.xlu1 %10315, %v5182_v52   ;;  %5201 = vperm.xlu0 %10314, %v5178_v58   ;;  %v12398_v37 = vmul.f32 %v5438_v62, %v5182_v52  ;;  %v12400_v2 = vmul.f32 %v5434_v32, %v5178_v58 }
0x35f5   :  { %v5196_v6 = vpop.permute.xlu1 %5195  ;;  %v5193_v3 = vpop.permute.xlu0 %5192 }
0x35f6   :  { %v5222_v28 = vrot.slane %v5196_v6, %v12189_v16  ;;  %v5218_v8 = vrot.slane %v5193_v3, %v12077_v21 }
0x35f8   :  { %v5223_v14 = vsel %vm4403_vm14, %v5222_v28, %v5218_v8  ;;  %v12427_v8 = vld [vmem:[%s13410_s21] ss:$0 sm:$0xff] }
0x35f9   :  { %v5208_v18 = vpop.permute.xlu1 %5207  ;;  %v5205_v49 = vpop.permute.xlu0 %5204 }
0x35fa   :  { %v5241_v19 = vrot.slane %v5208_v18, %v12189_v16  ;;  %v5237_v59 = vrot.slane %v5205_v49, %v12077_v21 }
0x35fc   :  { %v5242_v52 = vsel %vm4403_vm14, %v5241_v19, %v5237_v59 }
0x35fd   :  { %v5211_v31 = vpop.permute.xlu1 %5210  ;;  %v5199_v1 = vpop.permute.xlu0 %5198 }
0x35fe   :  { %v5246_v20 = vrot.slane %v5211_v31, %v12192_v4  ;;  %v5227_v62 = vrot.slane %v5199_v1, %v12192_v4 }
0x3600   :  { %v5247_v3 = vsel %vm4410_vm15, %v5246_v20, %v5242_v52  ;;  %v5228_v18 = vsel %vm4410_vm15, %v5227_v62, %v5223_v14 }
0x3601   :  { %v5214_v32 = vpop.permute.xlu1 %5213  ;;  %v5202_v15 = vpop.permute.xlu0 %5201 }
0x3602   :  { %v5251_v58 = vrot.slane %v5214_v32, %v12199_v33  ;;  %v5232_v6 = vrot.slane %v5202_v15, %v12199_v33 }
0x3604   :  { %v5252_v49 = vsel %vm4417_vm3, %v5251_v58, %v5247_v3  ;;  %v5233_v31 = vsel %vm4417_vm3, %v5232_v6, %v5228_v18 }
0x3605   :  { %v5253_v1 = vsel %vm564_vm2, %v5252_v49, %v5233_v31 }
0x3606   :  { %9692 = vmatmul.mubr.msk.f32.vlgmr.msra.gmra.mrb[30].mxu0 %vm99_vm0, %v5253_v1 }
0x3607   :  { %10158 = vmatpush3.bf16.msra.mxu0 %v11981_v12  ;;  %9713 = vmatprep.mubr.msk.f32.mxu0 %vm10853_vm1, %v13473_v63 }
0x3608   :  { %10159 = vmatprep.subr.bf16.mxu0 %v13474_v30 }
0x360b   :  { %10161 = vmatpush3.bf16.msra.mxu0 %v11994_v54 }
0x360c   :  { %10168 = vmatprep.subr.bf16.mxu0 %v13474_v30 }
0x36d9   :  { %v5322_v28 = vpop.f32.mrb[30].mxu0 }
0x36da   :  { %v5323_v19 = vadd.f32 %v12427_v8, %v5322_v28  ;;  %v9693_v59 = vpop.f32.mrb[31].mxu0 }
0x36dc   :  { %v5327_v20 = vrot.slane %v5323_v19, 4  ;;  %v5328_v62 = vrot.slane %v5323_v19, 5 }
0x36de   :  { %5347 = vrot.lane.b32.xlu1 %v5328_v62, %s10856_s0  ;;  %5345 = vrot.lane.b32.xlu0 %v5327_v20, %s10856_s0  ;;  %v5331_v32 = vadd.f32 %v5327_v20, %v12098_v53  ;;  %v5332_v15 = vadd.f32 %v5328_v62, %v12101_v36 }
0x36e0   :  { %v8969_v14 = vmul.f32 -1.442695, %v5331_v32  ;;  %v8970_v52 = vmul.f32 -1.442695, %v5332_v15 }
0x36e2   :  { %10674 = vpow2.f32 %v8969_v14 }
0x36e3   :  { %10676 = vpow2.f32 %v8970_v52 }
0x36ec   :  { %v10675_v58 = vpop.eup %10674 }
0x36ed   :  { %v10677_v6 = vpop.eup %10676  ;;  %v5339_v3 = vadd.f32 1.0, %v10675_v58 }
0x36ee   :  { %v5340_v18 = vadd.f32 1.0, %v10677_v6 }
0x36ef   :  { %10678 = vrcp.f32 %v5339_v3  ;;  %v5368_v3 = vrot.slane %v12138_v45, %v12370_v35 }
0x36f0   :  { %10680 = vrcp.f32 %v5340_v18 }
0x36f9   :  { %v10679_v49 = vpop.eup %10678 }
0x36fa   :  { %v10681_v31 = vpop.eup %10680 }
0x3750   :  { %v5348_v1 = vpop.permute.xlu1 %5347  ;;  %v5346_v28 = vpop.permute.xlu0 %5345 }
0x3751   :  { %v5352_v19 = vmul.f32 %v10681_v31, %v5348_v1  ;;  %v5351_v59 = vmul.f32 %v10679_v49, %v5346_v28  ;;  %v12443_v28 = vsub.s32 5, %v11862_v48 }
0x3753   :  { %5357 = vrot.lane.b32.xlu1 %v5352_v19, %s10857_s14  ;;  %5355 = vrot.lane.b32.xlu0 %v5351_v59, %s10857_s14  ;;  %13478 = vst [vmem:[#allocation17_spill] sm:$0xff] %v12443_v28 }
0x37c5   :  { %v5358_v20 = vpop.permute.xlu1 %5357  ;;  %v5356_v62 = vpop.permute.xlu0 %5355 }
0x37c6   :  { %v5361_v32 = vadd.f32 %v5356_v62, %v12098_v53  ;;  %v5362_v15 = vadd.f32 %v5358_v20, %v12101_v36  ;;  %v5372_v20 = vrot.slane %v12140_v26, %v12370_v35  ;;  %v5706_v62 = vrot.slane %v12145_v42, %v12443_v28 }
0x37c8   :  { %10682 = vtanh.f32 %v5361_v32 }
0x37c9   :  { %10684 = vtanh.f32 %v5362_v15 }
0x37d2   :  { %v10683_v14 = vpop.eup %10682 }
0x37d3   :  { %v5378_v52 = vrot.slane %v10683_v14, %v12370_v35  ;;  %v10685_v58 = vpop.eup %10684 }
0x37d4   :  { %v5398_v6 = vrot.slane %v10685_v58, %v12370_v35 }
0x37d5   :  { %5385 = vbcast.lane.b32.xlu1 %v5378_v52, 296  ;;  %5381 = vbcast.lane.b32.xlu0 %v5378_v52, 288 }
0x37d9   :  { %5405 = vbcast.lane.b32.xlu1 %v5398_v6, 296  ;;  %5401 = vbcast.lane.b32.xlu0 %v5398_v6, 288 }
0x37dd   :  { %5409 = vbcast.lane.b32.xlu1 %v5398_v6, 304  ;;  %5389 = vbcast.lane.b32.xlu0 %v5378_v52, 304 }
0x37e1   :  { %5413 = vbcast.lane.b32.xlu1 %v5398_v6, 312  ;;  %5393 = vbcast.lane.b32.xlu0 %v5378_v52, 312 }
0x3847   :  { %v5386_v18 = vpop.permute.xlu1 %5385  ;;  %v5382_v49 = vpop.permute.xlu0 %5381 }
0x3848   :  { %v5424_v31 = vmul.f32 %v5386_v18, %v5368_v3  ;;  %v5423_v1 = vmul.f32 %v5382_v49, %v5368_v3  ;;  %v5710_v18 = vrot.slane %v12150_v41, %v12443_v28 }
0x384a   :  { %v5448_v19 = vadd.f32 %v12378_v50, %v5424_v31  ;;  %v5447_v59 = vadd.f32 %v12380_v17, %v5423_v1 }
0x384b   :  { %v5406_v32 = vpop.permute.xlu1 %5405  ;;  %v5402_v15 = vpop.permute.xlu0 %5401 }
0x384c   :  { %v5428_v14 = vmul.f32 %v5406_v32, %v5372_v20  ;;  %v5427_v52 = vmul.f32 %v5402_v15, %v5372_v20  ;;  %5467 = vperm.xlu1 %10315, %v5448_v19   ;;  %5464 = vperm.xlu0 %10314, %v5447_v59   ;;  %v12451_v58 = vmul.f32 %v5706_v62, %v5448_v19 }
0x384d   :  { %v12453_v6 = vmul.f32 %v5706_v62, %v5447_v59 }
0x384e   :  { %v5452_v50 = vadd.f32 %v12386_v5, %v5428_v14  ;;  %v5451_v17 = vadd.f32 %v12388_v24, %v5427_v52 }
0x384f   :  { %v5410_v49 = vpop.permute.xlu1 %5409  ;;  %v5390_v31 = vpop.permute.xlu0 %5389 }
0x3850   :  { %v5429_v1 = vmul.f32 %v5410_v49, %v5372_v20  ;;  %v5425_v35 = vmul.f32 %v5390_v31, %v5368_v3  ;;  %5479 = vperm.xlu1 %10315, %v5452_v50   ;;  %5476 = vperm.xlu0 %10314, %v5451_v17   ;;  %v12459_v32 = vmul.f32 %v5710_v18, %v5452_v50 }
0x3851   :  { %v12461_v15 = vmul.f32 %v5710_v18, %v5451_v17 }
0x3852   :  { %v5453_v19 = vadd.f32 %v12392_v43, %v5429_v1  ;;  %v5449_v59 = vadd.f32 %v12394_v11, %v5425_v35 }
0x3853   :  { %v5414_v5 = vpop.permute.xlu1 %5413  ;;  %v5394_v14 = vpop.permute.xlu0 %5393 }
0x3854   :  { %v5430_v24 = vmul.f32 %v5414_v5, %v5372_v20  ;;  %v5426_v52 = vmul.f32 %v5394_v14, %v5368_v3  ;;  %5482 = vperm.xlu1 %10315, %v5453_v19   ;;  %5470 = vperm.xlu0 %10314, %v5449_v59   ;;  %v12465_v38 = vmul.f32 %v5710_v18, %v5453_v19 }
0x3855   :  { %v12467_v49 = vmul.f32 %v5706_v62, %v5449_v59 }
0x3856   :  { %v5454_v31 = vadd.f32 %v12398_v37, %v5430_v24  ;;  %v5450_v50 = vadd.f32 %v12400_v2, %v5426_v52 }
0x3858   :  { %5485 = vperm.xlu1 %10315, %v5454_v31   ;;  %5473 = vperm.xlu0 %10314, %v5450_v50   ;;  %v12471_v17 = vmul.f32 %v5710_v18, %v5454_v31  ;;  %v12473_v43 = vmul.f32 %v5706_v62, %v5450_v50 }
0x38cb   :  { %v5468_v35 = vpop.permute.xlu1 %5467  ;;  %v5465_v11 = vpop.permute.xlu0 %5464 }
0x38cc   :  { %v5494_v19 = vrot.slane %v5468_v35, %v12189_v16  ;;  %v5490_v59 = vrot.slane %v5465_v11, %v12077_v21 }
0x38ce   :  { %v5495_v52 = vsel %vm4403_vm14, %v5494_v19, %v5490_v59 }
0x38cf   :  { %v5480_v20 = vpop.permute.xlu1 %5479  ;;  %v5477_v3 = vpop.permute.xlu0 %5476 }
0x38d0   :  { %v5513_v37 = vrot.slane %v5480_v20, %v12189_v16  ;;  %v5509_v2 = vrot.slane %v5477_v3, %v12077_v21 }
0x38d2   :  { %v5514_v31 = vsel %vm4403_vm14, %v5513_v37, %v5509_v2 }
0x38d3   :  { %v5483_v1 = vpop.permute.xlu1 %5482  ;;  %v5471_v5 = vpop.permute.xlu0 %5470 }
0x38d4   :  { %v5518_v14 = vrot.slane %v5483_v1, %v12192_v4  ;;  %v5499_v18 = vrot.slane %v5471_v5, %v12192_v4 }
0x38d6   :  { %v5519_v11 = vsel %vm4410_vm15, %v5518_v14, %v5514_v31  ;;  %v5500_v20 = vsel %vm4410_vm15, %v5499_v18, %v5495_v52 }
0x38d7   :  { %v5486_v62 = vpop.permute.xlu1 %5485  ;;  %v5474_v24 = vpop.permute.xlu0 %5473 }
0x38d8   :  { %v5523_v50 = vrot.slane %v5486_v62, %v12199_v33  ;;  %v5504_v35 = vrot.slane %v5474_v24, %v12199_v33 }
0x38da   :  { %v5524_v3 = vsel %vm4417_vm3, %v5523_v50, %v5519_v11  ;;  %v5505_v1 = vsel %vm4417_vm3, %v5504_v35, %v5500_v20 }
0x38db   :  { %v5525_v5 = vsel %vm564_vm2, %v5524_v3, %v5505_v1 }
0x38dc   :  { %9703 = vmatmul.mubr.msk.f32.vlgmr.msra.gmra.mrb[36].mxu1 %vm99_vm0, %v5525_v5 }
0x38dd   :  { %10164 = vmatpush3.bf16.msra.mxu1 %v11981_v12  ;;  %9724 = vmatprep.mubr.msk.f32.mxu1 %vm10853_vm1, %v13473_v63 }
0x38de   :  { %10165 = vmatprep.subr.bf16.mxu1 %v13474_v30 }
0x38e1   :  { %10167 = vmatpush3.bf16.msra.mxu1 %v11994_v54 }
0x38e2   :  { %10187 = vmatprep.subr.bf16.mxu1 %v11886_v55 }
0x39af   :  { %v5594_v19 = vpop.f32.mrb[36].mxu1 }
0x39b0   :  { %v5595_v59 = vadd.f32 %v12427_v8, %v5594_v19  ;;  %v9704_v37 = vpop.f32.mrb[37].mxu1 }
0x39b2   :  { %v5599_v2 = vrot.slane %v5595_v59, 3  ;;  %v5600_v14 = vrot.slane %v5595_v59, 4 }
0x39b4   :  { %5619 = vrot.lane.b32.xlu1 %v5600_v14, %s10856_s0  ;;  %5617 = vrot.lane.b32.xlu0 %v5599_v2, %s10856_s0  ;;  %v5603_v18 = vadd.f32 %v5599_v2, %v12098_v53  ;;  %v5604_v62 = vadd.f32 %v5600_v14, %v12101_v36 }
0x39b6   :  { %v8972_v24 = vmul.f32 -1.442695, %v5603_v18  ;;  %v8973_v52 = vmul.f32 -1.442695, %v5604_v62 }
0x39b8   :  { %10686 = vpow2.f32 %v8972_v24 }
0x39b9   :  { %10688 = vpow2.f32 %v8973_v52 }
0x39c2   :  { %v10687_v31 = vpop.eup %10686 }
0x39c3   :  { %v10689_v50 = vpop.eup %10688  ;;  %v5611_v35 = vadd.f32 1.0, %v10687_v31 }
0x39c4   :  { %v5612_v11 = vadd.f32 1.0, %v10689_v50  ;;  %v5640_v50 = vrot.slane %v12138_v45, %v12443_v28 }
0x39c5   :  { %10690 = vrcp.f32 %v5611_v35 }
0x39c6   :  { %10692 = vrcp.f32 %v5612_v11 }
0x39cf   :  { %v10691_v20 = vpop.eup %10690 }
0x39d0   :  { %v10693_v3 = vpop.eup %10692 }
0x3a26   :  { %v5620_v1 = vpop.permute.xlu1 %5619  ;;  %v5618_v5 = vpop.permute.xlu0 %5617 }
0x3a27   :  { %v5624_v19 = vmul.f32 %v10693_v3, %v5620_v1  ;;  %v5623_v59 = vmul.f32 %v10691_v20, %v5618_v5  ;;  %v12511_v1 = vsub.s32 6, %v11862_v48 }
0x3a29   :  { %5629 = vrot.lane.b32.xlu1 %v5624_v19, %s10857_s14  ;;  %5627 = vrot.lane.b32.xlu0 %v5623_v59, %s10857_s14  ;;  %v5644_v59 = vrot.slane %v12140_v26, %v12443_v28 }
0x3a9b   :  { %v5630_v37 = vpop.permute.xlu1 %5629  ;;  %v5628_v2 = vpop.permute.xlu0 %5627 }
0x3a9c   :  { %v5633_v14 = vadd.f32 %v5628_v2, %v12098_v53  ;;  %v5634_v18 = vadd.f32 %v5630_v37, %v12101_v36  ;;  %v5978_v37 = vrot.slane %v12145_v42, %v12511_v1 }
0x3a9e   :  { %10694 = vtanh.f32 %v5633_v14 }
0x3a9f   :  { %10696 = vtanh.f32 %v5634_v18 }
0x3aa8   :  { %v10695_v62 = vpop.eup %10694 }
0x3aa9   :  { %v5650_v24 = vrot.slane %v10695_v62, %v12443_v28  ;;  %v10697_v52 = vpop.eup %10696 }
0x3aaa   :  { %v5670_v31 = vrot.slane %v10697_v52, %v12443_v28 }
0x3aab   :  { %5657 = vbcast.lane.b32.xlu1 %v5650_v24, 296  ;;  %5653 = vbcast.lane.b32.xlu0 %v5650_v24, 288 }
0x3aaf   :  { %5677 = vbcast.lane.b32.xlu1 %v5670_v31, 296  ;;  %5673 = vbcast.lane.b32.xlu0 %v5670_v31, 288 }
0x3ab3   :  { %5681 = vbcast.lane.b32.xlu1 %v5670_v31, 304  ;;  %5661 = vbcast.lane.b32.xlu0 %v5650_v24, 304 }
0x3ab7   :  { %5685 = vbcast.lane.b32.xlu1 %v5670_v31, 312  ;;  %5665 = vbcast.lane.b32.xlu0 %v5650_v24, 312  ;;  %v5982_v31 = vrot.slane %v12150_v41, %v12511_v1 }
0x3b1d   :  { %v5658_v35 = vpop.permute.xlu1 %5657  ;;  %v5654_v11 = vpop.permute.xlu0 %5653 }
0x3b1e   :  { %v5696_v20 = vmul.f32 %v5658_v35, %v5640_v50  ;;  %v5695_v3 = vmul.f32 %v5654_v11, %v5640_v50 }
0x3b20   :  { %v5720_v5 = vadd.f32 %v12451_v58, %v5696_v20  ;;  %v5719_v19 = vadd.f32 %v12453_v6, %v5695_v3 }
0x3b21   :  { %v5678_v2 = vpop.permute.xlu1 %5677  ;;  %v5674_v14 = vpop.permute.xlu0 %5673 }
0x3b22   :  { %v5700_v18 = vmul.f32 %v5678_v2, %v5644_v59  ;;  %v5699_v62 = vmul.f32 %v5674_v14, %v5644_v59  ;;  %5739 = vperm.xlu1 %10315, %v5720_v5   ;;  %5736 = vperm.xlu0 %10314, %v5719_v19   ;;  %v12519_v24 = vmul.f32 %v5978_v37, %v5720_v5 }
0x3b23   :  { %v12521_v52 = vmul.f32 %v5978_v37, %v5719_v19 }
0x3b24   :  { %v5724_v58 = vadd.f32 %v12459_v32, %v5700_v18  ;;  %v5723_v6 = vadd.f32 %v12461_v15, %v5699_v62 }
0x3b25   :  { %v5682_v35 = vpop.permute.xlu1 %5681  ;;  %v5662_v11 = vpop.permute.xlu0 %5661 }
0x3b26   :  { %v5701_v20 = vmul.f32 %v5682_v35, %v5644_v59  ;;  %v5697_v3 = vmul.f32 %v5662_v11, %v5640_v50  ;;  %5751 = vperm.xlu1 %10315, %v5724_v58   ;;  %5748 = vperm.xlu0 %10314, %v5723_v6   ;;  %v12527_v2 = vmul.f32 %v5982_v31, %v5724_v58 }
0x3b27   :  { %v12529_v14 = vmul.f32 %v5982_v31, %v5723_v6 }
0x3b28   :  { %v5725_v5 = vadd.f32 %v12465_v38, %v5701_v20  ;;  %v5721_v19 = vadd.f32 %v12467_v49, %v5697_v3 }
0x3b29   :  { %v5686_v32 = vpop.permute.xlu1 %5685  ;;  %v5666_v18 = vpop.permute.xlu0 %5665 }
0x3b2a   :  { %v5702_v15 = vmul.f32 %v5686_v32, %v5644_v59  ;;  %v5698_v62 = vmul.f32 %v5666_v18, %v5640_v50  ;;  %5754 = vperm.xlu1 %10315, %v5725_v5   ;;  %5742 = vperm.xlu0 %10314, %v5721_v19   ;;  %v12533_v28 = vmul.f32 %v5982_v31, %v5725_v5 }
0x3b2b   :  { %v12535_v35 = vmul.f32 %v5978_v37, %v5721_v19 }
0x3b2c   :  { %v5726_v11 = vadd.f32 %v12471_v17, %v5702_v15  ;;  %v5722_v58 = vadd.f32 %v12473_v43, %v5698_v62 }
0x3b2e   :  { %5757 = vperm.xlu1 %10315, %v5726_v11   ;;  %5745 = vperm.xlu0 %10314, %v5722_v58   ;;  %v12539_v6 = vmul.f32 %v5982_v31, %v5726_v11  ;;  %v12541_v38 = vmul.f32 %v5978_v37, %v5722_v58 }
0x3ba1   :  { %v5740_v49 = vpop.permute.xlu1 %5739  ;;  %v5737_v20 = vpop.permute.xlu0 %5736 }
0x3ba2   :  { %v5766_v5 = vrot.slane %v5740_v49, %v12189_v16  ;;  %v5762_v19 = vrot.slane %v5737_v20, %v12077_v21 }
0x3ba4   :  { %v5767_v62 = vsel %vm4403_vm14, %v5766_v5, %v5762_v19 }
0x3ba5   :  { %v5752_v59 = vpop.permute.xlu1 %5751  ;;  %v5749_v50 = vpop.permute.xlu0 %5748 }
0x3ba6   :  { %v5785_v17 = vrot.slane %v5752_v59, %v12189_v16  ;;  %v5781_v43 = vrot.slane %v5749_v50, %v12077_v21 }
0x3ba8   :  { %v5786_v11 = vsel %vm4403_vm14, %v5785_v17, %v5781_v43 }
0x3ba9   :  { %v5755_v3 = vpop.permute.xlu1 %5754  ;;  %v5743_v32 = vpop.permute.xlu0 %5742 }
0x3baa   :  { %v5790_v18 = vrot.slane %v5755_v3, %v12192_v4  ;;  %v5771_v31 = vrot.slane %v5743_v32, %v12192_v4 }
0x3bac   :  { %v5791_v20 = vsel %vm4410_vm15, %v5790_v18, %v5786_v11  ;;  %v5772_v59 = vsel %vm4410_vm15, %v5771_v31, %v5767_v62 }
0x3bad   :  { %v5758_v37 = vpop.permute.xlu1 %5757  ;;  %v5746_v15 = vpop.permute.xlu0 %5745 }
0x3bae   :  { %v5795_v58 = vrot.slane %v5758_v37, %v12199_v33  ;;  %v5776_v49 = vrot.slane %v5746_v15, %v12199_v33 }
0x3bb0   :  { %v5796_v50 = vsel %vm4417_vm3, %v5795_v58, %v5791_v20  ;;  %v5777_v3 = vsel %vm4417_vm3, %v5776_v49, %v5772_v59 }
0x3bb1   :  { %v5797_v32 = vsel %vm564_vm2, %v5796_v50, %v5777_v3 }
0x3bb2   :  { %9714 = vmatmul.mubr.msk.f32.vlgmr.msra.gmra.mrb[32].mxu0 %vm99_vm0, %v5797_v32 }
0x3bb3   :  { %9751 = vmatprep.mubr.msk.f32.mxu0 %vm10853_vm1, %v13473_v63 }
0x3c85   :  { %v5866_v5 = vpop.f32.mrb[32].mxu0 }
0x3c86   :  { %v5867_v19 = vadd.f32 %v12427_v8, %v5866_v5  ;;  %v9715_v17 = vpop.f32.mrb[33].mxu0 }
0x3c88   :  { %v5871_v43 = vrot.slane %v5867_v19, 2  ;;  %v5872_v37 = vrot.slane %v5867_v19, 3 }
0x3c8a   :  { %5891 = vrot.lane.b32.xlu1 %v5872_v37, %s10856_s0  ;;  %5889 = vrot.lane.b32.xlu0 %v5871_v43, %s10856_s0  ;;  %v5875_v18 = vadd.f32 %v5871_v43, %v12098_v53  ;;  %v5876_v31 = vadd.f32 %v5872_v37, %v12101_v36 }
0x3c8c   :  { %v8975_v15 = vmul.f32 -1.442695, %v5875_v18  ;;  %v8976_v62 = vmul.f32 -1.442695, %v5876_v31 }
0x3c8e   :  { %10698 = vpow2.f32 %v8975_v15 }
0x3c8f   :  { %10700 = vpow2.f32 %v8976_v62 }
0x3c98   :  { %v10699_v11 = vpop.eup %10698 }
0x3c99   :  { %v10701_v58 = vpop.eup %10700  ;;  %v5883_v49 = vadd.f32 1.0, %v10699_v11 }
0x3c9a   :  { %v5884_v20 = vadd.f32 1.0, %v10701_v58  ;;  %v5912_v58 = vrot.slane %v12138_v45, %v12511_v1 }
0x3c9b   :  { %10702 = vrcp.f32 %v5883_v49 }
0x3c9c   :  { %10704 = vrcp.f32 %v5884_v20 }
0x3ca5   :  { %v10703_v59 = vpop.eup %10702 }
0x3ca6   :  { %v10705_v50 = vpop.eup %10704 }
0x3cfc   :  { %v5892_v3 = vpop.permute.xlu1 %5891  ;;  %v5890_v32 = vpop.permute.xlu0 %5889 }
0x3cfd   :  { %v5896_v5 = vmul.f32 %v10705_v50, %v5892_v3  ;;  %v5895_v19 = vmul.f32 %v10703_v59, %v5890_v32 }
0x3cff   :  { %5901 = vrot.lane.b32.xlu1 %v5896_v5, %s10857_s14  ;;  %5899 = vrot.lane.b32.xlu0 %v5895_v19, %s10857_s14  ;;  %v5916_v5 = vrot.slane %v12140_v26, %v12511_v1  ;;  %v6250_v19 = vrot.slane %v12145_v42, %v11870_v56 }
0x3d71   :  { %v5902_v17 = vpop.permute.xlu1 %5901  ;;  %v5900_v43 = vpop.permute.xlu0 %5899 }
0x3d72   :  { %v5905_v37 = vadd.f32 %v5900_v43, %v12098_v53  ;;  %v5906_v18 = vadd.f32 %v5902_v17, %v12101_v36 }
0x3d74   :  { %10706 = vtanh.f32 %v5905_v37 }
0x3d75   :  { %10708 = vtanh.f32 %v5906_v18 }
0x3d7e   :  { %v10707_v31 = vpop.eup %10706 }
0x3d7f   :  { %v5922_v15 = vrot.slane %v10707_v31, %v12511_v1  ;;  %v10709_v62 = vpop.eup %10708 }
0x3d80   :  { %v5942_v11 = vrot.slane %v10709_v62, %v12511_v1  ;;  %v6254_v62 = vrot.slane %v12150_v41, %v11870_v56 }
0x3d81   :  { %5929 = vbcast.lane.b32.xlu1 %v5922_v15, 296  ;;  %5925 = vbcast.lane.b32.xlu0 %v5922_v15, 288 }
0x3d85   :  { %5949 = vbcast.lane.b32.xlu1 %v5942_v11, 296  ;;  %5945 = vbcast.lane.b32.xlu0 %v5942_v11, 288 }
0x3d89   :  { %5953 = vbcast.lane.b32.xlu1 %v5942_v11, 304  ;;  %5933 = vbcast.lane.b32.xlu0 %v5922_v15, 304 }
0x3d8d   :  { %5957 = vbcast.lane.b32.xlu1 %v5942_v11, 312  ;;  %5937 = vbcast.lane.b32.xlu0 %v5922_v15, 312 }
0x3df3   :  { %v5930_v49 = vpop.permute.xlu1 %5929  ;;  %v5926_v20 = vpop.permute.xlu0 %5925 }
0x3df4   :  { %v5968_v59 = vmul.f32 %v5930_v49, %v5912_v58  ;;  %v5967_v50 = vmul.f32 %v5926_v20, %v5912_v58 }
0x3df6   :  { %v5992_v3 = vadd.f32 %v12519_v24, %v5968_v59  ;;  %v5991_v32 = vadd.f32 %v12521_v52, %v5967_v50 }
0x3df7   :  { %v5950_v17 = vpop.permute.xlu1 %5949  ;;  %v5946_v43 = vpop.permute.xlu0 %5945 }
0x3df8   :  { %v5972_v37 = vmul.f32 %v5950_v17, %v5916_v5  ;;  %v5971_v18 = vmul.f32 %v5946_v43, %v5916_v5  ;;  %6011 = vperm.xlu1 %10315, %v5992_v3   ;;  %6008 = vperm.xlu0 %10314, %v5991_v32   ;;  %v12580_v31 = vmul.f32 %v6250_v19, %v5992_v3 }
0x3df9   :  { %v12582_v15 = vmul.f32 %v6250_v19, %v5991_v32 }
0x3dfa   :  { %v5996_v24 = vadd.f32 %v12527_v2, %v5972_v37  ;;  %v5995_v52 = vadd.f32 %v12529_v14, %v5971_v18 }
0x3dfb   :  { %v5954_v11 = vpop.permute.xlu1 %5953  ;;  %v5934_v49 = vpop.permute.xlu0 %5933 }
0x3dfc   :  { %v5973_v42 = vmul.f32 %v5954_v11, %v5916_v5  ;;  %v5969_v20 = vmul.f32 %v5934_v49, %v5912_v58  ;;  %6023 = vperm.xlu1 %10315, %v5996_v24   ;;  %6020 = vperm.xlu0 %10314, %v5995_v52   ;;  %v12588_v59 = vmul.f32 %v6254_v62, %v5996_v24 }
0x3dfd   :  { %v12590_v50 = vmul.f32 %v6254_v62, %v5995_v52 }
0x3dfe   :  { %v5997_v3 = vadd.f32 %v12533_v28, %v5973_v42  ;;  %v5993_v32 = vadd.f32 %v12535_v35, %v5969_v20 }
0x3dff   :  { %v5958_v2 = vpop.permute.xlu1 %5957  ;;  %v5938_v17 = vpop.permute.xlu0 %5937 }
0x3e00   :  { %v5974_v14 = vmul.f32 %v5958_v2, %v5916_v5  ;;  %v5970_v43 = vmul.f32 %v5938_v17, %v5912_v58  ;;  %6026 = vperm.xlu1 %10315, %v5997_v3   ;;  %6014 = vperm.xlu0 %10314, %v5993_v32   ;;  %v12594_v41 = vmul.f32 %v6254_v62, %v5997_v3 }
0x3e01   :  { %v12596_v37 = vmul.f32 %v6250_v19, %v5993_v32 }
0x3e02   :  { %v5998_v18 = vadd.f32 %v12539_v6, %v5974_v14  ;;  %v5994_v24 = vadd.f32 %v12541_v38, %v5970_v43 }
0x3e04   :  { %6029 = vperm.xlu1 %10315, %v5998_v18   ;;  %6017 = vperm.xlu0 %10314, %v5994_v24   ;;  %v12600_v52 = vmul.f32 %v6254_v62, %v5998_v18  ;;  %v12602_v28 = vmul.f32 %v6250_v19, %v5994_v24 }
0x3e77   :  { %v6012_v35 = vpop.permute.xlu1 %6011  ;;  %v6009_v11 = vpop.permute.xlu0 %6008 }
0x3e78   :  { %v6038_v20 = vrot.slane %v6012_v35, %v12189_v16  ;;  %v6034_v3 = vrot.slane %v6009_v11, %v12077_v21 }
0x3e7a   :  { %v6039_v17 = vsel %vm4403_vm14, %v6038_v20, %v6034_v3 }
0x3e7b   :  { %v6024_v5 = vpop.permute.xlu1 %6023  ;;  %v6021_v58 = vpop.permute.xlu0 %6020 }
0x3e7c   :  { %v6057_v6 = vrot.slane %v6024_v5, %v12189_v16  ;;  %v6053_v38 = vrot.slane %v6021_v58, %v12077_v21 }
0x3e7e   :  { %v6058_v14 = vsel %vm4403_vm14, %v6057_v6, %v6053_v38 }
0x3e7f   :  { %v6027_v49 = vpop.permute.xlu1 %6026  ;;  %v6015_v42 = vpop.permute.xlu0 %6014 }
0x3e80   :  { %v6062_v32 = vrot.slane %v6027_v49, %v12192_v4  ;;  %v6043_v62 = vrot.slane %v6015_v42, %v12192_v4 }
0x3e82   :  { %v6063_v24 = vsel %vm4410_vm15, %v6062_v32, %v6058_v14  ;;  %v6044_v35 = vsel %vm4410_vm15, %v6043_v62, %v6039_v17 }
0x3e83   :  { %v6030_v19 = vpop.permute.xlu1 %6029  ;;  %v6018_v2 = vpop.permute.xlu0 %6017 }
0x3e84   :  { %v6067_v43 = vrot.slane %v6030_v19, %v12199_v33  ;;  %v6048_v18 = vrot.slane %v6018_v2, %v12199_v33 }
0x3e86   :  { %v6068_v11 = vsel %vm4417_vm3, %v6067_v43, %v6063_v24  ;;  %v6049_v5 = vsel %vm4417_vm3, %v6048_v18, %v6044_v35 }
0x3e87   :  { %v6069_v58 = vsel %vm564_vm2, %v6068_v11, %v6049_v5 }
0x3e88   :  { %9725 = vmatmul.mubr.msk.f32.vlgmr.msra.gmra.mrb[38].mxu1 %vm99_vm0, %v6069_v58  ;;  %v6184_v58 = vrot.slane %v12138_v45, %v11870_v56 }
0x3e89   :  { %10189 = vmatpush3.bf16.msra.mxu1 %v11886_v55 }
0x3e8a   :  { %10191 = vmatprep.subr.bf16.mxu1 %v11894_v47 }
0x3e8d   :  { %10193 = vmatpush3.bf16.msra.mxu1 %v11894_v47 }
0x3e8e   :  { %10195 = vmatprep.subr.bf16.mxu1 %v11910_v25 }
0x3e91   :  { %10197 = vmatpush3.bf16.msra.mxu1 %v11910_v25 }
0x3e92   :  { %10199 = vmatprep.subr.bf16.mxu1 %v11922_v61 }
0x3e95   :  { %10201 = vmatpush3.bf16.msra.mxu1 %v11922_v61 }
0x3e96   :  { %10203 = vmatprep.subr.bf16.mxu1 %v11934_v22 }
0x3e99   :  { %10205 = vmatpush3.bf16.msra.mxu1 %v11934_v22 }
0x3e9a   :  { %10207 = vmatprep.subr.bf16.mxu1 %v11946_v40 }
0x3e9d   :  { %10209 = vmatpush3.bf16.msra.mxu1 %v11946_v40 }
0x3e9e   :  { %10211 = vmatprep.subr.bf16.mxu1 %v12014_v57 }
0x3ea1   :  { %10213 = vmatpush3.bf16.msra.mxu1 %v12014_v57 }
0x3ea2   :  { %10215 = vmatprep.subr.bf16.mxu1 %v12024_v51 }
0x3ea5   :  { %10217 = vmatpush3.bf16.msra.mxu1 %v12024_v51 }
0x3ea6   :  { %10230 = vmatprep.subr.bf16.mxu1 %v13474_v30 }
0x3f5b   :  { %v6138_v55 = vpop.f32.mrb[38].mxu1 }
0x3f5c   :  { %v6139_v47 = vadd.f32 %v12427_v8, %v6138_v55  ;;  %v9726_v25 = vpop.f32.mrb[39].mxu1 }
0x3f5e   :  { %v6143_v61 = vrot.slane %v6139_v47, 1  ;;  %v6144_v22 = vrot.slane %v6139_v47, 2 }
0x3f60   :  { %6163 = vrot.lane.b32.xlu1 %v6144_v22, %s10856_s0  ;;  %6161 = vrot.lane.b32.xlu0 %v6143_v61, %s10856_s0  ;;  %v6147_v40 = vadd.f32 %v6143_v61, %v12098_v53  ;;  %v6148_v57 = vadd.f32 %v6144_v22, %v12101_v36 }
0x3f62   :  { %v8978_v49 = vmul.f32 -1.442695, %v6147_v40  ;;  %v8979_v42 = vmul.f32 -1.442695, %v6148_v57  ;;  %v6188_v57 = vrot.slane %v12140_v26, %v11870_v56 }
0x3f64   :  { %10710 = vpow2.f32 %v8978_v49 }
0x3f65   :  { %10712 = vpow2.f32 %v8979_v42 }
0x3f6e   :  { %v10711_v51 = vpop.eup %10710 }
0x3f6f   :  { %v10713_v20 = vpop.eup %10712  ;;  %v6155_v3 = vadd.f32 1.0, %v10711_v51 }
0x3f70   :  { %v6156_v6 = vadd.f32 1.0, %v10713_v20 }
0x3f71   :  { %10714 = vrcp.f32 %v6155_v3 }
0x3f72   :  { %10716 = vrcp.f32 %v6156_v6  ;;  %v3918_v6 = vld [vmem:[%s13411_s22] sm:$0xff] }
0x3f7b   :  { %v10715_v8 = vpop.eup %10714 }
0x3f7c   :  { %v10717_v38 = vpop.eup %10716 }
0x3fd2   :  { %v6164_v32 = vpop.permute.xlu1 %6163  ;;  %v6162_v62 = vpop.permute.xlu0 %6161 }
0x3fd3   :  { %v6168_v19 = vmul.f32 %v10717_v38, %v6164_v32  ;;  %v6167_v2 = vmul.f32 %v10715_v8, %v6162_v62  ;;  %v3920_v62 = vld [vmem:[%s13411_s22 + $0x10] sm:$0xff] }
0x3fd5   :  { %6173 = vrot.lane.b32.xlu1 %v6168_v19, %s10857_s14  ;;  %6171 = vrot.lane.b32.xlu0 %v6167_v2, %s10857_s14  ;;  %v3921_v19 = vld [vmem:[%s13411_s22 + $0x18] sm:$0xff] }
0x4047   :  { %v6174_v17 = vpop.permute.xlu1 %6173  ;;  %v6172_v14 = vpop.permute.xlu0 %6171 }
0x4048   :  { %v6177_v43 = vadd.f32 %v6172_v14, %v12098_v53  ;;  %v6178_v18 = vadd.f32 %v6174_v17, %v12101_v36  ;;  %v12673_v14 = vpack.c.bf16 %v3921_v19, %v3920_v62 }
0x404a   :  { %10718 = vtanh.f32 %v6177_v43 }
0x404b   :  { %10720 = vtanh.f32 %v6178_v18 }
0x4054   :  { %v10719_v24 = vpop.eup %10718 }
0x4055   :  { %v6194_v35 = vrot.slane %v10719_v24, %v11870_v56  ;;  %v10721_v11 = vpop.eup %10720 }
0x4056   :  { %v6214_v5 = vrot.slane %v10721_v11, %v11870_v56 }
0x4057   :  { %6201 = vbcast.lane.b32.xlu1 %v6194_v35, 296  ;;  %6197 = vbcast.lane.b32.xlu0 %v6194_v35, 288 }
0x405b   :  { %6221 = vbcast.lane.b32.xlu1 %v6214_v5, 296  ;;  %6217 = vbcast.lane.b32.xlu0 %v6214_v5, 288 }
0x405f   :  { %6225 = vbcast.lane.b32.xlu1 %v6214_v5, 304  ;;  %6205 = vbcast.lane.b32.xlu0 %v6194_v35, 304 }
0x4063   :  { %6229 = vbcast.lane.b32.xlu1 %v6214_v5, 312  ;;  %6209 = vbcast.lane.b32.xlu0 %v6194_v35, 312  ;;  %v3924_v5 = vld [vmem:[%s13411_s22 + $0x30] sm:$0xff] }
0x40c9   :  { %v6202_v55 = vpop.permute.xlu1 %6201  ;;  %v6198_v47 = vpop.permute.xlu0 %6197 }
0x40ca   :  { %v6240_v25 = vmul.f32 %v6202_v55, %v6184_v58  ;;  %v6239_v61 = vmul.f32 %v6198_v47, %v6184_v58  ;;  %v3927_v47 = vld [vmem:[%s13411_s22 + $0x48] sm:$0xff] }
0x40cc   :  { %v6264_v22 = vadd.f32 %v12580_v31, %v6240_v25  ;;  %v6263_v40 = vadd.f32 %v12582_v15, %v6239_v61  ;;  %v3919_v31 = vld [vmem:[%s13411_s22 + $0x8] sm:$0xff]  ;;  %v3928_v61 = vld [vmem:[%s13411_s22 + $0x50] sm:$0xff] }
0x40cd   :  { %v6222_v49 = vpop.permute.xlu1 %6221  ;;  %v6218_v42 = vpop.permute.xlu0 %6217  ;;  %v12661_v8 = vpack.c.bf16 %v3919_v31, %v3918_v6  ;;  %v6331_v6 = vadd.s32 4294967240, %v12073_v46 }
0x40ce   :  { %v6244_v51 = vmul.f32 %v6222_v49, %v6188_v57  ;;  %v6243_v20 = vmul.f32 %v6218_v42, %v6188_v57  ;;  %6292 = vperm.xlu1 %10315, %v6264_v22   ;;  %6289 = vperm.xlu0 %10314, %v6263_v40   ;;  %v3929_v22 = vld [vmem:[%s13411_s22 + $0x58] sm:$0xff]  ;;  %v6317_v42 = vadd.s32 4294967256, %v12073_v46 }
0x40cf   :  { %10170 = vmatpush3.bf16.msra.mxu0 %v12661_v8  ;;  %v12722_v40 = vpack.c.bf16 %v3929_v22, %v3928_v61 }
0x40d0   :  { %v6268_v3 = vadd.f32 %v12588_v59, %v6244_v51  ;;  %v6267_v45 = vadd.f32 %v12590_v50, %v6243_v20  ;;  %10171 = vmatprep.subr.bf16.mxu0 %v13474_v30  ;;  %v6312_v51 = vadd.s32 4294967264, %v12073_v46  ;;  %v12731_v31 = vsub.s32 %v6317_v42, %v11862_v48 }
0x40d1   :  { %v6226_v15 = vpop.permute.xlu1 %6225  ;;  %v6206_v26 = vpop.permute.xlu0 %6205 }
0x40d2   :  { %v6245_v38 = vmul.f32 %v6226_v15, %v6188_v57  ;;  %v6241_v32 = vmul.f32 %v6206_v26, %v6184_v58  ;;  %6304 = vperm.xlu1 %10315, %v6268_v3   ;;  %6301 = vperm.xlu0 %10314, %v6267_v45   ;;  %v6324_v45 = vadd.s32 4294967248, %v12073_v46  ;;  %v12734_v15 = vsub.s32 %v6312_v51, %v11862_v48 }
0x40d3   :  { %10173 = vmatpush3.bf16.msra.mxu0 %v12673_v14 }
0x40d4   :  { %v6269_v59 = vadd.f32 %v12594_v41, %v6245_v38  ;;  %v6265_v50 = vadd.f32 %v12596_v37, %v6241_v32  ;;  %v3922_v41 = vld [vmem:[%s13411_s22 + $0x20] sm:$0xff]  ;;  %v3923_v37 = vld [vmem:[%s13411_s22 + $0x28] sm:$0xff]  ;;  %10174 = vmatprep.subr.bf16.mxu0 %v13474_v30  ;;  %v12737_v26 = vsub.s32 %v6324_v45, %v11862_v48 }
0x40d5   :  { %v6230_v2 = vpop.permute.xlu1 %6229  ;;  %v6210_v17 = vpop.permute.xlu0 %6209  ;;  %v12682_v24 = vpack.c.bf16 %v3923_v37, %v3922_v41 }
0x40d6   :  { %v6246_v43 = vmul.f32 %v6230_v2, %v6188_v57  ;;  %v6242_v18 = vmul.f32 %v6210_v17, %v6184_v58  ;;  %6307 = vperm.xlu1 %10315, %v6269_v59   ;;  %6295 = vperm.xlu0 %10314, %v6265_v50   ;;  %v3925_v58 = vld [vmem:[%s13411_s22 + $0x38] sm:$0xff]  ;;  %v12740_v59 = vsub.s32 %v6331_v6, %v11862_v48 }
0x40d7   :  { %10176 = vmatpush3.bf16.msra.mxu0 %v12682_v24  ;;  %v12694_v55 = vpack.c.bf16 %v3925_v58, %v3924_v5 }
0x40d8   :  { %v6270_v35 = vadd.f32 %v12600_v52, %v6246_v43  ;;  %v6266_v11 = vadd.f32 %v12602_v28, %v6242_v18  ;;  %v6273_v52 = vrot.slane %v11873_v23, 7  ;;  %10177 = vmatprep.subr.bf16.mxu0 %v13474_v30  ;;  %v3926_v28 = vld [vmem:[%s13411_s22 + $0x40] sm:$0xff] }
0x40d9   :  { %v12708_v25 = vpack.c.bf16 %v3927_v47, %v3926_v28 }
0x40da   :  { %6310 = vperm.xlu1 %10315, %v6270_v35   ;;  %6298 = vperm.xlu0 %10314, %v6266_v11  }
0x40db   :  { %10179 = vmatpush3.bf16.msra.mxu0 %v12694_v55 }
0x40dc   :  { %10180 = vmatprep.subr.bf16.mxu0 %v13474_v30 }
0x40de   :  { %6276 = vrot.lane.b32.xlu1 %v6273_v52, %s10856_s0  ;;  %6274 = vrot.lane.b32.xlu0 %v11884_v44, %s10856_s0 }
0x40df   :  { %10182 = vmatpush3.bf16.msra.mxu0 %v12708_v25 }
0x40e0   :  { %10183 = vmatprep.subr.bf16.mxu0 %v13474_v30 }
0x40e2   :  { %6361 = vrot.lane.b32.xlu1 %v6273_v52, %s10857_s14  ;;  %6359 = vrot.lane.b32.xlu0 %v11884_v44, %s10857_s14 }
0x40e3   :  { %10185 = vmatpush3.bf16.msra.mxu0 %v12722_v40 }
0x40e4   :  { %10218 = vmatprep.subr.bf16.mxu0 %v13474_v30 }
0x414d   :  { %v6293_v57 = vpop.permute.xlu1 %6292  ;;  %v6290_v49 = vpop.permute.xlu0 %6289 }
0x414e   :  { %v6321_v50 = vrot.slane %v6293_v57, %v12731_v31  ;;  %v6316_v62 = vrot.slane %v6290_v49, %v12734_v15 }
0x4150   :  { %v6323_v35 = vsel %vm6322_vm4, %v6321_v50, %v6316_v62  ;;  %v8980_v62 = vld [vmem:[%s13412_s23] ss:$0 sm:$0xff] }
0x4151   :  { %v6305_v20 = vpop.permute.xlu1 %6304  ;;  %v6302_v3 = vpop.permute.xlu0 %6301 }
0x4152   :  { %v6345_v46 = vrot.slane %v6305_v20, %v12731_v31  ;;  %v6341_v19 = vrot.slane %v6302_v3, %v12734_v15 }
0x4154   :  { %v6346_v11 = vsel %vm6322_vm4, %v6345_v46, %v6341_v19 }
0x4155   :  { %v6308_v38 = vpop.permute.xlu1 %6307  ;;  %v6296_v32 = vpop.permute.xlu0 %6295 }
0x4156   :  { %v6350_v2 = vrot.slane %v6308_v38, %v12737_v26  ;;  %v6328_v17 = vrot.slane %v6296_v32, %v12737_v26  ;;  %v10859_v38 = vmov 1966171168  }
0x4157   :  { %v6456_v32 = vunpack.c.l.s4 %v10859_v38 }
0x4158   :  { %v6351_v58 = vsel %vm6329_vm5, %v6350_v2, %v6346_v11  ;;  %v6330_v52 = vsel %vm6329_vm5, %v6328_v17, %v6323_v35 }
0x4159   :  { %v6311_v43 = vpop.permute.xlu1 %6310  ;;  %v6299_v18 = vpop.permute.xlu0 %6298  ;;  %v6457_v50 = vunpack.c.0.s8 %v6456_v32  ;;  %v13480_v32 = vunpack.i.h.bf16 %v12042_v39 }
0x415a   :  { %v6355_v41 = vrot.slane %v6311_v43, %v12740_v59  ;;  %v6335_v37 = vrot.slane %v6299_v18, %v12740_v59 }
0x415b   :  { %v6460_v2 = vsub.s32 %v6457_v50, %v11862_v48 }
0x415c   :  { %v6356_v47 = vsel %vm6336_vm6, %v6355_v41, %v6351_v58  ;;  %v6337_v61 = vsel %vm6336_vm6, %v6335_v37, %v6330_v52 }
0x415d   :  { %v6277_v5 = vpop.permute.xlu1 %6276  ;;  %v6275_v28 = vpop.permute.xlu0 %6274 }
0x415e   :  { %v6366_v22 = vsel %vm99_vm0, %v6277_v5, %v6356_v47  ;;  %v6365_v57 = vsel %vm99_vm0, %v6275_v28, %v6337_v61 }
0x4161   :  { %v6362_v49 = vpop.permute.xlu1 %6361  ;;  %v6360_v42 = vpop.permute.xlu0 %6359 }
0x4162   :  { %v6368_v51 = vsel %vm3977_vm11, %v6366_v22, %v6362_v49  ;;  %v6367_v20 = vsel %vm3977_vm11, %v6365_v57, %v6360_v42 }
0x4163   :  { %v6379_v3 = vrot.slane %v6368_v51, 7  ;;  %v6378_v45 = vrot.slane %v6367_v20, 7 }
0x4165   :  { %v6380_v6 = vsel %vm6377_vm7, %v6378_v45, %v6379_v3 }
0x4166   :  { %9752 = vmatmul.mubr.msk.f32.vlgmr.msra.gmra.mrb[34].mxu0 %vm3980_vm12, %v6380_v6  ;;  %v13479_v6 = vunpack.i.l.bf16 %v12042_v39 }
0x4167   :  { %10220 = vmatpush3.bf16.msra.mxu0 %v11981_v12  ;;  %9797 = vmatprep.mubr.msk.f32.mxu0 %vm10853_vm1, %v13473_v63 }
0x4168   :  { %10221 = vmatprep.subr.bf16.mxu0 %v13474_v30 }
0x416b   :  { %10223 = vmatpush3.bf16.msra.mxu0 %v11994_v54 }
0x416c   :  { %10224 = vmatprep.subr.bf16.mxu0 %v13474_v30 }
0x4239   :  { %v6449_v46 = vpop.f32.mrb[34].mxu0 }
0x423a   :  { %v12770_v19 = vadd.f32 %v8980_v62, %v6449_v46  ;;  %v9753_v17 = vpop.f32.mrb[35].mxu0 }
0x423c   :  { %v6453_v43 = vmax.f32 %v12770_v19, 0.0  ;;  %v10827_v19 = vld [vmem:[%s13412_s23] ss:$0 sm:$0xff] }
0x423e   :  { %v6461_v18 = vrot.slane %v6453_v43, %v6460_v2 }
0x4240   :  { %v6462_v41 = vcombine.high %v6461_v18, %v6461_v18  ;;  %v6469_v37 = vrot.slane %v6461_v18, %v6460_v2 }
0x4242   :  { %v6476_v35 = vrot.slane %v6462_v41, %v6460_v2  ;;  %v6480_v11 = vrot.slane %v6469_v37, %v12105_v10  ;;  %v10824_v37 = vld [vmem:[%s13405_s16] ss:$0 sm:$0xff] }
0x4244   :  { %v6484_v5 = vrot.slane %v6476_v35, %v12105_v10  ;;  %v6489_v58 = vsub.f32 %v11959_v29, %v6480_v11  ;;  %v6487_v52 = vmul.f32 %v6480_v11, %v11959_v29 }
0x4246   :  { %v6488_v28 = vmul.f32 %v6484_v5, %v11983_v34  ;;  %v6490_v48 = vsub.f32 %v11983_v34, %v6484_v5  ;;  %v6491_v61 = vand.u32 2147483647, %v6489_v58 }
0x4248   :  { %v10316_v47 = vpack.i.bf16 %v6488_v28, %v6487_v52  ;;  %v6492_v22 = vand.u32 2147483647, %v6490_v48 }
0x424a   :  { %10317 = vrot.lane.b32.xlu0 %v10316_v47, %s10857_s14  ;;  %v10321_v57 = vpack.i.bf16 %v6492_v22, %v6491_v61 }
0x424c   :  { %10322 = vrot.lane.b32.xlu1 %v10321_v57, %s10856_s0 }
0x42bc   :  { %v10318_v49 = vpop.permute.xlu0 %10317 }
0x42bd   :  { %v10320_v42 = vunpack.i.h.bf16 %v10318_v49  ;;  %v10319_v51 = vunpack.i.l.bf16 %v10318_v49 }
0x42be   :  { %v10323_v20 = vpop.permute.xlu1 %10322 }
0x42bf   :  { %v10325_v3 = vunpack.i.h.bf16 %v10323_v20  ;;  %v10324_v45 = vunpack.i.l.bf16 %v10323_v20  ;;  %v6509_v29 = vsel %vm99_vm0, %v12034_v13, %v10319_v51  ;;  %v6510_v34 = vsel %vm99_vm0, %v12030_v9, %v10320_v42  ;;  %v10823_v13 = vld [vmem:[%s13404_s15] ss:$0 sm:$0xff] }
0x42c0   :  { %v6511_v38 = vsel %vm3977_vm11, %v6509_v29, %v13479_v6  ;;  %v6512_v50 = vsel %vm3977_vm11, %v6510_v34, %v13480_v32 }
0x42c1   :  { %v6513_v62 = vsel %vm3980_vm12, %v6511_v38, %v10324_v45  ;;  %v6514_v46 = vsel %vm3980_vm12, %v6512_v50, %v10325_v3 }
0x42c2   :  { %9786 = vmatprep.mubr.f32.mxu1 %v6513_v62 }
0x42c3   :  { %9787 = vmatmul.mubr.f32.vlgmr.msra.gmra.mrb[40].mxu1 %v6514_v46 }
0x42c4   :  { %10232 = vmatpush3.bf16.msra.mxu1 %v11981_v12  ;;  %9819 = vmatprep.mubr.msk.f32.mxu1 %vm10853_vm1, %v13473_v63 }
0x42c5   :  { %10233 = vmatprep.subr.bf16.mxu1 %v13474_v30 }
0x42c8   :  { %10235 = vmatpush3.bf16.msra.mxu1 %v11994_v54 }
0x42c9   :  { %10242 = vmatprep.subr.bf16.mxu1 %v13474_v30 }
0x4396   :  { %v9788_v9 = vpop.f32.mrb[40].mxu1 }
0x4397   :  { %v6587_v39 = vadd.f32 %v10823_v13, %v9788_v9  ;;  %v6581_v2 = vpop.f32.mrb[41].mxu1 }
0x4398   :  { %v6582_v17 = vadd.f32 %v10823_v13, %v6581_v2 }
0x4399   :  { %10722 = vtanh.f32 %v6587_v39 }
0x439a   :  { %10724 = vtanh.f32 %v6582_v17 }
0x43a3   :  { %v10723_v18 = vpop.eup %10722 }
0x43a4   :  { %v10725_v41 = vpop.eup %10724  ;;  %v6593_v35 = vmul.f32 %v10824_v37, %v10723_v18 }
0x43a5   :  { %v6592_v11 = vmul.f32 %v10824_v37, %v10725_v41 }
0x43a6   :  { %v6597_v5 = vsel %vm99_vm0, %v6593_v35, 0.0 }
0x43a7   :  { %6598 = vadd.xlane.f32.xlu1 %v6597_v5  ;;  %v6594_v58 = vsel %vm99_vm0, %v6592_v11, 0.0 }
0x43a8   :  { %6595 = vadd.xlane.f32.xlu0 %v6594_v58 }
0x4434   :  { %v6599_v52 = vpop.xlane.xlu1 %6598 }
0x4435   :  { %v6601_v28 = vadd.f32 %v6599_v52, %v12079_v60  ;;  %v6596_v48 = vpop.xlane.xlu0 %6595 }
0x4436   :  { %v6600_v47 = vadd.f32 %v6596_v48, %v12079_v60 }
0x4437   :  { %v6611_v61 = vrot.slane %v6601_v28, %v12077_v21 }
0x4438   :  { %v6607_v22 = vrot.slane %v6600_v47, %v12077_v21 }
0x443a   :  { %v6612_v57 = vsel %vm564_vm2, %v6611_v61, %v6607_v22 }
0x443b   :  { %v6614_v49 = vsel %vm4105_vm13, %v6612_v57, -inf  ;;  %v13482_v57 = vld [vmem:[#allocation10_spill] sm:$0xff] }
0x443c   :  { %6615 = vmax.xlane.f32.xlu0 %v6614_v49 }
0x44c9   :  { %v6616_v42 = vpop.xlane.xlu0 %6615 }
0x44ca   :  { %v6621_v51 = vrot.slane %v6616_v42, %v12105_v10  ;;  %v6625_v20 = vrot.slane %v6616_v42, %v12108_v0 }
0x44cc   :  { %v6628_v3 = vsub.f32 %v6600_v47, %v6621_v51  ;;  %v6629_v45 = vsub.f32 %v6601_v28, %v6625_v20  ;;  %v13481_v47 = vld [vmem:[#allocation8_spill] sm:$0xff]  ;;  %v13483_v51 = vld [vmem:[#allocation9_spill] sm:$0xff] }
0x44ce   :  { %v6630_v29 = vmul.f32 1.442695, %v6628_v3  ;;  %v6632_v34 = vmul.f32 1.442695, %v6629_v45  ;;  %v13484_v3 = vld [vmem:[#allocation11_spill] sm:$0xff] }
0x44d0   :  { %10726 = vpow2.f32 %v6630_v29  ;;  %v13485_v29 = vld [vmem:[#allocation12_spill] sm:$0xff] }
0x44d1   :  { %10728 = vpow2.f32 %v6632_v34 }
0x44da   :  { %v10727_v60 = vpop.eup %10726 }
0x44db   :  { %v10729_v6 = vpop.eup %10728  ;;  %6637 = vperm.xlu0 %10314, %v10727_v60  }
0x44dc   :  { %6640 = vperm.xlu1 %10315, %v10729_v6  }
0x455a   :  { %v6638_v38 = vpop.permute.xlu0 %6637 }
0x455b   :  { %v6641_v32 = vpop.permute.xlu1 %6640  ;;  %v6645_v50 = vrot.slane %v6638_v38, %v12077_v21 }
0x455c   :  { %v6649_v62 = vrot.slane %v6641_v32, %v12077_v21 }
0x455e   :  { %v6650_v46 = vsel %vm564_vm2, %v6649_v62, %v6645_v50 }
0x455f   :  { %v6652_v9 = vsel %vm4105_vm13, %v6650_v46, 0.0 }
0x4560   :  { %6653 = vadd.xlane.f32.xlu1 %v6652_v9 }
0x45ed   :  { %v6654_v13 = vpop.xlane.xlu1 %6653 }
0x45ee   :  { %v6659_v39 = vrot.slane %v6654_v13, %v12105_v10  ;;  %v6663_v2 = vrot.slane %v6654_v13, %v12108_v0 }
0x45f0   :  { %10730 = vrcp.f32 %v6659_v39 }
0x45f1   :  { %10732 = vrcp.f32 %v6663_v2 }
0x45fa   :  { %v10731_v17 = vpop.eup %10730 }
0x45fb   :  { %v10733_v18 = vpop.eup %10732  ;;  %v12824_v41 = vmul.f32 %v10731_v17, %v10727_v60  ;;  %v13486_v60 = vld [vmem:[#allocation13_spill] sm:$0xff] }
0x45fc   :  { %v12826_v37 = vmul.f32 %v10733_v18, %v10729_v6 }
0x45fd   :  { %v6673_v35 = vrot.slane %v12824_v41, %v12105_v10  ;;  %v12831_v11 = vsub.f32 1.0, %v12824_v41 }
0x45fe   :  { %v6677_v5 = vrot.slane %v12826_v37, %v12105_v10  ;;  %v12836_v58 = vsub.f32 1.0, %v12826_v37 }
0x45ff   :  { %v6678_v52 = vmul.f32 %v6673_v35, %v12122_v27  ;;  %v6691_v28 = vrot.slane %v12831_v11, %v12105_v10  ;;  %v6679_v48 = vmul.f32 %v6673_v35, %v12124_v7  ;;  %v6680_v49 = vmul.f32 %v6673_v35, %v13482_v57 }
0x4600   :  { %v6682_v61 = vmul.f32 %v6677_v5, %v13481_v47  ;;  %v6695_v22 = vrot.slane %v12836_v58, %v12105_v10  ;;  %v6683_v20 = vmul.f32 %v6677_v5, %v13483_v51  ;;  %v6684_v45 = vmul.f32 %v6677_v5, %v13484_v3 }
0x4601   :  { %v6696_v42 = vmul.f32 0.0, %v6691_v28  ;;  %v6681_v34 = vmul.f32 %v6673_v35, %v13485_v29  ;;  %v6685_v6 = vmul.f32 %v6677_v5, %v13486_v60  ;;  %v6960_v7 = vrot.slane %v12836_v58, %v12108_v0 }
0x4602   :  { %v6697_v27 = vmul.f32 0.0, %v6695_v22  ;;  %v6956_v38 = vrot.slane %v12831_v11, %v12108_v0 }
0x4603   :  { %v6698_v32 = vadd.f32 %v6696_v42, %v6678_v52  ;;  %v6699_v10 = vadd.f32 %v6696_v42, %v6679_v48  ;;  %v6700_v50 = vadd.f32 %v6696_v42, %v6680_v49  ;;  %v6701_v62 = vadd.f32 %v6696_v42, %v6681_v34 }
0x4604   :  { %v6702_v46 = vadd.f32 %v6697_v27, %v6682_v61  ;;  %v6703_v9 = vadd.f32 %v6697_v27, %v6683_v20  ;;  %v6704_v13 = vadd.f32 %v6697_v27, %v6684_v45  ;;  %v6705_v39 = vadd.f32 %v6697_v27, %v6685_v6 }
0x4605   :  { %6715 = vperm.xlu0 %10314, %v6698_v32   ;;  %v12854_v2 = vmul.f32 %v6956_v38, %v6700_v50  ;;  %v12856_v17 = vmul.f32 %v6956_v38, %v6698_v32  ;;  %v12858_v18 = vmul.f32 %v6956_v38, %v6701_v62  ;;  %v12860_v35 = vmul.f32 %v6956_v38, %v6699_v10 }
0x4606   :  { %v12862_v5 = vmul.f32 %v6960_v7, %v6703_v9  ;;  %v12864_v28 = vmul.f32 %v6960_v7, %v6702_v46  ;;  %v12866_v52 = vmul.f32 %v6960_v7, %v6704_v13  ;;  %v12868_v48 = vmul.f32 %v6960_v7, %v6705_v39 }
0x4609   :  { %6718 = vperm.xlu0 %10314, %v6699_v10  }
0x460d   :  { %6727 = vperm.xlu0 %10314, %v6702_v46  }
0x4611   :  { %6730 = vperm.xlu0 %10314, %v6703_v9  }
0x4615   :  { %6721 = vperm.xlu0 %10314, %v6700_v50  }
0x4619   :  { %6733 = vperm.xlu0 %10314, %v6704_v13  }
0x461d   :  { %6724 = vperm.xlu0 %10314, %v6701_v62  }
0x4621   :  { %6736 = vperm.xlu0 %10314, %v6705_v39   ;;  %v12895_v39 = vld [vmem:[%s13410_s21] ss:$0 sm:$0xff] }
0x4684   :  { %v6716_v47 = vpop.permute.xlu0 %6715 }
0x4685   :  { %v6741_v34 = vrot.slane %v6716_v47, %v12077_v21 }
0x4688   :  { %v6719_v61 = vpop.permute.xlu0 %6718 }
0x4689   :  { %v6745_v20 = vrot.slane %v6719_v61, %v12189_v16 }
0x468b   :  { %v6746_v7 = vsel %vm4403_vm14, %v6745_v20, %v6741_v34 }
0x468c   :  { %v6728_v22 = vpop.permute.xlu0 %6727 }
0x468d   :  { %v6760_v27 = vrot.slane %v6728_v22, %v12077_v21 }
0x4690   :  { %v6731_v57 = vpop.permute.xlu0 %6730 }
0x4691   :  { %v6764_v3 = vrot.slane %v6731_v57, %v12189_v16 }
0x4693   :  { %v6765_v38 = vsel %vm4403_vm14, %v6764_v3, %v6760_v27 }
0x4694   :  { %v6722_v49 = vpop.permute.xlu0 %6721 }
0x4695   :  { %v6750_v45 = vrot.slane %v6722_v49, %v12192_v4 }
0x4697   :  { %v6751_v10 = vsel %vm4410_vm15, %v6750_v45, %v6746_v7 }
0x4698   :  { %v6734_v42 = vpop.permute.xlu0 %6733 }
0x4699   :  { %v6769_v29 = vrot.slane %v6734_v42, %v12192_v4 }
0x469b   :  { %v6770_v50 = vsel %vm4410_vm15, %v6769_v29, %v6765_v38 }
0x469c   :  { %v6725_v51 = vpop.permute.xlu0 %6724 }
0x469d   :  { %v6755_v60 = vrot.slane %v6725_v51, %v12199_v33 }
0x469f   :  { %v6756_v62 = vsel %vm4417_vm3, %v6755_v60, %v6751_v10 }
0x46a0   :  { %v6737_v6 = vpop.permute.xlu0 %6736 }
0x46a1   :  { %v6774_v32 = vrot.slane %v6737_v6, %v12199_v33 }
0x46a3   :  { %v6775_v46 = vsel %vm4417_vm3, %v6774_v32, %v6770_v50 }
0x46a4   :  { %v6776_v9 = vsel %vm564_vm2, %v6775_v46, %v6756_v62 }
0x46a5   :  { %9798 = vmatmul.mubr.msk.f32.vlgmr.msra.gmra.mrb[36].mxu0 %vm99_vm0, %v6776_v9 }
0x46a6   :  { %10226 = vmatpush3.bf16.msra.mxu0 %v11981_v12  ;;  %9808 = vmatprep.mubr.msk.f32.mxu0 %vm10853_vm1, %v13473_v63 }
0x46a7   :  { %10227 = vmatprep.subr.bf16.mxu0 %v13474_v30 }
0x46aa   :  { %10229 = vmatpush3.bf16.msra.mxu0 %v11994_v54 }
0x46ab   :  { %10236 = vmatprep.subr.bf16.mxu0 %v13474_v30 }
0x4778   :  { %v6845_v13 = vpop.f32.mrb[36].mxu0 }
0x4779   :  { %v6846_v47 = vadd.f32 %v12895_v39, %v6845_v13  ;;  %v9799_v61 = vpop.f32.mrb[37].mxu0 }
0x477a   :  { %v6894_v61 = vrot.slane %v12826_v37, %v12108_v0 }
0x477b   :  { %v6850_v22 = vrot.slane %v6846_v47, 7  ;;  %6869 = vrot.lane.b32.xlu1 %v6846_v47, %s10856_s0  ;;  %v6854_v49 = vadd.f32 %v6846_v47, %v12101_v36 }
0x477d   :  { %6867 = vrot.lane.b32.xlu0 %v6850_v22, %s10856_s0  ;;  %v6853_v57 = vadd.f32 %v6850_v22, %v12098_v53  ;;  %v8984_v51 = vmul.f32 -1.442695, %v6854_v49 }
0x477f   :  { %v8983_v42 = vmul.f32 -1.442695, %v6853_v57 }
0x4781   :  { %10734 = vpow2.f32 %v8983_v42 }
0x4782   :  { %10736 = vpow2.f32 %v8984_v51 }
0x478b   :  { %v10735_v20 = vpop.eup %10734 }
0x478c   :  { %v6861_v3 = vadd.f32 1.0, %v10735_v20  ;;  %v10737_v45 = vpop.eup %10736 }
0x478d   :  { %v6862_v29 = vadd.f32 1.0, %v10737_v45  ;;  %v13487_v45 = vld [vmem:[#allocation14_spill] sm:$0xff] }
0x478e   :  { %10738 = vrcp.f32 %v6861_v3  ;;  %v6890_v3 = vrot.slane %v12824_v41, %v12108_v0 }
0x478f   :  { %10740 = vrcp.f32 %v6862_v29  ;;  %v7232_v29 = vrot.slane %v12836_v58, %v13487_v45 }
0x4798   :  { %v10739_v34 = vpop.eup %10738 }
0x4799   :  { %v10741_v7 = vpop.eup %10740 }
0x47ed   :  { %v6870_v6 = vpop.permute.xlu1 %6869 }
0x47ee   :  { %v6874_v38 = vmul.f32 %v10741_v7, %v6870_v6 }
0x47ef   :  { %v6868_v27 = vpop.permute.xlu0 %6867 }
0x47f0   :  { %v6873_v60 = vmul.f32 %v10739_v34, %v6868_v27 }
0x47f2   :  { %6877 = vrot.lane.b32.xlu0 %v6873_v60, %s10857_s14 }
0x47f6   :  { %6879 = vrot.lane.b32.xlu0 %v6874_v38, %s10857_s14 }
0x4864   :  { %v6878_v32 = vpop.permute.xlu0 %6877 }
0x4865   :  { %v6883_v50 = vadd.f32 %v6878_v32, %v12098_v53 }
0x4868   :  { %v6880_v10 = vpop.permute.xlu0 %6879 }
0x4869   :  { %v6884_v62 = vadd.f32 %v6880_v10, %v12101_v36 }
0x486b   :  { %10742 = vtanh.f32 %v6884_v62 }
0x486c   :  { %10744 = vtanh.f32 %v6883_v50 }
0x4875   :  { %v10743_v46 = vpop.eup %10742 }
0x4876   :  { %v6920_v9 = vrot.slane %v10743_v46, %v12108_v0  ;;  %v10745_v13 = vpop.eup %10744 }
0x4877   :  { %v6900_v47 = vrot.slane %v10745_v13, %v12108_v0  ;;  %v7228_v0 = vrot.slane %v12831_v11, %v13487_v45 }
0x4878   :  { %6927 = vbcast.lane.b32.xlu0 %v6920_v9, 296  ;;  %6923 = vbcast.lane.b32.xlu1 %v6920_v9, 288 }
0x487c   :  { %6931 = vbcast.lane.b32.xlu0 %v6920_v9, 304  ;;  %6911 = vbcast.lane.b32.xlu1 %v6900_v47, 304 }
0x4880   :  { %6903 = vbcast.lane.b32.xlu0 %v6900_v47, 288  ;;  %6915 = vbcast.lane.b32.xlu1 %v6900_v47, 312 }
0x4884   :  { %6907 = vbcast.lane.b32.xlu0 %v6900_v47, 296 }
0x4888   :  { %6935 = vbcast.lane.b32.xlu0 %v6920_v9, 312 }
0x48ea   :  { %v6928_v22 = vpop.permute.xlu0 %6927  ;;  %v6924_v57 = vpop.permute.xlu1 %6923 }
0x48eb   :  { %v6950_v49 = vmul.f32 %v6928_v22, %v6894_v61  ;;  %v6949_v42 = vmul.f32 %v6924_v57, %v6894_v61 }
0x48ed   :  { %v6974_v51 = vadd.f32 %v12862_v5, %v6950_v49  ;;  %v6973_v20 = vadd.f32 %v12864_v28, %v6949_v42 }
0x48ee   :  { %v6932_v34 = vpop.permute.xlu0 %6931  ;;  %v6912_v27 = vpop.permute.xlu1 %6911 }
0x48ef   :  { %v6951_v60 = vmul.f32 %v6932_v34, %v6894_v61  ;;  %v6947_v6 = vmul.f32 %v6912_v27, %v6890_v3  ;;  %7001 = vperm.xlu0 %10314, %v6974_v51   ;;  %6998 = vperm.xlu1 %10315, %v6973_v20   ;;  %v12916_v7 = vmul.f32 %v7232_v29, %v6974_v51 }
0x48f0   :  { %v12918_v38 = vmul.f32 %v7232_v29, %v6973_v20 }
0x48f1   :  { %v6975_v5 = vadd.f32 %v12866_v52, %v6951_v60  ;;  %v6971_v28 = vadd.f32 %v12854_v2, %v6947_v6 }
0x48f2   :  { %v6904_v32 = vpop.permute.xlu0 %6903  ;;  %v6916_v10 = vpop.permute.xlu1 %6915 }
0x48f3   :  { %v6945_v50 = vmul.f32 %v6904_v32, %v6890_v3  ;;  %v6948_v62 = vmul.f32 %v6916_v10, %v6890_v3  ;;  %7004 = vperm.xlu0 %10314, %v6975_v5   ;;  %v12924_v46 = vmul.f32 %v7232_v29, %v6975_v5  ;;  %v12926_v9 = vmul.f32 %v7228_v0, %v6971_v28 }
0x48f5   :  { %v6969_v13 = vadd.f32 %v12856_v17, %v6945_v50  ;;  %v6972_v47 = vadd.f32 %v12858_v18, %v6948_v62 }
0x48f6   :  { %v6908_v22 = vpop.permute.xlu0 %6907 }
0x48f7   :  { %v6946_v52 = vmul.f32 %v6908_v22, %v6890_v3  ;;  %6986 = vperm.xlu1 %10315, %v6969_v13   ;;  %v12930_v2 = vmul.f32 %v7228_v0, %v6969_v13  ;;  %v12932_v57 = vmul.f32 %v7228_v0, %v6972_v47 }
0x48f9   :  { %v6970_v49 = vadd.f32 %v12860_v35, %v6946_v52 }
0x48fa   :  { %v6936_v42 = vpop.permute.xlu0 %6935 }
0x48fb   :  { %v6952_v51 = vmul.f32 %v6936_v42, %v6894_v61  ;;  %6989 = vperm.xlu0 %10314, %v6970_v49   ;;  %6992 = vperm.xlu1 %10315, %v6971_v28   ;;  %v12935_v20 = vmul.f32 %v7228_v0, %v6970_v49 }
0x48fd   :  { %v6976_v34 = vadd.f32 %v12868_v48, %v6952_v51 }
0x48ff   :  { %7007 = vperm.xlu0 %10314, %v6976_v34   ;;  %6995 = vperm.xlu1 %10315, %v6972_v47   ;;  %v12938_v17 = vmul.f32 %v7232_v29, %v6976_v34 }
0x496e   :  { %v7002_v18 = vpop.permute.xlu0 %7001  ;;  %v6999_v3 = vpop.permute.xlu1 %6998 }
0x496f   :  { %v7035_v35 = vrot.slane %v7002_v18, %v12189_v16  ;;  %v7031_v61 = vrot.slane %v6999_v3, %v12077_v21 }
0x4971   :  { %v7036_v62 = vsel %vm4403_vm14, %v7035_v35, %v7031_v61 }
0x4972   :  { %v7005_v27 = vpop.permute.xlu0 %7004 }
0x4973   :  { %v7040_v48 = vrot.slane %v7005_v27, %v12192_v4 }
0x4975   :  { %v7041_v22 = vsel %vm4410_vm15, %v7040_v48, %v7036_v62 }
0x4976   :  { %v6987_v60 = vpop.permute.xlu1 %6986 }
0x4977   :  { %v7012_v28 = vrot.slane %v6987_v60, %v12077_v21 }
0x497a   :  { %v6990_v6 = vpop.permute.xlu0 %6989  ;;  %v6993_v5 = vpop.permute.xlu1 %6992 }
0x497b   :  { %v7016_v0 = vrot.slane %v6990_v6, %v12189_v16  ;;  %v7021_v32 = vrot.slane %v6993_v5, %v12192_v4 }
0x497d   :  { %v7017_v29 = vsel %vm4403_vm14, %v7016_v0, %v7012_v28 }
0x497e   :  { %v7008_v10 = vpop.permute.xlu0 %7007  ;;  %v6996_v50 = vpop.permute.xlu1 %6995  ;;  %v7022_v52 = vsel %vm4410_vm15, %v7021_v32, %v7017_v29 }
0x497f   :  { %v7045_v13 = vrot.slane %v7008_v10, %v12199_v33  ;;  %v7026_v47 = vrot.slane %v6996_v50, %v12199_v33 }
0x4981   :  { %v7046_v49 = vsel %vm4417_vm3, %v7045_v13, %v7041_v22  ;;  %v7027_v42 = vsel %vm4417_vm3, %v7026_v47, %v7022_v52 }
0x4982   :  { %v7047_v51 = vsel %vm564_vm2, %v7046_v49, %v7027_v42 }
0x4983   :  { %9809 = vmatmul.mubr.msk.f32.vlgmr.msra.gmra.mrb[38].mxu0 %vm99_vm0, %v7047_v51 }
0x4984   :  { %10238 = vmatpush3.bf16.msra.mxu0 %v11981_v12  ;;  %9830 = vmatprep.mubr.msk.f32.mxu0 %vm10853_vm1, %v13473_v63 }
0x4985   :  { %10239 = vmatprep.subr.bf16.mxu0 %v13474_v30 }
0x4988   :  { %10241 = vmatpush3.bf16.msra.mxu0 %v11994_v54 }
0x4989   :  { %10248 = vmatprep.subr.bf16.mxu0 %v13474_v30 }
0x4a56   :  { %v7116_v34 = vpop.f32.mrb[38].mxu0 }
0x4a57   :  { %v7117_v18 = vadd.f32 %v12895_v39, %v7116_v34  ;;  %v9810_v3 = vpop.f32.mrb[39].mxu0 }
0x4a59   :  { %v7121_v27 = vrot.slane %v7117_v18, 6  ;;  %v7122_v60 = vrot.slane %v7117_v18, 7 }
0x4a5b   :  { %7141 = vrot.lane.b32.xlu0 %v7122_v60, %s10856_s0  ;;  %7139 = vrot.lane.b32.xlu1 %v7121_v27, %s10856_s0  ;;  %v7125_v6 = vadd.f32 %v7121_v27, %v12098_v53  ;;  %v7126_v5 = vadd.f32 %v7122_v60, %v12101_v36  ;;  %v7162_v27 = vrot.slane %v12824_v41, %v13487_v45 }
0x4a5d   :  { %v8986_v35 = vmul.f32 -1.442695, %v7125_v6  ;;  %v8987_v61 = vmul.f32 -1.442695, %v7126_v5 }
0x4a5f   :  { %10746 = vpow2.f32 %v8986_v35 }
0x4a60   :  { %10748 = vpow2.f32 %v8987_v61 }
0x4a69   :  { %v10747_v28 = vpop.eup %10746 }
0x4a6a   :  { %v10749_v0 = vpop.eup %10748  ;;  %v7133_v48 = vadd.f32 1.0, %v10747_v28 }
0x4a6b   :  { %v7134_v32 = vadd.f32 1.0, %v10749_v0  ;;  %v7166_v0 = vrot.slane %v12826_v37, %v13487_v45 }
0x4a6c   :  { %10750 = vrcp.f32 %v7133_v48  ;;  %v13488_v48 = vld [vmem:[#allocation15_spill] sm:$0xff] }
0x4a6d   :  { %10752 = vrcp.f32 %v7134_v32  ;;  %v7500_v32 = vrot.slane %v12831_v11, %v13488_v48 }
0x4a76   :  { %v10751_v29 = vpop.eup %10750 }
0x4a77   :  { %v10753_v10 = vpop.eup %10752 }
0x4acd   :  { %v7142_v50 = vpop.permute.xlu0 %7141  ;;  %v7140_v62 = vpop.permute.xlu1 %7139 }
0x4ace   :  { %v7146_v13 = vmul.f32 %v10753_v10, %v7142_v50  ;;  %v7145_v47 = vmul.f32 %v10751_v29, %v7140_v62 }
0x4ad0   :  { %7151 = vrot.lane.b32.xlu0 %v7146_v13, %s10857_s14  ;;  %7149 = vrot.lane.b32.xlu1 %v7145_v47, %s10857_s14 }
0x4b42   :  { %v7152_v22 = vpop.permute.xlu0 %7151  ;;  %v7150_v52 = vpop.permute.xlu1 %7149 }
0x4b43   :  { %v7155_v49 = vadd.f32 %v7150_v52, %v12098_v53  ;;  %v7156_v42 = vadd.f32 %v7152_v22, %v12101_v36 }
0x4b45   :  { %10754 = vtanh.f32 %v7155_v49 }
0x4b46   :  { %10756 = vtanh.f32 %v7156_v42 }
0x4b4f   :  { %v10755_v51 = vpop.eup %10754 }
0x4b50   :  { %v7172_v34 = vrot.slane %v10755_v51, %v13487_v45  ;;  %v10757_v18 = vpop.eup %10756 }
0x4b51   :  { %v7192_v3 = vrot.slane %v10757_v18, %v13487_v45  ;;  %v7504_v45 = vrot.slane %v12836_v58, %v13488_v48 }
0x4b52   :  { %7179 = vbcast.lane.b32.xlu0 %v7172_v34, 296  ;;  %7175 = vbcast.lane.b32.xlu1 %v7172_v34, 288 }
0x4b56   :  { %7199 = vbcast.lane.b32.xlu0 %v7192_v3, 296  ;;  %7195 = vbcast.lane.b32.xlu1 %v7192_v3, 288 }
0x4b5a   :  { %7203 = vbcast.lane.b32.xlu0 %v7192_v3, 304  ;;  %7183 = vbcast.lane.b32.xlu1 %v7172_v34, 304 }
0x4b5e   :  { %7207 = vbcast.lane.b32.xlu0 %v7192_v3, 312  ;;  %7187 = vbcast.lane.b32.xlu1 %v7172_v34, 312 }
0x4bc4   :  { %v7180_v60 = vpop.permute.xlu0 %7179  ;;  %v7176_v6 = vpop.permute.xlu1 %7175 }
0x4bc5   :  { %v7218_v5 = vmul.f32 %v7180_v60, %v7162_v27  ;;  %v7217_v35 = vmul.f32 %v7176_v6, %v7162_v27 }
0x4bc7   :  { %v7242_v61 = vadd.f32 %v12935_v20, %v7218_v5  ;;  %v7241_v28 = vadd.f32 %v12930_v2, %v7217_v35 }
0x4bc8   :  { %v7200_v29 = vpop.permute.xlu0 %7199  ;;  %v7196_v10 = vpop.permute.xlu1 %7195 }
0x4bc9   :  { %v7222_v50 = vmul.f32 %v7200_v29, %v7166_v0  ;;  %v7221_v62 = vmul.f32 %v7196_v10, %v7166_v0  ;;  %7261 = vperm.xlu0 %10314, %v7242_v61   ;;  %7258 = vperm.xlu1 %10315, %v7241_v28   ;;  %v12981_v13 = vmul.f32 %v7500_v32, %v7242_v61 }
0x4bca   :  { %v12983_v47 = vmul.f32 %v7500_v32, %v7241_v28 }
0x4bcb   :  { %v7246_v20 = vadd.f32 %v12916_v7, %v7222_v50  ;;  %v7245_v2 = vadd.f32 %v12918_v38, %v7221_v62 }
0x4bcc   :  { %v7204_v22 = vpop.permute.xlu0 %7203  ;;  %v7184_v52 = vpop.permute.xlu1 %7183 }
0x4bcd   :  { %v7223_v49 = vmul.f32 %v7204_v22, %v7166_v0  ;;  %v7219_v42 = vmul.f32 %v7184_v52, %v7162_v27  ;;  %7273 = vperm.xlu0 %10314, %v7246_v20   ;;  %7270 = vperm.xlu1 %10315, %v7245_v2   ;;  %v12989_v51 = vmul.f32 %v7504_v45, %v7246_v20 }
0x4bce   :  { %v12991_v34 = vmul.f32 %v7504_v45, %v7245_v2 }
0x4bcf   :  { %v7247_v18 = vadd.f32 %v12924_v46, %v7223_v49  ;;  %v7243_v3 = vadd.f32 %v12926_v9, %v7219_v42 }
0x4bd0   :  { %v7208_v7 = vpop.permute.xlu0 %7207  ;;  %v7188_v60 = vpop.permute.xlu1 %7187 }
0x4bd1   :  { %v7224_v38 = vmul.f32 %v7208_v7, %v7166_v0  ;;  %v7220_v6 = vmul.f32 %v7188_v60, %v7162_v27  ;;  %7276 = vperm.xlu0 %10314, %v7247_v18   ;;  %7264 = vperm.xlu1 %10315, %v7243_v3   ;;  %v12995_v5 = vmul.f32 %v7504_v45, %v7247_v18 }
0x4bd2   :  { %v12997_v35 = vmul.f32 %v7500_v32, %v7243_v3 }
0x4bd3   :  { %v7248_v61 = vadd.f32 %v12938_v17, %v7224_v38  ;;  %v7244_v28 = vadd.f32 %v12932_v57, %v7220_v6 }
0x4bd5   :  { %7279 = vperm.xlu0 %10314, %v7248_v61   ;;  %7267 = vperm.xlu1 %10315, %v7244_v28   ;;  %v13001_v29 = vmul.f32 %v7504_v45, %v7248_v61  ;;  %v13003_v46 = vmul.f32 %v7500_v32, %v7244_v28 }
0x4c48   :  { %v7262_v9 = vpop.permute.xlu0 %7261  ;;  %v7259_v10 = vpop.permute.xlu1 %7258 }
0x4c49   :  { %v7288_v20 = vrot.slane %v7262_v9, %v12189_v16  ;;  %v7284_v2 = vrot.slane %v7259_v10, %v12077_v21 }
0x4c4b   :  { %v7289_v49 = vsel %vm4403_vm14, %v7288_v20, %v7284_v2 }
0x4c4c   :  { %v7274_v0 = vpop.permute.xlu0 %7273  ;;  %v7271_v27 = vpop.permute.xlu1 %7270 }
0x4c4d   :  { %v7307_v17 = vrot.slane %v7274_v0, %v12189_v16  ;;  %v7303_v57 = vrot.slane %v7271_v27, %v12077_v21 }
0x4c4f   :  { %v7308_v42 = vsel %vm4403_vm14, %v7307_v17, %v7303_v57 }
0x4c50   :  { %v7277_v50 = vpop.permute.xlu0 %7276  ;;  %v7265_v62 = vpop.permute.xlu1 %7264 }
0x4c51   :  { %v7312_v22 = vrot.slane %v7277_v50, %v12192_v4  ;;  %v7293_v45 = vrot.slane %v7265_v62, %v12192_v4 }
0x4c53   :  { %v7313_v7 = vsel %vm4410_vm15, %v7312_v22, %v7308_v42  ;;  %v7294_v60 = vsel %vm4410_vm15, %v7293_v45, %v7289_v49 }
0x4c54   :  { %v7280_v32 = vpop.permute.xlu0 %7279  ;;  %v7268_v52 = vpop.permute.xlu1 %7267 }
0x4c55   :  { %v7317_v18 = vrot.slane %v7280_v32, %v12199_v33  ;;  %v7298_v3 = vrot.slane %v7268_v52, %v12199_v33 }
0x4c57   :  { %v7318_v38 = vsel %vm4417_vm3, %v7317_v18, %v7313_v7  ;;  %v7299_v6 = vsel %vm4417_vm3, %v7298_v3, %v7294_v60 }
0x4c58   :  { %v7319_v61 = vsel %vm564_vm2, %v7318_v38, %v7299_v6 }
0x4c59   :  { %9820 = vmatmul.mubr.msk.f32.vlgmr.msra.gmra.mrb[42].mxu1 %vm99_vm0, %v7319_v61 }
0x4c5a   :  { %10244 = vmatpush3.bf16.msra.mxu1 %v11981_v12  ;;  %9841 = vmatprep.mubr.msk.f32.mxu1 %vm10853_vm1, %v13473_v63 }
0x4c5b   :  { %10245 = vmatprep.subr.bf16.mxu1 %v13474_v30 }
0x4c5e   :  { %10247 = vmatpush3.bf16.msra.mxu1 %v11994_v54 }
0x4c5f   :  { %10254 = vmatprep.subr.bf16.mxu1 %v13474_v30 }
0x4d2c   :  { %v7388_v28 = vpop.f32.mrb[42].mxu1 }
0x4d2d   :  { %v7389_v9 = vadd.f32 %v12895_v39, %v7388_v28  ;;  %v9821_v10 = vpop.f32.mrb[43].mxu1 }
0x4d2f   :  { %v7393_v0 = vrot.slane %v7389_v9, 5  ;;  %v7394_v27 = vrot.slane %v7389_v9, 6 }
0x4d31   :  { %7413 = vrot.lane.b32.xlu0 %v7394_v27, %s10856_s0  ;;  %7411 = vrot.lane.b32.xlu1 %v7393_v0, %s10856_s0  ;;  %v7397_v50 = vadd.f32 %v7393_v0, %v12098_v53  ;;  %v7398_v62 = vadd.f32 %v7394_v27, %v12101_v36  ;;  %v7434_v0 = vrot.slane %v12824_v41, %v13488_v48 }
0x4d33   :  { %v8989_v20 = vmul.f32 -1.442695, %v7397_v50  ;;  %v8990_v2 = vmul.f32 -1.442695, %v7398_v62 }
0x4d35   :  { %10758 = vpow2.f32 %v8989_v20 }
0x4d36   :  { %10760 = vpow2.f32 %v8990_v2 }
0x4d3f   :  { %v10759_v17 = vpop.eup %10758 }
0x4d40   :  { %v10761_v57 = vpop.eup %10760  ;;  %v7405_v22 = vadd.f32 1.0, %v10759_v17 }
0x4d41   :  { %v7406_v45 = vadd.f32 1.0, %v10761_v57  ;;  %v7438_v57 = vrot.slane %v12826_v37, %v13488_v48 }
0x4d42   :  { %10762 = vrcp.f32 %v7405_v22  ;;  %v13489_v22 = vld [vmem:[#allocation16_spill] sm:$0xff] }
0x4d43   :  { %10764 = vrcp.f32 %v7406_v45  ;;  %v7772_v45 = vrot.slane %v12831_v11, %v13489_v22 }
0x4d4c   :  { %v10763_v32 = vpop.eup %10762 }
0x4d4d   :  { %v10765_v52 = vpop.eup %10764 }
0x4da3   :  { %v7414_v49 = vpop.permute.xlu0 %7413  ;;  %v7412_v42 = vpop.permute.xlu1 %7411 }
0x4da4   :  { %v7418_v18 = vmul.f32 %v10765_v52, %v7414_v49  ;;  %v7417_v3 = vmul.f32 %v10763_v32, %v7412_v42 }
0x4da6   :  { %7423 = vrot.lane.b32.xlu0 %v7418_v18, %s10857_s14  ;;  %7421 = vrot.lane.b32.xlu1 %v7417_v3, %s10857_s14 }
0x4e18   :  { %v7424_v7 = vpop.permute.xlu0 %7423  ;;  %v7422_v60 = vpop.permute.xlu1 %7421 }
0x4e19   :  { %v7427_v38 = vadd.f32 %v7422_v60, %v12098_v53  ;;  %v7428_v6 = vadd.f32 %v7424_v7, %v12101_v36 }
0x4e1b   :  { %10766 = vtanh.f32 %v7427_v38 }
0x4e1c   :  { %10768 = vtanh.f32 %v7428_v6 }
0x4e25   :  { %v10767_v61 = vpop.eup %10766 }
0x4e26   :  { %v7444_v28 = vrot.slane %v10767_v61, %v13488_v48  ;;  %v10769_v9 = vpop.eup %10768 }
0x4e27   :  { %v7464_v10 = vrot.slane %v10769_v9, %v13488_v48  ;;  %v7776_v48 = vrot.slane %v12836_v58, %v13489_v22 }
0x4e28   :  { %7451 = vbcast.lane.b32.xlu0 %v7444_v28, 296  ;;  %7447 = vbcast.lane.b32.xlu1 %v7444_v28, 288 }
0x4e2c   :  { %7471 = vbcast.lane.b32.xlu0 %v7464_v10, 296  ;;  %7467 = vbcast.lane.b32.xlu1 %v7464_v10, 288 }
0x4e30   :  { %7475 = vbcast.lane.b32.xlu0 %v7464_v10, 304  ;;  %7455 = vbcast.lane.b32.xlu1 %v7444_v28, 304 }
0x4e34   :  { %7479 = vbcast.lane.b32.xlu0 %v7464_v10, 312  ;;  %7459 = vbcast.lane.b32.xlu1 %v7444_v28, 312 }
0x4e9a   :  { %v7452_v27 = vpop.permute.xlu0 %7451  ;;  %v7448_v50 = vpop.permute.xlu1 %7447 }
0x4e9b   :  { %v7490_v62 = vmul.f32 %v7452_v27, %v7434_v0  ;;  %v7489_v20 = vmul.f32 %v7448_v50, %v7434_v0 }
0x4e9d   :  { %v7514_v2 = vadd.f32 %v12981_v13, %v7490_v62  ;;  %v7513_v17 = vadd.f32 %v12983_v47, %v7489_v20 }
0x4e9e   :  { %v7472_v32 = vpop.permute.xlu0 %7471  ;;  %v7468_v52 = vpop.permute.xlu1 %7467 }
0x4e9f   :  { %v7494_v49 = vmul.f32 %v7472_v32, %v7438_v57  ;;  %v7493_v42 = vmul.f32 %v7468_v52, %v7438_v57  ;;  %7533 = vperm.xlu0 %10314, %v7514_v2   ;;  %7530 = vperm.xlu1 %10315, %v7513_v17   ;;  %v13046_v18 = vmul.f32 %v7772_v45, %v7514_v2 }
0x4ea0   :  { %v13048_v3 = vmul.f32 %v7772_v45, %v7513_v17 }
0x4ea1   :  { %v7518_v13 = vadd.f32 %v12989_v51, %v7494_v49  ;;  %v7517_v47 = vadd.f32 %v12991_v34, %v7493_v42 }
0x4ea2   :  { %v7476_v7 = vpop.permute.xlu0 %7475  ;;  %v7456_v60 = vpop.permute.xlu1 %7455 }
0x4ea3   :  { %v7495_v38 = vmul.f32 %v7476_v7, %v7438_v57  ;;  %v7491_v6 = vmul.f32 %v7456_v60, %v7434_v0  ;;  %7545 = vperm.xlu0 %10314, %v7518_v13   ;;  %7542 = vperm.xlu1 %10315, %v7517_v47   ;;  %v13054_v61 = vmul.f32 %v7776_v48, %v7518_v13 }
0x4ea4   :  { %v13056_v28 = vmul.f32 %v7776_v48, %v7517_v47 }
0x4ea5   :  { %v7519_v9 = vadd.f32 %v12995_v5, %v7495_v38  ;;  %v7515_v10 = vadd.f32 %v12997_v35, %v7491_v6 }
0x4ea6   :  { %v7480_v51 = vpop.permute.xlu0 %7479  ;;  %v7460_v27 = vpop.permute.xlu1 %7459 }
0x4ea7   :  { %v7496_v34 = vmul.f32 %v7480_v51, %v7438_v57  ;;  %v7492_v50 = vmul.f32 %v7460_v27, %v7434_v0  ;;  %7548 = vperm.xlu0 %10314, %v7519_v9   ;;  %7536 = vperm.xlu1 %10315, %v7515_v10   ;;  %v13060_v62 = vmul.f32 %v7776_v48, %v7519_v9 }
0x4ea8   :  { %v13062_v20 = vmul.f32 %v7772_v45, %v7515_v10 }
0x4ea9   :  { %v7520_v2 = vadd.f32 %v13001_v29, %v7496_v34  ;;  %v7516_v17 = vadd.f32 %v13003_v46, %v7492_v50 }
0x4eab   :  { %7551 = vperm.xlu0 %10314, %v7520_v2   ;;  %7539 = vperm.xlu1 %10315, %v7516_v17   ;;  %v13066_v32 = vmul.f32 %v7776_v48, %v7520_v2  ;;  %v13068_v5 = vmul.f32 %v7772_v45, %v7516_v17 }
0x4f1e   :  { %v7534_v35 = vpop.permute.xlu0 %7533  ;;  %v7531_v52 = vpop.permute.xlu1 %7530 }
0x4f1f   :  { %v7560_v13 = vrot.slane %v7534_v35, %v12189_v16  ;;  %v7556_v47 = vrot.slane %v7531_v52, %v12077_v21 }
0x4f21   :  { %v7561_v38 = vsel %vm4403_vm14, %v7560_v13, %v7556_v47 }
0x4f22   :  { %v7546_v57 = vpop.permute.xlu0 %7545  ;;  %v7543_v0 = vpop.permute.xlu1 %7542 }
0x4f23   :  { %v7579_v29 = vrot.slane %v7546_v57, %v12189_v16  ;;  %v7575_v46 = vrot.slane %v7543_v0, %v12077_v21 }
0x4f25   :  { %v7580_v6 = vsel %vm4403_vm14, %v7579_v29, %v7575_v46 }
0x4f26   :  { %v7549_v49 = vpop.permute.xlu0 %7548  ;;  %v7537_v42 = vpop.permute.xlu1 %7536 }
0x4f27   :  { %v7584_v7 = vrot.slane %v7549_v49, %v12192_v4  ;;  %v7565_v48 = vrot.slane %v7537_v42, %v12192_v4 }
0x4f29   :  { %v7585_v51 = vsel %vm4410_vm15, %v7584_v7, %v7580_v6  ;;  %v7566_v27 = vsel %vm4410_vm15, %v7565_v48, %v7561_v38 }
0x4f2a   :  { %v7552_v45 = vpop.permute.xlu0 %7551  ;;  %v7540_v60 = vpop.permute.xlu1 %7539 }
0x4f2b   :  { %v7589_v9 = vrot.slane %v7552_v45, %v12199_v33  ;;  %v7570_v10 = vrot.slane %v7540_v60, %v12199_v33 }
0x4f2d   :  { %v7590_v34 = vsel %vm4417_vm3, %v7589_v9, %v7585_v51  ;;  %v7571_v50 = vsel %vm4417_vm3, %v7570_v10, %v7566_v27 }
0x4f2e   :  { %v7591_v2 = vsel %vm564_vm2, %v7590_v34, %v7571_v50 }
0x4f2f   :  { %9831 = vmatmul.mubr.msk.f32.vlgmr.msra.gmra.mrb[40].mxu0 %vm99_vm0, %v7591_v2 }
0x4f30   :  { %10250 = vmatpush3.bf16.msra.mxu0 %v11981_v12  ;;  %9852 = vmatprep.mubr.msk.f32.mxu0 %vm10853_vm1, %v13473_v63 }
0x4f31   :  { %10251 = vmatprep.subr.bf16.mxu0 %v13474_v30 }
0x4f34   :  { %10253 = vmatpush3.bf16.msra.mxu0 %v11994_v54 }
0x4f35   :  { %10260 = vmatprep.subr.bf16.mxu0 %v13474_v30 }
0x5002   :  { %v7660_v17 = vpop.f32.mrb[40].mxu0 }
0x5003   :  { %v7661_v35 = vadd.f32 %v12895_v39, %v7660_v17  ;;  %v9832_v52 = vpop.f32.mrb[41].mxu0 }
0x5005   :  { %v7665_v57 = vrot.slane %v7661_v35, 4  ;;  %v7666_v0 = vrot.slane %v7661_v35, 5 }
0x5007   :  { %7685 = vrot.lane.b32.xlu0 %v7666_v0, %s10856_s0  ;;  %7683 = vrot.lane.b32.xlu1 %v7665_v57, %s10856_s0  ;;  %v7669_v49 = vadd.f32 %v7665_v57, %v12098_v53  ;;  %v7670_v42 = vadd.f32 %v7666_v0, %v12101_v36  ;;  %v7706_v57 = vrot.slane %v12824_v41, %v13489_v22 }
0x5009   :  { %v8992_v13 = vmul.f32 -1.442695, %v7669_v49  ;;  %v8993_v47 = vmul.f32 -1.442695, %v7670_v42 }
0x500b   :  { %10770 = vpow2.f32 %v8992_v13 }
0x500c   :  { %10772 = vpow2.f32 %v8993_v47 }
0x5015   :  { %v10771_v29 = vpop.eup %10770 }
0x5016   :  { %v10773_v46 = vpop.eup %10772  ;;  %v7677_v7 = vadd.f32 1.0, %v10771_v29 }
0x5017   :  { %v7678_v48 = vadd.f32 1.0, %v10773_v46  ;;  %v7710_v46 = vrot.slane %v12826_v37, %v13489_v22 }
0x5018   :  { %10774 = vrcp.f32 %v7677_v7  ;;  %v13490_v7 = vld [vmem:[#allocation17_spill] sm:$0xff] }
0x5019   :  { %10776 = vrcp.f32 %v7678_v48  ;;  %v8044_v48 = vrot.slane %v12831_v11, %v13490_v7 }
0x5022   :  { %v10775_v45 = vpop.eup %10774 }
0x5023   :  { %v10777_v60 = vpop.eup %10776 }
0x5079   :  { %v7686_v38 = vpop.permute.xlu0 %7685  ;;  %v7684_v6 = vpop.permute.xlu1 %7683 }
0x507a   :  { %v7690_v9 = vmul.f32 %v10777_v60, %v7686_v38  ;;  %v7689_v10 = vmul.f32 %v10775_v45, %v7684_v6 }
0x507c   :  { %7695 = vrot.lane.b32.xlu0 %v7690_v9, %s10857_s14  ;;  %7693 = vrot.lane.b32.xlu1 %v7689_v10, %s10857_s14 }
0x50ee   :  { %v7696_v51 = vpop.permute.xlu0 %7695  ;;  %v7694_v27 = vpop.permute.xlu1 %7693 }
0x50ef   :  { %v7699_v34 = vadd.f32 %v7694_v27, %v12098_v53  ;;  %v7700_v50 = vadd.f32 %v7696_v51, %v12101_v36 }
0x50f1   :  { %10778 = vtanh.f32 %v7699_v34 }
0x50f2   :  { %10780 = vtanh.f32 %v7700_v50 }
0x50fb   :  { %v10779_v2 = vpop.eup %10778 }
0x50fc   :  { %v7716_v17 = vrot.slane %v10779_v2, %v13489_v22  ;;  %v10781_v35 = vpop.eup %10780 }
0x50fd   :  { %v7736_v52 = vrot.slane %v10781_v35, %v13489_v22  ;;  %v8048_v22 = vrot.slane %v12836_v58, %v13490_v7 }
0x50fe   :  { %7723 = vbcast.lane.b32.xlu0 %v7716_v17, 296  ;;  %7719 = vbcast.lane.b32.xlu1 %v7716_v17, 288 }
0x5102   :  { %7743 = vbcast.lane.b32.xlu0 %v7736_v52, 296  ;;  %7739 = vbcast.lane.b32.xlu1 %v7736_v52, 288 }
0x5106   :  { %7747 = vbcast.lane.b32.xlu0 %v7736_v52, 304  ;;  %7727 = vbcast.lane.b32.xlu1 %v7716_v17, 304 }
0x510a   :  { %7751 = vbcast.lane.b32.xlu0 %v7736_v52, 312  ;;  %7731 = vbcast.lane.b32.xlu1 %v7716_v17, 312 }
0x5170   :  { %v7724_v0 = vpop.permute.xlu0 %7723  ;;  %v7720_v49 = vpop.permute.xlu1 %7719 }
0x5171   :  { %v7762_v42 = vmul.f32 %v7724_v0, %v7706_v57  ;;  %v7761_v13 = vmul.f32 %v7720_v49, %v7706_v57 }
0x5173   :  { %v7786_v47 = vadd.f32 %v13046_v18, %v7762_v42  ;;  %v7785_v29 = vadd.f32 %v13048_v3, %v7761_v13 }
0x5174   :  { %v7744_v45 = vpop.permute.xlu0 %7743  ;;  %v7740_v60 = vpop.permute.xlu1 %7739 }
0x5175   :  { %v7766_v38 = vmul.f32 %v7744_v45, %v7710_v46  ;;  %v7765_v6 = vmul.f32 %v7740_v60, %v7710_v46  ;;  %7805 = vperm.xlu0 %10314, %v7786_v47   ;;  %7802 = vperm.xlu1 %10315, %v7785_v29   ;;  %v13111_v9 = vmul.f32 %v8044_v48, %v7786_v47 }
0x5176   :  { %v13113_v10 = vmul.f32 %v8044_v48, %v7785_v29 }
0x5177   :  { %v7790_v18 = vadd.f32 %v13054_v61, %v7766_v38  ;;  %v7789_v3 = vadd.f32 %v13056_v28, %v7765_v6 }
0x5178   :  { %v7748_v51 = vpop.permute.xlu0 %7747  ;;  %v7728_v27 = vpop.permute.xlu1 %7727 }
0x5179   :  { %v7767_v34 = vmul.f32 %v7748_v51, %v7710_v46  ;;  %v7763_v50 = vmul.f32 %v7728_v27, %v7706_v57  ;;  %7817 = vperm.xlu0 %10314, %v7790_v18   ;;  %7814 = vperm.xlu1 %10315, %v7789_v3   ;;  %v13119_v2 = vmul.f32 %v8048_v22, %v7790_v18 }
0x517a   :  { %v13121_v17 = vmul.f32 %v8048_v22, %v7789_v3 }
0x517b   :  { %v7791_v35 = vadd.f32 %v13060_v62, %v7767_v34  ;;  %v7787_v52 = vadd.f32 %v13062_v20, %v7763_v50 }
0x517c   :  { %v7752_v61 = vpop.permute.xlu0 %7751  ;;  %v7732_v0 = vpop.permute.xlu1 %7731 }
0x517d   :  { %v7768_v28 = vmul.f32 %v7752_v61, %v7710_v46  ;;  %v7764_v49 = vmul.f32 %v7732_v0, %v7706_v57  ;;  %7820 = vperm.xlu0 %10314, %v7791_v35   ;;  %7808 = vperm.xlu1 %10315, %v7787_v52   ;;  %v13125_v42 = vmul.f32 %v8048_v22, %v7791_v35 }
0x517e   :  { %v13127_v13 = vmul.f32 %v8044_v48, %v7787_v52 }
0x517f   :  { %v7792_v47 = vadd.f32 %v13066_v32, %v7768_v28  ;;  %v7788_v29 = vadd.f32 %v13068_v5, %v7764_v49 }
0x5181   :  { %7823 = vperm.xlu0 %10314, %v7792_v47   ;;  %7811 = vperm.xlu1 %10315, %v7788_v29   ;;  %v13131_v45 = vmul.f32 %v8048_v22, %v7792_v47  ;;  %v13133_v62 = vmul.f32 %v8044_v48, %v7788_v29 }
0x51f4   :  { %v7806_v20 = vpop.permute.xlu0 %7805  ;;  %v7803_v60 = vpop.permute.xlu1 %7802 }
0x51f5   :  { %v7832_v18 = vrot.slane %v7806_v20, %v12189_v16  ;;  %v7828_v3 = vrot.slane %v7803_v60, %v12077_v21 }
0x51f7   :  { %v7833_v34 = vsel %vm4403_vm14, %v7832_v18, %v7828_v3 }
0x51f8   :  { %v7818_v46 = vpop.permute.xlu0 %7817  ;;  %v7815_v57 = vpop.permute.xlu1 %7814 }
0x51f9   :  { %v7851_v32 = vrot.slane %v7818_v46, %v12189_v16  ;;  %v7847_v5 = vrot.slane %v7815_v57, %v12077_v21 }
0x51fb   :  { %v7852_v50 = vsel %vm4403_vm14, %v7851_v32, %v7847_v5 }
0x51fc   :  { %v7821_v38 = vpop.permute.xlu0 %7820  ;;  %v7809_v6 = vpop.permute.xlu1 %7808 }
0x51fd   :  { %v7856_v51 = vrot.slane %v7821_v38, %v12192_v4  ;;  %v7837_v22 = vrot.slane %v7809_v6, %v12192_v4 }
0x51ff   :  { %v7857_v61 = vsel %vm4410_vm15, %v7856_v51, %v7852_v50  ;;  %v7838_v0 = vsel %vm4410_vm15, %v7837_v22, %v7833_v34 }
0x5200   :  { %v7824_v48 = vpop.permute.xlu0 %7823  ;;  %v7812_v27 = vpop.permute.xlu1 %7811 }
0x5201   :  { %v7861_v35 = vrot.slane %v7824_v48, %v12199_v33  ;;  %v7842_v52 = vrot.slane %v7812_v27, %v12199_v33 }
0x5203   :  { %v7862_v28 = vsel %vm4417_vm3, %v7861_v35, %v7857_v61  ;;  %v7843_v49 = vsel %vm4417_vm3, %v7842_v52, %v7838_v0 }
0x5204   :  { %v7863_v47 = vsel %vm564_vm2, %v7862_v28, %v7843_v49 }
0x5205   :  { %9842 = vmatmul.mubr.msk.f32.vlgmr.msra.gmra.mrb[44].mxu1 %vm99_vm0, %v7863_v47 }
0x5206   :  { %10256 = vmatpush3.bf16.msra.mxu1 %v11981_v12  ;;  %9863 = vmatprep.mubr.msk.f32.mxu1 %vm10853_vm1, %v13473_v63 }
0x5207   :  { %10257 = vmatprep.subr.bf16.mxu1 %v13474_v30 }
0x520a   :  { %10259 = vmatpush3.bf16.msra.mxu1 %v11994_v54 }
0x520b   :  { %10278 = vmatprep.subr.bf16.mxu1 %v13474_v30 }
0x52d8   :  { %v7932_v29 = vpop.f32.mrb[44].mxu1 }
0x52d9   :  { %v7933_v20 = vadd.f32 %v12895_v39, %v7932_v29  ;;  %v9843_v60 = vpop.f32.mrb[45].mxu1  ;;  %v7978_v29 = vrot.slane %v12824_v41, %v13490_v7 }
0x52db   :  { %v7937_v46 = vrot.slane %v7933_v20, 3  ;;  %v7938_v57 = vrot.slane %v7933_v20, 4 }
0x52dd   :  { %7957 = vrot.lane.b32.xlu0 %v7938_v57, %s10856_s0  ;;  %7955 = vrot.lane.b32.xlu1 %v7937_v46, %s10856_s0  ;;  %v7941_v12 = vadd.f32 %v7937_v46, %v12098_v53  ;;  %v7942_v38 = vadd.f32 %v7938_v57, %v12101_v36 }
0x52df   :  { %v8995_v6 = vmul.f32 -1.442695, %v7941_v12  ;;  %v8996_v18 = vmul.f32 -1.442695, %v7942_v38 }
0x52e1   :  { %10782 = vpow2.f32 %v8995_v6  ;;  %v7982_v6 = vrot.slane %v12826_v37, %v13490_v7 }
0x52e2   :  { %10784 = vpow2.f32 %v8996_v18  ;;  %v8316_v18 = vrot.slane %v12831_v11, %v12511_v1 }
0x52eb   :  { %v10783_v54 = vpop.eup %10782 }
0x52ec   :  { %v10785_v3 = vpop.eup %10784  ;;  %v7949_v32 = vadd.f32 1.0, %v10783_v54 }
0x52ed   :  { %v7950_v5 = vadd.f32 1.0, %v10785_v3 }
0x52ee   :  { %10786 = vrcp.f32 %v7949_v32 }
0x52ef   :  { %10788 = vrcp.f32 %v7950_v5 }
0x52f8   :  { %v10787_v39 = vpop.eup %10786 }
0x52f9   :  { %v10789_v51 = vpop.eup %10788 }
0x534f   :  { %v7958_v22 = vpop.permute.xlu0 %7957  ;;  %v7956_v48 = vpop.permute.xlu1 %7955 }
0x5350   :  { %v7962_v27 = vmul.f32 %v10789_v51, %v7958_v22  ;;  %v7961_v34 = vmul.f32 %v10787_v39, %v7956_v48 }
0x5352   :  { %7967 = vrot.lane.b32.xlu0 %v7962_v27, %s10857_s14  ;;  %7965 = vrot.lane.b32.xlu1 %v7961_v34, %s10857_s14 }
0x53c4   :  { %v7968_v50 = vpop.permute.xlu0 %7967  ;;  %v7966_v35 = vpop.permute.xlu1 %7965 }
0x53c5   :  { %v7971_v52 = vadd.f32 %v7966_v35, %v12098_v53  ;;  %v7972_v61 = vadd.f32 %v7968_v50, %v12101_v36 }
0x53c7   :  { %10790 = vtanh.f32 %v7971_v52 }
0x53c8   :  { %10792 = vtanh.f32 %v7972_v61 }
0x53d1   :  { %v10791_v0 = vpop.eup %10790 }
0x53d2   :  { %v7988_v28 = vrot.slane %v10791_v0, %v13490_v7  ;;  %v10793_v49 = vpop.eup %10792 }
0x53d3   :  { %v8008_v47 = vrot.slane %v10793_v49, %v13490_v7  ;;  %v8320_v7 = vrot.slane %v12836_v58, %v12511_v1 }
0x53d4   :  { %7995 = vbcast.lane.b32.xlu0 %v7988_v28, 296  ;;  %7991 = vbcast.lane.b32.xlu1 %v7988_v28, 288 }
0x53d8   :  { %8015 = vbcast.lane.b32.xlu0 %v8008_v47, 296  ;;  %8011 = vbcast.lane.b32.xlu1 %v8008_v47, 288 }
0x53dc   :  { %8019 = vbcast.lane.b32.xlu0 %v8008_v47, 304  ;;  %7999 = vbcast.lane.b32.xlu1 %v7988_v28, 304 }
0x53e0   :  { %8023 = vbcast.lane.b32.xlu0 %v8008_v47, 312  ;;  %8003 = vbcast.lane.b32.xlu1 %v7988_v28, 312 }
0x5446   :  { %v7996_v20 = vpop.permute.xlu0 %7995  ;;  %v7992_v60 = vpop.permute.xlu1 %7991 }
0x5447   :  { %v8034_v46 = vmul.f32 %v7996_v20, %v7978_v29  ;;  %v8033_v57 = vmul.f32 %v7992_v60, %v7978_v29 }
0x5449   :  { %v8058_v12 = vadd.f32 %v13111_v9, %v8034_v46  ;;  %v8057_v38 = vadd.f32 %v13113_v10, %v8033_v57 }
0x544a   :  { %v8016_v54 = vpop.permute.xlu0 %8015  ;;  %v8012_v3 = vpop.permute.xlu1 %8011 }
0x544b   :  { %v8038_v32 = vmul.f32 %v8016_v54, %v7982_v6  ;;  %v8037_v5 = vmul.f32 %v8012_v3, %v7982_v6  ;;  %8077 = vperm.xlu0 %10314, %v8058_v12   ;;  %8074 = vperm.xlu1 %10315, %v8057_v38   ;;  %v13176_v39 = vmul.f32 %v8316_v18, %v8058_v12 }
0x544c   :  { %v13178_v51 = vmul.f32 %v8316_v18, %v8057_v38 }
0x544d   :  { %v8062_v9 = vadd.f32 %v13119_v2, %v8038_v32  ;;  %v8061_v10 = vadd.f32 %v13121_v17, %v8037_v5 }
0x544e   :  { %v8020_v22 = vpop.permute.xlu0 %8019  ;;  %v8000_v48 = vpop.permute.xlu1 %7999 }
0x544f   :  { %v8039_v27 = vmul.f32 %v8020_v22, %v7982_v6  ;;  %v8035_v34 = vmul.f32 %v8000_v48, %v7978_v29  ;;  %8089 = vperm.xlu0 %10314, %v8062_v9   ;;  %8086 = vperm.xlu1 %10315, %v8061_v10   ;;  %v13184_v50 = vmul.f32 %v8320_v7, %v8062_v9 }
0x5450   :  { %v13186_v35 = vmul.f32 %v8320_v7, %v8061_v10 }
0x5451   :  { %v8063_v52 = vadd.f32 %v13125_v42, %v8039_v27  ;;  %v8059_v61 = vadd.f32 %v13127_v13, %v8035_v34 }
0x5452   :  { %v8024_v2 = vpop.permute.xlu0 %8023  ;;  %v8004_v0 = vpop.permute.xlu1 %8003 }
0x5453   :  { %v8040_v17 = vmul.f32 %v8024_v2, %v7982_v6  ;;  %v8036_v28 = vmul.f32 %v8004_v0, %v7978_v29  ;;  %8092 = vperm.xlu0 %10314, %v8063_v52   ;;  %8080 = vperm.xlu1 %10315, %v8059_v61   ;;  %v13190_v49 = vmul.f32 %v8320_v7, %v8063_v52 }
0x5454   :  { %v13192_v47 = vmul.f32 %v8316_v18, %v8059_v61 }
0x5455   :  { %v8064_v20 = vadd.f32 %v13131_v45, %v8040_v17  ;;  %v8060_v60 = vadd.f32 %v13133_v62, %v8036_v28 }
0x5457   :  { %8095 = vperm.xlu0 %10314, %v8064_v20   ;;  %8083 = vperm.xlu1 %10315, %v8060_v60   ;;  %v13196_v46 = vmul.f32 %v8320_v7, %v8064_v20  ;;  %v13198_v42 = vmul.f32 %v8316_v18, %v8060_v60 }
0x54ca   :  { %v8078_v13 = vpop.permute.xlu0 %8077  ;;  %v8075_v57 = vpop.permute.xlu1 %8074 }
0x54cb   :  { %v8104_v54 = vrot.slane %v8078_v13, %v12189_v16  ;;  %v8100_v3 = vrot.slane %v8075_v57, %v12077_v21 }
0x54cd   :  { %v8105_v10 = vsel %vm4403_vm14, %v8104_v54, %v8100_v3 }
0x54ce   :  { %v8090_v12 = vpop.permute.xlu0 %8089  ;;  %v8087_v29 = vpop.permute.xlu1 %8086 }
0x54cf   :  { %v8123_v45 = vrot.slane %v8090_v12, %v12189_v16  ;;  %v8119_v62 = vrot.slane %v8087_v29, %v12077_v21 }
0x54d1   :  { %v8124_v7 = vsel %vm4403_vm14, %v8123_v45, %v8119_v62 }
0x54d2   :  { %v8093_v38 = vpop.permute.xlu0 %8092  ;;  %v8081_v6 = vpop.permute.xlu1 %8080 }
0x54d3   :  { %v8128_v32 = vrot.slane %v8093_v38, %v12192_v4  ;;  %v8109_v5 = vrot.slane %v8081_v6, %v12192_v4 }
0x54d5   :  { %v8129_v27 = vsel %vm4410_vm15, %v8128_v32, %v8124_v7  ;;  %v8110_v34 = vsel %vm4410_vm15, %v8109_v5, %v8105_v10 }
0x54d6   :  { %v8096_v18 = vpop.permute.xlu0 %8095  ;;  %v8084_v9 = vpop.permute.xlu1 %8083 }
0x54d7   :  { %v8133_v22 = vrot.slane %v8096_v18, %v12199_v33  ;;  %v8114_v48 = vrot.slane %v8084_v9, %v12199_v33 }
0x54d9   :  { %v8134_v52 = vsel %vm4417_vm3, %v8133_v22, %v8129_v27  ;;  %v8115_v61 = vsel %vm4417_vm3, %v8114_v48, %v8110_v34  ;;  %v8250_v48 = vrot.slane %v12824_v41, %v12511_v1 }
0x54da   :  { %v8135_v2 = vsel %vm564_vm2, %v8134_v52, %v8115_v61 }
0x54db   :  { %9853 = vmatmul.mubr.msk.f32.vlgmr.msra.gmra.mrb[42].mxu0 %vm99_vm0, %v8135_v2 }
0x54dc   :  { %10262 = vmatpush3.bf16.msra.mxu0 %v12661_v8  ;;  %9890 = vmatprep.mubr.msk.f32.mxu0 %vm10853_vm1, %v13473_v63 }
0x54dd   :  { %10263 = vmatprep.subr.bf16.mxu0 %v13474_v30 }
0x54e0   :  { %10265 = vmatpush3.bf16.msra.mxu0 %v12673_v14  ;;  %v13232_v14 = vld [vmem:[%s13410_s21] ss:$0 sm:$0xff] }
0x54e1   :  { %10266 = vmatprep.subr.bf16.mxu0 %v13474_v30 }
0x54e4   :  { %10268 = vmatpush3.bf16.msra.mxu0 %v12682_v24 }
0x54e5   :  { %10269 = vmatprep.subr.bf16.mxu0 %v13474_v30 }
0x54e8   :  { %10271 = vmatpush3.bf16.msra.mxu0 %v12694_v55 }
0x54e9   :  { %10272 = vmatprep.subr.bf16.mxu0 %v13474_v30 }
0x54ec   :  { %10274 = vmatpush3.bf16.msra.mxu0 %v12708_v25 }
0x54ed   :  { %10275 = vmatprep.subr.bf16.mxu0 %v13474_v30 }
0x54f0   :  { %10277 = vmatpush3.bf16.msra.mxu0 %v12722_v40 }
0x55ae   :  { %v8204_v8 = vpop.f32.mrb[42].mxu0 }
0x55af   :  { %v8205_v24 = vadd.f32 %v13232_v14, %v8204_v8  ;;  %v9854_v0 = vpop.f32.mrb[43].mxu0 }
0x55b0   :  { %v8588_v0 = vrot.slane %v12831_v11, %v11870_v56 }
0x55b1   :  { %v8209_v17 = vrot.slane %v8205_v24, 2  ;;  %v8210_v28 = vrot.slane %v8205_v24, 3  ;;  %v8254_v24 = vrot.slane %v12826_v37, %v12511_v1 }
0x55b3   :  { %8229 = vrot.lane.b32.xlu0 %v8210_v28, %s10856_s0  ;;  %8227 = vrot.lane.b32.xlu1 %v8209_v17, %s10856_s0  ;;  %v8213_v55 = vadd.f32 %v8209_v17, %v12098_v53  ;;  %v8214_v25 = vadd.f32 %v8210_v28, %v12101_v36 }
0x55b5   :  { %v8998_v40 = vmul.f32 -1.442695, %v8213_v55  ;;  %v8999_v20 = vmul.f32 -1.442695, %v8214_v25 }
0x55b7   :  { %10794 = vpow2.f32 %v8998_v40 }
0x55b8   :  { %10796 = vpow2.f32 %v8999_v20 }
0x55c1   :  { %v10795_v60 = vpop.eup %10794 }
0x55c2   :  { %v10797_v13 = vpop.eup %10796  ;;  %v8221_v57 = vadd.f32 1.0, %v10795_v60 }
0x55c3   :  { %v8222_v12 = vadd.f32 1.0, %v10797_v13 }
0x55c4   :  { %10798 = vrcp.f32 %v8221_v57 }
0x55c5   :  { %10800 = vrcp.f32 %v8222_v12 }
0x55ce   :  { %v10799_v29 = vpop.eup %10798 }
0x55cf   :  { %v10801_v38 = vpop.eup %10800 }
0x5625   :  { %v8230_v6 = vpop.permute.xlu0 %8229  ;;  %v8228_v54 = vpop.permute.xlu1 %8227 }
0x5626   :  { %v8234_v3 = vmul.f32 %v10801_v38, %v8230_v6  ;;  %v8233_v45 = vmul.f32 %v10799_v29, %v8228_v54 }
0x5628   :  { %8239 = vrot.lane.b32.xlu0 %v8234_v3, %s10857_s14  ;;  %8237 = vrot.lane.b32.xlu1 %v8233_v45, %s10857_s14 }
0x569a   :  { %v8240_v62 = vpop.permute.xlu0 %8239  ;;  %v8238_v32 = vpop.permute.xlu1 %8237 }
0x569b   :  { %v8243_v5 = vadd.f32 %v8238_v32, %v12098_v53  ;;  %v8244_v18 = vadd.f32 %v8240_v62, %v12101_v36 }
0x569d   :  { %10802 = vtanh.f32 %v8243_v5 }
0x569e   :  { %10804 = vtanh.f32 %v8244_v18 }
0x56a7   :  { %v10803_v9 = vpop.eup %10802 }
0x56a8   :  { %v8260_v10 = vrot.slane %v10803_v9, %v12511_v1  ;;  %v10805_v7 = vpop.eup %10804 }
0x56a9   :  { %v8280_v22 = vrot.slane %v10805_v7, %v12511_v1  ;;  %v8592_v1 = vrot.slane %v12836_v58, %v11870_v56 }
0x56aa   :  { %8267 = vbcast.lane.b32.xlu0 %v8260_v10, 296  ;;  %8263 = vbcast.lane.b32.xlu1 %v8260_v10, 288 }
0x56ae   :  { %8287 = vbcast.lane.b32.xlu0 %v8280_v22, 296  ;;  %8283 = vbcast.lane.b32.xlu1 %v8280_v22, 288 }
0x56b2   :  { %8291 = vbcast.lane.b32.xlu0 %v8280_v22, 304  ;;  %8271 = vbcast.lane.b32.xlu1 %v8260_v10, 304 }
0x56b6   :  { %8295 = vbcast.lane.b32.xlu0 %v8280_v22, 312  ;;  %8275 = vbcast.lane.b32.xlu1 %v8260_v10, 312 }
0x571c   :  { %v8268_v27 = vpop.permute.xlu0 %8267  ;;  %v8264_v34 = vpop.permute.xlu1 %8263 }
0x571d   :  { %v8306_v52 = vmul.f32 %v8268_v27, %v8250_v48  ;;  %v8305_v61 = vmul.f32 %v8264_v34, %v8250_v48 }
0x571f   :  { %v8330_v2 = vadd.f32 %v13176_v39, %v8306_v52  ;;  %v8329_v8 = vadd.f32 %v13178_v51, %v8305_v61 }
0x5720   :  { %v8288_v17 = vpop.permute.xlu0 %8287  ;;  %v8284_v28 = vpop.permute.xlu1 %8283 }
0x5721   :  { %v8310_v55 = vmul.f32 %v8288_v17, %v8254_v24  ;;  %v8309_v25 = vmul.f32 %v8284_v28, %v8254_v24  ;;  %8349 = vperm.xlu0 %10314, %v8330_v2   ;;  %8346 = vperm.xlu1 %10315, %v8329_v8   ;;  %v13253_v40 = vmul.f32 %v8588_v0, %v8330_v2 }
0x5722   :  { %v13255_v20 = vmul.f32 %v8588_v0, %v8329_v8 }
0x5723   :  { %v8334_v39 = vadd.f32 %v13184_v50, %v8310_v55  ;;  %v8333_v51 = vadd.f32 %v13186_v35, %v8309_v25 }
0x5724   :  { %v8292_v60 = vpop.permute.xlu0 %8291  ;;  %v8272_v13 = vpop.permute.xlu1 %8271 }
0x5725   :  { %v8311_v11 = vmul.f32 %v8292_v60, %v8254_v24  ;;  %v8307_v57 = vmul.f32 %v8272_v13, %v8250_v48  ;;  %8361 = vperm.xlu0 %10314, %v8334_v39   ;;  %8358 = vperm.xlu1 %10315, %v8333_v51   ;;  %v13261_v12 = vmul.f32 %v8592_v1, %v8334_v39 }
0x5726   :  { %v13263_v29 = vmul.f32 %v8592_v1, %v8333_v51 }
0x5727   :  { %v8335_v38 = vadd.f32 %v13190_v49, %v8311_v11  ;;  %v8331_v6 = vadd.f32 %v13192_v47, %v8307_v57 }
0x5728   :  { %v8296_v50 = vpop.permute.xlu0 %8295  ;;  %v8276_v54 = vpop.permute.xlu1 %8275 }
0x5729   :  { %v8312_v35 = vmul.f32 %v8296_v50, %v8254_v24  ;;  %v8308_v3 = vmul.f32 %v8276_v54, %v8250_v48  ;;  %8364 = vperm.xlu0 %10314, %v8335_v38   ;;  %8352 = vperm.xlu1 %10315, %v8331_v6   ;;  %v13267_v58 = vmul.f32 %v8592_v1, %v8335_v38 }
0x572a   :  { %v13269_v45 = vmul.f32 %v8588_v0, %v8331_v6 }
0x572b   :  { %v8336_v62 = vadd.f32 %v13196_v46, %v8312_v35  ;;  %v8332_v32 = vadd.f32 %v13198_v42, %v8308_v3 }
0x572d   :  { %8367 = vperm.xlu0 %10314, %v8336_v62   ;;  %8355 = vperm.xlu1 %10315, %v8332_v32   ;;  %v13273_v5 = vmul.f32 %v8592_v1, %v8336_v62  ;;  %v13275_v49 = vmul.f32 %v8588_v0, %v8332_v32 }
0x57a0   :  { %v8350_v47 = vpop.permute.xlu0 %8349  ;;  %v8347_v18 = vpop.permute.xlu1 %8346 }
0x57a1   :  { %v8376_v48 = vrot.slane %v8350_v47, %v12189_v16  ;;  %v8372_v27 = vrot.slane %v8347_v18, %v12077_v21 }
0x57a3   :  { %v8377_v8 = vsel %vm4403_vm14, %v8376_v48, %v8372_v27 }
0x57a4   :  { %v8362_v9 = vpop.permute.xlu0 %8361  ;;  %v8359_v10 = vpop.permute.xlu1 %8358 }
0x57a5   :  { %v8395_v46 = vrot.slane %v8362_v9, %v12189_v16  ;;  %v8391_v42 = vrot.slane %v8359_v10, %v12077_v21 }
0x57a7   :  { %v8396_v24 = vsel %vm4403_vm14, %v8395_v46, %v8391_v42 }
0x57a8   :  { %v8365_v7 = vpop.permute.xlu0 %8364  ;;  %v8353_v22 = vpop.permute.xlu1 %8352 }
0x57a9   :  { %v8400_v34 = vrot.slane %v8365_v7, %v12192_v4  ;;  %v8381_v52 = vrot.slane %v8353_v22, %v12192_v4 }
0x57ab   :  { %v8401_v28 = vsel %vm4410_vm15, %v8400_v34, %v8396_v24  ;;  %v8382_v16 = vsel %vm4410_vm15, %v8381_v52, %v8377_v8 }
0x57ac   :  { %v8368_v61 = vpop.permute.xlu0 %8367  ;;  %v8356_v2 = vpop.permute.xlu1 %8355 }
0x57ad   :  { %v8405_v0 = vrot.slane %v8368_v61, %v12199_v33  ;;  %v8386_v17 = vrot.slane %v8356_v2, %v12199_v33  ;;  %v8526_v2 = vrot.slane %v12826_v37, %v11870_v56 }
0x57af   :  { %v8406_v21 = vsel %vm4417_vm3, %v8405_v0, %v8401_v28  ;;  %v8387_v55 = vsel %vm4417_vm3, %v8386_v17, %v8382_v16 }
0x57b0   :  { %v8407_v4 = vsel %vm564_vm2, %v8406_v21, %v8387_v55 }
0x57b1   :  { %9864 = vmatmul.mubr.msk.f32.vlgmr.msra.gmra.mrb[46].mxu1 %vm99_vm0, %v8407_v4 }
0x57b2   :  { %9909 = vmatprep.mubr.msk.f32.mxu1 %vm10853_vm1, %v13473_v63  ;;  %vm8853_vm1 = vcmask 9216  }
0x5884   :  { %v8476_v25 = vpop.f32.mrb[46].mxu1 }
0x5885   :  { %v8477_v39 = vadd.f32 %v13232_v14, %v8476_v25  ;;  %v9865_v51 = vpop.f32.mrb[47].mxu1 }
0x5886   :  { %v8681_v51 = vrot.slane %v11884_v44, 7  ;;  %v8767_v44 = vld [vmem:[%s13413_s24 + $0x10] sm:$0xff] }
0x5887   :  { %v8481_v33 = vrot.slane %v8477_v39, 1  ;;  %v8482_v1 = vrot.slane %v8477_v39, 2 }
0x5889   :  { %8501 = vrot.lane.b32.xlu0 %v8482_v1, %s10856_s0  ;;  %8499 = vrot.lane.b32.xlu1 %v8481_v33, %s10856_s0  ;;  %v8485_v60 = vadd.f32 %v8481_v33, %v12098_v53  ;;  %v8486_v13 = vadd.f32 %v8482_v1, %v12101_v36  ;;  %v8682_v33 = vrot.slane %v11873_v23, 6  ;;  %v8768_v23 = vld [vmem:[%s13413_s24 + $0x18] sm:$0xff] }
0x588a   :  { %v10282_v1 = vpack.c.bf16 %v8768_v23, %v8767_v44 }
0x588b   :  { %v9001_v11 = vmul.f32 -1.442695, %v8485_v60  ;;  %v9002_v57 = vmul.f32 -1.442695, %v8486_v13  ;;  %v8769_v60 = vld [vmem:[%s13413_s24 + $0x20] sm:$0xff]  ;;  %v8770_v13 = vld [vmem:[%s13413_s24 + $0x28] sm:$0xff] }
0x588d   :  { %10806 = vpow2.f32 %v9001_v11  ;;  %v10285_v11 = vpack.c.bf16 %v8770_v13, %v8769_v60 }
0x588e   :  { %10808 = vpow2.f32 %v9002_v57 }
0x5897   :  { %v10807_v38 = vpop.eup %10806 }
0x5898   :  { %v10809_v63 = vpop.eup %10808  ;;  %v8493_v6 = vadd.f32 1.0, %v10807_v38 }
0x5899   :  { %v8494_v50 = vadd.f32 1.0, %v10809_v63 }
0x589a   :  { %10810 = vrcp.f32 %v8493_v6 }
0x589b   :  { %10812 = vrcp.f32 %v8494_v50 }
0x58a4   :  { %v10811_v14 = vpop.eup %10810 }
0x58a5   :  { %v10813_v54 = vpop.eup %10812 }
0x58fb   :  { %v8502_v35 = vpop.permute.xlu0 %8501  ;;  %v8500_v3 = vpop.permute.xlu1 %8499 }
0x58fc   :  { %v8506_v62 = vmul.f32 %v10813_v54, %v8502_v35  ;;  %v8505_v32 = vmul.f32 %v10811_v14, %v8500_v3 }
0x58fe   :  { %8511 = vrot.lane.b32.xlu0 %v8506_v62, %s10857_s14  ;;  %8509 = vrot.lane.b32.xlu1 %v8505_v32, %s10857_s14 }
0x5970   :  { %v8512_v47 = vpop.permute.xlu0 %8511  ;;  %v8510_v18 = vpop.permute.xlu1 %8509 }
0x5971   :  { %v8515_v9 = vadd.f32 %v8510_v18, %v12098_v53  ;;  %v8516_v10 = vadd.f32 %v8512_v47, %v12101_v36  ;;  %v8522_v53 = vrot.slane %v12824_v41, %v11870_v56 }
0x5973   :  { %10814 = vtanh.f32 %v8515_v9 }
0x5974   :  { %10816 = vtanh.f32 %v8516_v10 }
0x597d   :  { %v10815_v7 = vpop.eup %10814 }
0x597e   :  { %v8532_v22 = vrot.slane %v10815_v7, %v11870_v56  ;;  %v10817_v48 = vpop.eup %10816 }
0x597f   :  { %v8552_v27 = vrot.slane %v10817_v48, %v11870_v56 }
0x5980   :  { %8539 = vbcast.lane.b32.xlu0 %v8532_v22, 296  ;;  %8535 = vbcast.lane.b32.xlu1 %v8532_v22, 288 }
0x5984   :  { %8559 = vbcast.lane.b32.xlu0 %v8552_v27, 296  ;;  %8555 = vbcast.lane.b32.xlu1 %v8552_v27, 288 }
0x5988   :  { %8563 = vbcast.lane.b32.xlu0 %v8552_v27, 304  ;;  %8543 = vbcast.lane.b32.xlu1 %v8532_v22, 304 }
0x598c   :  { %8567 = vbcast.lane.b32.xlu0 %v8552_v27, 312  ;;  %8547 = vbcast.lane.b32.xlu1 %v8532_v22, 312 }
0x59f2   :  { %v8540_v36 = vpop.permute.xlu0 %8539  ;;  %v8536_v46 = vpop.permute.xlu1 %8535 }
0x59f3   :  { %v8578_v42 = vmul.f32 %v8540_v36, %v8522_v53  ;;  %v8577_v34 = vmul.f32 %v8536_v46, %v8522_v53 }
0x59f5   :  { %v8602_v52 = vadd.f32 %v13253_v40, %v8578_v42  ;;  %v8601_v61 = vadd.f32 %v13255_v20, %v8577_v34  ;;  %v8772_v42 = vld [vmem:[%s13413_s24 + $0x38] sm:$0xff] }
0x59f6   :  { %v8560_v8 = vpop.permute.xlu0 %8559  ;;  %v8556_v24 = vpop.permute.xlu1 %8555 }
0x59f7   :  { %v8582_v0 = vmul.f32 %v8560_v8, %v8526_v2  ;;  %v8581_v17 = vmul.f32 %v8556_v24, %v8526_v2  ;;  %8621 = vperm.xlu0 %10314, %v8602_v52   ;;  %8618 = vperm.xlu1 %10315, %v8601_v61   ;;  %v9004_v24 = vld [vmem:[%s13414_s25] ss:$0 sm:$0xff] }
0x59f9   :  { %v8606_v28 = vadd.f32 %v13261_v12, %v8582_v0  ;;  %v8605_v41 = vadd.f32 %v13263_v29, %v8581_v17 }
0x59fa   :  { %v8564_v16 = vpop.permute.xlu0 %8563  ;;  %v8544_v21 = vpop.permute.xlu1 %8543 }
0x59fb   :  { %v8583_v55 = vmul.f32 %v8564_v16, %v8526_v2  ;;  %v8579_v4 = vmul.f32 %v8544_v21, %v8522_v53  ;;  %8633 = vperm.xlu0 %10314, %v8606_v28   ;;  %8630 = vperm.xlu1 %10315, %v8605_v41  }
0x59fd   :  { %v8607_v40 = vadd.f32 %v13267_v58, %v8583_v55  ;;  %v8603_v56 = vadd.f32 %v13269_v45, %v8579_v4  ;;  %v8683_v58 = vsel %vm564_vm2, %v8682_v33, %v8681_v51  ;;  %v8765_v45 = vld [vmem:[%s13413_s24] sm:$0xff] }
0x59fe   :  { %v8568_v37 = vpop.permute.xlu0 %8567  ;;  %v8548_v20 = vpop.permute.xlu1 %8547 }
0x59ff   :  { %v8584_v25 = vmul.f32 %v8568_v37, %v8526_v2  ;;  %v8580_v39 = vmul.f32 %v8548_v20, %v8522_v53  ;;  %8636 = vperm.xlu0 %10314, %v8607_v40   ;;  %8624 = vperm.xlu1 %10315, %v8603_v56  }
0x5a01   :  { %v8608_v12 = vadd.f32 %v13273_v5, %v8584_v25  ;;  %v8604_v29 = vadd.f32 %v13275_v49, %v8580_v39  ;;  %v8766_v5 = vld [vmem:[%s13413_s24 + $0x8] sm:$0xff] }
0x5a02   :  { %v10279_v49 = vpack.c.bf16 %v8766_v5, %v8765_v45 }
0x5a03   :  { %8639 = vperm.xlu0 %10314, %v8608_v12   ;;  %8627 = vperm.xlu1 %10315, %v8604_v29  }
0x5a04   :  { %10280 = vmatpush3.bf16.msra.mxu1 %v10279_v49 }
0x5a05   :  { %10281 = vmatprep.subr.bf16.mxu1 %v13474_v30 }
0x5a07   :  { %8684 = vrot.lane.b32.xlu1 %v8683_v58, %s10857_s14 }
0x5a08   :  { %10283 = vmatpush3.bf16.msra.mxu1 %v10282_v1 }
0x5a09   :  { %10284 = vmatprep.subr.bf16.mxu1 %v13474_v30 }
0x5a0c   :  { %10286 = vmatpush3.bf16.msra.mxu1 %v10285_v11 }
0x5a0d   :  { %10287 = vmatprep.subr.bf16.mxu1 %v13474_v30 }
0x5a76   :  { %v8622_v57 = vpop.permute.xlu0 %8621  ;;  %v8619_v38 = vpop.permute.xlu1 %8618 }
0x5a77   :  { %v8648_v54 = vrot.slane %v8622_v57, %v12731_v31  ;;  %v8644_v35 = vrot.slane %v8619_v38, %v12734_v15 }
0x5a79   :  { %v8649_v9 = vsel %vm6322_vm4, %v8648_v54, %v8644_v35 }
0x5a7a   :  { %v8634_v63 = vpop.permute.xlu0 %8633  ;;  %v8631_v6 = vpop.permute.xlu1 %8630 }
0x5a7b   :  { %v8667_v3 = vrot.slane %v8634_v63, %v12731_v31  ;;  %v8663_v62 = vrot.slane %v8631_v6, %v12734_v15 }
0x5a7d   :  { %v8668_v10 = vsel %vm6322_vm4, %v8667_v3, %v8663_v62 }
0x5a7e   :  { %v8637_v50 = vpop.permute.xlu0 %8636  ;;  %v8625_v14 = vpop.permute.xlu1 %8624 }
0x5a7f   :  { %v8672_v32 = vrot.slane %v8637_v50, %v12737_v26  ;;  %v8653_v47 = vrot.slane %v8625_v14, %v12737_v26 }
0x5a81   :  { %v8673_v48 = vsel %vm6329_vm5, %v8672_v32, %v8668_v10  ;;  %v8654_v31 = vsel %vm6329_vm5, %v8653_v47, %v8649_v9 }
0x5a82   :  { %v8640_v18 = vpop.permute.xlu0 %8639  ;;  %v8628_v30 = vpop.permute.xlu1 %8627 }
0x5a83   :  { %v8677_v7 = vrot.slane %v8640_v18, %v12740_v59  ;;  %v8658_v22 = vrot.slane %v8628_v30, %v12740_v59  ;;  %v8771_v59 = vld [vmem:[%s13413_s24 + $0x30] sm:$0xff]  ;;  %s8861_s24 = sshll.u32 %s10860_s8, 4  ;;  %s8862_s24 = int_to_ptr.vmem [resolvable:$true] %s8861_s24 }
0x5a84   :  { %v10288_v34 = vpack.c.bf16 %v8772_v42, %v8771_v59  ;;  %s10828_s23 = scalar_lea.vmem %s8862_s24, 32  ;;  %p10833_p1 = scmp.lt.s32.totalorder %s8862_s24, %s8862_s24 }
0x5a85   :  { %v8678_v15 = vsel %vm6336_vm6, %v8677_v7, %v8673_v48  ;;  %v8659_v27 = vsel %vm6336_vm6, %v8658_v22, %v8654_v31  ;;  %p10829_p0 = scmp.ne.s32.totalorder %s8862_s24, %s10828_s23  ;;  %p10834_p2 = scmp.lt.s32.totalorder %s10828_s23, %s10828_s23 }
0x5a86   :  { %v8679_v26 = vsel %vm564_vm2, %v8678_v15, %v8659_v27  ;;  %v8685_v53 = vpop.permute.xlu1 %8684  ;;  %10289 = vmatpush3.bf16.msra.mxu1 %v10288_v34 }
0x5a87   :  { %v8687_v36 = vsel %vm99_vm0, %v6453_v43, %v8679_v26  ;;  %p10835_p3 = por %p10834_p2, %p10833_p1 }
0x5a88   :  { %v8688_v46 = vsel %vm3977_vm11, %v8687_v36, %v8685_v53 }
0x5a89   :  { %9891 = vmatmul.mubr.msk.f32.vlgmr.msra.gmra.mrb[44].mxu0 %vm3980_vm12, %v8688_v46  ;;  %p10836_p4 = pnand %p10835_p3, %p10829_p0 }
0x5b5c   :  { %v8758_v52 = vpop.f32.mrb[44].mxu0 }
0x5b5d   :  { %v8759_v43 = vadd.f32 %v10827_v19, %v8758_v52  ;;  %v9892_v61 = vpop.f32.mrb[45].mxu0 }
0x5b5f   :  { %v8762_v2 = vmax.f32 %v8759_v43, 0.0 }
0x5b61   :  { %v8764_v8 = vsel %vm99_vm0, %v8762_v2, %v8683_v58 }
0x5b62   :  { %9910 = vmatmul.mubr.msk.f32.vlgmr.msra.gmra.mrb[48].mxu1 %vm3977_vm11, %v8764_v8 }
0x5c35   :  { %v8849_v0 = vpop.f32.mrb[48].mxu1 }
0x5c36   :  { %v8850_v17 = vadd.f32 %v9004_v24, %v8849_v0  ;;  %v9911_v28 = vpop.f32.mrb[49].mxu1 }
0x5c38   :  { %8854 = vst.msk [vmem:[#allocation5] sm:$0x3] %vm8853_vm1, %v8850_v17 }
0x5c39   :  { %10839 = shalt.err (!%p10836_p4)
}
0x5c3a   :  { %s10840_s15 = scalar_lea.hbm %s13415_s26, 32 }
0x5c3b   :  { %p10841_p5 = scmp.ne.s32.totalorder %s13415_s26, %s10840_s15  ;;  %p10844_p6 = scmp.lt.u32.totalorder %s10840_s15, %s13415_s26 }
0x5c3d   :  { %p10846_p7 = pnand %p10844_p6, %p10841_p5 }
0x5c3f   :  { %10849 = shalt.err (!%p10846_p7)
}
0x5c40   :  { %8864 = dma.vmem_to_hbm [thread:$0]  %s8862_s24, 32, %s13415_s26, [#allocation6]  }
0x5c41   :  { %10850 = dma.done.wait [#allocation6], 32  }
0x5c42   :  { %10851 = vsyncadd [#allocation6], 4294967264 }
0x5c43   :  { %8868 = vsyncpa [#allocation6], 1 }

</bundles_post_ra>
